<compile_context>
chip_gen: v7x
topology: tpu7x:2x2x1
jax: 0.10.0
libtpu: 0.0.40
codegen_flags: <defaults>
</compile_context>

<pallas_src>
import functools

import jax
import jax.numpy as jnp
from jax import lax
from jax.experimental import pallas as pl
from jax.experimental.pallas import tpu as pltpu


# ----------------------------------------------------------------------------
# Static sizing
# ----------------------------------------------------------------------------
N_POLICY = 73 * 64          # 4672 real policy logits
POLICY_NP = 4736            # padded N (multiple of 128)
POLICY_KP = 5120            # padded K (multiple of POLICY_TK)
POLICY_TK = 640             # K streaming block (bf16 weight block ~6 MB)
POLICY_TM = 16              # row tile for the tiny-M FC matmuls (bf16 packing)
TOWER_TM = 64               # row tile for the conv-tower matmuls (2 blocks @ B=2)


def _pad_to(n, m):
    return ((n + m - 1) // m) * m


# ----------------------------------------------------------------------------
# Pallas kernels
# ----------------------------------------------------------------------------
def _mm_bn_relu_kernel(x_ref, w_ref, s_ref, b_ref, o_ref):
    """relu((x @ w) * scale + shift); bf16 inputs, f32 accumulate."""
    acc = jnp.dot(x_ref[...], w_ref[...], preferred_element_type=jnp.float32)
    y = jnp.maximum(acc * s_ref[...] + b_ref[...], 0.0)
    o_ref[...] = y.astype(o_ref.dtype)


def _conv3_heads_kernel(x_ref, w3_ref, s3_ref, b3_ref,
                        wh_ref, sh_ref, bh_ref, o_ref):
    """Fused: conv3 (im2col matmul) -> BN/relu -> policy+value 1x1 convs -> BN/relu."""
    h = jnp.dot(x_ref[...], w3_ref[...], preferred_element_type=jnp.float32)
    h = jnp.maximum(h * s3_ref[...] + b3_ref[...], 0.0)
    g = jnp.dot(h.astype(jnp.bfloat16), wh_ref[...],
                preferred_element_type=jnp.float32)
    y = jnp.maximum(g * sh_ref[...] + bh_ref[...], 0.0)
    o_ref[...] = y.astype(o_ref.dtype)


def _policy_fc_logsoftmax_kernel(x_ref, w_ref, b_ref, o_ref, *, nk, n_valid):
    """K-streamed matmul accumulated directly into o_ref; fused bias +
    (column-masked) log_softmax epilogue on the full-row output tile."""
    k = pl.program_id(1)

    @pl.when(k == 0)
    def _():
        o_ref[...] = jnp.zeros_like(o_ref)

    o_ref[...] += jnp.dot(x_ref[...], w_ref[...],
                          preferred_element_type=jnp.float32)

    @pl.when(k == nk - 1)
    def _():
        y = o_ref[...] + b_ref[...]
        cols = lax.broadcasted_iota(jnp.int32, y.shape, 1)
        y = jnp.where(cols < n_valid, y, -1e30)          # mask padded logits
        m = jnp.max(y, axis=-1, keepdims=True)
        s = y - m
        lse = jnp.log(jnp.sum(jnp.exp(s), axis=-1, keepdims=True))
        o_ref[...] = s - lse


def _value_head_kernel(x_ref, w1_ref, b1_ref, w2_ref, b2_ref, o_ref):
    """Fused value fc1 (relu) + fc2 (tanh); everything fits a single VMEM block."""
    h = jnp.dot(x_ref[...], w1_ref[...], preferred_element_type=jnp.float32)
    h = jnp.maximum(h + b1_ref[...], 0.0)
    v = jnp.dot(h, w2_ref[...], preferred_element_type=jnp.float32)
    o_ref[...] = jnp.tanh(v + b2_ref[...])


# ----------------------------------------------------------------------------
# pallas_call wrappers
# ----------------------------------------------------------------------------
def conv_bn_relu(x_bf16, w_bf16, scale, shift):
    """x: (M, K) bf16 with M % 64 == 0; w: (K, N) bf16; scale/shift: (1, N) f32."""
    M, K = x_bf16.shape
    _, N = w_bf16.shape
    tm = TOWER_TM
    return pl.pallas_call(
        _mm_bn_relu_kernel,
        out_shape=jax.ShapeDtypeStruct((M, N), jnp.bfloat16),
        grid_spec=pltpu.PrefetchScalarGridSpec(
            num_scalar_prefetch=0,
            grid=(M // tm,),
            in_specs=[
                pl.BlockSpec((tm, K), lambda i: (i, 0)),
                pl.BlockSpec((K, N), lambda i: (0, 0)),
                pl.BlockSpec((1, N), lambda i: (0, 0)),
                pl.BlockSpec((1, N), lambda i: (0, 0)),
            ],
            out_specs=pl.BlockSpec((tm, N), lambda i: (i, 0)),
        ),
        compiler_params=pltpu.CompilerParams(
            dimension_semantics=("parallel",)),
    )(x_bf16, w_bf16, scale, shift)


def conv3_and_heads(cols_bf16, params):
    """Fused conv3 + (policy|value) 1x1 convs. cols: (B*64, 1152) bf16 ->
    (B*64, 128) bf16 where cols [:73]=policy channels, [73:105]=value channels."""
    M, K = cols_bf16.shape
    tm = TOWER_TM
    return pl.pallas_call(
        _conv3_heads_kernel,
        out_shape=jax.ShapeDtypeStruct((M, 128), jnp.bfloat16),
        grid_spec=pltpu.PrefetchScalarGridSpec(
            num_scalar_prefetch=0,
            grid=(M // tm,),
            in_specs=[
                pl.BlockSpec((tm, K), lambda i: (i, 0)),
                pl.BlockSpec((K, 128), lambda i: (0, 0)),
                pl.BlockSpec((1, 128), lambda i: (0, 0)),
                pl.BlockSpec((1, 128), lambda i: (0, 0)),
                pl.BlockSpec((128, 128), lambda i: (0, 0)),
                pl.BlockSpec((1, 128), lambda i: (0, 0)),
                pl.BlockSpec((1, 128), lambda i: (0, 0)),
            ],
            out_specs=pl.BlockSpec((tm, 128), lambda i: (i, 0)),
        ),
        compiler_params=pltpu.CompilerParams(
            dimension_semantics=("parallel",)),
    )(cols_bf16, params["conv3_w"], params["conv3_scale"], params["conv3_shift"],
      params["heads_w"], params["heads_scale"], params["heads_shift"])


def policy_fc_logsoftmax(x_bf16, w_bf16, bias):
    """x: (Mp, POLICY_KP) bf16, w: (POLICY_KP, POLICY_NP) bf16, bias: (1, POLICY_NP) f32.
    Returns f32 (Mp, POLICY_NP) log-probabilities (valid in [:, :N_POLICY])."""
    Mp = x_bf16.shape[0]
    tm, tk = POLICY_TM, POLICY_TK
    nk = POLICY_KP // tk
    kernel = functools.partial(_policy_fc_logsoftmax_kernel,
                               nk=nk, n_valid=N_POLICY)
    return pl.pallas_call(
        kernel,
        out_shape=jax.ShapeDtypeStruct((Mp, POLICY_NP), jnp.float32),
        grid_spec=pltpu.PrefetchScalarGridSpec(
            num_scalar_prefetch=0,
            grid=(Mp // tm, nk),
            in_specs=[
                pl.BlockSpec((tm, tk), lambda i, k: (i, k)),
                pl.BlockSpec((tk, POLICY_NP), lambda i, k: (k, 0)),
                pl.BlockSpec((1, POLICY_NP), lambda i, k: (0, 0)),
            ],
            out_specs=pl.BlockSpec((tm, POLICY_NP), lambda i, k: (i, 0)),
        ),
        compiler_params=pltpu.CompilerParams(
            dimension_semantics=("parallel", "arbitrary"),
            vmem_limit_bytes=32 * 1024 * 1024),
    )(x_bf16, w_bf16, bias)


def value_head(x_bf16, w1, b1, w2, b2):
    """x: (Mp, 2048) bf16 -> tanh(relu(x@w1+b1)@w2+b2), (Mp, 128) f32 (col 0 valid)."""
    Mp = x_bf16.shape[0]
    return pl.pallas_call(
        _value_head_kernel,
        out_shape=jax.ShapeDtypeStruct((Mp, 128), jnp.float32),
    )(x_bf16, w1, b1, w2, b2)


# ----------------------------------------------------------------------------
# Conv lowering helpers (glue, plain JAX)
# ----------------------------------------------------------------------------
def im2col_3x3(x):
    """x: (B, 8, 8, C) NHWC -> (B*64, 9*C) patches for a 3x3 / pad=1 conv."""
    B, H, W, C = x.shape
    xp = jnp.pad(x, ((0, 0), (1, 1), (1, 1), (0, 0)))
    cols = []
    for ky in range(3):
        for kx in range(3):
            cols.append(xp[:, ky:ky + H, kx:kx + W, :])
    patches = jnp.stack(cols, axis=3)          # (B, H, W, 9, C)
    return patches.reshape(B * H * W, 9 * C)


def fold_bn(gamma, beta, mean, var, conv_bias, eps=1e-5):
    """Fold eval-mode BatchNorm (+ preceding conv bias) into scale/shift."""
    scale = gamma / jnp.sqrt(var + eps)
    shift = beta + scale * (conv_bias - mean)
    return scale, shift


# ----------------------------------------------------------------------------
# Parameter init (deterministic, synthetic) + one-time prep (pad/permute/cast)
# ----------------------------------------------------------------------------
def init_params(key):
    p = {}

    def normal(k, shape, scale=0.02):
        return scale * jax.random.normal(k, shape, dtype=jnp.float32)

    keys = iter(jax.random.split(key, 64))

    def bn_params(k, c):
        k1, k2, k3, k4 = jax.random.split(k, 4)
        gamma = 1.0 + 0.1 * jax.random.normal(k1, (c,), dtype=jnp.float32)
        beta = 0.05 * jax.random.normal(k2, (c,), dtype=jnp.float32)
        mean = 0.05 * jax.random.normal(k3, (c,), dtype=jnp.float32)
        var = 0.5 + jax.random.uniform(k4, (c,), dtype=jnp.float32)
        return gamma, beta, mean, var

    # ---- residual tower convs + BN (folded) ----
    conv_shapes = [(128, 12, 3, 3), (128, 128, 3, 3), (128, 128, 3, 3)]
    for i, shape in enumerate(conv_shapes, start=1):
        cout, cin, _, _ = shape
        w = normal(next(keys), shape)
        b = normal(next(keys), (cout,))
        g, be, mu, var = bn_params(next(keys), cout)
        wmat = jnp.transpose(w, (2, 3, 1, 0)).reshape(9 * cin, cout)
        if i == 1:                      # pre-pad K: 108 -> 128
            wmat = jnp.pad(wmat, ((0, 128 - wmat.shape[0]), (0, 0)))
        scale, shift = fold_bn(g, be, mu, var, b)
        p[f"conv{i}_w"] = wmat.astype(jnp.bfloat16)
        p[f"conv{i}_scale"] = scale.reshape(1, -1)
        p[f"conv{i}_shift"] = shift.reshape(1, -1)

    # ---- fused policy/value 1x1 convs + BN (73 + 32 channels, N padded to 128) ----
    wp = normal(next(keys), (73, 128, 1, 1)); bp = normal(next(keys), (73,))
    gp, bep, mup, varp = bn_params(next(keys), 73)
    wv = normal(next(keys), (32, 128, 1, 1)); bv = normal(next(keys), (32,))
    gv, bev, muv, varv = bn_params(next(keys), 32)
    wpm = jnp.transpose(wp.reshape(73, 128), (1, 0))       # (128, 73)
    wvm = jnp.transpose(wv.reshape(32, 128), (1, 0))       # (128, 32)
    sp, shp = fold_bn(gp, bep, mup, varp, bp)
    sv, shv = fold_bn(gv, bev, muv, varv, bv)
    wh = jnp.pad(jnp.concatenate([wpm, wvm], axis=1), ((0, 0), (0, 128 - 105)))
    sh = jnp.pad(jnp.concatenate([sp, sv]), (0, 128 - 105))
    bh = jnp.pad(jnp.concatenate([shp, shv]), (0, 128 - 105))
    p["heads_w"] = wh.astype(jnp.bfloat16)
    p["heads_scale"] = sh.reshape(1, -1)
    p["heads_shift"] = bh.reshape(1, -1)

    # ---- policy fc: permute rows (absorb torch channel-major flatten), pad, cast bf16 ----
    w = normal(next(keys), (N_POLICY, N_POLICY))           # torch Linear (out, in)
    b = normal(next(keys), (N_POLICY,))
    wt = jnp.transpose(w, (1, 0))                          # rows indexed c*64 + pos
    wt = wt.reshape(73, 64, N_POLICY).transpose(1, 0, 2).reshape(N_POLICY, N_POLICY)
    wt = jnp.pad(wt, ((0, POLICY_KP - N_POLICY), (0, POLICY_NP - N_POLICY)))
    p["policy_fc_w"] = wt.astype(jnp.bfloat16)
    p["policy_fc_b"] = jnp.pad(b, (0, POLICY_NP - N_POLICY)).reshape(1, -1)

    # ---- value fc1/fc2 (fc1 rows permuted the same way; fc2 N padded to 128) ----
    w1 = normal(next(keys), (128, 32 * 64)); b1 = normal(next(keys), (128,))
    w1t = jnp.transpose(w1, (1, 0))                        # (2048, 128), rows c*64+pos
    w1t = w1t.reshape(32, 64, 128).transpose(1, 0, 2).reshape(2048, 128)
    p["value_fc1_w"] = w1t.astype(jnp.bfloat16)
    p["value_fc1_b"] = b1.reshape(1, -1)

    w2 = normal(next(keys), (1, 128)); b2 = normal(next(keys), (1,))
    p["value_fc2_w"] = jnp.pad(jnp.transpose(w2, (1, 0)), ((0, 0), (0, 127)))  # f32
    p["value_fc2_b"] = jnp.pad(b2, (0, 127)).reshape(1, -1)
    return p


# ----------------------------------------------------------------------------
# Forward pass
# ----------------------------------------------------------------------------
def chessnet_forward(x_nchw, params):
    B = x_nchw.shape[0]
    x = jnp.transpose(x_nchw, (0, 2, 3, 1)).astype(jnp.bfloat16)   # NCHW -> NHWC bf16

    # conv1: relu(bn(conv3x3)) via im2col matmul (K padded 108 -> 128)
    cols = im2col_3x3(x)
    cols = jnp.pad(cols, ((0, 0), (0, 128 - cols.shape[1])))
    h = conv_bn_relu(cols, params["conv1_w"],
                     params["conv1_scale"], params["conv1_shift"])
    h = h.reshape(B, 8, 8, 128)

    # conv2
    cols = im2col_3x3(h)
    h = conv_bn_relu(cols, params["conv2_w"],
                     params["conv2_scale"], params["conv2_shift"])
    h = h.reshape(B, 8, 8, 128)

    # conv3 + fused policy/value 1x1 convs
    # TODO(synk): at large batch, fuse the whole 3-layer tower into one kernel
    # (3x3 conv as 9 shifted accumulating matmuls, activations resident in VMEM)
    # instead of materializing im2col patches in HBM between layers.
    cols = im2col_3x3(h)
    heads = conv3_and_heads(cols, params)                   # (B*64, 128) bf16

    # Row-major flattens match torch's channel-major .view(-1, C*64) because the
    # FC weight rows were permuted accordingly at init.
    pol = heads[:, :73].reshape(B, 64 * 73)                 # (B, 4672) bf16
    val = heads[:, 73:105].reshape(B, 64 * 32)              # (B, 2048) bf16

    Mp = _pad_to(B, POLICY_TM)

    # Policy FC + fused log_softmax
    pol_p = jnp.pad(pol, ((0, Mp - B), (0, POLICY_KP - pol.shape[1])))
    logp = policy_fc_logsoftmax(pol_p, params["policy_fc_w"], params["policy_fc_b"])
    policy = logp[:B, :N_POLICY]

    # Value head: fc1(relu) + fc2(tanh) in one kernel
    val_p = jnp.pad(val, ((0, Mp - B), (0, 0)))
    v = value_head(val_p, params["value_fc1_w"], params["value_fc1_b"],
                   params["value_fc2_w"], params["value_fc2_b"])
    value = v[:B, :1]
    return policy, value


# ----------------------------------------------------------------------------
if __name__ == "__main__":
    key = jax.random.PRNGKey(0)
    k_params, k_x = jax.random.split(key)

    params = init_params(k_params)
    # Chess board input: batch=2, 12 planes, 8x8 board (NCHW like PyTorch).
    x = jax.random.normal(k_x, (2, 12, 8, 8), dtype=jnp.float32)

    fwd = jax.jit(chessnet_forward)
    policy, value = fwd(x, params)
    policy = jax.block_until_ready(policy)
    value = jax.block_until_ready(value)

    assert policy.shape == (2, 4672) and value.shape == (2, 1)
    assert bool(jnp.all(jnp.isfinite(policy))) and bool(jnp.all(jnp.isfinite(value)))
    # log_softmax rows must logsumexp to ~0
    lse = jax.scipy.special.logsumexp(policy, axis=1)
    assert bool(jnp.allclose(lse, 0.0, atol=1e-3))
    # tanh output bounded
    assert bool(jnp.all(jnp.abs(value) <= 1.0))

    print("KERNEL_OK")
</pallas_src>

<mosaic_0001>
module attributes {stable_mosaic.version = 11 : i64} {
  func.func @_mm_bn_relu_kernel(%arg0: i32, %arg1: memref<64x128xbf16, #tpu.memory_space<vmem>>, %arg2: memref<128x128xbf16, #tpu.memory_space<vmem>>, %arg3: memref<1x128xf32, #tpu.memory_space<vmem>>, %arg4: memref<1x128xf32, #tpu.memory_space<vmem>>, %arg5: memref<64x128xbf16, #tpu.memory_space<vmem>>) attributes {dimension_semantics = [#tpu.dimension_semantics<parallel>], iteration_bounds = array<i64: 2>, scalar_prefetch = 0 : i64, scratch_operands = 0 : i64, tpu.core_type = #tpu.core_type<tc>, window_params = [{transform_indices = @transform_0, window_bounds = array<i64: 64, 128>}, {pipeline_mode = #tpu.pipeline_mode<synchronous>, transform_indices = @transform_1, window_bounds = array<i64: 128, 128>}, {pipeline_mode = #tpu.pipeline_mode<synchronous>, transform_indices = @transform_2, window_bounds = array<i64: 1, 128>}, {pipeline_mode = #tpu.pipeline_mode<synchronous>, transform_indices = @transform_3, window_bounds = array<i64: 1, 128>}, {transform_indices = @transform_4, window_bounds = array<i64: 64, 128>}]} {
    %c0 = arith.constant 0 : index
    %c0_0 = arith.constant 0 : index
    %0 = vector.load %arg1[%c0, %c0_0] : memref<64x128xbf16, #tpu.memory_space<vmem>>, vector<64x128xbf16>
    %c0_1 = arith.constant 0 : index
    %c0_2 = arith.constant 0 : index
    %1 = vector.load %arg2[%c0_1, %c0_2] : memref<128x128xbf16, #tpu.memory_space<vmem>>, vector<128x128xbf16>
    %cst = arith.constant dense<0.000000e+00> : vector<64x128xf32>
    %2 = tpu.matmul %0, %1, %cst {dimension_numbers = #tpu.dot_dimension_numbers<[1], [0], [0], [1], [0, 0, 1, 1], [], []>} : vector<64x128xbf16>, vector<128x128xbf16>, vector<64x128xf32> -> vector<64x128xf32>
    %c0_3 = arith.constant 0 : index
    %c0_4 = arith.constant 0 : index
    %3 = vector.load %arg3[%c0_3, %c0_4] : memref<1x128xf32, #tpu.memory_space<vmem>>, vector<1x128xf32>
    %4 = vector.broadcast %3 : vector<1x128xf32> to vector<64x128xf32>
    %5 = arith.mulf %2, %4 : vector<64x128xf32>
    %c0_5 = arith.constant 0 : index
    %c0_6 = arith.constant 0 : index
    %6 = vector.load %arg4[%c0_5, %c0_6] : memref<1x128xf32, #tpu.memory_space<vmem>>, vector<1x128xf32>
    %7 = vector.broadcast %6 : vector<1x128xf32> to vector<64x128xf32>
    %8 = arith.addf %5, %7 : vector<64x128xf32>
    %cst_7 = arith.constant 0.000000e+00 : f32
    %9 = vector.broadcast %cst_7 : f32 to vector<64x128xf32>
    %10 = arith.maximumf %8, %9 : vector<64x128xf32>
    %11 = arith.truncf %10 : vector<64x128xf32> to vector<64x128xbf16>
    %c0_8 = arith.constant 0 : index
    %c0_9 = arith.constant 0 : index
    %12 = vector.load %arg5[%c0_8, %c0_9] : memref<64x128xbf16, #tpu.memory_space<vmem>>, vector<64x128xbf16>
    tpu.vector_store %arg5[%c0_8, %c0_9], %11 {strides = array<i32>} : memref<64x128xbf16, #tpu.memory_space<vmem>>, vector<64x128xbf16>,
    return
  }
  func.func @transform_0(%arg0: i32) -> (i32, i32) {
    %c0_i32 = arith.constant 0 : i32
    %c0_i32_0 = arith.constant 0 : i32
    return %arg0, %c0_i32 : i32, i32
  }
  func.func @transform_1(%arg0: i32) -> (i32, i32) {
    %c0_i32 = arith.constant 0 : i32
    %c0_i32_0 = arith.constant 0 : i32
    %c0_i32_1 = arith.constant 0 : i32
    return %c0_i32, %c0_i32_0 : i32, i32
  }
  func.func @transform_2(%arg0: i32) -> (i32, i32) {
    %c0_i32 = arith.constant 0 : i32
    %c0_i32_0 = arith.constant 0 : i32
    %c0_i32_1 = arith.constant 0 : i32
    return %c0_i32, %c0_i32_0 : i32, i32
  }
  func.func @transform_3(%arg0: i32) -> (i32, i32) {
    %c0_i32 = arith.constant 0 : i32
    %c0_i32_0 = arith.constant 0 : i32
    %c0_i32_1 = arith.constant 0 : i32
    return %c0_i32, %c0_i32_0 : i32, i32
  }
  func.func @transform_4(%arg0: i32) -> (i32, i32) {
    %c0_i32 = arith.constant 0 : i32
    %c0_i32_0 = arith.constant 0 : i32
    return %arg0, %c0_i32 : i32, i32
  }
}

module attributes {stable_mosaic.version = 11 : i64} {
  func.func @_mm_bn_relu_kernel(%arg0: i32, %arg1: memref<64x1152xbf16, #tpu.memory_space<vmem>>, %arg2: memref<1152x128xbf16, #tpu.memory_space<vmem>>, %arg3: memref<1x128xf32, #tpu.memory_space<vmem>>, %arg4: memref<1x128xf32, #tpu.memory_space<vmem>>, %arg5: memref<64x128xbf16, #tpu.memory_space<vmem>>) attributes {dimension_semantics = [#tpu.dimension_semantics<parallel>], iteration_bounds = array<i64: 2>, scalar_prefetch = 0 : i64, scratch_operands = 0 : i64, tpu.core_type = #tpu.core_type<tc>, window_params = [{transform_indices = @transform_0, window_bounds = array<i64: 64, 1152>}, {pipeline_mode = #tpu.pipeline_mode<synchronous>, transform_indices = @transform_1, window_bounds = array<i64: 1152, 128>}, {pipeline_mode = #tpu.pipeline_mode<synchronous>, transform_indices = @transform_2, window_bounds = array<i64: 1, 128>}, {pipeline_mode = #tpu.pipeline_mode<synchronous>, transform_indices = @transform_3, window_bounds = array<i64: 1, 128>}, {transform_indices = @transform_4, window_bounds = array<i64: 64, 128>}]} {
    %c0 = arith.constant 0 : index
    %c0_0 = arith.constant 0 : index
    %0 = vector.load %arg1[%c0, %c0_0] : memref<64x1152xbf16, #tpu.memory_space<vmem>>, vector<64x1152xbf16>
    %c0_1 = arith.constant 0 : index
    %c0_2 = arith.constant 0 : index
    %1 = vector.load %arg2[%c0_1, %c0_2] : memref<1152x128xbf16, #tpu.memory_space<vmem>>, vector<1152x128xbf16>
    %cst = arith.constant dense<0.000000e+00> : vector<64x128xf32>
    %2 = tpu.matmul %0, %1, %cst {dimension_numbers = #tpu.dot_dimension_numbers<[1], [0], [0], [1], [0, 0, 1, 1], [], []>} : vector<64x1152xbf16>, vector<1152x128xbf16>, vector<64x128xf32> -> vector<64x128xf32>
    %c0_3 = arith.constant 0 : index
    %c0_4 = arith.constant 0 : index
    %3 = vector.load %arg3[%c0_3, %c0_4] : memref<1x128xf32, #tpu.memory_space<vmem>>, vector<1x128xf32>
    %4 = vector.broadcast %3 : vector<1x128xf32> to vector<64x128xf32>
    %5 = arith.mulf %2, %4 : vector<64x128xf32>
    %c0_5 = arith.constant 0 : index
    %c0_6 = arith.constant 0 : index
    %6 = vector.load %arg4[%c0_5, %c0_6] : memref<1x128xf32, #tpu.memory_space<vmem>>, vector<1x128xf32>
    %7 = vector.broadcast %6 : vector<1x128xf32> to vector<64x128xf32>
    %8 = arith.addf %5, %7 : vector<64x128xf32>
    %cst_7 = arith.constant 0.000000e+00 : f32
    %9 = vector.broadcast %cst_7 : f32 to vector<64x128xf32>
    %10 = arith.maximumf %8, %9 : vector<64x128xf32>
    %11 = arith.truncf %10 : vector<64x128xf32> to vector<64x128xbf16>
    %c0_8 = arith.constant 0 : index
    %c0_9 = arith.constant 0 : index
    %12 = vector.load %arg5[%c0_8, %c0_9] : memref<64x128xbf16, #tpu.memory_space<vmem>>, vector<64x128xbf16>
    tpu.vector_store %arg5[%c0_8, %c0_9], %11 {strides = array<i32>} : memref<64x128xbf16, #tpu.memory_space<vmem>>, vector<64x128xbf16>,
    return
  }
  func.func @transform_0(%arg0: i32) -> (i32, i32) {
    %c0_i32 = arith.constant 0 : i32
    %c0_i32_0 = arith.constant 0 : i32
    return %arg0, %c0_i32 : i32, i32
  }
  func.func @transform_1(%arg0: i32) -> (i32, i32) {
    %c0_i32 = arith.constant 0 : i32
    %c0_i32_0 = arith.constant 0 : i32
    %c0_i32_1 = arith.constant 0 : i32
    return %c0_i32, %c0_i32_0 : i32, i32
  }
  func.func @transform_2(%arg0: i32) -> (i32, i32) {
    %c0_i32 = arith.constant 0 : i32
    %c0_i32_0 = arith.constant 0 : i32
    %c0_i32_1 = arith.constant 0 : i32
    return %c0_i32, %c0_i32_0 : i32, i32
  }
  func.func @transform_3(%arg0: i32) -> (i32, i32) {
    %c0_i32 = arith.constant 0 : i32
    %c0_i32_0 = arith.constant 0 : i32
    %c0_i32_1 = arith.constant 0 : i32
    return %c0_i32, %c0_i32_0 : i32, i32
  }
  func.func @transform_4(%arg0: i32) -> (i32, i32) {
    %c0_i32 = arith.constant 0 : i32
    %c0_i32_0 = arith.constant 0 : i32
    return %arg0, %c0_i32 : i32, i32
  }
}

module attributes {stable_mosaic.version = 11 : i64} {
  func.func @_conv3_heads_kernel(%arg0: i32, %arg1: memref<64x1152xbf16, #tpu.memory_space<vmem>>, %arg2: memref<1152x128xbf16, #tpu.memory_space<vmem>>, %arg3: memref<1x128xf32, #tpu.memory_space<vmem>>, %arg4: memref<1x128xf32, #tpu.memory_space<vmem>>, %arg5: memref<128x128xbf16, #tpu.memory_space<vmem>>, %arg6: memref<1x128xf32, #tpu.memory_space<vmem>>, %arg7: memref<1x128xf32, #tpu.memory_space<vmem>>, %arg8: memref<64x128xbf16, #tpu.memory_space<vmem>>) attributes {dimension_semantics = [#tpu.dimension_semantics<parallel>], iteration_bounds = array<i64: 2>, scalar_prefetch = 0 : i64, scratch_operands = 0 : i64, tpu.core_type = #tpu.core_type<tc>, window_params = [{transform_indices = @transform_0, window_bounds = array<i64: 64, 1152>}, {pipeline_mode = #tpu.pipeline_mode<synchronous>, transform_indices = @transform_1, window_bounds = array<i64: 1152, 128>}, {pipeline_mode = #tpu.pipeline_mode<synchronous>, transform_indices = @transform_2, window_bounds = array<i64: 1, 128>}, {pipeline_mode = #tpu.pipeline_mode<synchronous>, transform_indices = @transform_3, window_bounds = array<i64: 1, 128>}, {pipeline_mode = #tpu.pipeline_mode<synchronous>, transform_indices = @transform_4, window_bounds = array<i64: 128, 128>}, {pipeline_mode = #tpu.pipeline_mode<synchronous>, transform_indices = @transform_5, window_bounds = array<i64: 1, 128>}, {pipeline_mode = #tpu.pipeline_mode<synchronous>, transform_indices = @transform_6, window_bounds = array<i64: 1, 128>}, {transform_indices = @transform_7, window_bounds = array<i64: 64, 128>}]} {
    %c0 = arith.constant 0 : index
    %c0_0 = arith.constant 0 : index
    %0 = vector.load %arg1[%c0, %c0_0] : memref<64x1152xbf16, #tpu.memory_space<vmem>>, vector<64x1152xbf16>
    %c0_1 = arith.constant 0 : index
    %c0_2 = arith.constant 0 : index
    %1 = vector.load %arg2[%c0_1, %c0_2] : memref<1152x128xbf16, #tpu.memory_space<vmem>>, vector<1152x128xbf16>
    %cst = arith.constant dense<0.000000e+00> : vector<64x128xf32>
    %2 = tpu.matmul %0, %1, %cst {dimension_numbers = #tpu.dot_dimension_numbers<[1], [0], [0], [1], [0, 0, 1, 1], [], []>} : vector<64x1152xbf16>, vector<1152x128xbf16>, vector<64x128xf32> -> vector<64x128xf32>
    %c0_3 = arith.constant 0 : index
    %c0_4 = arith.constant 0 : index
    %3 = vector.load %arg3[%c0_3, %c0_4] : memref<1x128xf32, #tpu.memory_space<vmem>>, vector<1x128xf32>
    %4 = vector.broadcast %3 : vector<1x128xf32> to vector<64x128xf32>
    %5 = arith.mulf %2, %4 : vector<64x128xf32>
    %c0_5 = arith.constant 0 : index
    %c0_6 = arith.constant 0 : index
    %6 = vector.load %arg4[%c0_5, %c0_6] : memref<1x128xf32, #tpu.memory_space<vmem>>, vector<1x128xf32>
    %7 = vector.broadcast %6 : vector<1x128xf32> to vector<64x128xf32>
    %8 = arith.addf %5, %7 : vector<64x128xf32>
    %cst_7 = arith.constant 0.000000e+00 : f32
    %9 = vector.broadcast %cst_7 : f32 to vector<64x128xf32>
    %10 = arith.maximumf %8, %9 : vector<64x128xf32>
    %11 = arith.truncf %10 : vector<64x128xf32> to vector<64x128xbf16>
    %c0_8 = arith.constant 0 : index
    %c0_9 = arith.constant 0 : index
    %12 = vector.load %arg5[%c0_8, %c0_9] : memref<128x128xbf16, #tpu.memory_space<vmem>>, vector<128x128xbf16>
    %cst_10 = arith.constant dense<0.000000e+00> : vector<64x128xf32>
    %13 = tpu.matmul %11, %12, %cst_10 {dimension_numbers = #tpu.dot_dimension_numbers<[1], [0], [0], [1], [0, 0, 1, 1], [], []>} : vector<64x128xbf16>, vector<128x128xbf16>, vector<64x128xf32> -> vector<64x128xf32>
    %c0_11 = arith.constant 0 : index
    %c0_12 = arith.constant 0 : index
    %14 = vector.load %arg6[%c0_11, %c0_12] : memref<1x128xf32, #tpu.memory_space<vmem>>, vector<1x128xf32>
    %15 = vector.broadcast %14 : vector<1x128xf32> to vector<64x128xf32>
    %16 = arith.mulf %13, %15 : vector<64x128xf32>
    %c0_13 = arith.constant 0 : index
    %c0_14 = arith.constant 0 : index
    %17 = vector.load %arg7[%c0_13, %c0_14] : memref<1x128xf32, #tpu.memory_space<vmem>>, vector<1x128xf32>
    %18 = vector.broadcast %17 : vector<1x128xf32> to vector<64x128xf32>
    %19 = arith.addf %16, %18 : vector<64x128xf32>
    %cst_15 = arith.constant 0.000000e+00 : f32
    %20 = vector.broadcast %cst_15 : f32 to vector<64x128xf32>
    %21 = arith.maximumf %19, %20 : vector<64x128xf32>
    %22 = arith.truncf %21 : vector<64x128xf32> to vector<64x128xbf16>
    %c0_16 = arith.constant 0 : index
    %c0_17 = arith.constant 0 : index
    %23 = vector.load %arg8[%c0_16, %c0_17] : memref<64x128xbf16, #tpu.memory_space<vmem>>, vector<64x128xbf16>
    tpu.vector_store %arg8[%c0_16, %c0_17], %22 {strides = array<i32>} : memref<64x128xbf16, #tpu.memory_space<vmem>>, vector<64x128xbf16>,
    return
  }
  func.func @transform_0(%arg0: i32) -> (i32, i32) {
    %c0_i32 = arith.constant 0 : i32
    %c0_i32_0 = arith.constant 0 : i32
    return %arg0, %c0_i32 : i32, i32
  }
  func.func @transform_1(%arg0: i32) -> (i32, i32) {
    %c0_i32 = arith.constant 0 : i32
    %c0_i32_0 = arith.constant 0 : i32
    %c0_i32_1 = arith.constant 0 : i32
    return %c0_i32, %c0_i32_0 : i32, i32
  }
  func.func @transform_2(%arg0: i32) -> (i32, i32) {
    %c0_i32 = arith.constant 0 : i32
    %c0_i32_0 = arith.constant 0 : i32
    %c0_i32_1 = arith.constant 0 : i32
    return %c0_i32, %c0_i32_0 : i32, i32
  }
  func.func @transform_3(%arg0: i32) -> (i32, i32) {
    %c0_i32 = arith.constant 0 : i32
    %c0_i32_0 = arith.constant 0 : i32
    %c0_i32_1 = arith.constant 0 : i32
    return %c0_i32, %c0_i32_0 : i32, i32
  }
  func.func @transform_4(%arg0: i32) -> (i32, i32) {
    %c0_i32 = arith.constant 0 : i32
    %c0_i32_0 = arith.constant 0 : i32
    %c0_i32_1 = arith.constant 0 : i32
    return %c0_i32, %c0_i32_0 : i32, i32
  }
  func.func @transform_5(%arg0: i32) -> (i32, i32) {
    %c0_i32 = arith.constant 0 : i32
    %c0_i32_0 = arith.constant 0 : i32
    %c0_i32_1 = arith.constant 0 : i32
    return %c0_i32, %c0_i32_0 : i32, i32
  }
  func.func @transform_6(%arg0: i32) -> (i32, i32) {
    %c0_i32 = arith.constant 0 : i32
    %c0_i32_0 = arith.constant 0 : i32
    %c0_i32_1 = arith.constant 0 : i32
    return %c0_i32, %c0_i32_0 : i32, i32
  }
  func.func @transform_7(%arg0: i32) -> (i32, i32) {
    %c0_i32 = arith.constant 0 : i32
    %c0_i32_0 = arith.constant 0 : i32
    return %arg0, %c0_i32 : i32, i32
  }
}

module attributes {stable_mosaic.version = 11 : i64} {
  func.func @_value_head_kernel(%arg0: memref<16x2048xbf16, #tpu.memory_space<vmem>>, %arg1: memref<2048x128xbf16, #tpu.memory_space<vmem>>, %arg2: memref<1x128xf32, #tpu.memory_space<vmem>>, %arg3: memref<128x128xf32, #tpu.memory_space<vmem>>, %arg4: memref<1x128xf32, #tpu.memory_space<vmem>>, %arg5: memref<16x128xf32, #tpu.memory_space<vmem>>) attributes {dimension_semantics = [], scalar_prefetch = 0 : i64, scratch_operands = 0 : i64, tpu.core_type = #tpu.core_type<tc>} {
    %c0 = arith.constant 0 : index
    %c0_0 = arith.constant 0 : index
    %0 = vector.load %arg0[%c0, %c0_0] : memref<16x2048xbf16, #tpu.memory_space<vmem>>, vector<16x2048xbf16>
    %c0_1 = arith.constant 0 : index
    %c0_2 = arith.constant 0 : index
    %1 = vector.load %arg1[%c0_1, %c0_2] : memref<2048x128xbf16, #tpu.memory_space<vmem>>, vector<2048x128xbf16>
    %cst = arith.constant dense<0.000000e+00> : vector<16x128xf32>
    %2 = tpu.matmul %0, %1, %cst {dimension_numbers = #tpu.dot_dimension_numbers<[1], [0], [0], [1], [0, 0, 1, 1], [], []>} : vector<16x2048xbf16>, vector<2048x128xbf16>, vector<16x128xf32> -> vector<16x128xf32>
    %c0_3 = arith.constant 0 : index
    %c0_4 = arith.constant 0 : index
    %3 = vector.load %arg2[%c0_3, %c0_4] : memref<1x128xf32, #tpu.memory_space<vmem>>, vector<1x128xf32>
    %4 = vector.broadcast %3 : vector<1x128xf32> to vector<16x128xf32>
    %5 = arith.addf %2, %4 : vector<16x128xf32>
    %cst_5 = arith.constant 0.000000e+00 : f32
    %6 = vector.broadcast %cst_5 : f32 to vector<16x128xf32>
    %7 = arith.maximumf %5, %6 : vector<16x128xf32>
    %c0_6 = arith.constant 0 : index
    %c0_7 = arith.constant 0 : index
    %8 = vector.load %arg3[%c0_6, %c0_7] : memref<128x128xf32, #tpu.memory_space<vmem>>, vector<128x128xf32>
    %cst_8 = arith.constant dense<0.000000e+00> : vector<16x128xf32>
    %9 = tpu.matmul %7, %8, %cst_8 {dimension_numbers = #tpu.dot_dimension_numbers<[1], [0], [0], [1], [0, 0, 1, 1], [], []>} : vector<16x128xf32>, vector<128x128xf32>, vector<16x128xf32> -> vector<16x128xf32>
    %c0_9 = arith.constant 0 : index
    %c0_10 = arith.constant 0 : index
    %10 = vector.load %arg4[%c0_9, %c0_10] : memref<1x128xf32, #tpu.memory_space<vmem>>, vector<1x128xf32>
    %11 = vector.broadcast %10 : vector<1x128xf32> to vector<16x128xf32>
    %12 = arith.addf %9, %11 : vector<16x128xf32>
    %13 = math.tanh %12 : vector<16x128xf32>
    %c0_11 = arith.constant 0 : index
    %c0_12 = arith.constant 0 : index
    %14 = vector.load %arg5[%c0_11, %c0_12] : memref<16x128xf32, #tpu.memory_space<vmem>>, vector<16x128xf32>
    tpu.vector_store %arg5[%c0_11, %c0_12], %13 {strides = array<i32>} : memref<16x128xf32, #tpu.memory_space<vmem>>, vector<16x128xf32>,
    return
  }
}

module attributes {stable_mosaic.version = 11 : i64} {
  func.func @_policy_fc_logsoftmax_kernel(%arg0: i32, %arg1: i32, %arg2: memref<16x640xbf16, #tpu.memory_space<vmem>>, %arg3: memref<640x4736xbf16, #tpu.memory_space<vmem>>, %arg4: memref<1x4736xf32, #tpu.memory_space<vmem>>, %arg5: memref<16x4736xf32, #tpu.memory_space<vmem>>) attributes {dimension_semantics = [#tpu.dimension_semantics<parallel>, #tpu.dimension_semantics<arbitrary>], iteration_bounds = array<i64: 1, 8>, scalar_prefetch = 0 : i64, scratch_operands = 0 : i64, tpu.core_type = #tpu.core_type<tc>, window_params = [{transform_indices = @transform_0, window_bounds = array<i64: 16, 640>}, {transform_indices = @transform_1, window_bounds = array<i64: 640, 4736>}, {pipeline_mode = #tpu.pipeline_mode<synchronous>, transform_indices = @transform_2, window_bounds = array<i64: 1, 4736>}, {transform_indices = @transform_3, window_bounds = array<i64: 16, 4736>}]} {
    %c0_i32 = arith.constant 0 : i32
    %0 = arith.cmpi eq, %arg1, %c0_i32 : i32
    %1 = arith.extui %0 : i1 to i32
    %c0_i32_0 = arith.constant 0 : i32
    %2 = arith.cmpi ne, %1, %c0_i32_0 : i32
    scf.if %2 {
      %cst_9 = arith.constant 0.000000e+00 : f32
      %12 = vector.broadcast %cst_9 : f32 to vector<16x4736xf32>
      %c0_10 = arith.constant 0 : index
      %c0_11 = arith.constant 0 : index
      %13 = vector.load %arg5[%c0_10, %c0_11] : memref<16x4736xf32, #tpu.memory_space<vmem>>, vector<16x4736xf32>
      tpu.vector_store %arg5[%c0_10, %c0_11], %12 {strides = array<i32>} : memref<16x4736xf32, #tpu.memory_space<vmem>>, vector<16x4736xf32>,
    } else {
    }
    %c0 = arith.constant 0 : index
    %c0_1 = arith.constant 0 : index
    %3 = vector.load %arg5[%c0, %c0_1] : memref<16x4736xf32, #tpu.memory_space<vmem>>, vector<16x4736xf32>
    %c0_2 = arith.constant 0 : index
    %c0_3 = arith.constant 0 : index
    %4 = vector.load %arg2[%c0_2, %c0_3] : memref<16x640xbf16, #tpu.memory_space<vmem>>, vector<16x640xbf16>
    %c0_4 = arith.constant 0 : index
    %c0_5 = arith.constant 0 : index
    %5 = vector.load %arg3[%c0_4, %c0_5] : memref<640x4736xbf16, #tpu.memory_space<vmem>>, vector<640x4736xbf16>
    %cst = arith.constant dense<0.000000e+00> : vector<16x4736xf32>
    %6 = tpu.matmul %4, %5, %cst {dimension_numbers = #tpu.dot_dimension_numbers<[1], [0], [0], [1], [0, 0, 1, 1], [], []>} : vector<16x640xbf16>, vector<640x4736xbf16>, vector<16x4736xf32> -> vector<16x4736xf32>
    %7 = arith.addf %3, %6 : vector<16x4736xf32>
    %c0_6 = arith.constant 0 : index
    %c0_7 = arith.constant 0 : index
    %8 = vector.load %arg5[%c0_6, %c0_7] : memref<16x4736xf32, #tpu.memory_space<vmem>>, vector<16x4736xf32>
    tpu.vector_store %arg5[%c0_6, %c0_7], %7 {strides = array<i32>} : memref<16x4736xf32, #tpu.memory_space<vmem>>, vector<16x4736xf32>,
    %c7_i32 = arith.constant 7 : i32
    %9 = arith.cmpi eq, %arg1, %c7_i32 : i32
    %10 = arith.extui %9 : i1 to i32
    %c0_i32_8 = arith.constant 0 : i32
    %11 = arith.cmpi ne, %10, %c0_i32_8 : i32
    scf.if %11 {
      %c0_9 = arith.constant 0 : index
      %c0_10 = arith.constant 0 : index
      %12 = vector.load %arg5[%c0_9, %c0_10] : memref<16x4736xf32, #tpu.memory_space<vmem>>, vector<16x4736xf32>
      %c0_11 = arith.constant 0 : index
      %c0_12 = arith.constant 0 : index
      %13 = vector.load %arg4[%c0_11, %c0_12] : memref<1x4736xf32, #tpu.memory_space<vmem>>, vector<1x4736xf32>
      %14 = vector.broadcast %13 : vector<1x4736xf32> to vector<16x4736xf32>
      %15 = arith.addf %12, %14 : vector<16x4736xf32>
      %16 = tpu.iota {dimensions = array<i32: 1>} : vector<16x4736xi32>
      %c4672_i32 = arith.constant 4672 : i32
      %17 = vector.broadcast %c4672_i32 : i32 to vector<16x4736xi32>
      %18 = arith.cmpi slt, %16, %17 : vector<16x4736xi32>
      %cst_13 = arith.constant -1.000000e+30 : f32
      %19 = vector.broadcast %cst_13 : f32 to vector<16x4736xf32>
      %20 = arith.select %18, %15, %19 : vector<16x4736xi1>, vector<16x4736xf32>
      %cst_14 = arith.constant dense<0xFF800000> : vector<16xf32>
      %21 = vector.multi_reduction <maximumf>, %20, %cst_14 [1] : vector<16x4736xf32> to vector<16xf32>
      %22 = vector.shape_cast %21 : vector<16xf32> to vector<16x1xf32>
      %23 = vector.broadcast %22 : vector<16x1xf32> to vector<16x4736xf32>
      %24 = arith.subf %20, %23 : vector<16x4736xf32>
      %25 = math.exp %24 : vector<16x4736xf32>
      %cst_15 = arith.constant dense<0.000000e+00> : vector<16xf32>
      %26 = vector.multi_reduction <add>, %25, %cst_15 [1] : vector<16x4736xf32> to vector<16xf32>
      %27 = vector.shape_cast %26 : vector<16xf32> to vector<16x1xf32>
      %28 = math.log %27 : vector<16x1xf32>
      %29 = vector.broadcast %28 : vector<16x1xf32> to vector<16x4736xf32>
      %30 = arith.subf %24, %29 : vector<16x4736xf32>
      %c0_16 = arith.constant 0 : index
      %c0_17 = arith.constant 0 : index
      %31 = vector.load %arg5[%c0_16, %c0_17] : memref<16x4736xf32, #tpu.memory_space<vmem>>, vector<16x4736xf32>
      tpu.vector_store %arg5[%c0_16, %c0_17], %30 {strides = array<i32>} : memref<16x4736xf32, #tpu.memory_space<vmem>>, vector<16x4736xf32>,
    } else {
    }
    return
  }
  func.func @transform_0(%arg0: i32, %arg1: i32) -> (i32, i32) {
    %c0_i32 = arith.constant 0 : i32
    return %arg0, %arg1 : i32, i32
  }
  func.func @transform_1(%arg0: i32, %arg1: i32) -> (i32, i32) {
    %c0_i32 = arith.constant 0 : i32
    %c0_i32_0 = arith.constant 0 : i32
    return %arg1, %c0_i32 : i32, i32
  }
  func.func @transform_2(%arg0: i32, %arg1: i32) -> (i32, i32) {
    %c0_i32 = arith.constant 0 : i32
    %c0_i32_0 = arith.constant 0 : i32
    %c0_i32_1 = arith.constant 0 : i32
    return %c0_i32, %c0_i32_0 : i32, i32
  }
  func.func @transform_3(%arg0: i32, %arg1: i32) -> (i32, i32) {
    %c0_i32 = arith.constant 0 : i32
    %c0_i32_0 = arith.constant 0 : i32
    return %arg0, %c0_i32 : i32, i32
  }
}

</mosaic_0001>

<bundles_post_ra>
// kernel: chessnet_forward.5
= control target key start
LH: loop header
LB: loop body
LE: loop exit
PB: predicated region body
PF: predicated region fallthrough
CT: control target
= control target key end

     0   :  { %9 = vsyncpa [#allocation3], 0  ;;  %s1008_s0 = inlined_call_operand.vmem [shape: bf16[128,128], index: 0, kind: input, shape index: {}]   ;;  %s1009_s1 = inlined_call_operand.hbm [shape: bf16[128,128], index: 1, kind: input, shape index: {}]   ;;  %s1010_s2 = inlined_call_operand.hbm [shape: f32[1,128], index: 2, kind: input, shape index: {}]   ;;  %s1011_s3 = inlined_call_operand.hbm [shape: f32[1,128], index: 3, kind: input, shape index: {}]   ;;  %s1012_s4 = inlined_call_operand.vmem [shape: bf16[128,128], index: 4, kind: output, shape index: {}]  }
   0x1   :  { %10 = vsyncpa [#allocation5], 0  ;;  %s873_s15 = smov 0  }
   0x2 LB: > { %s843_s16 = smov [#allocation4]   ;;  %s568_s18 = sadd.s32 4294967295, %s841_s15   ;;  %s841_s15 = sphi %s873_s15, %s16_s15  }
   0x3   : > { %s162_s17 = sshll.u32 %s843_s16, 4  ;;  %p570_p0 = scmp.ge.s32.totalorder %s841_s15, 1  ;;  %s163_s17 = int_to_ptr.vmem [resolvable:$true] %s162_s17 }
   0x4   : > { %p136_p1 = scmp.lt.s32.totalorder %s841_s15, 3  ;;  %p883_p2 = scmp.eq.s32.totalorder %s568_s18, 0 }
   0x5   : > { %s844_s21 = smov [#allocation2]   ;;  %s845_s24 = smov [#allocation6]  }
   0x6   : > { %s1016_s19 = scalar_select %p883_p2, 1, 0 }
   0x7   : > { %p887_p3 = pnand %p570_p0, %p136_p1  ;;  %s148_s22 = sshll.u32 %s844_s21, 4  ;;  %s899_s22 = int_to_ptr.vmem [resolvable:$true] %s148_s22 }
   0x8   : > { %s173_s25 = sshll.u32 %s845_s24, 4  ;;  %s743_s28 = scalar_lea.hbm %s1010_s2, 16  ;;  %s901_s25 = int_to_ptr.vmem [resolvable:$true] %s173_s25 }
   0x9   : > { %s1017_s20 = scalar_select %p887_p3, 1, 0 }
   0xa   : > { %p702_p4 = pneg %p887_p3  ;;  %p744_p6 = scmp.ne.s32.totalorder %s1010_s2, %s743_s28 }
   0xb   : > { %p750_p10 = scmp.lt.u32.totalorder %s743_s28, %s1010_s2 }
   0xc   : > { %p895_p5 = pnand %p883_p2, %p702_p4 }
   0xe   : > { %p911_p7 = pneg %p895_p5 }
  0x10   : > { %p746_p8 = pnand %p911_p7, %p744_p6 }
  0x12   : > { %p747_p9 = pneg %p746_p8 }
  0x14   : > { %p752_p11 = pnand %p750_p10, %p747_p9 }
  0x16   : > { %755 = shalt.err (!%p752_p11)
}
  0x17   : > { %s756_s8 = scalar_lea.vmem %s163_s17, 16  ;;  %s763_s9 = scalar_lea.vmem %s163_s17, 32 }
  0x18   : > { %p757_p12 = scmp.ne.s32.totalorder %s163_s17, %s756_s8  ;;  %p764_p1 = scmp.lt.s32.totalorder %s163_s17, %s163_s17 }
  0x19   : > { %p765_p4 = scmp.lt.s32.totalorder %s763_s9, %s756_s8 }
  0x1a   : > { %p759_p13 = pnand %p757_p12, %p911_p7 }
  0x1b   : > { %p766_p2 = por %p765_p4, %p764_p1 }
  0x1c   : > { %p760_p0 = pneg %p759_p13 }
  0x1e   : > { %p767_p3 = pnand %p766_p2, %p760_p0 }
  0x20   : > { %770 = shalt.err (!%p767_p3)
}
  0x21   : > { %708 = dma.hbm_to_vmem [thread:$0]  (!%p895_p5), %s1010_s2, 16, %s163_s17, [#allocation5]  }
  0x22   : > { %s771_s14 = scalar_lea.hbm %s1009_s1, 1024 }
  0x23   : > { %p772_p6 = scmp.ne.s32.totalorder %s1009_s1, %s771_s14  ;;  %p778_p2 = scmp.lt.u32.totalorder %s771_s14, %s1009_s1 }
  0x25   : > { %p774_p8 = pnand %p772_p6, %p911_p7 }
  0x27   : > { %p775_p9 = pneg %p774_p8 }
  0x29   : > { %p780_p3 = pnand %p778_p2, %p775_p9 }
  0x2b   : > { %783 = shalt.err (!%p780_p3)
}
  0x2c   : > { %s784_s17 = scalar_lea.vmem %s899_s22, 1024  ;;  %p792_p13 = scmp.lt.s32.totalorder %s899_s22, %s899_s22 }
  0x2d   : > { %p785_p10 = scmp.ne.s32.totalorder %s899_s22, %s784_s17  ;;  %p793_p0 = scmp.lt.s32.totalorder %s784_s17, %s784_s17 }
  0x2f   : > { %p787_p11 = pnand %p785_p10, %p911_p7  ;;  %p794_p1 = por %p793_p0, %p792_p13 }
  0x31   : > { %p788_p12 = pneg %p787_p11 }
  0x33   : > { %p795_p4 = pnand %p794_p1, %p788_p12 }
  0x35   : > { %798 = shalt.err (!%p795_p4)
}
  0x36   : > { %s846_s27 = smov 64   ;;  %s847_s28 = smov 4  }
  0x37   : > { %705 = dma.hbm_to_vmem [thread:$0]  (!%p895_p5), %s1009_s1, 1024, %s899_s22, [#allocation3], %s846_s27, %s846_s27, %s847_s28  }
  0x38   : > { %s799_s8 = scalar_lea.hbm %s1011_s3, 16 }
  0x39   : > { %p800_p6 = scmp.ne.s32.totalorder %s1011_s3, %s799_s8  ;;  %p806_p2 = scmp.lt.u32.totalorder %s799_s8, %s1011_s3 }
  0x3b   : > { %p802_p8 = pnand %p800_p6, %p911_p7 }
  0x3d   : > { %p803_p9 = pneg %p802_p8 }
  0x3f   : > { %p808_p3 = pnand %p806_p2, %p803_p9 }
  0x41   : > { %811 = shalt.err (!%p808_p3)
}
  0x42   : > { %s812_s22 = scalar_lea.vmem %s901_s25, 16  ;;  %s819_s13 = scalar_lea.vmem %s901_s25, 32 }
  0x43   : > { %p813_p10 = scmp.ne.s32.totalorder %s901_s25, %s812_s22  ;;  %p820_p13 = scmp.lt.s32.totalorder %s901_s25, %s901_s25 }
  0x44   : > { %p821_p0 = scmp.lt.s32.totalorder %s819_s13, %s812_s22 }
  0x45   : > { %p815_p11 = pnand %p813_p10, %p911_p7 }
  0x46   : > { %p822_p1 = por %p821_p0, %p820_p13 }
  0x47   : > { %p816_p12 = pneg %p815_p11 }
  0x49   : > { %p823_p4 = pnand %p822_p1, %p816_p12 }
  0x4b   : > { %826 = shalt.err (!%p823_p4)
}
  0x4c   : > { %711 = dma.hbm_to_vmem [thread:$0]  (!%p895_p5), %s1011_s3, 16, %s901_s25, [#allocation5]  }
  0x4d   : > { %p1020_p6 = scmp.ne.s32.totalorder %s1017_s20, 0 }
  0x4e   : > { %p1021_p7 = scmp.ne.s32.totalorder (!%p1020_p6), %s1016_s19, 0 }
  0x4f   : > { %195 = sbr.rel (%p1020_p6) target bundleno = 346 (0x15a), region = 36 }
  0x56   : > { %832 = dma.done.wait (%p1021_p7), [#allocation3], 1024  }
  0x57   : > { %834 = vsyncadd (%p1021_p7), [#allocation3], 4294966272 }
  0x58   : > { %836 = dma.done.wait (%p1021_p7), [#allocation5], 32  }
  0x59   : > { %838 = vsyncadd (%p1021_p7), [#allocation5], 4294967264  ;;  %s579_s23 = sshll.u32 %s568_s18, 3  ;;  %v731_v0 = vld [vmem:[#allocation2] sm:$0xff]   ;;  %v732_v1 = vld [vmem:[#allocation2 + $0x8] sm:$0xff]  }
  0x5a   : > { %p230_p8 = scmp.lt.s32.totalorder %s579_s23, 15  ;;  %650 = vmatprep.subr.bf16.mxu0 %v731_v0  ;;  %674 = vmatprep.subr.bf16.mxu1 %v731_v0  ;;  %v733_v2 = vld [vmem:[#allocation2 + $0x10] sm:$0xff]   ;;  %v734_v3 = vld [vmem:[#allocation2 + $0x18] sm:$0xff]   ;;  %v735_v6 = vld [vmem:[#allocation2 + $0x20] sm:$0xff]  }
  0x5b   : > { %651 = vmatpush3.bf16.msra.mxu0 %v731_v0  ;;  %682 = vmatpush3.bf16.msra.mxu1 %v731_v0  ;;  %v736_v7 = vld [vmem:[#allocation2 + $0x28] sm:$0xff]   ;;  %v737_v8 = vld [vmem:[#allocation2 + $0x30] sm:$0xff]   ;;  %v738_v9 = vld [vmem:[#allocation2 + $0x38] sm:$0xff]  }
  0x5c   : > { %s1023_s23 = smov (!%p230_p8, %s579_s23), 15  ;;  %652 = vmatprep.subr.bf16.mxu0 %v732_v1  ;;  %675 = vmatprep.subr.bf16.mxu1 %v732_v1  ;;  %v595_v12 = vld [vmem:[#allocation4] ss:$0 sm:$0xff]  ;;  %v596_v14 = vld [vmem:[#allocation6] ss:$0 sm:$0xff] }
  0x5d   : > { %s580_s20 = sshll.u32 %s1023_s23, 2 }
  0x5e   : > { %s994_s18 = scalar_lea.vmem %s1008_s0, %s580_s20  ;;  %s239_s24 = scalar_lea.vmem %s1012_s4, %s580_s20 }
  0x5f   : > { %653 = vmatpush3.bf16.msra.mxu0 %v732_v1  ;;  %683 = vmatpush3.bf16.msra.mxu1 %v732_v1  ;;  %v739_v4 = vld [vmem:[%s994_s18] sm:$0xff]   ;;  %v740_v5 = vld [vmem:[%s994_s18 + $0x10] sm:$0xff]   ;;  %v741_v10 = vld [vmem:[%s994_s18 + $0x8] sm:$0xff]  }
  0x60   : > { %654 = vmatprep.subr.bf16.mxu0 %v733_v2  ;;  %676 = vmatprep.subr.bf16.mxu1 %v733_v2  ;;  %v742_v11 = vld [vmem:[%s994_s18 + $0x18] sm:$0xff]  }
  0x61   : > { %666 = vmatprep.mubr.bf16.mxu0 %v739_v4  ;;  %670 = vmatprep.mubr.bf16.mxu1 %v740_v5 }
  0x63   : > { %655 = vmatpush3.bf16.msra.mxu0 %v733_v2  ;;  %684 = vmatpush3.bf16.msra.mxu1 %v733_v2 }
  0x64   : > { %656 = vmatprep.subr.bf16.mxu0 %v734_v3  ;;  %677 = vmatprep.subr.bf16.mxu1 %v734_v3 }
  0x67   : > { %657 = vmatpush3.bf16.msra.mxu0 %v734_v3  ;;  %685 = vmatpush3.bf16.msra.mxu1 %v734_v3 }
  0x68   : > { %658 = vmatprep.subr.bf16.mxu0 %v735_v6  ;;  %678 = vmatprep.subr.bf16.mxu1 %v735_v6 }
  0x6b   : > { %659 = vmatpush3.bf16.msra.mxu0 %v735_v6  ;;  %686 = vmatpush3.bf16.msra.mxu1 %v735_v6 }
  0x6c   : > { %660 = vmatprep.subr.bf16.mxu0 %v736_v7  ;;  %679 = vmatprep.subr.bf16.mxu1 %v736_v7 }
  0x6f   : > { %661 = vmatpush3.bf16.msra.mxu0 %v736_v7  ;;  %687 = vmatpush3.bf16.msra.mxu1 %v736_v7 }
  0x70   : > { %662 = vmatprep.subr.bf16.mxu0 %v737_v8  ;;  %680 = vmatprep.subr.bf16.mxu1 %v737_v8 }
  0x73   : > { %663 = vmatpush3.bf16.msra.mxu0 %v737_v8  ;;  %688 = vmatpush3.bf16.msra.mxu1 %v737_v8 }
  0x74   : > { %664 = vmatprep.subr.bf16.mxu0 %v738_v9  ;;  %681 = vmatprep.subr.bf16.mxu1 %v738_v9 }
  0x77   : > { %665 = vmatpush3.bf16.msra.mxu0 %v738_v9  ;;  %689 = vmatpush3.bf16.msra.mxu1 %v738_v9 }
  0x7a   : > { %667 = vmatmul.mubr.bf16.vlgmr.msra.gmra.mrb[0].mxu0 %v741_v10  ;;  %671 = vmatmul.mubr.bf16.vlgmr.msra.gmra.mrb[0].mxu1 %v742_v11 }
 0x14d   : > { %v668_v13 = vpop.f32.mrb[0].mxu0  ;;  %v672_v15 = vpop.f32.mrb[0].mxu1 }
 0x14e   : > { %v412_v16 = vmul.f32 %v668_v13, %v595_v12  ;;  %v416_v17 = vmul.f32 %v672_v15, %v595_v12  ;;  %v372_v18 = vpop.f32.mrb[1].mxu0  ;;  %v388_v19 = vpop.f32.mrb[1].mxu1 }
 0x14f   : > { %v410_v20 = vmul.f32 %v595_v12, %v372_v18  ;;  %v414_v21 = vmul.f32 %v595_v12, %v388_v19  ;;  %v669_v22 = vpop.f32.mrb[2].mxu0  ;;  %v673_v23 = vpop.f32.mrb[2].mxu1 }
 0x150   : > { %v427_v24 = vadd.f32 %v596_v14, %v412_v16  ;;  %v431_v25 = vadd.f32 %v596_v14, %v416_v17  ;;  %v413_v26 = vmul.f32 %v669_v22, %v595_v12  ;;  %v417_v27 = vmul.f32 %v673_v23, %v595_v12  ;;  %v375_v28 = vpop.f32.mrb[3].mxu0  ;;  %v391_v29 = vpop.f32.mrb[3].mxu1 }
 0x151   : > { %v425_v30 = vadd.f32 %v596_v14, %v410_v20  ;;  %v429_v31 = vadd.f32 %v596_v14, %v414_v21  ;;  %v411_v32 = vmul.f32 %v595_v12, %v375_v28  ;;  %v415_v33 = vmul.f32 %v595_v12, %v391_v29 }
 0x152   : > { %v428_v34 = vadd.f32 %v596_v14, %v413_v26  ;;  %v432_v35 = vadd.f32 %v596_v14, %v417_v27  ;;  %v435_v38 = vmax.f32 %v427_v24, 0.0  ;;  %v439_v39 = vmax.f32 %v431_v25, 0.0 }
 0x153   : > { %v426_v36 = vadd.f32 %v596_v14, %v411_v32  ;;  %v430_v37 = vadd.f32 %v596_v14, %v415_v33  ;;  %v433_v42 = vmax.f32 %v425_v30, 0.0  ;;  %v437_v43 = vmax.f32 %v429_v31, 0.0 }
 0x154   : > { %v436_v40 = vmax.f32 %v428_v34, 0.0  ;;  %v440_v41 = vmax.f32 %v432_v35, 0.0 }
 0x155   : > { %v434_v44 = vmax.f32 %v426_v36, 0.0  ;;  %v438_v45 = vmax.f32 %v430_v37, 0.0 }
 0x156   : > { %v623_v46 = vpack.c.bf16 %v436_v40, %v435_v38  ;;  %v633_v47 = vpack.c.bf16 %v440_v41, %v439_v39 }
 0x157   : > { %v618_v48 = vpack.c.bf16 %v434_v44, %v433_v42  ;;  %v628_v49 = vpack.c.bf16 %v438_v45, %v437_v43 }
 0x158   : > { %635 = vst [vmem:[%s239_s24 + $0x8] sm:$0xff] %v623_v46   ;;  %637 = vst [vmem:[%s239_s24 + $0x18] sm:$0xff] %v633_v47  }
 0x159   : > { %619 = vst [vmem:[%s239_s24] sm:$0xff] %v618_v48   ;;  %636 = vst [vmem:[%s239_s24 + $0x10] sm:$0xff] %v628_v49  }
 0x15a PF: > { %s16_s15 = sadd.s32 1, %s841_s15  }
 0x15b   : > { %p13_p5 = scmp.ge.s32.totalorder %s16_s15, 4  }
 0x15d   :  { %15 = sbr.rel (!%p13_p5) target bundleno = 2 (0x2), region = 79 }
 0x164   :  { %503 = vsyncpa [#allocation3], 1 }
 0x165   :  { %505 = vsyncpa [#allocation3 + $0x1], 1 }
 0x166   :  { %506 = vsyncpa [#allocation5], 1 }

// kernel: chessnet_forward.6
= control target key start
LH: loop header
LB: loop body
LE: loop exit
PB: predicated region body
PF: predicated region fallthrough
CT: control target
= control target key end

     0   :  { %9 = vsyncpa [#allocation3], 0  ;;  %s2376_s0 = inlined_call_operand.vmem [shape: bf16[128,1152], index: 0, kind: input, shape index: {}]   ;;  %s2377_s1 = inlined_call_operand.hbm [shape: bf16[1152,128], index: 1, kind: input, shape index: {}]   ;;  %s2378_s2 = inlined_call_operand.hbm [shape: f32[1,128], index: 2, kind: input, shape index: {}]   ;;  %s2379_s3 = inlined_call_operand.hbm [shape: f32[1,128], index: 3, kind: input, shape index: {}]   ;;  %s2380_s4 = inlined_call_operand.vmem [shape: bf16[128,128], index: 4, kind: output, shape index: {}]  }
   0x1   :  { %10 = vsyncpa [#allocation5], 0  ;;  %s2209_s15 = smov 0  }
   0x2 LB: > { %s2179_s16 = smov [#allocation4]   ;;  %s1535_s18 = sadd.s32 4294967295, %s2177_s15   ;;  %s2177_s15 = sphi %s2209_s15, %s16_s15  }
   0x3   : > { %s162_s17 = sshll.u32 %s2179_s16, 4  ;;  %p1537_p0 = scmp.ge.s32.totalorder %s2177_s15, 1  ;;  %s163_s17 = int_to_ptr.vmem [resolvable:$true] %s162_s17 }
   0x4   : > { %p136_p1 = scmp.lt.s32.totalorder %s2177_s15, 3  ;;  %p2219_p2 = scmp.eq.s32.totalorder %s1535_s18, 0 }
   0x5   : > { %s2180_s21 = smov [#allocation2]   ;;  %s2181_s24 = smov [#allocation6]  }
   0x6   : > { %s2384_s19 = scalar_select %p2219_p2, 1, 0 }
   0x7   : > { %p2223_p3 = pnand %p1537_p0, %p136_p1  ;;  %s148_s22 = sshll.u32 %s2180_s21, 4  ;;  %s2235_s22 = int_to_ptr.vmem [resolvable:$true] %s148_s22 }
   0x8   : > { %s173_s25 = sshll.u32 %s2181_s24, 4  ;;  %s2079_s28 = scalar_lea.hbm %s2378_s2, 16  ;;  %s2237_s25 = int_to_ptr.vmem [resolvable:$true] %s173_s25 }
   0x9   : > { %s2385_s20 = scalar_select %p2223_p3, 1, 0 }
   0xa   : > { %p1926_p4 = pneg %p2223_p3  ;;  %p2080_p6 = scmp.ne.s32.totalorder %s2378_s2, %s2079_s28 }
   0xb   : > { %p2086_p10 = scmp.lt.u32.totalorder %s2079_s28, %s2378_s2 }
   0xc   : > { %p2231_p5 = pnand %p2219_p2, %p1926_p4 }
   0xe   : > { %p2247_p7 = pneg %p2231_p5 }
  0x10   : > { %p2082_p8 = pnand %p2247_p7, %p2080_p6 }
  0x12   : > { %p2083_p9 = pneg %p2082_p8 }
  0x14   : > { %p2088_p11 = pnand %p2086_p10, %p2083_p9 }
  0x16   : > { %2091 = shalt.err (!%p2088_p11)
}
  0x17   : > { %s2092_s8 = scalar_lea.vmem %s163_s17, 16  ;;  %s2099_s9 = scalar_lea.vmem %s163_s17, 32 }
  0x18   : > { %p2093_p12 = scmp.ne.s32.totalorder %s163_s17, %s2092_s8  ;;  %p2100_p1 = scmp.lt.s32.totalorder %s163_s17, %s163_s17 }
  0x19   : > { %p2101_p4 = scmp.lt.s32.totalorder %s2099_s9, %s2092_s8 }
  0x1a   : > { %p2095_p13 = pnand %p2093_p12, %p2247_p7 }
  0x1b   : > { %p2102_p2 = por %p2101_p4, %p2100_p1 }
  0x1c   : > { %p2096_p0 = pneg %p2095_p13 }
  0x1e   : > { %p2103_p3 = pnand %p2102_p2, %p2096_p0 }
  0x20   : > { %2106 = shalt.err (!%p2103_p3)
}
  0x21   : > { %1932 = dma.hbm_to_vmem [thread:$0]  (!%p2231_p5), %s2378_s2, 16, %s163_s17, [#allocation5]  }
  0x22   : > { %s2107_s14 = scalar_lea.hbm %s2377_s1, 9216 }
  0x23   : > { %p2108_p6 = scmp.ne.s32.totalorder %s2377_s1, %s2107_s14  ;;  %p2114_p2 = scmp.lt.u32.totalorder %s2107_s14, %s2377_s1 }
  0x25   : > { %p2110_p8 = pnand %p2108_p6, %p2247_p7 }
  0x27   : > { %p2111_p9 = pneg %p2110_p8 }
  0x29   : > { %p2116_p3 = pnand %p2114_p2, %p2111_p9 }
  0x2b   : > { %2119 = shalt.err (!%p2116_p3)
}
  0x2c   : > { %s2120_s17 = scalar_lea.vmem %s2235_s22, 9216  ;;  %p2128_p13 = scmp.lt.s32.totalorder %s2235_s22, %s2235_s22 }
  0x2d   : > { %p2121_p10 = scmp.ne.s32.totalorder %s2235_s22, %s2120_s17  ;;  %p2129_p0 = scmp.lt.s32.totalorder %s2120_s17, %s2120_s17 }
  0x2f   : > { %p2123_p11 = pnand %p2121_p10, %p2247_p7  ;;  %p2130_p1 = por %p2129_p0, %p2128_p13 }
  0x31   : > { %p2124_p12 = pneg %p2123_p11 }
  0x33   : > { %p2131_p4 = pnand %p2130_p1, %p2124_p12 }
  0x35   : > { %2134 = shalt.err (!%p2131_p4)
}
  0x36   : > { %s2182_s27 = smov 64   ;;  %s2183_s28 = smov 4  }
  0x37   : > { %1929 = dma.hbm_to_vmem [thread:$0]  (!%p2231_p5), %s2377_s1, 9216, %s2235_s22, [#allocation3], %s2182_s27, %s2182_s27, %s2183_s28  }
  0x38   : > { %s2135_s8 = scalar_lea.hbm %s2379_s3, 16 }
  0x39   : > { %p2136_p6 = scmp.ne.s32.totalorder %s2379_s3, %s2135_s8  ;;  %p2142_p2 = scmp.lt.u32.totalorder %s2135_s8, %s2379_s3 }
  0x3b   : > { %p2138_p8 = pnand %p2136_p6, %p2247_p7 }
  0x3d   : > { %p2139_p9 = pneg %p2138_p8 }
  0x3f   : > { %p2144_p3 = pnand %p2142_p2, %p2139_p9 }
  0x41   : > { %2147 = shalt.err (!%p2144_p3)
}
  0x42   : > { %s2148_s22 = scalar_lea.vmem %s2237_s25, 16  ;;  %s2155_s13 = scalar_lea.vmem %s2237_s25, 32 }
  0x43   : > { %p2149_p10 = scmp.ne.s32.totalorder %s2237_s25, %s2148_s22  ;;  %p2156_p13 = scmp.lt.s32.totalorder %s2237_s25, %s2237_s25 }
  0x44   : > { %p2157_p0 = scmp.lt.s32.totalorder %s2155_s13, %s2148_s22 }
  0x45   : > { %p2151_p11 = pnand %p2149_p10, %p2247_p7 }
  0x46   : > { %p2158_p1 = por %p2157_p0, %p2156_p13 }
  0x47   : > { %p2152_p12 = pneg %p2151_p11 }
  0x49   : > { %p2159_p4 = pnand %p2158_p1, %p2152_p12 }
  0x4b   : > { %2162 = shalt.err (!%p2159_p4)
}
  0x4c   : > { %1935 = dma.hbm_to_vmem [thread:$0]  (!%p2231_p5), %s2379_s3, 16, %s2237_s25, [#allocation5]  }
  0x4d   : > { %p2388_p6 = scmp.ne.s32.totalorder %s2385_s20, 0 }
  0x4e   : > { %p2389_p7 = scmp.ne.s32.totalorder (!%p2388_p6), %s2384_s19, 0 }
  0x4f   : > { %196 = sbr.rel (%p2388_p6) target bundleno = 415 (0x19f), region = 36 }
  0x56   : > { %2168 = dma.done.wait (%p2389_p7), [#allocation3], 9216  }
  0x57   : > { %2170 = vsyncadd (%p2389_p7), [#allocation3], 4294958080 }
  0x58   : > { %2172 = dma.done.wait (%p2389_p7), [#allocation5], 32  }
  0x59   : > { %2174 = vsyncadd (%p2389_p7), [#allocation5], 4294967264  ;;  %v1955_v0 = vld [vmem:[#allocation2 + $0x40] sm:$0xff]   ;;  %v1959_v4 = vld [vmem:[#allocation2 + $0x48] sm:$0xff]   ;;  %s1546_s19 = sshll.u32 %s1535_s18, 3 }
  0x5a   : > { %v1956_v1 = vld [vmem:[#allocation2 + $0xc0] sm:$0xff]   ;;  %1701 = vmatprep.subr.bf16.mxu0 %v1955_v0  ;;  %v1960_v5 = vld [vmem:[#allocation2 + $0xc8] sm:$0xff]   ;;  %v1963_v8 = vld [vmem:[#allocation2 + $0x50] sm:$0xff]   ;;  %p232_p5 = scmp.lt.s32.totalorder %s1546_s19, 15 }
  0x5b   : > { %v1957_v2 = vld [vmem:[#allocation2] sm:$0xff]   ;;  %1741 = vmatprep.subr.bf16.mxu1 %v1956_v1  ;;  %v1961_v6 = vld [vmem:[#allocation2 + $0x8] sm:$0xff]   ;;  %v1964_v9 = vld [vmem:[#allocation2 + $0xd0] sm:$0xff]  }
  0x5c   : > { %v1958_v3 = vld [vmem:[#allocation2 + $0x80] sm:$0xff]   ;;  %1702 = vmatpush3.bf16.msra.mxu0 %v1957_v2  ;;  %v1962_v7 = vld [vmem:[#allocation2 + $0x88] sm:$0xff]   ;;  %v1965_v10 = vld [vmem:[#allocation2 + $0x10] sm:$0xff]   ;;  %s2391_s19 = smov (!%p232_p5, %s1546_s19), 15 }
  0x5d   : > { %1742 = vmatpush3.bf16.msra.mxu1 %v1958_v3  ;;  %1703 = vmatprep.subr.bf16.mxu0 %v1959_v4  ;;  %v1966_v11 = vld [vmem:[#allocation2 + $0x90] sm:$0xff]   ;;  %v1967_v12 = vld [vmem:[#allocation2 + $0x58] sm:$0xff]   ;;  %v1971_v16 = vld [vmem:[#allocation2 + $0x60] sm:$0xff]   ;;  %s1913_s18 = smul.u32 36, %s2391_s19  ;;  %s1549_s5 = sshll.u32 %s2391_s19, 2 }
  0x5e   : > { %1743 = vmatprep.subr.bf16.mxu1 %v1960_v5  ;;  %v1968_v13 = vld [vmem:[#allocation2 + $0xd8] sm:$0xff]   ;;  %v1972_v17 = vld [vmem:[#allocation2 + $0xe0] sm:$0xff]   ;;  %v1975_v20 = vld [vmem:[#allocation2 + $0x68] sm:$0xff]   ;;  %s242_s26 = scalar_lea.vmem %s2380_s4, %s1549_s5 }
  0x5f   : > { %v1969_v14 = vld [vmem:[#allocation2 + $0x18] sm:$0xff]   ;;  %v1973_v18 = vld [vmem:[#allocation2 + $0x20] sm:$0xff]   ;;  %v1976_v21 = vld [vmem:[#allocation2 + $0xe8] sm:$0xff]   ;;  %s2328_s25 = scalar_lea.vmem %s2376_s0, %s1913_s18 }
  0x60   : > { %1704 = vmatpush3.bf16.msra.mxu0 %v1961_v6  ;;  %v1970_v15 = vld [vmem:[#allocation2 + $0x98] sm:$0xff]   ;;  %v1974_v19 = vld [vmem:[#allocation2 + $0xa0] sm:$0xff]   ;;  %v1977_v22 = vld [vmem:[#allocation2 + $0x28] sm:$0xff]  }
  0x61   : > { %1744 = vmatpush3.bf16.msra.mxu1 %v1962_v7  ;;  %1705 = vmatprep.subr.bf16.mxu0 %v1963_v8  ;;  %v1978_v23 = vld [vmem:[#allocation2 + $0xa8] sm:$0xff]   ;;  %v1979_v24 = vld [vmem:[#allocation2 + $0x70] sm:$0xff]   ;;  %v1983_v28 = vld [vmem:[#allocation2 + $0x78] sm:$0xff]  }
  0x62   : > { %1745 = vmatprep.subr.bf16.mxu1 %v1964_v9  ;;  %v1980_v25 = vld [vmem:[#allocation2 + $0xf0] sm:$0xff]   ;;  %v1984_v29 = vld [vmem:[#allocation2 + $0xf8] sm:$0xff]   ;;  %v1987_v32 = vld [vmem:[%s2328_s25] ss:$36 sps:$4 sm:$0xff]  }
  0x63   : > { %v1981_v26 = vld [vmem:[#allocation2 + $0x30] sm:$0xff]   ;;  %v1985_v30 = vld [vmem:[#allocation2 + $0x38] sm:$0xff]   ;;  %v1989_v33 = vld [vmem:[%s2328_s25 + $0x4] ss:$36 sps:$4 sm:$0xff]  }
  0x64   : > { %1706 = vmatpush3.bf16.msra.mxu0 %v1965_v10  ;;  %v1982_v27 = vld [vmem:[#allocation2 + $0xb0] sm:$0xff]   ;;  %v1986_v31 = vld [vmem:[#allocation2 + $0xb8] sm:$0xff]   ;;  %v1990_v34 = vld [vmem:[%s2328_s25 + $0x8] ss:$36 sps:$4 sm:$0xff]   ;;  %1077 = vmatprep.mubr.bf16.mxu0 %v1989_v33 }
  0x65   : > { %1746 = vmatpush3.bf16.msra.mxu1 %v1966_v11  ;;  %1707 = vmatprep.subr.bf16.mxu0 %v1967_v12  ;;  %v1992_v35 = vld [vmem:[%s2328_s25 + $0xc] ss:$36 sps:$4 sm:$0xff]   ;;  %v1993_v36 = vld [vmem:[#allocation2 + $0x140] sm:$0xff]   ;;  %v2003_v45 = vld [vmem:[%s2328_s25 + $0x54] ss:$36 sps:$4 sm:$0xff]  }
  0x66   : > { %1747 = vmatprep.subr.bf16.mxu1 %v1968_v13  ;;  %1142 = vmatprep.mubr.bf16.mxu1 %v1992_v35  ;;  %v1994_v37 = vld [vmem:[#allocation2 + $0x1c0] sm:$0xff]   ;;  %v1997_v40 = vld [vmem:[#allocation2 + $0x148] sm:$0xff]   ;;  %v2006_v47 = vld [vmem:[%s2328_s25 + $0x50] ss:$36 sps:$4 sm:$0xff]  }
  0x67   : > { %v1995_v38 = vld [vmem:[#allocation2 + $0x100] sm:$0xff]   ;;  %v1998_v41 = vld [vmem:[#allocation2 + $0x1c8] sm:$0xff]   ;;  %v2007_v48 = vld [vmem:[#allocation2 + $0x150] sm:$0xff]  }
  0x68   : > { %1708 = vmatpush3.bf16.msra.mxu0 %v1969_v14  ;;  %v1996_v39 = vld [vmem:[#allocation2 + $0x180] sm:$0xff]   ;;  %v1999_v42 = vld [vmem:[#allocation2 + $0x108] sm:$0xff]   ;;  %v2008_v49 = vld [vmem:[#allocation2 + $0x1d0] sm:$0xff]  }
  0x69   : > { %1748 = vmatpush3.bf16.msra.mxu1 %v1970_v15  ;;  %1709 = vmatprep.subr.bf16.mxu0 %v1971_v16  ;;  %v2000_v43 = vld [vmem:[#allocation2 + $0x188] sm:$0xff]   ;;  %v2009_v50 = vld [vmem:[#allocation2 + $0x110] sm:$0xff]   ;;  %v2011_v52 = vld [vmem:[#allocation2 + $0x158] sm:$0xff]  }
  0x6a   : > { %1749 = vmatprep.subr.bf16.mxu1 %v1972_v17  ;;  %v2001_v44 = vld [vmem:[%s2328_s25 + $0x4c] ss:$36 sps:$4 sm:$0xff]   ;;  %v2012_v53 = vld [vmem:[#allocation2 + $0x1d8] sm:$0xff]   ;;  %v2021_v60 = vld [vmem:[#allocation2 + $0x160] sm:$0xff]  }
  0x6b   : > { %v2005_v46 = vld [vmem:[%s2328_s25 + $0x48] ss:$36 sps:$4 sm:$0xff]   ;;  %v2010_v51 = vld [vmem:[#allocation2 + $0x190] sm:$0xff]   ;;  %v2013_v54 = vld [vmem:[#allocation2 + $0x118] sm:$0xff]  }
  0x6c   : > { %1710 = vmatpush3.bf16.msra.mxu0 %v1973_v18  ;;  %v2014_v55 = vld [vmem:[#allocation2 + $0x198] sm:$0xff]   ;;  %v2019_v58 = vld [vmem:[%s2328_s25 + $0x90] ss:$36 sps:$4 sm:$0xff]   ;;  %v2022_v61 = vld [vmem:[#allocation2 + $0x1e0] sm:$0xff]  }
  0x6d   : > { %1750 = vmatpush3.bf16.msra.mxu1 %v1974_v19  ;;  %1711 = vmatprep.subr.bf16.mxu0 %v1975_v20  ;;  %v2015_v56 = vld [vmem:[%s2328_s25 + $0x94] ss:$36 sps:$4 sm:$0xff]   ;;  %v2017_v57 = vld [vmem:[%s2328_s25 + $0x9c] ss:$36 sps:$4 sm:$0xff]   ;;  %v2025_v0 = vld [vmem:[#allocation2 + $0x168] sm:$0xff]  }
  0x6e   : > { %1751 = vmatprep.subr.bf16.mxu1 %v1976_v21  ;;  %v2020_v59 = vld [vmem:[%s2328_s25 + $0x98] ss:$36 sps:$4 sm:$0xff]   ;;  %v2023_v62 = vld [vmem:[#allocation2 + $0x120] sm:$0xff]   ;;  %v2026_v1 = vld [vmem:[#allocation2 + $0x1e8] sm:$0xff]  }
  0x6f   : > { %v2024_v63 = vld [vmem:[#allocation2 + $0x1a0] sm:$0xff]   ;;  %v2027_v2 = vld [vmem:[#allocation2 + $0x128] sm:$0xff]   ;;  %v2033_v6 = vld [vmem:[%s2328_s25 + $0xd8] ss:$36 sps:$4 sm:$0xff]  }
  0x70   : > { %1712 = vmatpush3.bf16.msra.mxu0 %v1977_v22  ;;  %v2028_v3 = vld [vmem:[#allocation2 + $0x1a8] sm:$0xff]   ;;  %v2029_v4 = vld [vmem:[%s2328_s25 + $0xdc] ss:$36 sps:$4 sm:$0xff]   ;;  %v2035_v8 = vld [vmem:[#allocation2 + $0x170] sm:$0xff]  }
  0x71   : > { %1752 = vmatpush3.bf16.msra.mxu1 %v1978_v23  ;;  %1713 = vmatprep.subr.bf16.mxu0 %v1979_v24  ;;  %v2031_v5 = vld [vmem:[%s2328_s25 + $0xe4] ss:$36 sps:$4 sm:$0xff]   ;;  %v2036_v9 = vld [vmem:[#allocation2 + $0x1f0] sm:$0xff]   ;;  %v2039_v12 = vld [vmem:[#allocation2 + $0x178] sm:$0xff]  }
  0x72   : > { %1753 = vmatprep.subr.bf16.mxu1 %v1980_v25  ;;  %v2034_v7 = vld [vmem:[%s2328_s25 + $0xe0] ss:$36 sps:$4 sm:$0xff]   ;;  %v2037_v10 = vld [vmem:[#allocation2 + $0x130] sm:$0xff]   ;;  %v2040_v13 = vld [vmem:[#allocation2 + $0x1f8] sm:$0xff]  }
  0x73   : > { %v2038_v11 = vld [vmem:[#allocation2 + $0x1b0] sm:$0xff]   ;;  %v2041_v14 = vld [vmem:[#allocation2 + $0x138] sm:$0xff]   ;;  %v2049_v20 = vld [vmem:[#allocation2 + $0x200] sm:$0xff]  }
  0x74   : > { %1714 = vmatpush3.bf16.msra.mxu0 %v1981_v26  ;;  %v2042_v15 = vld [vmem:[#allocation2 + $0x1b8] sm:$0xff]   ;;  %v2043_v16 = vld [vmem:[%s2328_s25 + $0x10] ss:$36 sps:$4 sm:$0xff]   ;;  %v2050_v21 = vld [vmem:[#allocation2 + $0x208] sm:$0xff]  }
  0x75   : > { %1754 = vmatpush3.bf16.msra.mxu1 %v1982_v27  ;;  %1715 = vmatprep.subr.bf16.mxu0 %v1983_v28  ;;  %v2045_v17 = vld [vmem:[%s2328_s25 + $0x14] ss:$36 sps:$4 sm:$0xff]   ;;  %v2048_v19 = vld [vmem:[%s2328_s25 + $0x1c] ss:$36 sps:$4 sm:$0xff]   ;;  %v2053_v23 = vld [vmem:[%s2328_s25 + $0x64] ss:$36 sps:$4 sm:$0xff]  }
  0x76   : > { %1755 = vmatprep.subr.bf16.mxu1 %v1984_v29  ;;  %v2046_v18 = vld [vmem:[%s2328_s25 + $0x18] ss:$36 sps:$4 sm:$0xff]   ;;  %v2056_v25 = vld [vmem:[%s2328_s25 + $0x60] ss:$36 sps:$4 sm:$0xff]   ;;  %v2057_v26 = vld [vmem:[#allocation2 + $0x210] sm:$0xff]  }
  0x77   : > { %v2051_v22 = vld [vmem:[%s2328_s25 + $0x5c] ss:$36 sps:$4 sm:$0xff]   ;;  %v2059_v27 = vld [vmem:[%s2328_s25 + $0xa4] ss:$36 sps:$4 sm:$0xff]   ;;  %v2061_v28 = vld [vmem:[%s2328_s25 + $0xac] ss:$36 sps:$4 sm:$0xff]  }
  0x78   : > { %1716 = vmatpush3.bf16.msra.mxu0 %v1985_v30  ;;  %v2055_v24 = vld [vmem:[%s2328_s25 + $0x58] ss:$36 sps:$4 sm:$0xff]   ;;  %v2063_v30 = vld [vmem:[%s2328_s25 + $0xa0] ss:$36 sps:$4 sm:$0xff]   ;;  %v2067_v33 = vld [vmem:[%s2328_s25 + $0xec] ss:$36 sps:$4 sm:$0xff]  }
  0x79   : > { %1756 = vmatpush3.bf16.msra.mxu1 %v1986_v31  ;;  %1781 = vmatprep.subr.bf16.mxu0 %v1993_v36  ;;  %v2058_v29 = vld [vmem:[#allocation2 + $0x218] sm:$0xff]   ;;  %v2064_v31 = vld [vmem:[%s2328_s25 + $0xa8] ss:$36 sps:$4 sm:$0xff]  }
  0x7a   : > { %1821 = vmatprep.subr.bf16.mxu1 %v1994_v37  ;;  %v2066_v35 = vld [vmem:[#allocation2 + $0x228] sm:$0xff]   ;;  %v2073_v37 = vld [vmem:[#allocation2 + $0x230] sm:$0xff]  }
  0x7b   : > { %1078 = vmatmul.mubr.bf16.vlgmr.msra.gmra.mrb[0].mxu0 %v1987_v32  ;;  %v2065_v32 = vld [vmem:[#allocation2 + $0x220] sm:$0xff]   ;;  %v2071_v36 = vld [vmem:[%s2328_s25 + $0xe8] ss:$36 sps:$4 sm:$0xff]  }
  0x7c   : > { %1143 = vmatmul.mubr.bf16.vlgmr.msra.gmra.mrb[0].mxu1 %v1990_v34  ;;  %1782 = vmatpush3.bf16.msra.mxu0 %v1995_v38  ;;  %v2069_v34 = vld [vmem:[%s2328_s25 + $0xf4] ss:$36 sps:$4 sm:$0xff]  }
  0x7d   : > { %1822 = vmatpush3.bf16.msra.mxu1 %v1996_v39  ;;  %1783 = vmatprep.subr.bf16.mxu0 %v1997_v40  ;;  %v2072_v38 = vld [vmem:[%s2328_s25 + $0xf0] ss:$36 sps:$4 sm:$0xff]   ;;  %v2075_v39 = vld [vmem:[%s2328_s25 + $0x20] ss:$36 sps:$4 sm:$0xff]  }
  0x7e   : > { %1823 = vmatprep.subr.bf16.mxu1 %v1998_v41  ;;  %1085 = vmatprep.mubr.bf16.mxu0 %v2001_v44  ;;  %v2076_v40 = vld [vmem:[%s2328_s25 + $0xb0] ss:$36 sps:$4 sm:$0xff]   ;;  %v2074_v41 = vld [vmem:[#allocation2 + $0x238] sm:$0xff]  }
  0x7f   : > { %1150 = vmatprep.mubr.bf16.mxu1 %v2003_v45 }
  0x80   : > { %1784 = vmatpush3.bf16.msra.mxu0 %v1999_v42  ;;  %v2077_v42 = vld [vmem:[%s2328_s25 + $0x68] ss:$36 sps:$4 sm:$0xff]  }
  0x81   : > { %1824 = vmatpush3.bf16.msra.mxu1 %v2000_v43  ;;  %1785 = vmatprep.subr.bf16.mxu0 %v2007_v48  ;;  %v2078_v43 = vld [vmem:[%s2328_s25 + $0xf8] ss:$36 sps:$4 sm:$0xff]  }
  0x82   : > { %1825 = vmatprep.subr.bf16.mxu1 %v2008_v49 }
  0x83   : > { %1086 = vmatmul.mubr.bf16.gmra.mrb[4].mxu0 %v2005_v46 }
  0x84   : > { %1151 = vmatmul.mubr.bf16.gmra.mrb[4].mxu1 %v2006_v47  ;;  %1786 = vmatpush3.bf16.msra.mxu0 %v2009_v50 }
  0x85   : > { %1826 = vmatpush3.bf16.msra.mxu1 %v2010_v51  ;;  %1787 = vmatprep.subr.bf16.mxu0 %v2011_v52 }
  0x86   : > { %1827 = vmatprep.subr.bf16.mxu1 %v2012_v53  ;;  %1093 = vmatprep.mubr.bf16.mxu0 %v2015_v56 }
  0x87   : > { %1158 = vmatprep.mubr.bf16.mxu1 %v2017_v57 }
  0x88   : > { %1788 = vmatpush3.bf16.msra.mxu0 %v2013_v54 }
  0x89   : > { %1828 = vmatpush3.bf16.msra.mxu1 %v2014_v55  ;;  %1789 = vmatprep.subr.bf16.mxu0 %v2021_v60 }
  0x8a   : > { %1829 = vmatprep.subr.bf16.mxu1 %v2022_v61 }
  0x8b   : > { %1094 = vmatmul.mubr.bf16.gmra.mrb[8].mxu0 %v2019_v58 }
  0x8c   : > { %1159 = vmatmul.mubr.bf16.gmra.mrb[8].mxu1 %v2020_v59  ;;  %1790 = vmatpush3.bf16.msra.mxu0 %v2023_v62 }
  0x8d   : > { %1830 = vmatpush3.bf16.msra.mxu1 %v2024_v63  ;;  %1791 = vmatprep.subr.bf16.mxu0 %v2025_v0 }
  0x8e   : > { %1831 = vmatprep.subr.bf16.mxu1 %v2026_v1  ;;  %1101 = vmatprep.mubr.bf16.mxu0 %v2029_v4 }
  0x8f   : > { %1166 = vmatprep.mubr.bf16.mxu1 %v2031_v5 }
  0x90   : > { %1792 = vmatpush3.bf16.msra.mxu0 %v2027_v2 }
  0x91   : > { %1832 = vmatpush3.bf16.msra.mxu1 %v2028_v3  ;;  %1793 = vmatprep.subr.bf16.mxu0 %v2035_v8 }
  0x92   : > { %1833 = vmatprep.subr.bf16.mxu1 %v2036_v9 }
  0x93   : > { %1102 = vmatmul.mubr.bf16.gmra.mrb[12].mxu0 %v2033_v6 }
  0x94   : > { %1167 = vmatmul.mubr.bf16.gmra.mrb[12].mxu1 %v2034_v7  ;;  %1794 = vmatpush3.bf16.msra.mxu0 %v2037_v10 }
  0x95   : > { %1834 = vmatpush3.bf16.msra.mxu1 %v2038_v11  ;;  %1795 = vmatprep.subr.bf16.mxu0 %v2039_v12 }
  0x96   : > { %1835 = vmatprep.subr.bf16.mxu1 %v2040_v13  ;;  %1207 = vmatprep.mubr.bf16.mxu0 %v2045_v17 }
  0x97   : > { %1272 = vmatprep.mubr.bf16.mxu1 %v2048_v19 }
  0x98   : > { %1796 = vmatpush3.bf16.msra.mxu0 %v2041_v14 }
  0x99   : > { %1836 = vmatpush3.bf16.msra.mxu1 %v2042_v15  ;;  %1873 = vmatprep.subr.bf16.mxu0 %v2049_v20 }
  0x9a   : > { %1897 = vmatprep.subr.bf16.mxu1 %v2049_v20 }
  0x9b   : > { %1208 = vmatmul.mubr.bf16.vlgmr.msra.gmra.mrb[16].mxu0 %v2043_v16 }
  0x9c   : > { %1273 = vmatmul.mubr.bf16.vlgmr.msra.gmra.mrb[16].mxu1 %v2046_v18  ;;  %1874 = vmatpush3.bf16.msra.mxu0 %v2049_v20 }
  0x9d   : > { %1905 = vmatpush3.bf16.msra.mxu1 %v2049_v20  ;;  %1875 = vmatprep.subr.bf16.mxu0 %v2050_v21 }
  0x9e   : > { %1898 = vmatprep.subr.bf16.mxu1 %v2050_v21  ;;  %1215 = vmatprep.mubr.bf16.mxu0 %v2051_v22 }
  0x9f   : > { %1280 = vmatprep.mubr.bf16.mxu1 %v2053_v23 }
  0xa0   : > { %1876 = vmatpush3.bf16.msra.mxu0 %v2050_v21 }
  0xa1   : > { %1906 = vmatpush3.bf16.msra.mxu1 %v2050_v21  ;;  %1877 = vmatprep.subr.bf16.mxu0 %v2057_v26 }
  0xa2   : > { %1899 = vmatprep.subr.bf16.mxu1 %v2057_v26 }
  0xa3   : > { %1216 = vmatmul.mubr.bf16.gmra.mrb[20].mxu0 %v2055_v24 }
  0xa4   : > { %1281 = vmatmul.mubr.bf16.gmra.mrb[20].mxu1 %v2056_v25  ;;  %1223 = vmatprep.mubr.bf16.mxu0 %v2059_v27 }
  0xa5   : > { %1878 = vmatpush3.bf16.msra.mxu0 %v2057_v26  ;;  %1288 = vmatprep.mubr.bf16.mxu1 %v2061_v28 }
  0xa6   : > { %1907 = vmatpush3.bf16.msra.mxu1 %v2057_v26  ;;  %1879 = vmatprep.subr.bf16.mxu0 %v2058_v29 }
  0xa7   : > { %1900 = vmatprep.subr.bf16.mxu1 %v2058_v29 }
  0xa9   : > { %1880 = vmatpush3.bf16.msra.mxu0 %v2058_v29 }
  0xaa   : > { %1908 = vmatpush3.bf16.msra.mxu1 %v2058_v29  ;;  %1881 = vmatprep.subr.bf16.mxu0 %v2065_v32 }
  0xab   : > { %1224 = vmatmul.mubr.bf16.gmra.mrb[24].mxu0 %v2063_v30  ;;  %1901 = vmatprep.subr.bf16.mxu1 %v2065_v32 }
  0xac   : > { %1289 = vmatmul.mubr.bf16.gmra.mrb[24].mxu1 %v2064_v31  ;;  %1231 = vmatprep.mubr.bf16.mxu0 %v2067_v33 }
  0xad   : > { %1882 = vmatpush3.bf16.msra.mxu0 %v2065_v32  ;;  %1296 = vmatprep.mubr.bf16.mxu1 %v2069_v34 }
  0xae   : > { %1909 = vmatpush3.bf16.msra.mxu1 %v2065_v32  ;;  %1883 = vmatprep.subr.bf16.mxu0 %v2066_v35 }
  0xaf   : > { %1902 = vmatprep.subr.bf16.mxu1 %v2066_v35 }
  0xb1   : > { %1884 = vmatpush3.bf16.msra.mxu0 %v2066_v35 }
  0xb2   : > { %1910 = vmatpush3.bf16.msra.mxu1 %v2066_v35  ;;  %1885 = vmatprep.subr.bf16.mxu0 %v2073_v37 }
  0xb3   : > { %1232 = vmatmul.mubr.bf16.gmra.mrb[28].mxu0 %v2071_v36  ;;  %1903 = vmatprep.subr.bf16.mxu1 %v2073_v37 }
  0xb4   : > { %1297 = vmatmul.mubr.bf16.gmra.mrb[28].mxu1 %v2072_v38  ;;  %1889 = vmatprep.mubr.bf16.mxu0 %v2075_v39 }
  0xb5   : > { %1886 = vmatpush3.bf16.msra.mxu0 %v2073_v37  ;;  %1893 = vmatprep.mubr.bf16.mxu1 %v2076_v40 }
  0xb6   : > { %1911 = vmatpush3.bf16.msra.mxu1 %v2073_v37  ;;  %1887 = vmatprep.subr.bf16.mxu0 %v2074_v41 }
  0xb7   : > { %1904 = vmatprep.subr.bf16.mxu1 %v2074_v41 }
  0xb9   : > { %1888 = vmatpush3.bf16.msra.mxu0 %v2074_v41 }
  0xba   : > { %1912 = vmatpush3.bf16.msra.mxu1 %v2074_v41 }
  0xbc   : > { %1890 = vmatmul.mubr.bf16.vlgmr.msra.gmra.mrb[32].mxu0 %v2077_v42 }
  0xbd   : > { %1894 = vmatmul.mubr.bf16.vlgmr.msra.gmra.mrb[32].mxu1 %v2078_v43 }
 0x14e   : > { %v1717_v44 = vpop.f32.mrb[0].mxu0 }
 0x14f   : > { %v1757_v45 = vpop.f32.mrb[0].mxu1  ;;  %v1718_v46 = vpop.f32.mrb[1].mxu0 }
 0x150   : > { %v1719_v47 = vadd.f32 %v1718_v46, %v1717_v44  ;;  %v1758_v48 = vpop.f32.mrb[1].mxu1  ;;  %v1720_v49 = vpop.f32.mrb[2].mxu0 }
 0x151   : > { %v1759_v50 = vadd.f32 %v1758_v48, %v1757_v45  ;;  %v1760_v51 = vpop.f32.mrb[2].mxu1  ;;  %v1721_v52 = vpop.f32.mrb[3].mxu0 }
 0x152   : > { %v1722_v53 = vadd.f32 %v1721_v52, %v1720_v49  ;;  %v1761_v54 = vpop.f32.mrb[3].mxu1 }
 0x153   : > { %v1145_v55 = vadd.f32 %v1759_v50, %v1719_v47  ;;  %v1762_v56 = vadd.f32 %v1761_v54, %v1760_v51 }
 0x155   : > { %v1148_v57 = vadd.f32 %v1762_v56, %v1722_v53 }
 0x156   : > { %v1723_v58 = vpop.f32.mrb[4].mxu0 }
 0x157   : > { %v1763_v59 = vpop.f32.mrb[4].mxu1  ;;  %v1724_v60 = vpop.f32.mrb[5].mxu0 }
 0x158   : > { %v1725_v61 = vadd.f32 %v1724_v60, %v1723_v58  ;;  %v1764_v62 = vpop.f32.mrb[5].mxu1  ;;  %v1726_v63 = vpop.f32.mrb[6].mxu0 }
 0x159   : > { %v1765_v0 = vadd.f32 %v1764_v62, %v1763_v59  ;;  %v1766_v1 = vpop.f32.mrb[6].mxu1  ;;  %v1727_v2 = vpop.f32.mrb[7].mxu0 }
 0x15a   : > { %v1728_v3 = vadd.f32 %v1727_v2, %v1726_v63  ;;  %v1767_v4 = vpop.f32.mrb[7].mxu1 }
 0x15b   : > { %v1153_v5 = vadd.f32 %v1765_v0, %v1725_v61  ;;  %v1768_v6 = vadd.f32 %v1767_v4, %v1766_v1 }
 0x15d   : > { %v1156_v7 = vadd.f32 %v1768_v6, %v1728_v3 }
 0x15e   : > { %v1729_v8 = vpop.f32.mrb[8].mxu0 }
 0x15f   : > { %v1769_v9 = vpop.f32.mrb[8].mxu1  ;;  %v1730_v10 = vpop.f32.mrb[9].mxu0 }
 0x160   : > { %v1731_v11 = vadd.f32 %v1730_v10, %v1729_v8  ;;  %v1770_v12 = vpop.f32.mrb[9].mxu1  ;;  %v1732_v13 = vpop.f32.mrb[10].mxu0 }
 0x161   : > { %v1771_v14 = vadd.f32 %v1770_v12, %v1769_v9  ;;  %v1772_v15 = vpop.f32.mrb[10].mxu1  ;;  %v1733_v16 = vpop.f32.mrb[11].mxu0 }
 0x162   : > { %v1734_v17 = vadd.f32 %v1733_v16, %v1732_v13  ;;  %v1773_v18 = vpop.f32.mrb[11].mxu1 }
 0x163   : > { %v1161_v19 = vadd.f32 %v1771_v14, %v1731_v11  ;;  %v1774_v20 = vadd.f32 %v1773_v18, %v1772_v15 }
 0x165   : > { %v1164_v21 = vadd.f32 %v1774_v20, %v1734_v17 }
 0x166   : > { %v1735_v22 = vpop.f32.mrb[12].mxu0 }
 0x167   : > { %v1775_v23 = vpop.f32.mrb[12].mxu1  ;;  %v1736_v24 = vpop.f32.mrb[13].mxu0 }
 0x168   : > { %v1776_v25 = vpop.f32.mrb[13].mxu1  ;;  %v1737_v26 = vadd.f32 %v1736_v24, %v1735_v22  ;;  %v1738_v28 = vpop.f32.mrb[14].mxu0 }
 0x169   : > { %v1777_v27 = vadd.f32 %v1776_v25, %v1775_v23  ;;  %v1778_v29 = vpop.f32.mrb[14].mxu1  ;;  %v1739_v30 = vpop.f32.mrb[15].mxu0 }
 0x16a   : > { %v1779_v31 = vpop.f32.mrb[15].mxu1  ;;  %v1740_v33 = vadd.f32 %v1739_v30, %v1738_v28 }
 0x16b   : > { %v1169_v32 = vadd.f32 %v1777_v27, %v1737_v26  ;;  %v1780_v34 = vadd.f32 %v1779_v31, %v1778_v29 }
 0x16d   : > { %v1172_v35 = vadd.f32 %v1780_v34, %v1740_v33 }
 0x16e   : > { %v1797_v36 = vpop.f32.mrb[16].mxu0 }
 0x16f   : > { %v1798_v37 = vpop.f32.mrb[17].mxu0  ;;  %v1837_v38 = vpop.f32.mrb[16].mxu1 }
 0x170   : > { %v1799_v39 = vadd.f32 %v1798_v37, %v1797_v36  ;;  %v1800_v40 = vpop.f32.mrb[18].mxu0  ;;  %v1838_v41 = vpop.f32.mrb[17].mxu1 }
 0x171   : > { %v1801_v42 = vpop.f32.mrb[19].mxu0  ;;  %v1839_v44 = vadd.f32 %v1838_v41, %v1837_v38  ;;  %v1840_v45 = vpop.f32.mrb[18].mxu1 }
 0x172   : > { %v1210_v43 = vadd.f32 %v1799_v39, %v1145_v55  ;;  %v1802_v46 = vadd.f32 %v1801_v42, %v1800_v40  ;;  %v1841_v47 = vpop.f32.mrb[19].mxu1  ;;  %v1658_v39 = vld [vmem:[#allocation4] ss:$0 sm:$0xff] }
 0x173   : > { %v1842_v49 = vadd.f32 %v1841_v47, %v1840_v45 }
 0x174   : > { %v1213_v48 = vadd.f32 %v1802_v46, %v1148_v57  ;;  %v1275_v50 = vadd.f32 %v1839_v44, %v1210_v43  ;;  %v1659_v43 = vld [vmem:[#allocation6] ss:$0 sm:$0xff] }
 0x176   : > { %v1803_v51 = vpop.f32.mrb[20].mxu0  ;;  %v2366_v52 = vadd.f32 %v1842_v49, %v1213_v48 }
 0x177   : > { %v1804_v53 = vpop.f32.mrb[21].mxu0  ;;  %v1843_v54 = vpop.f32.mrb[20].mxu1 }
 0x178   : > { %v1805_v56 = vadd.f32 %v1804_v53, %v1803_v51  ;;  %v1806_v58 = vpop.f32.mrb[22].mxu0  ;;  %v1844_v59 = vpop.f32.mrb[21].mxu1 }
 0x179   : > { %v1807_v60 = vpop.f32.mrb[23].mxu0  ;;  %v1845_v62 = vadd.f32 %v1844_v59, %v1843_v54  ;;  %v1846_v63 = vpop.f32.mrb[22].mxu1 }
 0x17a   : > { %v1218_v61 = vadd.f32 %v1805_v56, %v1153_v5  ;;  %v1808_v55 = vadd.f32 %v1807_v60, %v1806_v58  ;;  %v1847_v0 = vpop.f32.mrb[23].mxu1 }
 0x17b   : > { %v1848_v2 = vadd.f32 %v1847_v0, %v1846_v63 }
 0x17c   : > { %v1221_v1 = vadd.f32 %v1808_v55, %v1156_v7  ;;  %v1283_v3 = vadd.f32 %v1845_v62, %v1218_v61 }
 0x17e   : > { %v1809_v57 = vpop.f32.mrb[24].mxu0  ;;  %v1286_v4 = vadd.f32 %v1848_v2, %v1221_v1 }
 0x17f   : > { %v1810_v6 = vpop.f32.mrb[25].mxu0  ;;  %v1849_v8 = vpop.f32.mrb[24].mxu1 }
 0x180   : > { %v1811_v9 = vadd.f32 %v1810_v6, %v1809_v57  ;;  %v1812_v10 = vpop.f32.mrb[26].mxu0  ;;  %v1850_v11 = vpop.f32.mrb[25].mxu1 }
 0x181   : > { %v1813_v12 = vpop.f32.mrb[27].mxu0  ;;  %v1851_v14 = vadd.f32 %v1850_v11, %v1849_v8  ;;  %v1852_v15 = vpop.f32.mrb[26].mxu1 }
 0x182   : > { %v1226_v13 = vadd.f32 %v1811_v9, %v1161_v19  ;;  %v1814_v16 = vadd.f32 %v1813_v12, %v1812_v10  ;;  %v1853_v5 = vpop.f32.mrb[27].mxu1 }
 0x183   : > { %v1854_v18 = vadd.f32 %v1853_v5, %v1852_v15 }
 0x184   : > { %v1229_v17 = vadd.f32 %v1814_v16, %v1164_v21  ;;  %v1291_v20 = vadd.f32 %v1851_v14, %v1226_v13 }
 0x186   : > { %v1815_v22 = vpop.f32.mrb[28].mxu0  ;;  %v1294_v7 = vadd.f32 %v1854_v18, %v1229_v17 }
 0x187   : > { %v1816_v23 = vpop.f32.mrb[29].mxu0  ;;  %v1855_v24 = vpop.f32.mrb[28].mxu1 }
 0x188   : > { %v1817_v25 = vadd.f32 %v1816_v23, %v1815_v22  ;;  %v1818_v26 = vpop.f32.mrb[30].mxu0  ;;  %v1856_v27 = vpop.f32.mrb[29].mxu1 }
 0x189   : > { %v1819_v28 = vpop.f32.mrb[31].mxu0  ;;  %v1857_v30 = vadd.f32 %v1856_v27, %v1855_v24  ;;  %v1858_v31 = vpop.f32.mrb[30].mxu1 }
 0x18a   : > { %v1234_v29 = vadd.f32 %v1817_v25, %v1169_v32  ;;  %v1820_v33 = vadd.f32 %v1819_v28, %v1818_v26  ;;  %v1859_v19 = vpop.f32.mrb[31].mxu1 }
 0x18b   : > { %v1860_v36 = vadd.f32 %v1859_v19, %v1858_v31 }
 0x18c   : > { %v1237_v34 = vadd.f32 %v1820_v33, %v1172_v35  ;;  %v1299_v37 = vadd.f32 %v1857_v30, %v1234_v29 }
 0x18e   : > { %v1302_v38 = vadd.f32 %v1860_v36, %v1237_v34 }
 0x18f   : > { %v1891_v21 = vpop.f32.mrb[32].mxu0 }
 0x190   : > { %v1348_v40 = vadd.f32 %v1891_v21, %v1283_v3  ;;  %v1895_v41 = vpop.f32.mrb[32].mxu1  ;;  %v1339_v42 = vpop.f32.mrb[33].mxu0 }
 0x191   : > { %v1364_v44 = vadd.f32 %v1895_v41, %v1299_v37  ;;  %v1340_v45 = vadd.f32 %v1339_v42, %v1275_v50  ;;  %v1355_v46 = vpop.f32.mrb[33].mxu1  ;;  %v1892_v47 = vpop.f32.mrb[34].mxu0 }
 0x192   : > { %v1379_v48 = vmul.f32 %v1658_v39, %v1348_v40  ;;  %v1356_v32 = vadd.f32 %v1355_v46, %v1291_v20  ;;  %v1351_v49 = vadd.f32 %v1892_v47, %v1286_v4  ;;  %v1896_v51 = vpop.f32.mrb[34].mxu1  ;;  %v1342_v53 = vpop.f32.mrb[35].mxu0 }
 0x193   : > { %v1383_v35 = vmul.f32 %v1658_v39, %v1364_v44  ;;  %v1377_v54 = vmul.f32 %v1658_v39, %v1340_v45  ;;  %v1367_v56 = vadd.f32 %v1896_v51, %v1302_v38  ;;  %v1343_v58 = vadd.f32 %v1342_v53, %v2366_v52  ;;  %v1358_v59 = vpop.f32.mrb[35].mxu1 }
 0x194   : > { %v1394_v60 = vadd.f32 %v1659_v43, %v1379_v48  ;;  %v1381_v61 = vmul.f32 %v1658_v39, %v1356_v32  ;;  %v1380_v62 = vmul.f32 %v1658_v39, %v1351_v49  ;;  %v1359_v63 = vadd.f32 %v1358_v59, %v1294_v7 }
 0x195   : > { %v1398_v55 = vadd.f32 %v1659_v43, %v1383_v35  ;;  %v1392_v50 = vadd.f32 %v1659_v43, %v1377_v54  ;;  %v1384_v0 = vmul.f32 %v1658_v39, %v1367_v56  ;;  %v1378_v1 = vmul.f32 %v1658_v39, %v1343_v58 }
 0x196   : > { %v1396_v2 = vadd.f32 %v1659_v43, %v1381_v61  ;;  %v1395_v3 = vadd.f32 %v1659_v43, %v1380_v62  ;;  %v1382_v57 = vmul.f32 %v1658_v39, %v1359_v63  ;;  %v1402_v8 = vmax.f32 %v1394_v60, 0.0 }
 0x197   : > { %v1399_v4 = vadd.f32 %v1659_v43, %v1384_v0  ;;  %v1393_v6 = vadd.f32 %v1659_v43, %v1378_v1  ;;  %v1406_v11 = vmax.f32 %v1398_v55, 0.0  ;;  %v1400_v52 = vmax.f32 %v1392_v50, 0.0 }
 0x198   : > { %v1403_v9 = vmax.f32 %v1395_v3, 0.0  ;;  %v1397_v10 = vadd.f32 %v1659_v43, %v1382_v57  ;;  %v1404_v14 = vmax.f32 %v1396_v2, 0.0 }
 0x199   : > { %v1407_v12 = vmax.f32 %v1399_v4, 0.0  ;;  %v1401_v13 = vmax.f32 %v1393_v6, 0.0 }
 0x19a   : > { %v1686_v15 = vpack.c.bf16 %v1403_v9, %v1402_v8  ;;  %v1405_v16 = vmax.f32 %v1397_v10, 0.0 }
 0x19b   : > { %v1696_v5 = vpack.c.bf16 %v1407_v12, %v1406_v11  ;;  %v1681_v17 = vpack.c.bf16 %v1401_v13, %v1400_v52 }
 0x19c   : > { %1698 = vst [vmem:[%s242_s26 + $0x8] sm:$0xff] %v1686_v15   ;;  %v1691_v18 = vpack.c.bf16 %v1405_v16, %v1404_v14 }
 0x19d   : > { %1700 = vst [vmem:[%s242_s26 + $0x18] sm:$0xff] %v1696_v5   ;;  %1682 = vst [vmem:[%s242_s26] sm:$0xff] %v1681_v17  }
 0x19e   : > { %1699 = vst [vmem:[%s242_s26 + $0x10] sm:$0xff] %v1691_v18  }
 0x19f PF: > { %s16_s15 = sadd.s32 1, %s2177_s15  }
 0x1a0   : > { %p13_p8 = scmp.ge.s32.totalorder %s16_s15, 4  }
 0x1a2   :  { %15 = sbr.rel (!%p13_p8) target bundleno = 2 (0x2), region = 79 }
 0x1a9   :  { %1470 = vsyncpa [#allocation3], 1 }
 0x1aa   :  { %1472 = vsyncpa [#allocation3 + $0x1], 1 }
 0x1ab   :  { %1473 = vsyncpa [#allocation5], 1 }

// kernel: chessnet_forward.7
= control target key start
LH: loop header
LB: loop body
LE: loop exit
PB: predicated region body
PF: predicated region fallthrough
CT: control target
= control target key end

     0   :  { %12 = vsyncpa [#allocation3], 0  ;;  %s2950_s0 = inlined_call_operand.vmem [shape: bf16[128,1152], index: 0, kind: input, shape index: {}]   ;;  %s2951_s1 = inlined_call_operand.hbm [shape: bf16[1152,128], index: 1, kind: input, shape index: {}]   ;;  %s2952_s2 = inlined_call_operand.hbm [shape: f32[1,128], index: 2, kind: input, shape index: {}]   ;;  %s2953_s3 = inlined_call_operand.hbm [shape: f32[1,128], index: 3, kind: input, shape index: {}]   ;;  %s2954_s4 = inlined_call_operand.hbm [shape: bf16[128,128], index: 4, kind: input, shape index: {}]   ;;  %s2955_s5 = inlined_call_operand.hbm [shape: f32[1,128], index: 5, kind: input, shape index: {}]   ;;  %s2956_s6 = inlined_call_operand.hbm [shape: f32[1,128], index: 6, kind: input, shape index: {}]   ;;  %s2957_s7 = inlined_call_operand.vmem [shape: bf16[128,128], index: 7, kind: output, shape index: {}]  }
   0x1   :  { %13 = vsyncpa [#allocation5], 0 }
   0x2   :  { %14 = vsyncpa [#allocation8], 0 }
   0x3   :  { %15 = vsyncpa [#allocation11], 0  ;;  %s2714_s24 = smov 0  }
   0x4 LB: > { %s2666_s25 = smov [#allocation4]   ;;  %s1856_s27 = sadd.s32 4294967295, %s2664_s24   ;;  %s2664_s24 = sphi %s2714_s24, %s21_s24  }
   0x5   : > { %s230_s26 = sshll.u32 %s2666_s25, 4  ;;  %p1858_p0 = scmp.ge.s32.totalorder %s2664_s24, 1  ;;  %s2728_s26 = int_to_ptr.vmem [resolvable:$true] %s230_s26 }
   0x6   : > { %p204_p1 = scmp.lt.s32.totalorder %s2664_s24, 3  ;;  %p2724_p2 = scmp.eq.s32.totalorder %s1856_s27, 0 }
   0x7   : > { %s2667_s30 = smov [#allocation7]   ;;  %s2668_s10 = smov [#allocation2]  }
   0x8   : > { %s2961_s28 = scalar_select %p2724_p2, 1, 0 }
   0x9   : > { %p2730_p3 = pnand %p1858_p0, %p204_p1  ;;  %s251_s8 = sshll.u32 %s2667_s30, 4  ;;  %s2736_s8 = int_to_ptr.vmem [resolvable:$true] %s251_s8 }
   0xa   : > { %s216_s11 = sshll.u32 %s2668_s10, 4  ;;  %s2669_s12 = smov [#allocation6]   ;;  %s2744_s11 = int_to_ptr.vmem [resolvable:$true] %s216_s11 }
   0xb   : > { %s2962_s29 = scalar_select %p2730_p3, 1, 0 }
   0xc   : > { %p2295_p4 = pneg %p2730_p3  ;;  %s2746_s13 = sshll.u32 %s2669_s12, 4  ;;  %s242_s13 = int_to_ptr.vmem [resolvable:$true] %s2746_s13 }
   0xd   : > { %s2474_s16 = scalar_lea.hbm %s2952_s2, 16 }
   0xe   : > { %p2740_p5 = pnand %p2724_p2, %p2295_p4  ;;  %p2475_p6 = scmp.ne.s32.totalorder %s2952_s2, %s2474_s16 }
   0xf   : > { %p2481_p10 = scmp.lt.u32.totalorder %s2474_s16, %s2952_s2 }
  0x10   : > { %p2756_p7 = pneg %p2740_p5 }
  0x12   : > { %p2477_p8 = pnand %p2756_p7, %p2475_p6 }
  0x14   : > { %p2478_p9 = pneg %p2477_p8 }
  0x16   : > { %p2483_p11 = pnand %p2481_p10, %p2478_p9 }
  0x18   : > { %2486 = shalt.err (!%p2483_p11)
}
  0x19   : > { %s2487_s22 = scalar_lea.vmem %s2728_s26, 16  ;;  %s2494_s23 = scalar_lea.vmem %s2728_s26, 32 }
  0x1a   : > { %p2488_p12 = scmp.ne.s32.totalorder %s2728_s26, %s2487_s22  ;;  %p2495_p1 = scmp.lt.s32.totalorder %s2728_s26, %s2728_s26 }
  0x1b   : > { %p2496_p4 = scmp.lt.s32.totalorder %s2494_s23, %s2487_s22 }
  0x1c   : > { %p2490_p13 = pnand %p2488_p12, %p2756_p7 }
  0x1d   : > { %p2497_p6 = por %p2496_p4, %p2495_p1 }
  0x1e   : > { %p2491_p0 = pneg %p2490_p13 }
  0x20   : > { %p2498_p8 = pnand %p2497_p6, %p2491_p0 }
  0x22   : > { %2501 = shalt.err (!%p2498_p8)
}
  0x23   : > { %2301 = dma.hbm_to_vmem [thread:$0]  (!%p2740_p5), %s2952_s2, 16, %s2728_s26, [#allocation5]  }
  0x24   : > { %s2502_s14 = scalar_lea.hbm %s2954_s4, 1024 }
  0x25   : > { %p2503_p9 = scmp.ne.s32.totalorder %s2954_s4, %s2502_s14  ;;  %p2509_p12 = scmp.lt.u32.totalorder %s2502_s14, %s2954_s4 }
  0x27   : > { %p2505_p10 = pnand %p2503_p9, %p2756_p7 }
  0x29   : > { %p2506_p11 = pneg %p2505_p10 }
  0x2b   : > { %p2511_p13 = pnand %p2509_p12, %p2506_p11 }
  0x2d   : > { %2514 = shalt.err (!%p2511_p13)
}
  0x2e   : > { %s2515_s26 = scalar_lea.vmem %s2736_s8, 1024  ;;  %p2523_p6 = scmp.lt.s32.totalorder %s2736_s8, %s2736_s8 }
  0x2f   : > { %p2516_p0 = scmp.ne.s32.totalorder %s2736_s8, %s2515_s26  ;;  %p2524_p8 = scmp.lt.s32.totalorder %s2515_s26, %s2515_s26 }
  0x31   : > { %p2518_p1 = pnand %p2516_p0, %p2756_p7  ;;  %p2525_p9 = por %p2524_p8, %p2523_p6 }
  0x33   : > { %p2519_p4 = pneg %p2518_p1 }
  0x35   : > { %p2526_p10 = pnand %p2525_p9, %p2519_p4 }
  0x37   : > { %2529 = shalt.err (!%p2526_p10)
}
  0x38   : > { %s2670_s20 = smov 64   ;;  %s2671_s21 = smov 4  }
  0x39   : > { %2307 = dma.hbm_to_vmem [thread:$0]  (!%p2740_p5), %s2954_s4, 1024, %s2736_s8, [#allocation8], %s2670_s20, %s2670_s20, %s2671_s21  }
  0x3a   : > { %s2530_s10 = scalar_lea.hbm %s2951_s1, 9216 }
  0x3b   : > { %p2531_p11 = scmp.ne.s32.totalorder %s2951_s1, %s2530_s10  ;;  %p2537_p0 = scmp.lt.u32.totalorder %s2530_s10, %s2951_s1 }
  0x3d   : > { %p2533_p12 = pnand %p2531_p11, %p2756_p7 }
  0x3f   : > { %p2534_p13 = pneg %p2533_p12 }
  0x41   : > { %p2539_p1 = pnand %p2537_p0, %p2534_p13 }
  0x43   : > { %2542 = shalt.err (!%p2539_p1)
}
  0x44   : > { %s2543_s8 = scalar_lea.vmem %s2744_s11, 9216  ;;  %p2551_p9 = scmp.lt.s32.totalorder %s2744_s11, %s2744_s11 }
  0x45   : > { %p2544_p4 = scmp.ne.s32.totalorder %s2744_s11, %s2543_s8  ;;  %p2552_p10 = scmp.lt.s32.totalorder %s2543_s8, %s2543_s8 }
  0x47   : > { %p2546_p6 = pnand %p2544_p4, %p2756_p7  ;;  %p2553_p11 = por %p2552_p10, %p2551_p9 }
  0x49   : > { %p2547_p8 = pneg %p2546_p6 }
  0x4b   : > { %p2554_p12 = pnand %p2553_p11, %p2547_p8 }
  0x4d   : > { %2557 = shalt.err (!%p2554_p12)
}
  0x4e   : > { %2298 = dma.hbm_to_vmem [thread:$0]  (!%p2740_p5), %s2951_s1, 9216, %s2744_s11, [#allocation3], %s2670_s20, %s2670_s20, %s2671_s21  }
  0x4f   : > { %s2558_s23 = scalar_lea.hbm %s2953_s3, 16 }
  0x50   : > { %p2559_p13 = scmp.ne.s32.totalorder %s2953_s3, %s2558_s23  ;;  %p2565_p4 = scmp.lt.u32.totalorder %s2558_s23, %s2953_s3 }
  0x52   : > { %p2561_p0 = pnand %p2559_p13, %p2756_p7 }
  0x54   : > { %p2562_p1 = pneg %p2561_p0 }
  0x56   : > { %p2567_p6 = pnand %p2565_p4, %p2562_p1 }
  0x58   : > { %2570 = shalt.err (!%p2567_p6)
}
  0x59   : > { %s2571_s14 = scalar_lea.vmem %s242_s13, 16  ;;  %s2578_s11 = scalar_lea.vmem %s242_s13, 32 }
  0x5a   : > { %p2572_p8 = scmp.ne.s32.totalorder %s242_s13, %s2571_s14  ;;  %p2579_p11 = scmp.lt.s32.totalorder %s242_s13, %s242_s13 }
  0x5b   : > { %p2580_p12 = scmp.lt.s32.totalorder %s2578_s11, %s2571_s14 }
  0x5c   : > { %p2574_p9 = pnand %p2572_p8, %p2756_p7 }
  0x5d   : > { %p2581_p2 = por %p2580_p12, %p2579_p11 }
  0x5e   : > { %p2575_p10 = pneg %p2574_p9 }
  0x60   : > { %p2582_p3 = pnand %p2581_p2, %p2575_p10 }
  0x62   : > { %2585 = shalt.err (!%p2582_p3)
}
  0x63   : > { %2304 = dma.hbm_to_vmem [thread:$0]  (!%p2740_p5), %s2953_s3, 16, %s242_s13, [#allocation5]  }
  0x64   : > { %s2672_s15 = smov [#allocation9]   ;;  %s2673_s8 = smov [#allocation10]  }
  0x65   : > { %s265_s16 = sshll.u32 %s2672_s15, 4  ;;  %s276_s17 = sshll.u32 %s2673_s8, 4  ;;  %s266_s16 = int_to_ptr.vmem [resolvable:$true] %s265_s16  ;;  %s277_s17 = int_to_ptr.vmem [resolvable:$true] %s276_s17 }
  0x66   : > { %s2586_s22 = scalar_lea.hbm %s2955_s5, 16 }
  0x67   : > { %p2587_p2 = scmp.ne.s32.totalorder %s2955_s5, %s2586_s22  ;;  %p2593_p0 = scmp.lt.u32.totalorder %s2586_s22, %s2955_s5 }
  0x69   : > { %p2589_p3 = pnand %p2587_p2, %p2756_p7 }
  0x6b   : > { %p2590_p13 = pneg %p2589_p3 }
  0x6d   : > { %p2595_p1 = pnand %p2593_p0, %p2590_p13 }
  0x6f   : > { %2598 = shalt.err (!%p2595_p1)
}
  0x70   : > { %s2599_s13 = scalar_lea.vmem %s266_s16, 16  ;;  %s2606_s12 = scalar_lea.vmem %s266_s16, 32 }
  0x71   : > { %p2600_p4 = scmp.ne.s32.totalorder %s266_s16, %s2599_s13  ;;  %p2607_p9 = scmp.lt.s32.totalorder %s266_s16, %s266_s16 }
  0x72   : > { %p2608_p10 = scmp.lt.s32.totalorder %s2606_s12, %s2599_s13 }
  0x73   : > { %p2602_p6 = pnand %p2600_p4, %p2756_p7 }
  0x74   : > { %p2609_p11 = por %p2608_p10, %p2607_p9 }
  0x75   : > { %p2603_p8 = pneg %p2602_p6 }
  0x77   : > { %p2610_p12 = pnand %p2609_p11, %p2603_p8 }
  0x79   : > { %2613 = shalt.err (!%p2610_p12)
}
  0x7a   : > { %2310 = dma.hbm_to_vmem [thread:$0]  (!%p2740_p5), %s2955_s5, 16, %s266_s16, [#allocation8]  }
  0x7b   : > { %s2614_s15 = scalar_lea.hbm %s2956_s6, 16 }
  0x7c   : > { %p2615_p2 = scmp.ne.s32.totalorder %s2956_s6, %s2614_s15  ;;  %p2621_p0 = scmp.lt.u32.totalorder %s2614_s15, %s2956_s6 }
  0x7e   : > { %p2617_p3 = pnand %p2615_p2, %p2756_p7 }
  0x80   : > { %p2618_p13 = pneg %p2617_p3 }
  0x82   : > { %p2623_p1 = pnand %p2621_p0, %p2618_p13 }
  0x84   : > { %2626 = shalt.err (!%p2623_p1)
}
  0x85   : > { %s2627_s23 = scalar_lea.vmem %s277_s17, 16  ;;  %s2634_s16 = scalar_lea.vmem %s277_s17, 32 }
  0x86   : > { %p2628_p4 = scmp.ne.s32.totalorder %s277_s17, %s2627_s23  ;;  %p2635_p9 = scmp.lt.s32.totalorder %s277_s17, %s277_s17 }
  0x87   : > { %p2636_p10 = scmp.lt.s32.totalorder %s2634_s16, %s2627_s23 }
  0x88   : > { %p2630_p6 = pnand %p2628_p4, %p2756_p7 }
  0x89   : > { %p2637_p11 = por %p2636_p10, %p2635_p9 }
  0x8a   : > { %p2631_p8 = pneg %p2630_p6 }
  0x8c   : > { %p2638_p12 = pnand %p2637_p11, %p2631_p8 }
  0x8e   : > { %2641 = shalt.err (!%p2638_p12)
}
  0x8f   : > { %2313 = dma.hbm_to_vmem [thread:$0]  (!%p2740_p5), %s2956_s6, 16, %s277_s17, [#allocation11]  }
  0x90   : > { %p2965_p2 = scmp.ne.s32.totalorder %s2962_s29, 0 }
  0x91   : > { %p2966_p3 = scmp.ne.s32.totalorder (!%p2965_p2), %s2961_s28, 0 }
  0x92   : > { %299 = sbr.rel (%p2965_p2) target bundleno = 716 (0x2cc), region = 48 }
  0x99   : > { %2647 = dma.done.wait (%p2966_p3), [#allocation3], 9216  }
  0x9a   : > { %2649 = vsyncadd (%p2966_p3), [#allocation3], 4294958080 }
  0x9b   : > { %2651 = dma.done.wait (%p2966_p3), [#allocation5], 32  }
  0x9c   : > { %2653 = vsyncadd (%p2966_p3), [#allocation5], 4294967264 }
  0x9d   : > { %2655 = dma.done.wait (%p2966_p3), [#allocation8], 1040  }
  0x9e   : > { %2657 = vsyncadd (%p2966_p3), [#allocation8], 4294966256 }
  0x9f   : > { %2659 = dma.done.wait (%p2966_p3), [#allocation11], 16  }
  0xa0   : > { %2661 = vsyncadd (%p2966_p3), [#allocation11], 4294967280  ;;  %v2342_v0 = vld [vmem:[#allocation2 + $0x40] sm:$0xff]   ;;  %v2346_v4 = vld [vmem:[#allocation2 + $0x48] sm:$0xff]   ;;  %s1873_s28 = sshll.u32 %s1856_s27, 3 }
  0xa1   : > { %v2343_v1 = vld [vmem:[#allocation2 + $0xc0] sm:$0xff]   ;;  %2038 = vmatprep.subr.bf16.mxu0 %v2342_v0  ;;  %v2347_v5 = vld [vmem:[#allocation2 + $0xc8] sm:$0xff]   ;;  %v2350_v8 = vld [vmem:[#allocation2 + $0x50] sm:$0xff]   ;;  %p353_p5 = scmp.lt.s32.totalorder %s1873_s28, 15 }
  0xa2   : > { %v2344_v2 = vld [vmem:[#allocation2] sm:$0xff]   ;;  %2078 = vmatprep.subr.bf16.mxu1 %v2343_v1  ;;  %v2348_v6 = vld [vmem:[#allocation2 + $0x8] sm:$0xff]   ;;  %v2351_v9 = vld [vmem:[#allocation2 + $0xd0] sm:$0xff]  }
  0xa3   : > { %v2345_v3 = vld [vmem:[#allocation2 + $0x80] sm:$0xff]   ;;  %2039 = vmatpush3.bf16.msra.mxu0 %v2344_v2  ;;  %v2349_v7 = vld [vmem:[#allocation2 + $0x88] sm:$0xff]   ;;  %v2352_v10 = vld [vmem:[#allocation2 + $0x10] sm:$0xff]   ;;  %s2968_s28 = smov (!%p353_p5, %s1873_s28), 15 }
  0xa4   : > { %2079 = vmatpush3.bf16.msra.mxu1 %v2345_v3  ;;  %2040 = vmatprep.subr.bf16.mxu0 %v2346_v4  ;;  %v2353_v11 = vld [vmem:[#allocation2 + $0x90] sm:$0xff]   ;;  %v2354_v12 = vld [vmem:[#allocation2 + $0x58] sm:$0xff]   ;;  %v2358_v16 = vld [vmem:[#allocation2 + $0x60] sm:$0xff]   ;;  %s2270_s27 = smul.u32 36, %s2968_s28  ;;  %s1876_s17 = sshll.u32 %s2968_s28, 2 }
  0xa5   : > { %2080 = vmatprep.subr.bf16.mxu1 %v2347_v5  ;;  %v2355_v13 = vld [vmem:[#allocation2 + $0xd8] sm:$0xff]   ;;  %v2359_v17 = vld [vmem:[#allocation2 + $0xe0] sm:$0xff]   ;;  %v2362_v20 = vld [vmem:[#allocation2 + $0x68] sm:$0xff]   ;;  %s363_s12 = scalar_lea.vmem %s2957_s7, %s1876_s17 }
  0xa6   : > { %v2356_v14 = vld [vmem:[#allocation2 + $0x18] sm:$0xff]   ;;  %v2360_v18 = vld [vmem:[#allocation2 + $0x20] sm:$0xff]   ;;  %v2363_v21 = vld [vmem:[#allocation2 + $0xe8] sm:$0xff]   ;;  %s2905_s19 = scalar_lea.vmem %s2950_s0, %s2270_s27 }
  0xa7   : > { %2041 = vmatpush3.bf16.msra.mxu0 %v2348_v6  ;;  %v2357_v15 = vld [vmem:[#allocation2 + $0x98] sm:$0xff]   ;;  %v2361_v19 = vld [vmem:[#allocation2 + $0xa0] sm:$0xff]   ;;  %v2364_v22 = vld [vmem:[#allocation2 + $0x28] sm:$0xff]  }
  0xa8   : > { %2081 = vmatpush3.bf16.msra.mxu1 %v2349_v7  ;;  %2042 = vmatprep.subr.bf16.mxu0 %v2350_v8  ;;  %v2365_v23 = vld [vmem:[#allocation2 + $0xa8] sm:$0xff]   ;;  %v2366_v24 = vld [vmem:[#allocation2 + $0x70] sm:$0xff]   ;;  %v2370_v28 = vld [vmem:[#allocation2 + $0x78] sm:$0xff]  }
  0xa9   : > { %2082 = vmatprep.subr.bf16.mxu1 %v2351_v9  ;;  %v2367_v25 = vld [vmem:[#allocation2 + $0xf0] sm:$0xff]   ;;  %v2371_v29 = vld [vmem:[#allocation2 + $0xf8] sm:$0xff]   ;;  %v2374_v32 = vld [vmem:[%s2905_s19] ss:$36 sps:$4 sm:$0xff]  }
  0xaa   : > { %v2368_v26 = vld [vmem:[#allocation2 + $0x30] sm:$0xff]   ;;  %v2372_v30 = vld [vmem:[#allocation2 + $0x38] sm:$0xff]   ;;  %v2376_v33 = vld [vmem:[%s2905_s19 + $0x4] ss:$36 sps:$4 sm:$0xff]  }
  0xab   : > { %2043 = vmatpush3.bf16.msra.mxu0 %v2352_v10  ;;  %v2369_v27 = vld [vmem:[#allocation2 + $0xb0] sm:$0xff]   ;;  %v2373_v31 = vld [vmem:[#allocation2 + $0xb8] sm:$0xff]   ;;  %v2377_v34 = vld [vmem:[%s2905_s19 + $0x8] ss:$36 sps:$4 sm:$0xff]   ;;  %1198 = vmatprep.mubr.bf16.mxu0 %v2376_v33 }
  0xac   : > { %2083 = vmatpush3.bf16.msra.mxu1 %v2353_v11  ;;  %2044 = vmatprep.subr.bf16.mxu0 %v2354_v12  ;;  %v2379_v35 = vld [vmem:[%s2905_s19 + $0xc] ss:$36 sps:$4 sm:$0xff]   ;;  %v2380_v36 = vld [vmem:[#allocation2 + $0x140] sm:$0xff]   ;;  %v2389_v44 = vld [vmem:[%s2905_s19 + $0x54] ss:$36 sps:$4 sm:$0xff]  }
  0xad   : > { %2084 = vmatprep.subr.bf16.mxu1 %v2355_v13  ;;  %1263 = vmatprep.mubr.bf16.mxu1 %v2379_v35  ;;  %v2381_v37 = vld [vmem:[#allocation2 + $0x100] sm:$0xff]   ;;  %v2384_v40 = vld [vmem:[#allocation2 + $0x148] sm:$0xff]   ;;  %v2393_v47 = vld [vmem:[%s2905_s19 + $0x50] ss:$36 sps:$4 sm:$0xff]  }
  0xae   : > { %v2382_v38 = vld [vmem:[#allocation2 + $0x1c0] sm:$0xff]   ;;  %v2385_v41 = vld [vmem:[#allocation2 + $0x108] sm:$0xff]   ;;  %v2394_v48 = vld [vmem:[#allocation2 + $0x150] sm:$0xff]  }
  0xaf   : > { %2045 = vmatpush3.bf16.msra.mxu0 %v2356_v14  ;;  %v2383_v39 = vld [vmem:[#allocation2 + $0x180] sm:$0xff]   ;;  %v2386_v42 = vld [vmem:[#allocation2 + $0x1c8] sm:$0xff]   ;;  %v2395_v49 = vld [vmem:[#allocation2 + $0x110] sm:$0xff]  }
  0xb0   : > { %2085 = vmatpush3.bf16.msra.mxu1 %v2357_v15  ;;  %2046 = vmatprep.subr.bf16.mxu0 %v2358_v16  ;;  %v2387_v43 = vld [vmem:[%s2905_s19 + $0x4c] ss:$36 sps:$4 sm:$0xff]   ;;  %v2398_v52 = vld [vmem:[#allocation2 + $0x158] sm:$0xff]   ;;  %v2408_v60 = vld [vmem:[#allocation2 + $0x160] sm:$0xff]  }
  0xb1   : > { %2086 = vmatprep.subr.bf16.mxu1 %v2359_v17  ;;  %v2391_v45 = vld [vmem:[#allocation2 + $0x188] sm:$0xff]   ;;  %v2396_v50 = vld [vmem:[#allocation2 + $0x1d0] sm:$0xff]   ;;  %v2399_v53 = vld [vmem:[#allocation2 + $0x118] sm:$0xff]  }
  0xb2   : > { %v2392_v46 = vld [vmem:[%s2905_s19 + $0x48] ss:$36 sps:$4 sm:$0xff]   ;;  %v2397_v51 = vld [vmem:[#allocation2 + $0x190] sm:$0xff]   ;;  %v2400_v54 = vld [vmem:[#allocation2 + $0x1d8] sm:$0xff]  }
  0xb3   : > { %2047 = vmatpush3.bf16.msra.mxu0 %v2360_v18  ;;  %v2401_v55 = vld [vmem:[%s2905_s19 + $0x94] ss:$36 sps:$4 sm:$0xff]   ;;  %v2403_v56 = vld [vmem:[%s2905_s19 + $0x9c] ss:$36 sps:$4 sm:$0xff]   ;;  %v2412_v0 = vld [vmem:[#allocation2 + $0x168] sm:$0xff]  }
  0xb4   : > { %2087 = vmatpush3.bf16.msra.mxu1 %v2361_v19  ;;  %2048 = vmatprep.subr.bf16.mxu0 %v2362_v20  ;;  %v2405_v57 = vld [vmem:[#allocation2 + $0x198] sm:$0xff]   ;;  %v2406_v58 = vld [vmem:[%s2905_s19 + $0x90] ss:$36 sps:$4 sm:$0xff]   ;;  %v2409_v61 = vld [vmem:[#allocation2 + $0x120] sm:$0xff]  }
  0xb5   : > { %2088 = vmatprep.subr.bf16.mxu1 %v2363_v21  ;;  %v2407_v59 = vld [vmem:[%s2905_s19 + $0x98] ss:$36 sps:$4 sm:$0xff]   ;;  %v2410_v62 = vld [vmem:[#allocation2 + $0x1e0] sm:$0xff]   ;;  %v2413_v1 = vld [vmem:[#allocation2 + $0x128] sm:$0xff]  }
  0xb6   : > { %v2411_v63 = vld [vmem:[#allocation2 + $0x1a0] sm:$0xff]   ;;  %v2414_v2 = vld [vmem:[#allocation2 + $0x1e8] sm:$0xff]   ;;  %v2420_v6 = vld [vmem:[%s2905_s19 + $0xd8] ss:$36 sps:$4 sm:$0xff]  }
  0xb7   : > { %2049 = vmatpush3.bf16.msra.mxu0 %v2364_v22  ;;  %v2415_v3 = vld [vmem:[%s2905_s19 + $0xdc] ss:$36 sps:$4 sm:$0xff]   ;;  %v2417_v4 = vld [vmem:[%s2905_s19 + $0xe4] ss:$36 sps:$4 sm:$0xff]   ;;  %v2422_v8 = vld [vmem:[#allocation2 + $0x170] sm:$0xff]  }
  0xb8   : > { %2089 = vmatpush3.bf16.msra.mxu1 %v2365_v23  ;;  %2050 = vmatprep.subr.bf16.mxu0 %v2366_v24  ;;  %v2419_v5 = vld [vmem:[#allocation2 + $0x1a8] sm:$0xff]   ;;  %v2421_v7 = vld [vmem:[%s2905_s19 + $0xe0] ss:$36 sps:$4 sm:$0xff]   ;;  %v2423_v9 = vld [vmem:[#allocation2 + $0x130] sm:$0xff]  }
  0xb9   : > { %2090 = vmatprep.subr.bf16.mxu1 %v2367_v25  ;;  %v2424_v10 = vld [vmem:[#allocation2 + $0x1f0] sm:$0xff]   ;;  %v2426_v12 = vld [vmem:[#allocation2 + $0x178] sm:$0xff]   ;;  %v2433_v18 = vld [vmem:[#allocation2 + $0x200] sm:$0xff]  }
  0xba   : > { %v2425_v11 = vld [vmem:[#allocation2 + $0x1b0] sm:$0xff]   ;;  %v2427_v13 = vld [vmem:[#allocation2 + $0x138] sm:$0xff]   ;;  %v2437_v21 = vld [vmem:[#allocation2 + $0x208] sm:$0xff]  }
  0xbb   : > { %2051 = vmatpush3.bf16.msra.mxu0 %v2368_v26  ;;  %v2428_v14 = vld [vmem:[#allocation2 + $0x1f8] sm:$0xff]   ;;  %v2429_v15 = vld [vmem:[%s2905_s19 + $0x10] ss:$36 sps:$4 sm:$0xff]   ;;  %v2442_v25 = vld [vmem:[%s2905_s19 + $0x64] ss:$36 sps:$4 sm:$0xff]  }
  0xbc   : > { %2091 = vmatpush3.bf16.msra.mxu1 %v2369_v27  ;;  %2052 = vmatprep.subr.bf16.mxu0 %v2370_v28  ;;  %v2431_v16 = vld [vmem:[%s2905_s19 + $0x14] ss:$36 sps:$4 sm:$0xff]   ;;  %v2436_v20 = vld [vmem:[%s2905_s19 + $0x1c] ss:$36 sps:$4 sm:$0xff]   ;;  %v2446_v27 = vld [vmem:[%s2905_s19 + $0xa4] ss:$36 sps:$4 sm:$0xff]  }
  0xbd   : > { %2092 = vmatprep.subr.bf16.mxu1 %v2371_v29  ;;  %v2432_v17 = vld [vmem:[#allocation2 + $0x1b8] sm:$0xff]   ;;  %v2441_v24 = vld [vmem:[#allocation2 + $0x210] sm:$0xff]   ;;  %v2444_v28 = vld [vmem:[%s2905_s19 + $0x60] ss:$36 sps:$4 sm:$0xff]  }
  0xbe   : > { %v2434_v19 = vld [vmem:[%s2905_s19 + $0x18] ss:$36 sps:$4 sm:$0xff]   ;;  %v2450_v29 = vld [vmem:[%s2905_s19 + $0xac] ss:$36 sps:$4 sm:$0xff]  }
  0xbf   : > { %2053 = vmatpush3.bf16.msra.mxu0 %v2372_v30  ;;  %v2438_v22 = vld [vmem:[%s2905_s19 + $0x5c] ss:$36 sps:$4 sm:$0xff]   ;;  %v2453_v33 = vld [vmem:[#allocation2 + $0x228] sm:$0xff]   ;;  %v2458_v35 = vld [vmem:[%s2905_s19 + $0xf4] ss:$36 sps:$4 sm:$0xff]  }
  0xc0   : > { %2093 = vmatpush3.bf16.msra.mxu1 %v2373_v31  ;;  %2118 = vmatprep.subr.bf16.mxu0 %v2380_v36  ;;  %v2440_v23 = vld [vmem:[%s2905_s19 + $0x58] ss:$36 sps:$4 sm:$0xff]   ;;  %v2449_v30 = vld [vmem:[#allocation2 + $0x220] sm:$0xff]   ;;  %v2456_v36 = vld [vmem:[%s2905_s19 + $0xe8] ss:$36 sps:$4 sm:$0xff]  }
  0xc1   : > { %2158 = vmatprep.subr.bf16.mxu1 %v2382_v38  ;;  %v2445_v26 = vld [vmem:[#allocation2 + $0x218] sm:$0xff]   ;;  %v2448_v31 = vld [vmem:[%s2905_s19 + $0xa0] ss:$36 sps:$4 sm:$0xff]  }
  0xc2   : > { %1199 = vmatmul.mubr.bf16.vlgmr.msra.gmra.mrb[0].mxu0 %v2374_v32  ;;  %v2454_v32 = vld [vmem:[%s2905_s19 + $0xec] ss:$36 sps:$4 sm:$0xff]   ;;  %v2462_v38 = vld [vmem:[%s2905_s19 + $0x20] ss:$36 sps:$4 sm:$0xff]  }
  0xc3   : > { %1264 = vmatmul.mubr.bf16.vlgmr.msra.gmra.mrb[0].mxu1 %v2377_v34  ;;  %2119 = vmatpush3.bf16.msra.mxu0 %v2381_v37  ;;  %v2452_v34 = vld [vmem:[%s2905_s19 + $0xa8] ss:$36 sps:$4 sm:$0xff]   ;;  %v2457_v37 = vld [vmem:[#allocation2 + $0x230] sm:$0xff]  }
  0xc4   : > { %2159 = vmatpush3.bf16.msra.mxu1 %v2383_v39  ;;  %2120 = vmatprep.subr.bf16.mxu0 %v2384_v40  ;;  %v2461_v39 = vld [vmem:[#allocation2 + $0x238] sm:$0xff]   ;;  %v2460_v40 = vld [vmem:[%s2905_s19 + $0xf0] ss:$36 sps:$4 sm:$0xff]  }
  0xc5   : > { %2160 = vmatprep.subr.bf16.mxu1 %v2386_v42  ;;  %1206 = vmatprep.mubr.bf16.mxu0 %v2387_v43  ;;  %v2464_v42 = vld [vmem:[%s2905_s19 + $0xb0] ss:$36 sps:$4 sm:$0xff]   ;;  %v2465_v43 = vld [vmem:[%s2905_s19 + $0xf8] ss:$36 sps:$4 sm:$0xff]  }
  0xc6   : > { %1271 = vmatprep.mubr.bf16.mxu1 %v2389_v44  ;;  %v2466_v44 = vld [vmem:[#allocation7] sm:$0xff]  }
  0xc7   : > { %2121 = vmatpush3.bf16.msra.mxu0 %v2385_v41  ;;  %v2463_v41 = vld [vmem:[%s2905_s19 + $0x68] ss:$36 sps:$4 sm:$0xff]  }
  0xc8   : > { %2161 = vmatpush3.bf16.msra.mxu1 %v2391_v45  ;;  %2122 = vmatprep.subr.bf16.mxu0 %v2394_v48  ;;  %v2467_v45 = vld [vmem:[#allocation7 + $0x8] sm:$0xff]   ;;  %v2470_v48 = vld [vmem:[#allocation7 + $0x20] sm:$0xff]  }
  0xc9   : > { %2162 = vmatprep.subr.bf16.mxu1 %v2396_v50  ;;  %v2472_v50 = vld [vmem:[#allocation7 + $0x30] sm:$0xff]  }
  0xca   : > { %1207 = vmatmul.mubr.bf16.gmra.mrb[4].mxu0 %v2392_v46  ;;  %v2468_v46 = vld [vmem:[#allocation7 + $0x10] sm:$0xff]  }
  0xcb   : > { %1272 = vmatmul.mubr.bf16.gmra.mrb[4].mxu1 %v2393_v47  ;;  %2123 = vmatpush3.bf16.msra.mxu0 %v2395_v49  ;;  %v2469_v47 = vld [vmem:[#allocation7 + $0x18] sm:$0xff]   ;;  %v2471_v49 = vld [vmem:[#allocation7 + $0x28] sm:$0xff]  }
  0xcc   : > { %2163 = vmatpush3.bf16.msra.mxu1 %v2397_v51  ;;  %2124 = vmatprep.subr.bf16.mxu0 %v2398_v52  ;;  %v2473_v51 = vld [vmem:[#allocation7 + $0x38] sm:$0xff]  }
  0xcd   : > { %2164 = vmatprep.subr.bf16.mxu1 %v2400_v54  ;;  %1214 = vmatprep.mubr.bf16.mxu0 %v2401_v55 }
  0xce   : > { %1279 = vmatprep.mubr.bf16.mxu1 %v2403_v56 }
  0xcf   : > { %2125 = vmatpush3.bf16.msra.mxu0 %v2399_v53 }
  0xd0   : > { %2165 = vmatpush3.bf16.msra.mxu1 %v2405_v57  ;;  %2126 = vmatprep.subr.bf16.mxu0 %v2408_v60 }
  0xd1   : > { %2166 = vmatprep.subr.bf16.mxu1 %v2410_v62 }
  0xd2   : > { %1215 = vmatmul.mubr.bf16.gmra.mrb[8].mxu0 %v2406_v58 }
  0xd3   : > { %1280 = vmatmul.mubr.bf16.gmra.mrb[8].mxu1 %v2407_v59  ;;  %2127 = vmatpush3.bf16.msra.mxu0 %v2409_v61 }
  0xd4   : > { %2167 = vmatpush3.bf16.msra.mxu1 %v2411_v63  ;;  %2128 = vmatprep.subr.bf16.mxu0 %v2412_v0 }
  0xd5   : > { %2168 = vmatprep.subr.bf16.mxu1 %v2414_v2  ;;  %1222 = vmatprep.mubr.bf16.mxu0 %v2415_v3 }
  0xd6   : > { %1287 = vmatprep.mubr.bf16.mxu1 %v2417_v4 }
  0xd7   : > { %2129 = vmatpush3.bf16.msra.mxu0 %v2413_v1 }
  0xd8   : > { %2169 = vmatpush3.bf16.msra.mxu1 %v2419_v5  ;;  %2130 = vmatprep.subr.bf16.mxu0 %v2422_v8 }
  0xd9   : > { %2170 = vmatprep.subr.bf16.mxu1 %v2424_v10 }
  0xda   : > { %1223 = vmatmul.mubr.bf16.gmra.mrb[12].mxu0 %v2420_v6 }
  0xdb   : > { %1288 = vmatmul.mubr.bf16.gmra.mrb[12].mxu1 %v2421_v7  ;;  %2131 = vmatpush3.bf16.msra.mxu0 %v2423_v9 }
  0xdc   : > { %2171 = vmatpush3.bf16.msra.mxu1 %v2425_v11  ;;  %2132 = vmatprep.subr.bf16.mxu0 %v2426_v12 }
  0xdd   : > { %2172 = vmatprep.subr.bf16.mxu1 %v2428_v14  ;;  %1328 = vmatprep.mubr.bf16.mxu0 %v2431_v16 }
  0xde   : > { %1393 = vmatprep.mubr.bf16.mxu1 %v2436_v20 }
  0xdf   : > { %2133 = vmatpush3.bf16.msra.mxu0 %v2427_v13 }
  0xe0   : > { %2173 = vmatpush3.bf16.msra.mxu1 %v2432_v17  ;;  %2222 = vmatprep.subr.bf16.mxu0 %v2433_v18 }
  0xe1   : > { %2246 = vmatprep.subr.bf16.mxu1 %v2466_v44 }
  0xe2   : > { %1329 = vmatmul.mubr.bf16.vlgmr.msra.gmra.mrb[16].mxu0 %v2429_v15 }
  0xe3   : > { %2223 = vmatpush3.bf16.msra.mxu0 %v2433_v18  ;;  %1394 = vmatmul.mubr.bf16.vlgmr.msra.gmra.mrb[16].mxu1 %v2434_v19 }
  0xe4   : > { %2224 = vmatprep.subr.bf16.mxu0 %v2437_v21  ;;  %1336 = vmatprep.mubr.bf16.mxu0 %v2438_v22 }
  0xe5   : > { %1401 = vmatprep.mubr.bf16.mxu1 %v2442_v25  ;;  %2247 = vmatpush3.bf16.msra.mxu1 %v2466_v44 }
  0xe6   : > { %2248 = vmatprep.subr.bf16.mxu1 %v2467_v45 }
  0xe7   : > { %2225 = vmatpush3.bf16.msra.mxu0 %v2437_v21 }
  0xe8   : > { %2226 = vmatprep.subr.bf16.mxu0 %v2441_v24 }
  0xe9   : > { %2249 = vmatpush3.bf16.msra.mxu1 %v2467_v45 }
  0xea   : > { %1337 = vmatmul.mubr.bf16.gmra.mrb[20].mxu0 %v2440_v23  ;;  %2250 = vmatprep.subr.bf16.mxu1 %v2468_v46 }
  0xeb   : > { %1344 = vmatprep.mubr.bf16.mxu0 %v2446_v27  ;;  %2227 = vmatpush3.bf16.msra.mxu0 %v2441_v24 }
  0xec   : > { %2228 = vmatprep.subr.bf16.mxu0 %v2445_v26  ;;  %1402 = vmatmul.mubr.bf16.gmra.mrb[20].mxu1 %v2444_v28 }
  0xed   : > { %1409 = vmatprep.mubr.bf16.mxu1 %v2450_v29  ;;  %2251 = vmatpush3.bf16.msra.mxu1 %v2468_v46 }
  0xee   : > { %2252 = vmatprep.subr.bf16.mxu1 %v2469_v47 }
  0xef   : > { %2229 = vmatpush3.bf16.msra.mxu0 %v2445_v26 }
  0xf0   : > { %2230 = vmatprep.subr.bf16.mxu0 %v2449_v30 }
  0xf1   : > { %2253 = vmatpush3.bf16.msra.mxu1 %v2469_v47 }
  0xf2   : > { %1345 = vmatmul.mubr.bf16.gmra.mrb[24].mxu0 %v2448_v31  ;;  %2254 = vmatprep.subr.bf16.mxu1 %v2470_v48 }
  0xf3   : > { %1352 = vmatprep.mubr.bf16.mxu0 %v2454_v32  ;;  %2231 = vmatpush3.bf16.msra.mxu0 %v2449_v30 }
  0xf4   : > { %2232 = vmatprep.subr.bf16.mxu0 %v2453_v33  ;;  %1410 = vmatmul.mubr.bf16.gmra.mrb[24].mxu1 %v2452_v34 }
  0xf5   : > { %1417 = vmatprep.mubr.bf16.mxu1 %v2458_v35  ;;  %2255 = vmatpush3.bf16.msra.mxu1 %v2470_v48 }
  0xf6   : > { %2256 = vmatprep.subr.bf16.mxu1 %v2471_v49 }
  0xf7   : > { %2233 = vmatpush3.bf16.msra.mxu0 %v2453_v33 }
  0xf8   : > { %2234 = vmatprep.subr.bf16.mxu0 %v2457_v37 }
  0xf9   : > { %2257 = vmatpush3.bf16.msra.mxu1 %v2471_v49 }
  0xfa   : > { %1353 = vmatmul.mubr.bf16.gmra.mrb[28].mxu0 %v2456_v36  ;;  %2258 = vmatprep.subr.bf16.mxu1 %v2472_v50 }
  0xfb   : > { %2238 = vmatprep.mubr.bf16.mxu0 %v2462_v38  ;;  %2235 = vmatpush3.bf16.msra.mxu0 %v2457_v37 }
  0xfc   : > { %2236 = vmatprep.subr.bf16.mxu0 %v2461_v39  ;;  %1418 = vmatmul.mubr.bf16.gmra.mrb[28].mxu1 %v2460_v40 }
  0xfd   : > { %2259 = vmatpush3.bf16.msra.mxu1 %v2472_v50 }
  0xfe   : > { %2260 = vmatprep.subr.bf16.mxu1 %v2473_v51 }
  0xff   : > { %2237 = vmatpush3.bf16.msra.mxu0 %v2461_v39 }
 0x101   : > { %2261 = vmatpush3.bf16.msra.mxu1 %v2473_v51 }
 0x102   : > { %2239 = vmatmul.mubr.bf16.vlgmr.msra.gmra.mrb[32].mxu0 %v2463_v41 }
 0x103   : > { %2242 = vmatprep.mubr.bf16.mxu0 %v2464_v42 }
 0x10a   : > { %2243 = vmatmul.mubr.bf16.gmra.mrb[36].mxu0 %v2465_v43 }
 0x195   : > { %v2054_v52 = vpop.f32.mrb[0].mxu0 }
 0x196   : > { %v2094_v53 = vpop.f32.mrb[0].mxu1  ;;  %v2055_v54 = vpop.f32.mrb[1].mxu0 }
 0x197   : > { %v2056_v55 = vadd.f32 %v2055_v54, %v2054_v52  ;;  %v2095_v56 = vpop.f32.mrb[1].mxu1  ;;  %v2057_v57 = vpop.f32.mrb[2].mxu0 }
 0x198   : > { %v2096_v58 = vadd.f32 %v2095_v56, %v2094_v53  ;;  %v2097_v59 = vpop.f32.mrb[2].mxu1  ;;  %v2058_v60 = vpop.f32.mrb[3].mxu0 }
 0x199   : > { %v2059_v61 = vadd.f32 %v2058_v60, %v2057_v57  ;;  %v2098_v62 = vpop.f32.mrb[3].mxu1 }
 0x19a   : > { %v1266_v63 = vadd.f32 %v2096_v58, %v2056_v55  ;;  %v2099_v0 = vadd.f32 %v2098_v62, %v2097_v59 }
 0x19c   : > { %v1269_v1 = vadd.f32 %v2099_v0, %v2059_v61 }
 0x19d   : > { %v2060_v2 = vpop.f32.mrb[4].mxu0 }
 0x19e   : > { %v2100_v3 = vpop.f32.mrb[4].mxu1  ;;  %v2061_v4 = vpop.f32.mrb[5].mxu0 }
 0x19f   : > { %v2062_v5 = vadd.f32 %v2061_v4, %v2060_v2  ;;  %v2101_v6 = vpop.f32.mrb[5].mxu1  ;;  %v2063_v7 = vpop.f32.mrb[6].mxu0 }
 0x1a0   : > { %v2102_v8 = vadd.f32 %v2101_v6, %v2100_v3  ;;  %v2103_v9 = vpop.f32.mrb[6].mxu1  ;;  %v2064_v10 = vpop.f32.mrb[7].mxu0 }
 0x1a1   : > { %v2065_v11 = vadd.f32 %v2064_v10, %v2063_v7  ;;  %v2104_v12 = vpop.f32.mrb[7].mxu1 }
 0x1a2   : > { %v1274_v13 = vadd.f32 %v2102_v8, %v2062_v5  ;;  %v2105_v14 = vadd.f32 %v2104_v12, %v2103_v9 }
 0x1a4   : > { %v1277_v15 = vadd.f32 %v2105_v14, %v2065_v11 }
 0x1a5   : > { %v2066_v16 = vpop.f32.mrb[8].mxu0 }
 0x1a6   : > { %v2106_v17 = vpop.f32.mrb[8].mxu1  ;;  %v2067_v18 = vpop.f32.mrb[9].mxu0 }
 0x1a7   : > { %v2068_v19 = vadd.f32 %v2067_v18, %v2066_v16  ;;  %v2107_v20 = vpop.f32.mrb[9].mxu1  ;;  %v2069_v21 = vpop.f32.mrb[10].mxu0 }
 0x1a8   : > { %v2108_v22 = vadd.f32 %v2107_v20, %v2106_v17  ;;  %v2109_v23 = vpop.f32.mrb[10].mxu1  ;;  %v2070_v24 = vpop.f32.mrb[11].mxu0 }
 0x1a9   : > { %v2071_v25 = vadd.f32 %v2070_v24, %v2069_v21  ;;  %v2110_v26 = vpop.f32.mrb[11].mxu1 }
 0x1aa   : > { %v1282_v27 = vadd.f32 %v2108_v22, %v2068_v19  ;;  %v2111_v28 = vadd.f32 %v2110_v26, %v2109_v23 }
 0x1ac   : > { %v1285_v29 = vadd.f32 %v2111_v28, %v2071_v25 }
 0x1ad   : > { %v2072_v30 = vpop.f32.mrb[12].mxu0 }
 0x1ae   : > { %v2112_v31 = vpop.f32.mrb[12].mxu1  ;;  %v2073_v32 = vpop.f32.mrb[13].mxu0 }
 0x1af   : > { %v2113_v33 = vpop.f32.mrb[13].mxu1  ;;  %v2074_v34 = vadd.f32 %v2073_v32, %v2072_v30  ;;  %v2075_v36 = vpop.f32.mrb[14].mxu0 }
 0x1b0   : > { %v2114_v35 = vadd.f32 %v2113_v33, %v2112_v31  ;;  %v2115_v37 = vpop.f32.mrb[14].mxu1  ;;  %v2076_v38 = vpop.f32.mrb[15].mxu0 }
 0x1b1   : > { %v2116_v39 = vpop.f32.mrb[15].mxu1  ;;  %v2077_v41 = vadd.f32 %v2076_v38, %v2075_v36 }
 0x1b2   : > { %v1290_v40 = vadd.f32 %v2114_v35, %v2074_v34  ;;  %v2117_v42 = vadd.f32 %v2116_v39, %v2115_v37 }
 0x1b4   : > { %v1293_v43 = vadd.f32 %v2117_v42, %v2077_v41 }
 0x1b5   : > { %v2134_v44 = vpop.f32.mrb[16].mxu0 }
 0x1b6   : > { %v2135_v45 = vpop.f32.mrb[17].mxu0  ;;  %v2174_v50 = vpop.f32.mrb[16].mxu1 }
 0x1b7   : > { %v2136_v46 = vadd.f32 %v2135_v45, %v2134_v44  ;;  %v2137_v47 = vpop.f32.mrb[18].mxu0  ;;  %v2175_v52 = vpop.f32.mrb[17].mxu1 }
 0x1b8   : > { %v2138_v48 = vpop.f32.mrb[19].mxu0  ;;  %v2176_v54 = vadd.f32 %v2175_v52, %v2174_v50  ;;  %v2177_v55 = vpop.f32.mrb[18].mxu1  ;;  %v1986_v50 = vld [vmem:[#allocation6] ss:$0 sm:$0xff] }
 0x1b9   : > { %v1331_v49 = vadd.f32 %v2136_v46, %v1266_v63  ;;  %v2139_v51 = vadd.f32 %v2138_v48, %v2137_v47  ;;  %v2178_v56 = vpop.f32.mrb[19].mxu1  ;;  %v1985_v46 = vld [vmem:[#allocation4] ss:$0 sm:$0xff] }
 0x1ba   : > { %v2179_v57 = vadd.f32 %v2178_v56, %v2177_v55 }
 0x1bb   : > { %v1334_v53 = vadd.f32 %v2139_v51, %v1269_v1  ;;  %v1396_v59 = vadd.f32 %v2176_v54, %v1331_v49 }
 0x1bd   : > { %v2140_v58 = vpop.f32.mrb[20].mxu0  ;;  %v1399_v0 = vadd.f32 %v2179_v57, %v1334_v53 }
 0x1be   : > { %v2141_v60 = vpop.f32.mrb[21].mxu0 }
 0x1bf   : > { %v2142_v61 = vadd.f32 %v2141_v60, %v2140_v58  ;;  %v2143_v62 = vpop.f32.mrb[22].mxu0  ;;  %v2180_v4 = vpop.f32.mrb[20].mxu1 }
 0x1c0   : > { %v2144_v2 = vpop.f32.mrb[23].mxu0  ;;  %v2181_v6 = vpop.f32.mrb[21].mxu1 }
 0x1c1   : > { %v1339_v3 = vadd.f32 %v2142_v61, %v1274_v13  ;;  %v2145_v5 = vadd.f32 %v2144_v2, %v2143_v62  ;;  %v2182_v7 = vadd.f32 %v2181_v6, %v2180_v4  ;;  %v2183_v8 = vpop.f32.mrb[22].mxu1 }
 0x1c2   : > { %v2184_v9 = vpop.f32.mrb[23].mxu1 }
 0x1c3   : > { %v1342_v63 = vadd.f32 %v2145_v5, %v1277_v15  ;;  %v2185_v1 = vadd.f32 %v2184_v9, %v2183_v8  ;;  %v1404_v11 = vadd.f32 %v2182_v7, %v1339_v3 }
 0x1c5   : > { %v2146_v10 = vpop.f32.mrb[24].mxu0  ;;  %v1407_v17 = vadd.f32 %v2185_v1, %v1342_v63 }
 0x1c6   : > { %v2147_v12 = vpop.f32.mrb[25].mxu0 }
 0x1c7   : > { %v2148_v14 = vadd.f32 %v2147_v12, %v2146_v10  ;;  %v2149_v16 = vpop.f32.mrb[26].mxu0  ;;  %v2186_v20 = vpop.f32.mrb[24].mxu1 }
 0x1c8   : > { %v2150_v18 = vpop.f32.mrb[27].mxu0  ;;  %v2187_v22 = vpop.f32.mrb[25].mxu1 }
 0x1c9   : > { %v1347_v19 = vadd.f32 %v2148_v14, %v1282_v27  ;;  %v2151_v21 = vadd.f32 %v2150_v18, %v2149_v16  ;;  %v2188_v23 = vadd.f32 %v2187_v22, %v2186_v20  ;;  %v2189_v24 = vpop.f32.mrb[26].mxu1 }
 0x1ca   : > { %v2190_v25 = vpop.f32.mrb[27].mxu1 }
 0x1cb   : > { %v1350_v13 = vadd.f32 %v2151_v21, %v1285_v29  ;;  %v2191_v15 = vadd.f32 %v2190_v25, %v2189_v24  ;;  %v1412_v28 = vadd.f32 %v2188_v23, %v1347_v19 }
 0x1cd   : > { %v2152_v26 = vpop.f32.mrb[28].mxu0  ;;  %v1415_v33 = vadd.f32 %v2191_v15, %v1350_v13 }
 0x1ce   : > { %v2153_v30 = vpop.f32.mrb[29].mxu0 }
 0x1cf   : > { %v2154_v31 = vadd.f32 %v2153_v30, %v2152_v26  ;;  %v2155_v32 = vpop.f32.mrb[30].mxu0  ;;  %v2192_v36 = vpop.f32.mrb[28].mxu1  ;;  %v1995_v26 = vld [vmem:[#allocation9] ss:$0 sm:$0xff]  ;;  %v1996_v30 = vld [vmem:[#allocation10] ss:$0 sm:$0xff] }
 0x1d0   : > { %v2156_v34 = vpop.f32.mrb[31].mxu0  ;;  %v2193_v38 = vpop.f32.mrb[29].mxu1 }
 0x1d1   : > { %v1355_v35 = vadd.f32 %v2154_v31, %v1290_v40  ;;  %v2157_v37 = vadd.f32 %v2156_v34, %v2155_v32  ;;  %v2194_v39 = vadd.f32 %v2193_v38, %v2192_v36  ;;  %v2195_v41 = vpop.f32.mrb[30].mxu1 }
 0x1d2   : > { %v2196_v42 = vpop.f32.mrb[31].mxu1 }
 0x1d3   : > { %v1358_v27 = vadd.f32 %v2157_v37, %v1293_v43  ;;  %v2197_v29 = vadd.f32 %v2196_v42, %v2195_v41  ;;  %v1420_v44 = vadd.f32 %v2194_v39, %v1355_v35 }
 0x1d5   : > { %v2240_v45 = vpop.f32.mrb[32].mxu0  ;;  %v1423_v49 = vadd.f32 %v2197_v29, %v1358_v27 }
 0x1d6   : > { %v1469_v47 = vadd.f32 %v2240_v45, %v1404_v11  ;;  %v1460_v48 = vpop.f32.mrb[33].mxu0 }
 0x1d7   : > { %v1461_v51 = vadd.f32 %v1460_v48, %v1396_v59  ;;  %v2241_v52 = vpop.f32.mrb[34].mxu0 }
 0x1d8   : > { %v1500_v53 = vmul.f32 %v1985_v46, %v1469_v47  ;;  %v1472_v54 = vadd.f32 %v2241_v52, %v1407_v17  ;;  %v1463_v40 = vpop.f32.mrb[35].mxu0 }
 0x1d9   : > { %v1498_v55 = vmul.f32 %v1985_v46, %v1461_v51  ;;  %v1464_v56 = vadd.f32 %v1463_v40, %v1399_v0 }
 0x1da   : > { %v1515_v57 = vadd.f32 %v1986_v50, %v1500_v53  ;;  %v1501_v43 = vmul.f32 %v1985_v46, %v1472_v54 }
 0x1db   : > { %v1513_v58 = vadd.f32 %v1986_v50, %v1498_v55  ;;  %v1499_v60 = vmul.f32 %v1985_v46, %v1464_v56 }
 0x1dc   : > { %v1516_v61 = vadd.f32 %v1986_v50, %v1501_v43  ;;  %v1523_v3 = vmax.f32 %v1515_v57, 0.0 }
 0x1dd   : > { %v1514_v62 = vadd.f32 %v1986_v50, %v1499_v60  ;;  %v2244_v2 = vpop.f32.mrb[36].mxu0  ;;  %v1521_v63 = vmax.f32 %v1513_v58, 0.0 }
 0x1de   : > { %v1524_v4 = vmax.f32 %v1516_v61, 0.0  ;;  %v1485_v5 = vadd.f32 %v2244_v2, %v1420_v44  ;;  %v1476_v6 = vpop.f32.mrb[37].mxu0 }
 0x1df   : > { %v1522_v7 = vmax.f32 %v1514_v62, 0.0  ;;  %v1477_v59 = vadd.f32 %v1476_v6, %v1412_v28  ;;  %v2245_v8 = vpop.f32.mrb[38].mxu0 }
 0x1e0   : > { %v1530_v9 = vpack.c.bf16 %v1524_v4, %v1523_v3  ;;  %v1504_v1 = vmul.f32 %v1985_v46, %v1485_v5  ;;  %v1488_v10 = vadd.f32 %v2245_v8, %v1423_v49  ;;  %v1479_v11 = vpop.f32.mrb[39].mxu0 }
 0x1e1   : > { %v1502_v0 = vmul.f32 %v1985_v46, %v1477_v59  ;;  %v1480_v12 = vadd.f32 %v1479_v11, %v1415_v33  ;;  %v1529_v14 = vpack.c.bf16 %v1522_v7, %v1521_v63 }
 0x1e2   : > { %v1519_v16 = vadd.f32 %v1986_v50, %v1504_v1  ;;  %v1505_v17 = vmul.f32 %v1985_v46, %v1488_v10 }
 0x1e3   : > { %v1517_v18 = vadd.f32 %v1986_v50, %v1502_v0  ;;  %v1503_v19 = vmul.f32 %v1985_v46, %v1480_v12  ;;  %2262 = vmatprep.mubr.bf16.mxu1 %v1529_v14 }
 0x1e4   : > { %v1520_v20 = vadd.f32 %v1986_v50, %v1505_v17  ;;  %2263 = vmatmul.mubr.bf16.vlgmr.msra.gmra.mrb[32].mxu1 %v1530_v9  ;;  %v1527_v22 = vmax.f32 %v1519_v16, 0.0 }
 0x1e5   : > { %v1518_v21 = vadd.f32 %v1986_v50, %v1503_v19  ;;  %v1525_v23 = vmax.f32 %v1517_v18, 0.0 }
 0x1e6   : > { %v1528_v13 = vmax.f32 %v1520_v20, 0.0 }
 0x1e7   : > { %v1526_v24 = vmax.f32 %v1518_v21, 0.0 }
 0x1e8   : > { %v1532_v25 = vpack.c.bf16 %v1528_v13, %v1527_v22 }
 0x1e9   : > { %v1531_v15 = vpack.c.bf16 %v1526_v24, %v1525_v23 }
 0x1eb   : > { %2266 = vmatprep.mubr.bf16.mxu1 %v1531_v15 }
 0x1ec   : > { %2267 = vmatmul.mubr.bf16.gmra.mrb[36].mxu1 %v1532_v25 }
 0x2b7   : > { %v2264_v28 = vpop.f32.mrb[32].mxu1 }
 0x2b8   : > { %v1671_v31 = vmul.f32 %v2264_v28, %v1995_v26  ;;  %v1631_v32 = vpop.f32.mrb[33].mxu1 }
 0x2b9   : > { %v1669_v33 = vmul.f32 %v1995_v26, %v1631_v32  ;;  %v2265_v34 = vpop.f32.mrb[34].mxu1 }
 0x2ba   : > { %v1686_v35 = vadd.f32 %v1996_v30, %v1671_v31  ;;  %v1672_v36 = vmul.f32 %v2265_v34, %v1995_v26  ;;  %v1634_v37 = vpop.f32.mrb[35].mxu1 }
 0x2bb   : > { %v1684_v38 = vadd.f32 %v1996_v30, %v1669_v33  ;;  %v1670_v27 = vmul.f32 %v1995_v26, %v1634_v37 }
 0x2bc   : > { %v1687_v39 = vadd.f32 %v1996_v30, %v1672_v36  ;;  %v1694_v42 = vmax.f32 %v1686_v35, 0.0 }
 0x2bd   : > { %v1685_v41 = vadd.f32 %v1996_v30, %v1670_v27  ;;  %v1692_v44 = vmax.f32 %v1684_v38, 0.0 }
 0x2be   : > { %v1695_v29 = vmax.f32 %v1687_v39, 0.0 }
 0x2bf   : > { %v1693_v45 = vmax.f32 %v1685_v41, 0.0  ;;  %v2268_v46 = vpop.f32.mrb[36].mxu1 }
 0x2c0   : > { %v2023_v47 = vpack.c.bf16 %v1695_v29, %v1694_v42  ;;  %v1675_v48 = vmul.f32 %v2268_v46, %v1995_v26  ;;  %v1647_v49 = vpop.f32.mrb[37].mxu1 }
 0x2c1   : > { %v2018_v50 = vpack.c.bf16 %v1693_v45, %v1692_v44  ;;  %v1673_v51 = vmul.f32 %v1995_v26, %v1647_v49  ;;  %v2269_v52 = vpop.f32.mrb[38].mxu1 }
 0x2c2   : > { %2035 = vst [vmem:[%s363_s12 + $0x8] sm:$0xff] %v2023_v47   ;;  %v1690_v53 = vadd.f32 %v1996_v30, %v1675_v48  ;;  %v1676_v54 = vmul.f32 %v2269_v52, %v1995_v26  ;;  %v1650_v40 = vpop.f32.mrb[39].mxu1 }
 0x2c3   : > { %2019 = vst [vmem:[%s363_s12] sm:$0xff] %v2018_v50   ;;  %v1688_v55 = vadd.f32 %v1996_v30, %v1673_v51  ;;  %v1674_v56 = vmul.f32 %v1995_v26, %v1650_v40 }
 0x2c4   : > { %v1691_v57 = vadd.f32 %v1996_v30, %v1676_v54  ;;  %v1698_v58 = vmax.f32 %v1690_v53, 0.0 }
 0x2c5   : > { %v1689_v43 = vadd.f32 %v1996_v30, %v1674_v56  ;;  %v1696_v61 = vmax.f32 %v1688_v55, 0.0 }
 0x2c6   : > { %v1699_v60 = vmax.f32 %v1691_v57, 0.0 }
 0x2c7   : > { %v1697_v62 = vmax.f32 %v1689_v43, 0.0 }
 0x2c8   : > { %v2033_v2 = vpack.c.bf16 %v1699_v60, %v1698_v58 }
 0x2c9   : > { %v2028_v3 = vpack.c.bf16 %v1697_v62, %v1696_v61 }
 0x2ca   : > { %2037 = vst [vmem:[%s363_s12 + $0x18] sm:$0xff] %v2033_v2  }
 0x2cb   : > { %2036 = vst [vmem:[%s363_s12 + $0x10] sm:$0xff] %v2028_v3  }
 0x2cc PF: > { %s21_s24 = sadd.s32 1, %s2664_s24  }
 0x2cd   : > { %p18_p7 = scmp.ge.s32.totalorder %s21_s24, 4  }
 0x2cf   :  { %20 = sbr.rel (!%p18_p7) target bundleno = 4 (0x4), region = 103 }
 0x2d6   :  { %1762 = vsyncpa [#allocation3], 1 }
 0x2d7   :  { %1764 = vsyncpa [#allocation3 + $0x1], 1 }
 0x2d8   :  { %1765 = vsyncpa [#allocation5], 1 }
 0x2d9   :  { %1766 = vsyncpa [#allocation8], 1 }
 0x2da   :  { %1767 = vsyncpa [#allocation11], 1 }

// kernel: chessnet_forward.9
= control target key start
LH: loop header
LB: loop body
LE: loop exit
PB: predicated region body
PF: predicated region fallthrough
CT: control target
= control target key end

     0   :  { %10 = vsyncpa [#allocation3], 0  ;;  %s2426_s0 = inlined_call_operand.vmem [shape: bf16[16,2048], index: 0, kind: input, shape index: {}]   ;;  %s2427_s1 = inlined_call_operand.hbm [shape: bf16[2048,128], index: 1, kind: input, shape index: {}]   ;;  %s2428_s2 = inlined_call_operand.hbm [shape: f32[1,128], index: 2, kind: input, shape index: {}]   ;;  %s2429_s3 = inlined_call_operand.hbm [shape: f32[128,128], index: 3, kind: input, shape index: {}]   ;;  %s2430_s4 = inlined_call_operand.hbm [shape: f32[1,128], index: 4, kind: input, shape index: {}]   ;;  %s2431_s5 = inlined_call_operand.vmem [shape: f32[16,128], index: 5, kind: output, shape index: {}]  }
   0x1   :  { %11 = vsyncpa [#allocation5], 0 }
   0x2   :  { %12 = vsyncpa [#allocation8], 0  ;;  %s2279_s18 = smov [#allocation4]   ;;  %s2280_s20 = smov [#allocation2]  }
   0x3   :  { %s33_s19 = sshll.u32 %s2279_s18, 4  ;;  %s20_s21 = sshll.u32 %s2280_s20, 4  ;;  %s34_s19 = int_to_ptr.vmem [resolvable:$true] %s33_s19  ;;  %s2317_s21 = int_to_ptr.vmem [resolvable:$true] %s20_s21 }
   0x4   :  { %s2185_s24 = scalar_lea.hbm %s2428_s2, 16 }
   0x5   :  { %p2186_p0 = scmp.ne.s32.totalorder %s2428_s2, %s2185_s24  ;;  %p2189_p1 = scmp.lt.u32.totalorder %s2185_s24, %s2428_s2 }
   0x7   :  { %p2191_p2 = pnand %p2189_p1, %p2186_p0 }
   0x9   :  { %2194 = shalt.err (!%p2191_p2)
}
   0xa   :  { %s2195_s29 = scalar_lea.vmem %s34_s19, 16  ;;  %s2199_s30 = scalar_lea.vmem %s34_s19, 32 }
   0xb   :  { %p2196_p3 = scmp.ne.s32.totalorder %s34_s19, %s2195_s29  ;;  %p2200_p4 = scmp.lt.s32.totalorder %s34_s19, %s34_s19 }
   0xc   :  { %p2201_p5 = scmp.lt.s32.totalorder %s2199_s30, %s2195_s29 }
   0xe   :  { %p2202_p6 = por %p2201_p5, %p2200_p4 }
  0x10   :  { %p2203_p7 = pnand %p2202_p6, %p2196_p3 }
  0x12   :  { %2206 = shalt.err (!%p2203_p7)
}
  0x13   :  { %36 = dma.hbm_to_vmem [thread:$0]  %s2428_s2, 16, %s34_s19, [#allocation5]  }
  0x14   :  { %s2207_s10 = scalar_lea.hbm %s2427_s1, 16384 }
  0x15   :  { %p2208_p8 = scmp.ne.s32.totalorder %s2427_s1, %s2207_s10  ;;  %p2211_p9 = scmp.lt.u32.totalorder %s2207_s10, %s2427_s1 }
  0x17   :  { %p2213_p10 = pnand %p2211_p9, %p2208_p8 }
  0x19   :  { %2216 = shalt.err (!%p2213_p10)
}
  0x1a   :  { %s2217_s15 = scalar_lea.vmem %s2317_s21, 16384  ;;  %p2222_p12 = scmp.lt.s32.totalorder %s2317_s21, %s2317_s21 }
  0x1b   :  { %p2218_p11 = scmp.ne.s32.totalorder %s2317_s21, %s2217_s15  ;;  %p2223_p13 = scmp.lt.s32.totalorder %s2217_s15, %s2217_s15 }
  0x1d   :  { %p2224_p0 = por %p2223_p13, %p2222_p12 }
  0x1f   :  { %p2225_p1 = pnand %p2224_p0, %p2218_p11 }
  0x21   :  { %2228 = shalt.err (!%p2225_p1)
}
  0x22   :  { %s2281_s2 = smov 64   ;;  %s2282_s16 = smov 4  }
  0x23   :  { %26 = dma.hbm_to_vmem [thread:$0]  %s2427_s1, 16384, %s2317_s21, [#allocation3], %s2281_s2, %s2281_s2, %s2282_s16  }
  0x24   :  { %s2283_s19 = smov [#allocation6]   ;;  %s2229_s24 = scalar_lea.hbm %s2429_s3, 2048 }
  0x25   :  { %s42_s20 = sshll.u32 %s2283_s19, 4  ;;  %p2230_p2 = scmp.ne.s32.totalorder %s2429_s3, %s2229_s24  ;;  %s43_s20 = int_to_ptr.vmem [resolvable:$true] %s42_s20 }
  0x26   :  { %p2233_p3 = scmp.lt.u32.totalorder %s2229_s24, %s2429_s3 }
  0x28   :  { %p2235_p4 = pnand %p2233_p3, %p2230_p2 }
  0x2a   :  { %2238 = shalt.err (!%p2235_p4)
}
  0x2b   :  { %s2239_s29 = scalar_lea.vmem %s43_s20, 2048  ;;  %p2244_p6 = scmp.lt.s32.totalorder %s43_s20, %s43_s20 }
  0x2c   :  { %p2240_p5 = scmp.ne.s32.totalorder %s43_s20, %s2239_s29  ;;  %p2245_p7 = scmp.lt.s32.totalorder %s2239_s29, %s2239_s29 }
  0x2e   :  { %p2246_p8 = por %p2245_p7, %p2244_p6 }
  0x30   :  { %p2247_p9 = pnand %p2246_p8, %p2240_p5 }
  0x32   :  { %2250 = shalt.err (!%p2247_p9)
}
  0x33   :  { %s2284_s1 = smov 128   ;;  %s2285_s21 = smov 8  }
  0x34   :  { %48 = dma.hbm_to_vmem [thread:$0]  %s2429_s3, 2048, %s43_s20, [#allocation5], %s2284_s1, %s2284_s1, %s2285_s21  }
  0x35   :  { %s2286_s7 = smov [#allocation7]   ;;  %s2251_s11 = scalar_lea.hbm %s2430_s4, 16 }
  0x36   :  { %s55_s8 = sshll.u32 %s2286_s7, 4  ;;  %p2252_p10 = scmp.ne.s32.totalorder %s2430_s4, %s2251_s11  ;;  %s56_s8 = int_to_ptr.vmem [resolvable:$true] %s55_s8 }
  0x37   :  { %p2255_p11 = scmp.lt.u32.totalorder %s2251_s11, %s2430_s4 }
  0x39   :  { %p2257_p12 = pnand %p2255_p11, %p2252_p10 }
  0x3b   :  { %2260 = shalt.err (!%p2257_p12)
}
  0x3c   :  { %s2261_s2 = scalar_lea.vmem %s56_s8, 16  ;;  %s2265_s3 = scalar_lea.vmem %s56_s8, 32 }
  0x3d   :  { %p2262_p13 = scmp.ne.s32.totalorder %s56_s8, %s2261_s2  ;;  %p2266_p0 = scmp.lt.s32.totalorder %s56_s8, %s56_s8 }
  0x3e   :  { %p2267_p1 = scmp.lt.s32.totalorder %s2265_s3, %s2261_s2 }
  0x40   :  { %p2268_p2 = por %p2267_p1, %p2266_p0 }
  0x42   :  { %p2269_p3 = pnand %p2268_p2, %p2262_p13 }
  0x44   :  { %2272 = shalt.err (!%p2269_p3)
}
  0x45   :  { %58 = dma.hbm_to_vmem [thread:$0]  %s2430_s4, 16, %s56_s8, [#allocation8]  }
  0x46   :  { %2273 = dma.done.wait [#allocation3], 16384  }
  0x47   :  { %2274 = vsyncadd [#allocation3], 4294950912 }
  0x48   :  { %2275 = dma.done.wait [#allocation5], 2064  }
  0x49   :  { %2276 = vsyncadd [#allocation5], 4294965232 }
  0x4a   :  { %2277 = dma.done.wait [#allocation8], 16  }
  0x4b   :  { %2278 = vsyncadd [#allocation8], 4294967280  ;;  %v2053_v0 = vld [vmem:[#allocation2 + $0x40] sm:$0xff]   ;;  %v2057_v4 = vld [vmem:[#allocation2 + $0x48] sm:$0xff]  }
  0x4c   :  { %v2054_v1 = vld [vmem:[#allocation2 + $0xc0] sm:$0xff]   ;;  %1784 = vmatprep.subr.bf16.mxu0 %v2053_v0  ;;  %v2058_v5 = vld [vmem:[#allocation2 + $0xc8] sm:$0xff]   ;;  %v2061_v8 = vld [vmem:[#allocation2 + $0x50] sm:$0xff]  }
  0x4d   :  { %v2055_v2 = vld [vmem:[#allocation2] sm:$0xff]   ;;  %1806 = vmatprep.subr.bf16.mxu1 %v2054_v1  ;;  %v2059_v6 = vld [vmem:[#allocation2 + $0x8] sm:$0xff]   ;;  %v2062_v9 = vld [vmem:[#allocation2 + $0xd0] sm:$0xff]  }
  0x4e   :  { %v2056_v3 = vld [vmem:[#allocation2 + $0x80] sm:$0xff]   ;;  %1785 = vmatpush3.bf16.msra.mxu0 %v2055_v2  ;;  %v2060_v7 = vld [vmem:[#allocation2 + $0x88] sm:$0xff]   ;;  %v2063_v10 = vld [vmem:[#allocation2 + $0x10] sm:$0xff]  }
  0x4f   :  { %1807 = vmatpush3.bf16.msra.mxu1 %v2056_v3  ;;  %1786 = vmatprep.subr.bf16.mxu0 %v2057_v4  ;;  %v2064_v11 = vld [vmem:[#allocation2 + $0x90] sm:$0xff]   ;;  %v2065_v12 = vld [vmem:[#allocation2 + $0x58] sm:$0xff]   ;;  %v2069_v16 = vld [vmem:[#allocation2 + $0x60] sm:$0xff]  }
  0x50   :  { %1808 = vmatprep.subr.bf16.mxu1 %v2058_v5  ;;  %v2066_v13 = vld [vmem:[#allocation2 + $0xd8] sm:$0xff]   ;;  %v2070_v17 = vld [vmem:[#allocation2 + $0xe0] sm:$0xff]   ;;  %v2073_v20 = vld [vmem:[#allocation2 + $0x68] sm:$0xff]  }
  0x51   :  { %v2067_v14 = vld [vmem:[#allocation2 + $0x18] sm:$0xff]   ;;  %v2071_v18 = vld [vmem:[#allocation2 + $0x20] sm:$0xff]   ;;  %v2074_v21 = vld [vmem:[#allocation2 + $0xe8] sm:$0xff]  }
  0x52   :  { %1787 = vmatpush3.bf16.msra.mxu0 %v2059_v6  ;;  %v2068_v15 = vld [vmem:[#allocation2 + $0x98] sm:$0xff]   ;;  %v2072_v19 = vld [vmem:[#allocation2 + $0xa0] sm:$0xff]   ;;  %v2075_v22 = vld [vmem:[#allocation2 + $0x28] sm:$0xff]  }
  0x53   :  { %1809 = vmatpush3.bf16.msra.mxu1 %v2060_v7  ;;  %1788 = vmatprep.subr.bf16.mxu0 %v2061_v8  ;;  %v2076_v23 = vld [vmem:[#allocation2 + $0xa8] sm:$0xff]   ;;  %v2077_v24 = vld [vmem:[#allocation2 + $0x70] sm:$0xff]   ;;  %v2081_v28 = vld [vmem:[#allocation2 + $0x78] sm:$0xff]  }
  0x54   :  { %1810 = vmatprep.subr.bf16.mxu1 %v2062_v9  ;;  %v2078_v25 = vld [vmem:[#allocation2 + $0xf0] sm:$0xff]   ;;  %v2082_v29 = vld [vmem:[#allocation2 + $0xf8] sm:$0xff]   ;;  %v72_v32 = vld [vmem:[%s2426_s0] sm:$0xff] }
  0x55   :  { %v2079_v26 = vld [vmem:[#allocation2 + $0x30] sm:$0xff]   ;;  %v2083_v30 = vld [vmem:[#allocation2 + $0x38] sm:$0xff]   ;;  %v80_v33 = vld [vmem:[%s2426_s0 + $0x40] sm:$0xff] }
  0x56   :  { %1789 = vmatpush3.bf16.msra.mxu0 %v2063_v10  ;;  %v2080_v27 = vld [vmem:[#allocation2 + $0xb0] sm:$0xff]   ;;  %v2084_v31 = vld [vmem:[#allocation2 + $0xb8] sm:$0xff]   ;;  %v73_v34 = vld [vmem:[%s2426_s0 + $0x8] sm:$0xff]  ;;  %v1639_v35 = vcombine.low %v72_v32, %v80_v33  ;;  %v1640_v36 = vcombine.high %v72_v32, %v80_v33 }
  0x57   :  { %1811 = vmatpush3.bf16.msra.mxu1 %v2064_v11  ;;  %1790 = vmatprep.subr.bf16.mxu0 %v2065_v12  ;;  %v81_v37 = vld [vmem:[%s2426_s0 + $0x48] sm:$0xff]  ;;  %v2085_v40 = vld [vmem:[#allocation2 + $0x140] sm:$0xff]   ;;  %v2093_v48 = vld [vmem:[#allocation2 + $0x150] sm:$0xff]  }
  0x58   :  { %1812 = vmatprep.subr.bf16.mxu1 %v2066_v13  ;;  %v1641_v38 = vcombine.low %v73_v34, %v81_v37  ;;  %v1642_v39 = vcombine.high %v73_v34, %v81_v37  ;;  %1231 = vmatprep.mubr.bf16.mxu0 %v1640_v36  ;;  %v2086_v41 = vld [vmem:[#allocation2 + $0x1c0] sm:$0xff]   ;;  %v2089_v44 = vld [vmem:[#allocation2 + $0x148] sm:$0xff]   ;;  %v2094_v49 = vld [vmem:[#allocation2 + $0x1d0] sm:$0xff]  }
  0x59   :  { %v2087_v42 = vld [vmem:[#allocation2 + $0x100] sm:$0xff]   ;;  %v2090_v45 = vld [vmem:[#allocation2 + $0x1c8] sm:$0xff]   ;;  %v2095_v50 = vld [vmem:[#allocation2 + $0x110] sm:$0xff]  }
  0x5a   :  { %1791 = vmatpush3.bf16.msra.mxu0 %v2067_v14  ;;  %1272 = vmatprep.mubr.bf16.mxu1 %v1642_v39  ;;  %v2088_v43 = vld [vmem:[#allocation2 + $0x180] sm:$0xff]   ;;  %v2091_v46 = vld [vmem:[#allocation2 + $0x108] sm:$0xff]   ;;  %v2096_v51 = vld [vmem:[#allocation2 + $0x190] sm:$0xff]  }
  0x5b   :  { %1813 = vmatpush3.bf16.msra.mxu1 %v2068_v15  ;;  %1792 = vmatprep.subr.bf16.mxu0 %v2069_v16  ;;  %v2092_v47 = vld [vmem:[#allocation2 + $0x188] sm:$0xff]   ;;  %v2097_v52 = vld [vmem:[#allocation2 + $0x158] sm:$0xff]   ;;  %v2101_v56 = vld [vmem:[#allocation2 + $0x160] sm:$0xff]  }
  0x5c   :  { %1814 = vmatprep.subr.bf16.mxu1 %v2070_v17  ;;  %v2098_v53 = vld [vmem:[#allocation2 + $0x1d8] sm:$0xff]   ;;  %v2102_v57 = vld [vmem:[#allocation2 + $0x1e0] sm:$0xff]   ;;  %v2105_v60 = vld [vmem:[#allocation2 + $0x168] sm:$0xff]  }
  0x5d   :  { %v2099_v54 = vld [vmem:[#allocation2 + $0x118] sm:$0xff]   ;;  %v2103_v58 = vld [vmem:[#allocation2 + $0x120] sm:$0xff]   ;;  %v2106_v61 = vld [vmem:[#allocation2 + $0x1e8] sm:$0xff]  }
  0x5e   :  { %1793 = vmatpush3.bf16.msra.mxu0 %v2071_v18  ;;  %v2100_v55 = vld [vmem:[#allocation2 + $0x198] sm:$0xff]   ;;  %v2104_v59 = vld [vmem:[#allocation2 + $0x1a0] sm:$0xff]   ;;  %v2107_v62 = vld [vmem:[#allocation2 + $0x128] sm:$0xff]  }
  0x5f   :  { %1815 = vmatpush3.bf16.msra.mxu1 %v2072_v19  ;;  %1794 = vmatprep.subr.bf16.mxu0 %v2073_v20  ;;  %v2108_v63 = vld [vmem:[#allocation2 + $0x1a8] sm:$0xff]   ;;  %v2109_v0 = vld [vmem:[#allocation2 + $0x170] sm:$0xff]   ;;  %v2113_v4 = vld [vmem:[#allocation2 + $0x178] sm:$0xff]  }
  0x60   :  { %1816 = vmatprep.subr.bf16.mxu1 %v2074_v21  ;;  %v2110_v1 = vld [vmem:[#allocation2 + $0x1f0] sm:$0xff]   ;;  %v2114_v5 = vld [vmem:[#allocation2 + $0x1f8] sm:$0xff]   ;;  %v2117_v16 = vld [vmem:[#allocation2 + $0x240] sm:$0xff]  }
  0x61   :  { %v2111_v2 = vld [vmem:[#allocation2 + $0x130] sm:$0xff]   ;;  %v2115_v6 = vld [vmem:[#allocation2 + $0x138] sm:$0xff]   ;;  %v2118_v17 = vld [vmem:[#allocation2 + $0x2c0] sm:$0xff]  }
  0x62   :  { %1795 = vmatpush3.bf16.msra.mxu0 %v2075_v22  ;;  %v2112_v3 = vld [vmem:[#allocation2 + $0x1b0] sm:$0xff]   ;;  %v2116_v7 = vld [vmem:[#allocation2 + $0x1b8] sm:$0xff]   ;;  %v2119_v18 = vld [vmem:[#allocation2 + $0x200] sm:$0xff]  }
  0x63   :  { %1817 = vmatpush3.bf16.msra.mxu1 %v2076_v23  ;;  %1796 = vmatprep.subr.bf16.mxu0 %v2077_v24  ;;  %v74_v8 = vld [vmem:[%s2426_s0 + $0x10] sm:$0xff]  ;;  %v75_v12 = vld [vmem:[%s2426_s0 + $0x18] sm:$0xff]  ;;  %v2120_v19 = vld [vmem:[#allocation2 + $0x280] sm:$0xff]  }
  0x64   :  { %1818 = vmatprep.subr.bf16.mxu1 %v2078_v25  ;;  %v82_v9 = vld [vmem:[%s2426_s0 + $0x50] sm:$0xff]  ;;  %v83_v13 = vld [vmem:[%s2426_s0 + $0x58] sm:$0xff]  ;;  %v2121_v20 = vld [vmem:[#allocation2 + $0x248] sm:$0xff]  }
  0x65   :  { %v1643_v10 = vcombine.low %v74_v8, %v82_v9  ;;  %v1644_v11 = vcombine.high %v74_v8, %v82_v9  ;;  %v1645_v14 = vcombine.low %v75_v12, %v83_v13  ;;  %v1646_v15 = vcombine.high %v75_v12, %v83_v13  ;;  %v2122_v21 = vld [vmem:[#allocation2 + $0x2c8] sm:$0xff]   ;;  %v2125_v24 = vld [vmem:[#allocation2 + $0x250] sm:$0xff]   ;;  %v2133_v32 = vld [vmem:[#allocation2 + $0x260] sm:$0xff]  }
  0x66   :  { %1797 = vmatpush3.bf16.msra.mxu0 %v2079_v26  ;;  %v2123_v22 = vld [vmem:[#allocation2 + $0x208] sm:$0xff]   ;;  %v2126_v25 = vld [vmem:[#allocation2 + $0x2d0] sm:$0xff]   ;;  %v2134_v33 = vld [vmem:[#allocation2 + $0x2e0] sm:$0xff]  }
  0x67   :  { %1819 = vmatpush3.bf16.msra.mxu1 %v2080_v27  ;;  %1798 = vmatprep.subr.bf16.mxu0 %v2081_v28  ;;  %v2124_v23 = vld [vmem:[#allocation2 + $0x288] sm:$0xff]   ;;  %v2127_v26 = vld [vmem:[#allocation2 + $0x210] sm:$0xff]   ;;  %v2129_v28 = vld [vmem:[#allocation2 + $0x258] sm:$0xff]  }
  0x68   :  { %1820 = vmatprep.subr.bf16.mxu1 %v2082_v29  ;;  %v2128_v27 = vld [vmem:[#allocation2 + $0x290] sm:$0xff]   ;;  %v2130_v29 = vld [vmem:[#allocation2 + $0x2d8] sm:$0xff]   ;;  %v2135_v34 = vld [vmem:[#allocation2 + $0x220] sm:$0xff]  }
  0x69   :  { %v2137_v36 = vld [vmem:[#allocation2 + $0x268] sm:$0xff]   ;;  %v2165_v8 = vld [vmem:[#allocation2 + $0x360] sm:$0xff]  }
  0x6a   :  { %1799 = vmatpush3.bf16.msra.mxu0 %v2083_v30  ;;  %v2131_v30 = vld [vmem:[#allocation2 + $0x218] sm:$0xff]   ;;  %v2138_v37 = vld [vmem:[#allocation2 + $0x2e8] sm:$0xff]   ;;  %v2166_v9 = vld [vmem:[#allocation2 + $0x3e0] sm:$0xff]  }
  0x6b   :  { %1821 = vmatpush3.bf16.msra.mxu1 %v2084_v31  ;;  %1828 = vmatprep.subr.bf16.mxu0 %v2085_v40  ;;  %v2132_v31 = vld [vmem:[#allocation2 + $0x298] sm:$0xff]   ;;  %v2140_v39 = vld [vmem:[#allocation2 + $0x2a8] sm:$0xff]   ;;  %v2141_v40 = vld [vmem:[#allocation2 + $0x270] sm:$0xff]  }
  0x6c   :  { %1850 = vmatprep.subr.bf16.mxu1 %v2086_v41  ;;  %v2142_v41 = vld [vmem:[#allocation2 + $0x2f0] sm:$0xff]   ;;  %v2169_v12 = vld [vmem:[#allocation2 + $0x368] sm:$0xff]  }
  0x6d   :  { %1232 = vmatmul.mubr.bf16.vlgmr.msra.gmra.mrb[0].mxu0 %v1639_v35  ;;  %v2136_v35 = vld [vmem:[#allocation2 + $0x2a0] sm:$0xff]   ;;  %v2170_v13 = vld [vmem:[#allocation2 + $0x3e8] sm:$0xff]  }
  0x6e   :  { %1273 = vmatmul.mubr.bf16.vlgmr.msra.gmra.mrb[0].mxu1 %v1641_v38  ;;  %1829 = vmatpush3.bf16.msra.mxu0 %v2087_v42  ;;  %v2139_v38 = vld [vmem:[#allocation2 + $0x228] sm:$0xff]   ;;  %v2143_v42 = vld [vmem:[#allocation2 + $0x230] sm:$0xff]  }
  0x6f   :  { %1851 = vmatpush3.bf16.msra.mxu1 %v2088_v43  ;;  %1830 = vmatprep.subr.bf16.mxu0 %v2089_v44  ;;  %v2144_v43 = vld [vmem:[#allocation2 + $0x2b0] sm:$0xff]   ;;  %v2145_v44 = vld [vmem:[#allocation2 + $0x278] sm:$0xff]  }
  0x70   :  { %1852 = vmatprep.subr.bf16.mxu1 %v2090_v45  ;;  %1313 = vmatprep.mubr.bf16.mxu0 %v1644_v11  ;;  %v2146_v45 = vld [vmem:[#allocation2 + $0x2f8] sm:$0xff]   ;;  %v2168_v11 = vld [vmem:[#allocation2 + $0x3a0] sm:$0xff]  }
  0x71   :  { %1354 = vmatprep.mubr.bf16.mxu1 %v1646_v15  ;;  %v2172_v15 = vld [vmem:[#allocation2 + $0x3a8] sm:$0xff]  }
  0x72   :  { %1831 = vmatpush3.bf16.msra.mxu0 %v2091_v46  ;;  %v2147_v46 = vld [vmem:[#allocation2 + $0x238] sm:$0xff]  }
  0x73   :  { %1853 = vmatpush3.bf16.msra.mxu1 %v2092_v47  ;;  %1832 = vmatprep.subr.bf16.mxu0 %v2093_v48  ;;  %v2148_v47 = vld [vmem:[#allocation2 + $0x2b8] sm:$0xff]   ;;  %v76_v48 = vld [vmem:[%s2426_s0 + $0x20] sm:$0xff] }
  0x74   :  { %1854 = vmatprep.subr.bf16.mxu1 %v2094_v49  ;;  %v84_v49 = vld [vmem:[%s2426_s0 + $0x60] sm:$0xff] }
  0x76   :  { %1833 = vmatpush3.bf16.msra.mxu0 %v2095_v50  ;;  %v77_v50 = vld [vmem:[%s2426_s0 + $0x28] sm:$0xff] }
  0x77   :  { %1855 = vmatpush3.bf16.msra.mxu1 %v2096_v51  ;;  %1834 = vmatprep.subr.bf16.mxu0 %v2097_v52  ;;  %v85_v51 = vld [vmem:[%s2426_s0 + $0x68] sm:$0xff]  ;;  %v1647_v52 = vcombine.low %v76_v48, %v84_v49 }
  0x78   :  { %1856 = vmatprep.subr.bf16.mxu1 %v2098_v53  ;;  %v1648_v53 = vcombine.high %v76_v48, %v84_v49  ;;  %v1540_v48 = vld [vmem:[#allocation6 + $0x58] sm:$0xff] }
  0x7a   :  { %1835 = vmatpush3.bf16.msra.mxu0 %v2099_v54  ;;  %v1649_v54 = vcombine.low %v77_v50, %v85_v51 }
  0x7b   :  { %1857 = vmatpush3.bf16.msra.mxu1 %v2100_v55  ;;  %1836 = vmatprep.subr.bf16.mxu0 %v2101_v56  ;;  %v1650_v55 = vcombine.high %v77_v50, %v85_v51  ;;  %v2149_v56 = vld [vmem:[#allocation2 + $0x340] sm:$0xff]   ;;  %v1542_v51 = vld [vmem:[#allocation6 + $0x68] sm:$0xff] }
  0x7c   :  { %1858 = vmatprep.subr.bf16.mxu1 %v2102_v57  ;;  %v2150_v57 = vld [vmem:[#allocation2 + $0x3c0] sm:$0xff]  }
  0x7d   :  { %v1541_v50 = vld [vmem:[#allocation6 + $0x60] sm:$0xff] }
  0x7e   :  { %1837 = vmatpush3.bf16.msra.mxu0 %v2103_v58  ;;  %v2151_v58 = vld [vmem:[#allocation2 + $0x300] sm:$0xff]  }
  0x7f   :  { %1859 = vmatpush3.bf16.msra.mxu1 %v2104_v59  ;;  %1838 = vmatprep.subr.bf16.mxu0 %v2105_v60  ;;  %v2152_v59 = vld [vmem:[#allocation2 + $0x380] sm:$0xff]   ;;  %v2153_v60 = vld [vmem:[#allocation2 + $0x348] sm:$0xff]  }
  0x80   :  { %1860 = vmatprep.subr.bf16.mxu1 %v2106_v61  ;;  %v2154_v61 = vld [vmem:[#allocation2 + $0x3c8] sm:$0xff]  }
  0x82   :  { %1839 = vmatpush3.bf16.msra.mxu0 %v2107_v62  ;;  %v2155_v62 = vld [vmem:[#allocation2 + $0x308] sm:$0xff]  }
  0x83   :  { %1861 = vmatpush3.bf16.msra.mxu1 %v2108_v63  ;;  %1840 = vmatprep.subr.bf16.mxu0 %v2109_v0  ;;  %v2156_v63 = vld [vmem:[#allocation2 + $0x388] sm:$0xff]   ;;  %v2157_v0 = vld [vmem:[#allocation2 + $0x350] sm:$0xff]  }
  0x84   :  { %1862 = vmatprep.subr.bf16.mxu1 %v2110_v1  ;;  %v2158_v1 = vld [vmem:[#allocation2 + $0x3d0] sm:$0xff]  }
  0x86   :  { %1841 = vmatpush3.bf16.msra.mxu0 %v2111_v2  ;;  %v2159_v2 = vld [vmem:[#allocation2 + $0x310] sm:$0xff]  }
  0x87   :  { %1863 = vmatpush3.bf16.msra.mxu1 %v2112_v3  ;;  %1842 = vmatprep.subr.bf16.mxu0 %v2113_v4  ;;  %v2160_v3 = vld [vmem:[#allocation2 + $0x390] sm:$0xff]   ;;  %v2161_v4 = vld [vmem:[#allocation2 + $0x358] sm:$0xff]  }
  0x88   :  { %1864 = vmatprep.subr.bf16.mxu1 %v2114_v5  ;;  %v2162_v5 = vld [vmem:[#allocation2 + $0x3d8] sm:$0xff]  }
  0x8a   :  { %1843 = vmatpush3.bf16.msra.mxu0 %v2115_v6  ;;  %v2163_v6 = vld [vmem:[#allocation2 + $0x318] sm:$0xff]  }
  0x8b   :  { %1865 = vmatpush3.bf16.msra.mxu1 %v2116_v7  ;;  %1872 = vmatprep.subr.bf16.mxu0 %v2117_v16  ;;  %v2164_v7 = vld [vmem:[#allocation2 + $0x398] sm:$0xff]   ;;  %v2173_v16 = vld [vmem:[#allocation2 + $0x370] sm:$0xff]  }
  0x8c   :  { %1894 = vmatprep.subr.bf16.mxu1 %v2118_v17  ;;  %v2174_v17 = vld [vmem:[#allocation2 + $0x3f0] sm:$0xff]  }
  0x8d   :  { %1314 = vmatmul.mubr.bf16.vlgmr.msra.gmra.mrb[4].mxu0 %v1643_v10  ;;  %v2167_v10 = vld [vmem:[#allocation2 + $0x320] sm:$0xff]  }
  0x8e   :  { %1355 = vmatmul.mubr.bf16.vlgmr.msra.gmra.mrb[4].mxu1 %v1645_v14  ;;  %1873 = vmatpush3.bf16.msra.mxu0 %v2119_v18  ;;  %v2171_v14 = vld [vmem:[#allocation2 + $0x328] sm:$0xff]   ;;  %v2175_v18 = vld [vmem:[#allocation2 + $0x330] sm:$0xff]  }
  0x8f   :  { %1895 = vmatpush3.bf16.msra.mxu1 %v2120_v19  ;;  %1874 = vmatprep.subr.bf16.mxu0 %v2121_v20  ;;  %v2176_v19 = vld [vmem:[#allocation2 + $0x3b0] sm:$0xff]   ;;  %v2177_v20 = vld [vmem:[#allocation2 + $0x378] sm:$0xff]  }
  0x90   :  { %1896 = vmatprep.subr.bf16.mxu1 %v2122_v21  ;;  %1395 = vmatprep.mubr.bf16.mxu0 %v1648_v53  ;;  %v2178_v21 = vld [vmem:[#allocation2 + $0x3f8] sm:$0xff]  }
  0x91   :  { %1436 = vmatprep.mubr.bf16.mxu1 %v1650_v55  ;;  %v1543_v53 = vld [vmem:[#allocation6 + $0x70] sm:$0xff] }
  0x92   :  { %1875 = vmatpush3.bf16.msra.mxu0 %v2123_v22  ;;  %v2179_v22 = vld [vmem:[#allocation2 + $0x338] sm:$0xff]  }
  0x93   :  { %1897 = vmatpush3.bf16.msra.mxu1 %v2124_v23  ;;  %1876 = vmatprep.subr.bf16.mxu0 %v2125_v24  ;;  %v2180_v23 = vld [vmem:[#allocation2 + $0x3b8] sm:$0xff]   ;;  %v78_v24 = vld [vmem:[%s2426_s0 + $0x30] sm:$0xff] }
  0x94   :  { %1898 = vmatprep.subr.bf16.mxu1 %v2126_v25  ;;  %v86_v25 = vld [vmem:[%s2426_s0 + $0x70] sm:$0xff] }
  0x96   :  { %1877 = vmatpush3.bf16.msra.mxu0 %v2127_v26  ;;  %v79_v26 = vld [vmem:[%s2426_s0 + $0x38] sm:$0xff] }
  0x97   :  { %1899 = vmatpush3.bf16.msra.mxu1 %v2128_v27  ;;  %1878 = vmatprep.subr.bf16.mxu0 %v2129_v28  ;;  %v1651_v27 = vcombine.low %v78_v24, %v86_v25  ;;  %v1652_v28 = vcombine.high %v78_v24, %v86_v25 }
  0x98   :  { %1900 = vmatprep.subr.bf16.mxu1 %v2130_v29  ;;  %v87_v29 = vld [vmem:[%s2426_s0 + $0x78] sm:$0xff] }
  0x9a   :  { %1879 = vmatpush3.bf16.msra.mxu0 %v2131_v30  ;;  %v1653_v30 = vcombine.low %v79_v26, %v87_v29 }
  0x9b   :  { %1901 = vmatpush3.bf16.msra.mxu1 %v2132_v31  ;;  %1880 = vmatprep.subr.bf16.mxu0 %v2133_v32  ;;  %v1654_v31 = vcombine.high %v79_v26, %v87_v29  ;;  %v1529_v32 = vld [vmem:[#allocation6] sm:$0xff] }
  0x9c   :  { %1902 = vmatprep.subr.bf16.mxu1 %v2134_v33  ;;  %v1530_v33 = vld [vmem:[#allocation6 + $0x8] sm:$0xff] }
  0x9e   :  { %1881 = vmatpush3.bf16.msra.mxu0 %v2135_v34  ;;  %v1531_v34 = vld [vmem:[#allocation6 + $0x10] sm:$0xff] }
  0x9f   :  { %1903 = vmatpush3.bf16.msra.mxu1 %v2136_v35  ;;  %1882 = vmatprep.subr.bf16.mxu0 %v2137_v36  ;;  %v2013_v35 = vpack.c.bf16 %v1530_v33, %v1529_v32  ;;  %v1532_v36 = vld [vmem:[#allocation6 + $0x18] sm:$0xff] }
  0xa0   :  { %1904 = vmatprep.subr.bf16.mxu1 %v2138_v37  ;;  %v2017_v37 = vpack.c.bf16 %v1532_v36, %v1531_v34 }
  0xa2   :  { %1883 = vmatpush3.bf16.msra.mxu0 %v2139_v38  ;;  %v1533_v38 = vld [vmem:[#allocation6 + $0x20] sm:$0xff] }
  0xa3   :  { %1905 = vmatpush3.bf16.msra.mxu1 %v2140_v39  ;;  %1884 = vmatprep.subr.bf16.mxu0 %v2141_v40  ;;  %v1534_v39 = vld [vmem:[#allocation6 + $0x28] sm:$0xff] }
  0xa4   :  { %1906 = vmatprep.subr.bf16.mxu1 %v2142_v41  ;;  %v2021_v40 = vpack.c.bf16 %v1534_v39, %v1533_v38  ;;  %v1535_v41 = vld [vmem:[#allocation6 + $0x30] sm:$0xff] }
  0xa6   :  { %1885 = vmatpush3.bf16.msra.mxu0 %v2143_v42  ;;  %v1536_v42 = vld [vmem:[#allocation6 + $0x38] sm:$0xff] }
  0xa7   :  { %1907 = vmatpush3.bf16.msra.mxu1 %v2144_v43  ;;  %1886 = vmatprep.subr.bf16.mxu0 %v2145_v44  ;;  %v2025_v43 = vpack.c.bf16 %v1536_v42, %v1535_v41  ;;  %v1537_v44 = vld [vmem:[#allocation6 + $0x40] sm:$0xff] }
  0xa8   :  { %1908 = vmatprep.subr.bf16.mxu1 %v2146_v45  ;;  %v1538_v45 = vld [vmem:[#allocation6 + $0x48] sm:$0xff] }
  0xaa   :  { %1887 = vmatpush3.bf16.msra.mxu0 %v2147_v46  ;;  %v2029_v46 = vpack.c.bf16 %v1538_v45, %v1537_v44 }
  0xab   :  { %1909 = vmatpush3.bf16.msra.mxu1 %v2148_v47  ;;  %1916 = vmatprep.subr.bf16.mxu0 %v2149_v56  ;;  %v1539_v47 = vld [vmem:[#allocation6 + $0x50] sm:$0xff] }
  0xac   :  { %1938 = vmatprep.subr.bf16.mxu1 %v2150_v57  ;;  %v2033_v49 = vpack.c.bf16 %v1540_v48, %v1539_v47 }
  0xad   :  { %1396 = vmatmul.mubr.bf16.vlgmr.msra.gmra.mrb[8].mxu0 %v1647_v52  ;;  %v2037_v52 = vpack.c.bf16 %v1542_v51, %v1541_v50 }
  0xae   :  { %1437 = vmatmul.mubr.bf16.vlgmr.msra.gmra.mrb[8].mxu1 %v1649_v54  ;;  %1917 = vmatpush3.bf16.msra.mxu0 %v2151_v58  ;;  %v1544_v54 = vld [vmem:[#allocation6 + $0x78] sm:$0xff] }
  0xaf   :  { %1939 = vmatpush3.bf16.msra.mxu1 %v2152_v59  ;;  %1918 = vmatprep.subr.bf16.mxu0 %v2153_v60  ;;  %v2041_v55 = vpack.c.bf16 %v1544_v54, %v1543_v53  ;;  %v1638_v58 = vld [vmem:[#allocation4] ss:$0 sm:$0xff] }
  0xb0   :  { %1940 = vmatprep.subr.bf16.mxu1 %v2154_v61  ;;  %1477 = vmatprep.mubr.bf16.mxu0 %v1652_v28 }
  0xb1   :  { %1518 = vmatprep.mubr.bf16.mxu1 %v1654_v31 }
  0xb2   :  { %1919 = vmatpush3.bf16.msra.mxu0 %v2155_v62 }
  0xb3   :  { %1941 = vmatpush3.bf16.msra.mxu1 %v2156_v63  ;;  %1920 = vmatprep.subr.bf16.mxu0 %v2157_v0 }
  0xb4   :  { %1942 = vmatprep.subr.bf16.mxu1 %v2158_v1 }
  0xb6   :  { %1921 = vmatpush3.bf16.msra.mxu0 %v2159_v2 }
  0xb7   :  { %1943 = vmatpush3.bf16.msra.mxu1 %v2160_v3  ;;  %1922 = vmatprep.subr.bf16.mxu0 %v2161_v4 }
  0xb8   :  { %1944 = vmatprep.subr.bf16.mxu1 %v2162_v5 }
  0xba   :  { %1923 = vmatpush3.bf16.msra.mxu0 %v2163_v6 }
  0xbb   :  { %1945 = vmatpush3.bf16.msra.mxu1 %v2164_v7  ;;  %1924 = vmatprep.subr.bf16.mxu0 %v2165_v8 }
  0xbc   :  { %1946 = vmatprep.subr.bf16.mxu1 %v2166_v9 }
  0xbe   :  { %1925 = vmatpush3.bf16.msra.mxu0 %v2167_v10 }
  0xbf   :  { %1947 = vmatpush3.bf16.msra.mxu1 %v2168_v11  ;;  %1926 = vmatprep.subr.bf16.mxu0 %v2169_v12 }
  0xc0   :  { %1948 = vmatprep.subr.bf16.mxu1 %v2170_v13 }
  0xc2   :  { %1927 = vmatpush3.bf16.msra.mxu0 %v2171_v14 }
  0xc3   :  { %1949 = vmatpush3.bf16.msra.mxu1 %v2172_v15  ;;  %1928 = vmatprep.subr.bf16.mxu0 %v2173_v16 }
  0xc4   :  { %1950 = vmatprep.subr.bf16.mxu1 %v2174_v17 }
  0xc6   :  { %1929 = vmatpush3.bf16.msra.mxu0 %v2175_v18 }
  0xc7   :  { %1951 = vmatpush3.bf16.msra.mxu1 %v2176_v19  ;;  %1930 = vmatprep.subr.bf16.mxu0 %v2177_v20 }
  0xc8   :  { %1952 = vmatprep.subr.bf16.mxu1 %v2178_v21 }
  0xca   :  { %1931 = vmatpush3.bf16.msra.mxu0 %v2179_v22 }
  0xcb   :  { %1953 = vmatpush3.bf16.msra.mxu1 %v2180_v23  ;;  %2014 = vmatprep.subr.bf16.mxu0 %v2013_v35 }
  0xcd   :  { %1478 = vmatmul.mubr.bf16.vlgmr.msra.gmra.mrb[12].mxu0 %v1651_v27 }
  0xce   :  { %1519 = vmatmul.mubr.bf16.vlgmr.msra.gmra.mrb[12].mxu1 %v1653_v30  ;;  %2016 = vmatpush3.bf16.msra.mxu0 %v2013_v35 }
  0xcf   :  { %2018 = vmatprep.subr.bf16.mxu0 %v2017_v37 }
  0xd2   :  { %2020 = vmatpush3.bf16.msra.mxu0 %v2017_v37 }
  0xd3   :  { %2022 = vmatprep.subr.bf16.mxu0 %v2021_v40 }
  0xd6   :  { %2024 = vmatpush3.bf16.msra.mxu0 %v2021_v40 }
  0xd7   :  { %2026 = vmatprep.subr.bf16.mxu0 %v2025_v43 }
  0xda   :  { %2028 = vmatpush3.bf16.msra.mxu0 %v2025_v43 }
  0xdb   :  { %2030 = vmatprep.subr.bf16.mxu0 %v2029_v46 }
  0xde   :  { %2032 = vmatpush3.bf16.msra.mxu0 %v2029_v46 }
  0xdf   :  { %2034 = vmatprep.subr.bf16.mxu0 %v2033_v49 }
  0xe2   :  { %2036 = vmatpush3.bf16.msra.mxu0 %v2033_v49 }
  0xe3   :  { %2038 = vmatprep.subr.bf16.mxu0 %v2037_v52 }
  0xe6   :  { %2040 = vmatpush3.bf16.msra.mxu0 %v2037_v52 }
  0xe7   :  { %2042 = vmatprep.subr.bf16.mxu0 %v2041_v55 }
  0xea   :  { %2044 = vmatpush3.bf16.msra.mxu0 %v2041_v55 }
 0x140   :  { %v1800_v56 = vpop.f32.mrb[0].mxu0 }
 0x141   :  { %v1822_v57 = vpop.f32.mrb[0].mxu1  ;;  %v1801_v59 = vpop.f32.mrb[1].mxu0 }
 0x142   :  { %v1802_v60 = vadd.f32 %v1801_v59, %v1800_v56  ;;  %v1823_v61 = vpop.f32.mrb[1].mxu1  ;;  %v1803_v62 = vpop.f32.mrb[2].mxu0  ;;  %v1783_v59 = vld [vmem:[#allocation7] ss:$0 sm:$0xff] }
 0x143   :  { %v1824_v63 = vadd.f32 %v1823_v61, %v1822_v57  ;;  %v1825_v0 = vpop.f32.mrb[2].mxu1  ;;  %v1804_v1 = vpop.f32.mrb[3].mxu0 }
 0x144   :  { %v1234_v2 = vadd.f32 %v1802_v60, %v1638_v58  ;;  %v1805_v3 = vadd.f32 %v1804_v1, %v1803_v62  ;;  %v1826_v4 = vpop.f32.mrb[3].mxu1 }
 0x145   :  { %v1827_v5 = vadd.f32 %v1826_v4, %v1825_v0 }
 0x146   :  { %v1275_v6 = vadd.f32 %v1824_v63, %v1234_v2  ;;  %v1237_v7 = vadd.f32 %v1805_v3, %v1638_v58 }
 0x148   :  { %v1278_v8 = vadd.f32 %v1827_v5, %v1237_v7 }
 0x160   :  { %v1844_v9 = vpop.f32.mrb[4].mxu0 }
 0x161   :  { %v1866_v10 = vpop.f32.mrb[4].mxu1  ;;  %v1845_v11 = vpop.f32.mrb[5].mxu0 }
 0x162   :  { %v1846_v12 = vadd.f32 %v1845_v11, %v1844_v9  ;;  %v1867_v13 = vpop.f32.mrb[5].mxu1  ;;  %v1847_v14 = vpop.f32.mrb[6].mxu0 }
 0x163   :  { %v1868_v15 = vadd.f32 %v1867_v13, %v1866_v10  ;;  %v1869_v16 = vpop.f32.mrb[6].mxu1  ;;  %v1848_v17 = vpop.f32.mrb[7].mxu0 }
 0x164   :  { %v1316_v18 = vadd.f32 %v1846_v12, %v1275_v6  ;;  %v1849_v19 = vadd.f32 %v1848_v17, %v1847_v14  ;;  %v1870_v20 = vpop.f32.mrb[7].mxu1 }
 0x165   :  { %v1871_v21 = vadd.f32 %v1870_v20, %v1869_v16 }
 0x166   :  { %v1357_v22 = vadd.f32 %v1868_v15, %v1316_v18  ;;  %v1319_v23 = vadd.f32 %v1849_v19, %v1278_v8 }
 0x168   :  { %v1360_v24 = vadd.f32 %v1871_v21, %v1319_v23 }
 0x180   :  { %v1888_v25 = vpop.f32.mrb[8].mxu0 }
 0x181   :  { %v1910_v26 = vpop.f32.mrb[8].mxu1  ;;  %v1889_v27 = vpop.f32.mrb[9].mxu0 }
 0x182   :  { %v1911_v28 = vpop.f32.mrb[9].mxu1  ;;  %v1890_v29 = vadd.f32 %v1889_v27, %v1888_v25  ;;  %v1891_v31 = vpop.f32.mrb[10].mxu0 }
 0x183   :  { %v1912_v30 = vadd.f32 %v1911_v28, %v1910_v26  ;;  %v1913_v32 = vpop.f32.mrb[10].mxu1  ;;  %v1892_v33 = vpop.f32.mrb[11].mxu0 }
 0x184   :  { %v1914_v34 = vpop.f32.mrb[11].mxu1  ;;  %v1398_v35 = vadd.f32 %v1890_v29, %v1357_v22  ;;  %v1893_v36 = vadd.f32 %v1892_v33, %v1891_v31 }
 0x185   :  { %v1915_v37 = vadd.f32 %v1914_v34, %v1913_v32 }
 0x186   :  { %v1439_v38 = vadd.f32 %v1912_v30, %v1398_v35  ;;  %v1401_v39 = vadd.f32 %v1893_v36, %v1360_v24 }
 0x188   :  { %v1442_v40 = vadd.f32 %v1915_v37, %v1401_v39 }
 0x1a0   :  { %v1932_v41 = vpop.f32.mrb[12].mxu0 }
 0x1a1   :  { %v1954_v42 = vpop.f32.mrb[12].mxu1  ;;  %v1933_v43 = vpop.f32.mrb[13].mxu0 }
 0x1a2   :  { %v1934_v44 = vadd.f32 %v1933_v43, %v1932_v41  ;;  %v1955_v45 = vpop.f32.mrb[13].mxu1  ;;  %v1935_v46 = vpop.f32.mrb[14].mxu0 }
 0x1a3   :  { %v1956_v47 = vadd.f32 %v1955_v45, %v1954_v42  ;;  %v1957_v48 = vpop.f32.mrb[14].mxu1  ;;  %v1936_v49 = vpop.f32.mrb[15].mxu0 }
 0x1a4   :  { %v1480_v50 = vadd.f32 %v1934_v44, %v1439_v38  ;;  %v1937_v51 = vadd.f32 %v1936_v49, %v1935_v46  ;;  %v1958_v52 = vpop.f32.mrb[15].mxu1 }
 0x1a5   :  { %v1959_v53 = vadd.f32 %v1958_v52, %v1957_v48 }
 0x1a6   :  { %v1521_v54 = vadd.f32 %v1956_v47, %v1480_v50  ;;  %v1483_v55 = vadd.f32 %v1937_v51, %v1442_v40 }
 0x1a8   :  { %v1527_v56 = vmax.f32 %v1521_v54, 0.0  ;;  %v1524_v57 = vadd.f32 %v1959_v53, %v1483_v55 }
 0x1aa   :  { %v1528_v58 = vmax.f32 %v1524_v57, 0.0  ;;  %2010 = vmatprep.mubr.f32.mxu0 %v1527_v56 }
 0x1ac   :  { %2011 = vmatmul.mubr.f32.vlgmr.msra.gmra.mrb[16].mxu0 %v1528_v58 }
 0x27f   :  { %v2012_v60 = vpop.f32.mrb[16].mxu0 }
 0x280   :  { %v1624_v61 = vadd.f32 %v2012_v60, %v1783_v59  ;;  %v1618_v62 = vpop.f32.mrb[17].mxu0 }
 0x281   :  { %v1619_v63 = vadd.f32 %v1783_v59, %v1618_v62 }
 0x282   :  { %2181 = vtanh.f32 %v1624_v61 }
 0x283   :  { %2183 = vtanh.f32 %v1619_v63 }
 0x28c   :  { %v2182_v0 = vpop.eup %2181 }
 0x28d   :  { %v2184_v1 = vpop.eup %2183  ;;  %1630 = vst [vmem:[%s2431_s5 + $0x8] sm:$0xff] %v2182_v0 }
 0x28e   :  { %1629 = vst [vmem:[%s2431_s5] sm:$0xff] %v2184_v1 }
 0x28f   :  { %1635 = vsyncpa [#allocation3], 1 }
 0x290   :  { %1636 = vsyncpa [#allocation5], 1 }
 0x291   :  { %1637 = vsyncpa [#allocation8], 1 }

// kernel: chessnet_forward.8
= control target key start
LH: loop header
LB: loop body
LE: loop exit
PB: predicated region body
PF: predicated region fallthrough
CT: control target
= control target key end

     0   :  { %8 = vsyncpa [#allocation4], 0  ;;  %s21391_s0 = inlined_call_operand.vmem [shape: bf16[16,5120], index: 0, kind: input, shape index: {}]   ;;  %s21392_s1 = inlined_call_operand.hbm [shape: bf16[5120,4736], index: 1, kind: input, shape index: {}]   ;;  %s21393_s2 = inlined_call_operand.hbm [shape: f32[1,4736], index: 2, kind: input, shape index: {}]   ;;  %s21394_s3 = inlined_call_operand.vmem [shape: f32[16,4736], index: 3, kind: output, shape index: {}]  }
   0x1   :  { %10 = vsyncpa [#allocation4 + $0x1], 0 }
   0x2   :  { %11 = vsyncpa [#allocation6], 0  ;;  %s17482_s12 = smov 0   ;;  %s17484_s13 = smov 0  }
   0x3   :  { %s17486_s14 = smov 0   ;;  %s17488_s15 = smov 0  }
   0x4   :  { %s17490_s16 = smov 0   ;;  %s17492_s17 = smov 0  }
   0x5 LB: > { %s13157_s18 = sadd.s32 4294967295, %s17452_s17   ;;  %s26_s19 = sadd.s32 1, %s17448_s16  ;;  %s17452_s17 = sphi %s17492_s17, %s17_s17   ;;  %s17448_s16 = sphi %s17490_s16, %s21585_s16   ;;  %s17444_s15 = sphi %s17488_s15, %s21584_s15   ;;  %s17440_s14 = sphi %s17486_s14, %s21583_s14   ;;  %s17436_s13 = sphi %s17484_s13, %s21582_s13   ;;  %s17432_s12 = sphi %s17482_s12, %s21581_s12  }
   0x6   : > { %p27_p0 = scmp.ge.s32.totalorder %s26_s19, 8  ;;  %s38_s20 = sadd.s32 1, %s17440_s14 }
   0x7   : > { %p45_p1 = scmp.ne.s32.totalorder %s17440_s14, %s17436_s13  ;;  %p46_p2 = scmp.eq.s32.totalorder %s17452_s17, 0 }
   0x8   : > { %s21587_s19 = smov (%p27_p0, %s26_s19), 0  ;;  %p77_p4 = scmp.ne.s32.totalorder %s17436_s13, %s17432_s12 }
   0x9   : > { %p17518_p3 = por %p46_p2, %p45_p1  ;;  %s34_s22 = ssub.s32 %s17448_s16, %s21587_s19 }
   0xa   : > { %p17525_p5 = scmp.eq.s32.totalorder %s13157_s18, 0  ;;  %p36_p6 = scmp.eq.s32.totalorder %s34_s22, 0 }
   0xb   : > { %s21457_s21 = scalar_select %p17518_p3, 1, 0 }
   0xc   : > { %s21458_s23 = scalar_select %p17525_p5, 1, 0 }
   0xd   : > { %p13158_p7 = scmp.ge.s32.totalorder %s17452_s17, 1  ;;  %p17532_p8 = por %p17525_p5, %p77_p4 }
   0xe   : > { %p135_p9 = scmp.lt.s32.totalorder %s17452_s17, 9  ;;  %s17454_s27 = smov [#allocation5]  }
   0xf   : > { %s21459_s24 = scalar_select %p17532_p8, 1, 0 }
  0x10   : > { %s17538_s25 = scalar_select %p36_p6, %s17440_s14, %s38_s20  }
  0x11   : > { %p17540_p10 = pnand %p13158_p7, %p135_p9  ;;  %s148_s28 = sshll.u32 %s17454_s27, 4  ;;  %s149_s28 = int_to_ptr.vmem [resolvable:$true] %s148_s28 }
  0x12   : > { %s17342_s5 = scalar_lea.hbm %s21393_s2, 592 }
  0x13   : > { %s21460_s26 = scalar_select %p17540_p10, 1, 0 }
  0x14   : > { %p14889_p11 = pneg %p17540_p10  ;;  %p17343_p13 = scmp.ne.s32.totalorder %s21393_s2, %s17342_s5 }
  0x15   : > { %p17349_p4 = scmp.lt.u32.totalorder %s17342_s5, %s21393_s2 }
  0x16   : > { %p17548_p12 = pnand %p14889_p11, %p17525_p5 }
  0x18   : > { %p17344_p0 = pneg %p17548_p12 }
  0x1a   : > { %p17345_p1 = pnand %p17344_p0, %p17343_p13 }
  0x1c   : > { %p17346_p2 = pneg %p17345_p1 }
  0x1e   : > { %p17351_p6 = pnand %p17349_p4, %p17346_p2 }
  0x20   : > { %17354 = shalt.err (!%p17351_p6)
}
  0x21   : > { %s17355_s10 = scalar_lea.vmem %s149_s28, 592  ;;  %s17362_s11 = scalar_lea.vmem %s149_s28, 608 }
  0x22   : > { %p17356_p7 = scmp.ne.s32.totalorder %s149_s28, %s17355_s10  ;;  %p17363_p5 = scmp.lt.s32.totalorder %s149_s28, %s149_s28 }
  0x23   : > { %p17364_p8 = scmp.lt.s32.totalorder %s17362_s11, %s17355_s10 }
  0x24   : > { %p17358_p9 = pnand %p17356_p7, %p17344_p0 }
  0x25   : > { %p17365_p10 = por %p17364_p8, %p17363_p5 }
  0x26   : > { %p17359_p11 = pneg %p17358_p9 }
  0x28   : > { %p17366_p3 = pnand %p17365_p10, %p17359_p11 }
  0x2a   : > { %17369 = shalt.err (!%p17366_p3)
}
  0x2b   : > { %14892 = dma.hbm_to_vmem [thread:$0]  (!%p17548_p12), %s21393_s2, 592, %s149_s28, [#allocation6]  }
  0x2c   : > { %p13160_p13 = scmp.ge.s32.totalorder %s17452_s17, 8 }
  0x2d   : > { %p21462_p1 = scmp.ne.s32.totalorder (!%p13160_p13), %s21457_s21, 0 }
  0x2e   : > { %155 = sbr.rel (%p13160_p13) target bundleno = 88 (0x58), region = 20 }
  0x35   : > { %158 = sbr.rel (!%p21462_p1) target bundleno = 61 (0x3d), region = 24  ;;  %s160_s20 = sand.u32 (%p21462_p1), 1, %s17440_s14  }
  0x36   : > { %s14660_s22 = smul.u32 (%p21462_p1), 20, %s17448_s16 }
  0x37   : > { %s14878_s27 = smul.u32 (%p21462_p1), 40, %s160_s20 }
  0x38   : > { %s168_s5 = scalar_lea.vmem (%p21462_p1), %s21391_s0, %s14660_s22 }
  0x39   : > { %v183_v0 = vld [vmem:[%s168_s5] sm:$0xff] (%p21462_p1)  ;;  %v185_v1 = vld [vmem:[%s168_s5 + $0x8] sm:$0xff] (%p21462_p1)  ;;  %s162_s29 = scalar_lea.vmem (%p21462_p1), [#allocation2], %s14878_s27  ;;  %v13162_v4 = vld [vmem:[%s168_s5 + $0x10] sm:$0xf] (%p21462_p1) }
  0x3a   : > { %v187_v2 = vld [vmem:[%s168_s5 + $0xa0] sm:$0xff] (%p21462_p1)  ;;  %184 = vst [vmem:[%s162_s29] sm:$0xff] (%p21462_p1), %v183_v0  ;;  %186 = vst [vmem:[%s162_s29 + $0x8] sm:$0xff] (%p21462_p1), %v185_v1  ;;  %v189_v3 = vld [vmem:[%s168_s5 + $0xa8] sm:$0xff] (%p21462_p1) }
  0x3b   : > { %188 = vst [vmem:[%s162_s29 + $0x14] sm:$0xff] (%p21462_p1), %v187_v2  ;;  %v13164_v5 = vld [vmem:[%s168_s5 + $0xb0] sm:$0xf] (%p21462_p1)  ;;  %190 = vst [vmem:[%s162_s29 + $0x1c] sm:$0xff] (%p21462_p1), %v189_v3 }
  0x3c   : > { %13163 = vst [vmem:[%s162_s29 + $0x10] sm:$0xf] %v13162_v4  ;;  %13165 = vst [vmem:[%s162_s29 + $0x24] sm:$0xf] %v13164_v5 }
  0x3d PF: > { %s208_s28 = sand.u32 1, %s17440_s14   ;;  %s14894_s7 = smul.u32 189440, %s17448_s16 }
  0x3e   : > { %s14879_s6 = smul.u32 11840, %s208_s28  ;;  %s17585_s18 = scalar_lea.sflag [#allocation4], %s208_s28 }
  0x3f   : > { %s17581_s10 = scalar_lea.hbm %s21392_s1, %s14894_s7  ;;  %p21463_p5 = scmp.ne.s32.totalorder %s21457_s21, 0 }
  0x40   : > { %s212_s11 = scalar_lea.vmem [#allocation3], %s14879_s6  ;;  %s17370_s20 = scalar_lea.hbm %s17581_s10, 189440 }
  0x41   : > { %s220_s12 = sshll.u32 %s212_s11, 4  ;;  %p17371_p3 = scmp.ne.s32.totalorder %s17581_s10, %s17370_s20  ;;  %s17583_s12 = int_to_ptr.vmem [resolvable:$true] %s220_s12 }
  0x42   : > { %s17374_s30 = scalar_lea.hbm %s21392_s1, 1515520  ;;  %p17375_p12 = scmp.lt.u32.totalorder %s17581_s10, %s21392_s1 }
  0x43   : > { %p17372_p8 = pnand %p17371_p3, %p21463_p5  ;;  %p17376_p0 = scmp.lt.u32.totalorder %s17374_s30, %s17370_s20 }
  0x44   : > { %p17378_p4 = scmp.lt.u32.totalorder %s17370_s20, %s17581_s10 }
  0x45   : > { %p17373_p10 = pneg %p17372_p8  ;;  %p17377_p2 = por %p17376_p0, %p17375_p12 }
  0x47   : > { %p17379_p6 = por %p17378_p4, %p17377_p2 }
  0x49   : > { %p17380_p7 = pnand %p17379_p6, %p17373_p10 }
  0x4b   : > { %17383 = shalt.err (!%p17380_p7)
}
  0x4c   : > { %s17384_s29 = scalar_lea.vmem %s17583_s12, 189440  ;;  %s17455_s28 = smov [#allocation3]  }
  0x4d   : > { %p17385_p9 = scmp.ne.s32.totalorder %s17583_s12, %s17384_s29  ;;  %s17388_s6 = sshll.u32 %s17455_s28, 4  ;;  %s17389_s6 = int_to_ptr.vmem [resolvable:$false] %s17388_s6 }
  0x4e   : > { %s17390_s7 = scalar_lea.vmem %s17389_s6, 378880  ;;  %p17391_p1 = scmp.lt.s32.totalorder %s17583_s12, %s17389_s6 }
  0x4f   : > { %p17386_p11 = pnand %p17385_p9, %p21463_p5  ;;  %p17392_p3 = scmp.lt.s32.totalorder %s17390_s7, %s17384_s29 }
  0x51   : > { %p17387_p13 = pneg %p17386_p11  ;;  %p17393_p8 = por %p17392_p3, %p17391_p1 }
  0x53   : > { %p17394_p12 = pnand %p17393_p8, %p17387_p13 }
  0x55   : > { %17397 = shalt.err (!%p17394_p12)
}
  0x56   : > { %s17456_s8 = smov 2368   ;;  %s17457_s9 = smov 148  }
  0x57   : > { %14885 = dma.hbm_to_vmem [thread:$0]  (%p21463_p5), %s17581_s10, 189440, %s17583_s12, %s17585_s18, %s17456_s8, %s17456_s8, %s17457_s9  }
  0x58 PF: > { %p21464_p10 = scmp.ne.s32.totalorder %s21460_s26, 0 }
  0x59   : > { %s235_s11 = sand.u32 (!%p21464_p10), 1, %s17436_s13   ;;  %p21465_p0 = scmp.ne.s32.totalorder (!%p21464_p10), %s21459_s24, 0 }
  0x5a   : > { %232 = sbr.rel (%p21464_p10) target bundleno = 2357 (0x935), region = 54  ;;  %s242_s30 = scalar_lea.sflag (!%p21464_p10), [#allocation4], %s235_s11 }
  0x5b   : > { %s14881_s20 = smul.u32 (!%p21464_p10), 40, %s235_s11 }
  0x5c   : > { %s14882_s22 = smul.u32 (!%p21464_p10), 11840, %s235_s11 }
  0x5d   : > { %s17612_s27 = scalar_lea.vmem (!%p21464_p10), [#allocation2], %s14881_s20 }
  0x5e   : > { %s17614_s4 = scalar_lea.vmem (!%p21464_p10), [#allocation3], %s14882_s22 }
  0x61   : > { %17423 = dma.done.wait (%p21465_p0), %s242_s30, 189440  }
  0x62   : > { %17425 = vsyncadd (%p21465_p0), %s242_s30, 4294777856  ;;  %p21466_p5 = scmp.ne.s32.totalorder %s21458_s23, 0 }
  0x64   : > { %17427 = dma.done.wait (%p21466_p5), [#allocation6], 592  }
  0x65   : > { %17429 = vsyncadd (%p21466_p5), [#allocation6], 4294966704  ;;  %p13169_p2 = scmp.ne.s32.totalorder %s17444_s15, 0 }
  0x66   : > { %v17458_v6 = vmov (!%p13169_p2), 0.0  }
  0x67   : > { %291 = sbr.rel (%p13169_p2) target bundleno = 140 (0x8c), region = 70  ;;  %292 = vst [vmem:[%s21394_s3] sm:$0xff] (!%p13169_p2), %v17458_v6  ;;  %293 = vst [vmem:[%s21394_s3 + $0x8] sm:$0xff] (!%p13169_p2), %v17458_v6 }
  0x68   : > { %294 = vst [vmem:[%s21394_s3 + $0x10] sm:$0xff] (!%p13169_p2), %v17458_v6  ;;  %295 = vst [vmem:[%s21394_s3 + $0x18] sm:$0xff] (!%p13169_p2), %v17458_v6 }
  0x69   : > { %296 = vst [vmem:[%s21394_s3 + $0x20] sm:$0xff] (!%p13169_p2), %v17458_v6  ;;  %297 = vst [vmem:[%s21394_s3 + $0x28] sm:$0xff] (!%p13169_p2), %v17458_v6 }
  0x6a   : > { %298 = vst [vmem:[%s21394_s3 + $0x30] sm:$0xff] (!%p13169_p2), %v17458_v6  ;;  %299 = vst [vmem:[%s21394_s3 + $0x38] sm:$0xff] (!%p13169_p2), %v17458_v6 }
  0x6b   : > { %300 = vst [vmem:[%s21394_s3 + $0x40] sm:$0xff] (!%p13169_p2), %v17458_v6  ;;  %301 = vst [vmem:[%s21394_s3 + $0x48] sm:$0xff] (!%p13169_p2), %v17458_v6 }
  0x6c   : > { %302 = vst [vmem:[%s21394_s3 + $0x50] sm:$0xff] (!%p13169_p2), %v17458_v6  ;;  %303 = vst [vmem:[%s21394_s3 + $0x58] sm:$0xff] (!%p13169_p2), %v17458_v6 }
  0x6d   : > { %304 = vst [vmem:[%s21394_s3 + $0x60] sm:$0xff] (!%p13169_p2), %v17458_v6  ;;  %305 = vst [vmem:[%s21394_s3 + $0x68] sm:$0xff] (!%p13169_p2), %v17458_v6 }
  0x6e   : > { %306 = vst [vmem:[%s21394_s3 + $0x70] sm:$0xff] %v17458_v6  ;;  %307 = vst [vmem:[%s21394_s3 + $0x78] sm:$0xff] %v17458_v6 }
  0x6f   : > { %308 = vst [vmem:[%s21394_s3 + $0x80] sm:$0xff] %v17458_v6  ;;  %309 = vst [vmem:[%s21394_s3 + $0x88] sm:$0xff] %v17458_v6 }
  0x70   : > { %310 = vst [vmem:[%s21394_s3 + $0x90] sm:$0xff] %v17458_v6  ;;  %311 = vst [vmem:[%s21394_s3 + $0x98] sm:$0xff] %v17458_v6 }
  0x71   : > { %312 = vst [vmem:[%s21394_s3 + $0xa0] sm:$0xff] %v17458_v6  ;;  %313 = vst [vmem:[%s21394_s3 + $0xa8] sm:$0xff] %v17458_v6 }
  0x72   : > { %314 = vst [vmem:[%s21394_s3 + $0xb0] sm:$0xff] %v17458_v6  ;;  %315 = vst [vmem:[%s21394_s3 + $0xb8] sm:$0xff] %v17458_v6 }
  0x73   : > { %316 = vst [vmem:[%s21394_s3 + $0xc0] sm:$0xff] %v17458_v6  ;;  %317 = vst [vmem:[%s21394_s3 + $0xc8] sm:$0xff] %v17458_v6 }
  0x74   : > { %318 = vst [vmem:[%s21394_s3 + $0xd0] sm:$0xff] %v17458_v6  ;;  %319 = vst [vmem:[%s21394_s3 + $0xd8] sm:$0xff] %v17458_v6 }
  0x75   : > { %320 = vst [vmem:[%s21394_s3 + $0xe0] sm:$0xff] %v17458_v6  ;;  %321 = vst [vmem:[%s21394_s3 + $0xe8] sm:$0xff] %v17458_v6 }
  0x76   : > { %322 = vst [vmem:[%s21394_s3 + $0xf0] sm:$0xff] %v17458_v6  ;;  %323 = vst [vmem:[%s21394_s3 + $0xf8] sm:$0xff] %v17458_v6 }
  0x77   : > { %324 = vst [vmem:[%s21394_s3 + $0x100] sm:$0xff] %v17458_v6  ;;  %325 = vst [vmem:[%s21394_s3 + $0x108] sm:$0xff] %v17458_v6 }
  0x78   : > { %326 = vst [vmem:[%s21394_s3 + $0x110] sm:$0xff] %v17458_v6  ;;  %327 = vst [vmem:[%s21394_s3 + $0x118] sm:$0xff] %v17458_v6 }
  0x79   : > { %328 = vst [vmem:[%s21394_s3 + $0x120] sm:$0xff] %v17458_v6  ;;  %329 = vst [vmem:[%s21394_s3 + $0x128] sm:$0xff] %v17458_v6 }
  0x7a   : > { %330 = vst [vmem:[%s21394_s3 + $0x130] sm:$0xff] %v17458_v6  ;;  %331 = vst [vmem:[%s21394_s3 + $0x138] sm:$0xff] %v17458_v6 }
  0x7b   : > { %332 = vst [vmem:[%s21394_s3 + $0x140] sm:$0xff] %v17458_v6  ;;  %333 = vst [vmem:[%s21394_s3 + $0x148] sm:$0xff] %v17458_v6 }
  0x7c   : > { %334 = vst [vmem:[%s21394_s3 + $0x150] sm:$0xff] %v17458_v6  ;;  %335 = vst [vmem:[%s21394_s3 + $0x158] sm:$0xff] %v17458_v6 }
  0x7d   : > { %336 = vst [vmem:[%s21394_s3 + $0x160] sm:$0xff] %v17458_v6  ;;  %337 = vst [vmem:[%s21394_s3 + $0x168] sm:$0xff] %v17458_v6 }
  0x7e   : > { %338 = vst [vmem:[%s21394_s3 + $0x170] sm:$0xff] %v17458_v6  ;;  %339 = vst [vmem:[%s21394_s3 + $0x178] sm:$0xff] %v17458_v6 }
  0x7f   : > { %340 = vst [vmem:[%s21394_s3 + $0x180] sm:$0xff] %v17458_v6  ;;  %341 = vst [vmem:[%s21394_s3 + $0x188] sm:$0xff] %v17458_v6 }
  0x80   : > { %342 = vst [vmem:[%s21394_s3 + $0x190] sm:$0xff] %v17458_v6  ;;  %343 = vst [vmem:[%s21394_s3 + $0x198] sm:$0xff] %v17458_v6 }
  0x81   : > { %344 = vst [vmem:[%s21394_s3 + $0x1a0] sm:$0xff] %v17458_v6  ;;  %345 = vst [vmem:[%s21394_s3 + $0x1a8] sm:$0xff] %v17458_v6 }
  0x82   : > { %346 = vst [vmem:[%s21394_s3 + $0x1b0] sm:$0xff] %v17458_v6  ;;  %347 = vst [vmem:[%s21394_s3 + $0x1b8] sm:$0xff] %v17458_v6 }
  0x83   : > { %348 = vst [vmem:[%s21394_s3 + $0x1c0] sm:$0xff] %v17458_v6  ;;  %349 = vst [vmem:[%s21394_s3 + $0x1c8] sm:$0xff] %v17458_v6 }
  0x84   : > { %350 = vst [vmem:[%s21394_s3 + $0x1d0] sm:$0xff] %v17458_v6  ;;  %351 = vst [vmem:[%s21394_s3 + $0x1d8] sm:$0xff] %v17458_v6 }
  0x85   : > { %352 = vst [vmem:[%s21394_s3 + $0x1e0] sm:$0xff] %v17458_v6  ;;  %353 = vst [vmem:[%s21394_s3 + $0x1e8] sm:$0xff] %v17458_v6 }
  0x86   : > { %354 = vst [vmem:[%s21394_s3 + $0x1f0] sm:$0xff] %v17458_v6  ;;  %355 = vst [vmem:[%s21394_s3 + $0x1f8] sm:$0xff] %v17458_v6 }
  0x87   : > { %356 = vst [vmem:[%s21394_s3 + $0x200] sm:$0xff] %v17458_v6  ;;  %357 = vst [vmem:[%s21394_s3 + $0x208] sm:$0xff] %v17458_v6 }
  0x88   : > { %358 = vst [vmem:[%s21394_s3 + $0x210] sm:$0xff] %v17458_v6  ;;  %359 = vst [vmem:[%s21394_s3 + $0x218] sm:$0xff] %v17458_v6 }
  0x89   : > { %360 = vst [vmem:[%s21394_s3 + $0x220] sm:$0xff] %v17458_v6  ;;  %361 = vst [vmem:[%s21394_s3 + $0x228] sm:$0xff] %v17458_v6 }
  0x8a   : > { %362 = vst [vmem:[%s21394_s3 + $0x230] sm:$0xff] %v17458_v6  ;;  %363 = vst [vmem:[%s21394_s3 + $0x238] sm:$0xff] %v17458_v6 }
  0x8b   : > { %364 = vst [vmem:[%s21394_s3 + $0x240] sm:$0xff] %v17458_v6  ;;  %365 = vst [vmem:[%s21394_s3 + $0x248] sm:$0xff] %v17458_v6 }
  0x8c PF: > { %v14951_v7 = vld [vmem:[%s17614_s4 + $0x4] ss:$148 sps:$4 sm:$0xff]   ;;  %v14953_v8 = vld [vmem:[%s17614_s4 + $0xc] ss:$148 sps:$4 sm:$0xff]   ;;  %v14956_v10 = vld [vmem:[%s17614_s4 + $0x8] ss:$148 sps:$4 sm:$0xff]  }
  0x8d   : > { %9432 = vmatprep.subr.bf16.mxu0 %v14951_v7  ;;  %v14955_v9 = vld [vmem:[%s17614_s4] ss:$148 sps:$4 sm:$0xff]   ;;  %9561 = vmatprep.subr.bf16.mxu1 %v14953_v8  ;;  %v14961_v13 = vld [vmem:[%s17614_s4 + $0x128] ss:$148 sps:$4 sm:$0xff]   ;;  %v14962_v14 = vld [vmem:[%s17614_s4 + $0x130] ss:$148 sps:$4 sm:$0xff]  }
  0x8e   : > { %v14957_v11 = vld [vmem:[%s17614_s4 + $0x12c] ss:$148 sps:$4 sm:$0xff]   ;;  %9433 = vmatpush1.bf16.msra.mxu0 %v14955_v9  ;;  %9562 = vmatpush1.bf16.msra.mxu1 %v14956_v10  ;;  %v14959_v12 = vld [vmem:[%s17614_s4 + $0x134] ss:$148 sps:$4 sm:$0xff]   ;;  %v14965_v16 = vld [vmem:[%s17614_s4 + $0x25c] ss:$148 sps:$4 sm:$0xff]  }
  0x8f   : > { %9434 = vmatprep.subr.bf16.mxu0 %v14957_v11  ;;  %9563 = vmatprep.subr.bf16.mxu1 %v14959_v12  ;;  %v14963_v15 = vld [vmem:[%s17614_s4 + $0x254] ss:$148 sps:$4 sm:$0xff]   ;;  %v14967_v17 = vld [vmem:[%s17614_s4 + $0x250] ss:$148 sps:$4 sm:$0xff]   ;;  %v14968_v18 = vld [vmem:[%s17614_s4 + $0x258] ss:$148 sps:$4 sm:$0xff]  }
  0x90   : > { %v14969_v19 = vld [vmem:[%s17614_s4 + $0x37c] ss:$148 sps:$4 sm:$0xff]   ;;  %v14971_v20 = vld [vmem:[%s17614_s4 + $0x384] ss:$148 sps:$4 sm:$0xff]   ;;  %v14974_v22 = vld [vmem:[%s17614_s4 + $0x380] ss:$148 sps:$4 sm:$0xff]  }
  0x91   : > { %v14973_v21 = vld [vmem:[%s17614_s4 + $0x378] ss:$148 sps:$4 sm:$0xff]   ;;  %v14979_v25 = vld [vmem:[%s17614_s4 + $0x4a0] ss:$148 sps:$4 sm:$0xff]   ;;  %v14980_v26 = vld [vmem:[%s17614_s4 + $0x4a8] ss:$148 sps:$4 sm:$0xff]  }
  0x92   : > { %9435 = vmatpush1.bf16.msra.mxu0 %v14961_v13  ;;  %9564 = vmatpush1.bf16.msra.mxu1 %v14962_v14  ;;  %v14975_v23 = vld [vmem:[%s17614_s4 + $0x4a4] ss:$148 sps:$4 sm:$0xff]   ;;  %v14977_v24 = vld [vmem:[%s17614_s4 + $0x4ac] ss:$148 sps:$4 sm:$0xff]   ;;  %v14983_v28 = vld [vmem:[%s17614_s4 + $0x5d4] ss:$148 sps:$4 sm:$0xff]  }
  0x93   : > { %9436 = vmatprep.subr.bf16.mxu0 %v14963_v15  ;;  %9565 = vmatprep.subr.bf16.mxu1 %v14965_v16  ;;  %v14981_v27 = vld [vmem:[%s17614_s4 + $0x5cc] ss:$148 sps:$4 sm:$0xff]   ;;  %v14985_v29 = vld [vmem:[%s17614_s4 + $0x5c8] ss:$148 sps:$4 sm:$0xff]   ;;  %v14986_v30 = vld [vmem:[%s17614_s4 + $0x5d0] ss:$148 sps:$4 sm:$0xff]  }
  0x94   : > { %v14987_v31 = vld [vmem:[%s17614_s4 + $0x6f4] ss:$148 sps:$4 sm:$0xff]   ;;  %v14989_v32 = vld [vmem:[%s17614_s4 + $0x6fc] ss:$148 sps:$4 sm:$0xff]   ;;  %v14992_v34 = vld [vmem:[%s17614_s4 + $0x6f8] ss:$148 sps:$4 sm:$0xff]  }
  0x95   : > { %v14991_v33 = vld [vmem:[%s17614_s4 + $0x6f0] ss:$148 sps:$4 sm:$0xff]   ;;  %v14997_v37 = vld [vmem:[%s17614_s4 + $0x818] ss:$148 sps:$4 sm:$0xff]   ;;  %v14998_v38 = vld [vmem:[%s17614_s4 + $0x820] ss:$148 sps:$4 sm:$0xff]  }
  0x96   : > { %9437 = vmatpush1.bf16.msra.mxu0 %v14967_v17  ;;  %9566 = vmatpush1.bf16.msra.mxu1 %v14968_v18  ;;  %v14993_v35 = vld [vmem:[%s17614_s4 + $0x81c] ss:$148 sps:$4 sm:$0xff]   ;;  %v14995_v36 = vld [vmem:[%s17614_s4 + $0x824] ss:$148 sps:$4 sm:$0xff]   ;;  %v15001_v40 = vld [vmem:[%s17614_s4 + $0x94c] ss:$148 sps:$4 sm:$0xff]  }
  0x97   : > { %9438 = vmatprep.subr.bf16.mxu0 %v14969_v19  ;;  %9567 = vmatprep.subr.bf16.mxu1 %v14971_v20  ;;  %v14999_v39 = vld [vmem:[%s17614_s4 + $0x944] ss:$148 sps:$4 sm:$0xff]   ;;  %v15003_v41 = vld [vmem:[%s17614_s4 + $0x940] ss:$148 sps:$4 sm:$0xff]   ;;  %v15004_v42 = vld [vmem:[%s17614_s4 + $0x948] ss:$148 sps:$4 sm:$0xff]  }
  0x98   : > { %v15005_v43 = vld [vmem:[%s17614_s4 + $0xa6c] ss:$148 sps:$4 sm:$0xff]   ;;  %v15007_v44 = vld [vmem:[%s17614_s4 + $0xa74] ss:$148 sps:$4 sm:$0xff]   ;;  %v15010_v46 = vld [vmem:[%s17614_s4 + $0xa70] ss:$148 sps:$4 sm:$0xff]  }
  0x99   : > { %v15009_v45 = vld [vmem:[%s17614_s4 + $0xa68] ss:$148 sps:$4 sm:$0xff]   ;;  %v15015_v49 = vld [vmem:[%s17614_s4 + $0xb90] ss:$148 sps:$4 sm:$0xff]   ;;  %v15016_v50 = vld [vmem:[%s17614_s4 + $0xb98] ss:$148 sps:$4 sm:$0xff]  }
  0x9a   : > { %9439 = vmatpush1.bf16.msra.mxu0 %v14973_v21  ;;  %9568 = vmatpush1.bf16.msra.mxu1 %v14974_v22  ;;  %v15011_v47 = vld [vmem:[%s17614_s4 + $0xb94] ss:$148 sps:$4 sm:$0xff]   ;;  %v15013_v48 = vld [vmem:[%s17614_s4 + $0xb9c] ss:$148 sps:$4 sm:$0xff]   ;;  %v15019_v52 = vld [vmem:[%s17614_s4 + $0xcc4] ss:$148 sps:$4 sm:$0xff]  }
  0x9b   : > { %9440 = vmatprep.subr.bf16.mxu0 %v14975_v23  ;;  %9569 = vmatprep.subr.bf16.mxu1 %v14977_v24  ;;  %v15017_v51 = vld [vmem:[%s17614_s4 + $0xcbc] ss:$148 sps:$4 sm:$0xff]   ;;  %v15021_v53 = vld [vmem:[%s17614_s4 + $0xcb8] ss:$148 sps:$4 sm:$0xff]   ;;  %v15022_v55 = vld [vmem:[%s17614_s4 + $0xcc0] ss:$148 sps:$4 sm:$0xff]  }
  0x9c   : > { %v17969_v54 = vld [vmem:[%s17612_s27 + $0x4] ss:$20 sps:$4 sm:$0xff]   ;;  %v15023_v56 = vld [vmem:[%s17614_s4 + $0xde4] ss:$148 sps:$4 sm:$0xff]   ;;  %v15025_v57 = vld [vmem:[%s17614_s4 + $0xdec] ss:$148 sps:$4 sm:$0xff]  }
  0x9d   : > { %9464 = vmatprep.mubr.bf16.mxu0 %v17969_v54  ;;  %9593 = vmatprep.mubr.bf16.mxu1 %v17969_v54  ;;  %v15027_v58 = vld [vmem:[%s17614_s4 + $0xde0] ss:$148 sps:$4 sm:$0xff]   ;;  %v15028_v59 = vld [vmem:[%s17614_s4 + $0xde8] ss:$148 sps:$4 sm:$0xff]   ;;  %v15034_v63 = vld [vmem:[%s17614_s4 + $0xf10] ss:$148 sps:$4 sm:$0xff]  }
  0x9e   : > { %9441 = vmatpush1.bf16.msra.mxu0 %v14979_v25  ;;  %9570 = vmatpush1.bf16.msra.mxu1 %v14980_v26  ;;  %v15029_v60 = vld [vmem:[%s17614_s4 + $0xf0c] ss:$148 sps:$4 sm:$0xff]   ;;  %v15031_v61 = vld [vmem:[%s17614_s4 + $0xf14] ss:$148 sps:$4 sm:$0xff]   ;;  %v15037_v1 = vld [vmem:[%s17614_s4 + $0x103c] ss:$148 sps:$4 sm:$0xff]  }
  0x9f   : > { %9442 = vmatprep.subr.bf16.mxu0 %v14981_v27  ;;  %9571 = vmatprep.subr.bf16.mxu1 %v14983_v28  ;;  %v15033_v62 = vld [vmem:[%s17614_s4 + $0xf08] ss:$148 sps:$4 sm:$0xff]   ;;  %v15039_v2 = vld [vmem:[%s17614_s4 + $0x1030] ss:$148 sps:$4 sm:$0xff]   ;;  %v15040_v3 = vld [vmem:[%s17614_s4 + $0x1038] ss:$148 sps:$4 sm:$0xff]  }
  0xa0   : > { %v15035_v0 = vld [vmem:[%s17614_s4 + $0x1034] ss:$148 sps:$4 sm:$0xff]   ;;  %v15041_v4 = vld [vmem:[%s17614_s4 + $0x115c] ss:$148 sps:$4 sm:$0xff]   ;;  %v15043_v5 = vld [vmem:[%s17614_s4 + $0x1164] ss:$148 sps:$4 sm:$0xff]  }
  0xa1   : > { %v15045_v6 = vld [vmem:[%s17614_s4 + $0x1158] ss:$148 sps:$4 sm:$0xff]   ;;  %v15046_v7 = vld [vmem:[%s17614_s4 + $0x1160] ss:$148 sps:$4 sm:$0xff]   ;;  %v15052_v11 = vld [vmem:[%s17614_s4 + $0x1288] ss:$148 sps:$4 sm:$0xff]  }
  0xa2   : > { %9443 = vmatpush1.bf16.msra.mxu0 %v14985_v29  ;;  %9572 = vmatpush1.bf16.msra.mxu1 %v14986_v30  ;;  %v15051_v8 = vld [vmem:[%s17614_s4 + $0x1284] ss:$148 sps:$4 sm:$0xff]   ;;  %v15054_v9 = vld [vmem:[%s17614_s4 + $0x128c] ss:$148 sps:$4 sm:$0xff]   ;;  %v15061_v14 = vld [vmem:[%s17614_s4 + $0x13b4] ss:$148 sps:$4 sm:$0xff]  }
  0xa3   : > { %9444 = vmatprep.subr.bf16.mxu0 %v14987_v31  ;;  %9573 = vmatprep.subr.bf16.mxu1 %v14989_v32  ;;  %v15049_v10 = vld [vmem:[%s17614_s4 + $0x1280] ss:$148 sps:$4 sm:$0xff]   ;;  %v15055_v12 = vld [vmem:[%s17612_s27] ss:$20 sps:$4 sm:$0xff]   ;;  %v15056_v15 = vld [vmem:[%s17614_s4 + $0x13a8] ss:$148 sps:$4 sm:$0xff]  }
  0xa4   : > { %v15058_v13 = vld [vmem:[%s17614_s4 + $0x13ac] ss:$148 sps:$4 sm:$0xff]   ;;  %v15059_v16 = vld [vmem:[%s17614_s4 + $0x13b0] ss:$148 sps:$4 sm:$0xff]   ;;  %v15064_v17 = vld [vmem:[%s17614_s4 + $0x14d4] ss:$148 sps:$4 sm:$0xff]  }
  0xa5   : > { %v15067_v18 = vld [vmem:[%s17614_s4 + $0x14dc] ss:$148 sps:$4 sm:$0xff]   ;;  %v15065_v20 = vld [vmem:[%s17614_s4 + $0x14d8] ss:$148 sps:$4 sm:$0xff]   ;;  %v15071_v24 = vld [vmem:[%s17614_s4 + $0x1600] ss:$148 sps:$4 sm:$0xff]  }
  0xa6   : > { %9445 = vmatpush1.bf16.msra.mxu0 %v14991_v33  ;;  %9574 = vmatpush1.bf16.msra.mxu1 %v14992_v34  ;;  %v15062_v19 = vld [vmem:[%s17614_s4 + $0x14d0] ss:$148 sps:$4 sm:$0xff]   ;;  %v15068_v23 = vld [vmem:[%s17614_s4 + $0x15f8] ss:$148 sps:$4 sm:$0xff]   ;;  %v15074_v27 = vld [vmem:[%s17614_s4 + $0x1720] ss:$148 sps:$4 sm:$0xff]  }
  0xa7   : > { %9446 = vmatprep.subr.bf16.mxu0 %v14993_v35  ;;  %9575 = vmatprep.subr.bf16.mxu1 %v14995_v36  ;;  %v15070_v21 = vld [vmem:[%s17614_s4 + $0x15fc] ss:$148 sps:$4 sm:$0xff]   ;;  %v15073_v22 = vld [vmem:[%s17614_s4 + $0x1604] ss:$148 sps:$4 sm:$0xff]   ;;  %v15079_v26 = vld [vmem:[%s17614_s4 + $0x172c] ss:$148 sps:$4 sm:$0xff]  }
  0xa8   : > { %v15076_v25 = vld [vmem:[%s17614_s4 + $0x1724] ss:$148 sps:$4 sm:$0xff]   ;;  %v15077_v28 = vld [vmem:[%s17614_s4 + $0x1728] ss:$148 sps:$4 sm:$0xff]   ;;  %v15082_v29 = vld [vmem:[%s17614_s4 + $0x184c] ss:$148 sps:$4 sm:$0xff]  }
  0xa9   : > { %v15085_v30 = vld [vmem:[%s17614_s4 + $0x1854] ss:$148 sps:$4 sm:$0xff]   ;;  %v15083_v32 = vld [vmem:[%s17614_s4 + $0x1850] ss:$148 sps:$4 sm:$0xff]   ;;  %vm17461_vm0 = vmmov 0   ;;  %p14655_p4 = scmp.ne.s32.totalorder %s17444_s15, 7 }
  0xaa   : > { %9447 = vmatpush1.bf16.msra.mxu0 %v14997_v37  ;;  %9576 = vmatpush1.bf16.msra.mxu1 %v14998_v38  ;;  %v15080_v31 = vld [vmem:[%s17614_s4 + $0x1848] ss:$148 sps:$4 sm:$0xff]   ;;  %v15086_v35 = vld [vmem:[%s17614_s4 + $0x1970] ss:$148 sps:$4 sm:$0xff]   ;;  %v15089_v37 = vld [vmem:[%s17614_s4 + $0x1978] ss:$148 sps:$4 sm:$0xff]  }
  0xab   : > { %9448 = vmatprep.subr.bf16.mxu0 %v14999_v39  ;;  %9577 = vmatprep.subr.bf16.mxu1 %v15001_v40  ;;  %v15088_v33 = vld [vmem:[%s17614_s4 + $0x1974] ss:$148 sps:$4 sm:$0xff]   ;;  %v15091_v34 = vld [vmem:[%s17614_s4 + $0x197c] ss:$148 sps:$4 sm:$0xff]   ;;  %v15097_v39 = vld [vmem:[%s17614_s4 + $0x1aa4] ss:$148 sps:$4 sm:$0xff]  }
  0xac   : > { %v15146_v36 = vld [vmem:[%s17612_s27 + $0xc] ss:$20 sps:$4 sm:$0xff]  }
  0xad   : > { %v15094_v38 = vld [vmem:[%s17614_s4 + $0x1a9c] ss:$148 sps:$4 sm:$0xff]   ;;  %v15092_v40 = vld [vmem:[%s17614_s4 + $0x1a98] ss:$148 sps:$4 sm:$0xff]  }
  0xae   : > { %9449 = vmatpush1.bf16.msra.mxu0 %v15003_v41  ;;  %9578 = vmatpush1.bf16.msra.mxu1 %v15004_v42  ;;  %v15095_v41 = vld [vmem:[%s17614_s4 + $0x1aa0] ss:$148 sps:$4 sm:$0xff]   ;;  %v15100_v42 = vld [vmem:[%s17614_s4 + $0x1bc4] ss:$148 sps:$4 sm:$0xff]  }
  0xaf   : > { %9450 = vmatprep.subr.bf16.mxu0 %v15005_v43  ;;  %9579 = vmatprep.subr.bf16.mxu1 %v15007_v44  ;;  %v15103_v43 = vld [vmem:[%s17614_s4 + $0x1bcc] ss:$148 sps:$4 sm:$0xff]  }
  0xb0   : > { %v15098_v44 = vld [vmem:[%s17614_s4 + $0x1bc0] ss:$148 sps:$4 sm:$0xff]  }
  0xb2   : > { %9451 = vmatpush1.bf16.msra.mxu0 %v15009_v45  ;;  %9580 = vmatpush1.bf16.msra.mxu1 %v15010_v46  ;;  %v15101_v45 = vld [vmem:[%s17614_s4 + $0x1bc8] ss:$148 sps:$4 sm:$0xff]   ;;  %v15106_v46 = vld [vmem:[%s17614_s4 + $0x1cec] ss:$148 sps:$4 sm:$0xff]  }
  0xb3   : > { %9452 = vmatprep.subr.bf16.mxu0 %v15011_v47  ;;  %9581 = vmatprep.subr.bf16.mxu1 %v15013_v48  ;;  %v15109_v47 = vld [vmem:[%s17614_s4 + $0x1cf4] ss:$148 sps:$4 sm:$0xff]  }
  0xb4   : > { %v15104_v48 = vld [vmem:[%s17614_s4 + $0x1ce8] ss:$148 sps:$4 sm:$0xff]  }
  0xb6   : > { %9453 = vmatpush1.bf16.msra.mxu0 %v15015_v49  ;;  %9582 = vmatpush1.bf16.msra.mxu1 %v15016_v50  ;;  %v15107_v49 = vld [vmem:[%s17614_s4 + $0x1cf0] ss:$148 sps:$4 sm:$0xff]   ;;  %v15112_v50 = vld [vmem:[%s17614_s4 + $0x1e14] ss:$148 sps:$4 sm:$0xff]  }
  0xb7   : > { %9454 = vmatprep.subr.bf16.mxu0 %v15017_v51  ;;  %9583 = vmatprep.subr.bf16.mxu1 %v15019_v52  ;;  %v15115_v51 = vld [vmem:[%s17614_s4 + $0x1e1c] ss:$148 sps:$4 sm:$0xff]  }
  0xb8   : > { %v15110_v52 = vld [vmem:[%s17614_s4 + $0x1e10] ss:$148 sps:$4 sm:$0xff]  }
  0xba   : > { %9455 = vmatpush1.bf16.msra.mxu0 %v15021_v53  ;;  %9584 = vmatpush1.bf16.msra.mxu1 %v15022_v55  ;;  %v15113_v53 = vld [vmem:[%s17614_s4 + $0x1e18] ss:$148 sps:$4 sm:$0xff]   ;;  %v15118_v55 = vld [vmem:[%s17614_s4 + $0x1f3c] ss:$148 sps:$4 sm:$0xff]  }
  0xbb   : > { %9456 = vmatprep.subr.bf16.mxu0 %v15023_v56  ;;  %9585 = vmatprep.subr.bf16.mxu1 %v15025_v57  ;;  %v15121_v56 = vld [vmem:[%s17614_s4 + $0x1f44] ss:$148 sps:$4 sm:$0xff]  }
  0xbc   : > { %v15116_v57 = vld [vmem:[%s17614_s4 + $0x1f38] ss:$148 sps:$4 sm:$0xff]  }
  0xbe   : > { %9457 = vmatpush1.bf16.msra.mxu0 %v15027_v58  ;;  %9586 = vmatpush1.bf16.msra.mxu1 %v15028_v59  ;;  %v15119_v58 = vld [vmem:[%s17614_s4 + $0x1f40] ss:$148 sps:$4 sm:$0xff]   ;;  %v15124_v59 = vld [vmem:[%s17614_s4 + $0x2064] ss:$148 sps:$4 sm:$0xff]  }
  0xbf   : > { %9458 = vmatprep.subr.bf16.mxu0 %v15029_v60  ;;  %9587 = vmatprep.subr.bf16.mxu1 %v15031_v61  ;;  %v15127_v60 = vld [vmem:[%s17614_s4 + $0x206c] ss:$148 sps:$4 sm:$0xff]  }
  0xc0   : > { %v15122_v61 = vld [vmem:[%s17614_s4 + $0x2060] ss:$148 sps:$4 sm:$0xff]  }
  0xc2   : > { %9459 = vmatpush1.bf16.msra.mxu0 %v15033_v62  ;;  %9588 = vmatpush1.bf16.msra.mxu1 %v15034_v63  ;;  %v15125_v62 = vld [vmem:[%s17614_s4 + $0x2068] ss:$148 sps:$4 sm:$0xff]   ;;  %v15130_v63 = vld [vmem:[%s17614_s4 + $0x218c] ss:$148 sps:$4 sm:$0xff]  }
  0xc3   : > { %9460 = vmatprep.subr.bf16.mxu0 %v15035_v0  ;;  %9589 = vmatprep.subr.bf16.mxu1 %v15037_v1  ;;  %v15133_v0 = vld [vmem:[%s17614_s4 + $0x2194] ss:$148 sps:$4 sm:$0xff]  }
  0xc4   : > { %v15128_v1 = vld [vmem:[%s17614_s4 + $0x2188] ss:$148 sps:$4 sm:$0xff]  }
  0xc6   : > { %9461 = vmatpush1.bf16.msra.mxu0 %v15039_v2  ;;  %9590 = vmatpush1.bf16.msra.mxu1 %v15040_v3  ;;  %v15131_v2 = vld [vmem:[%s17614_s4 + $0x2190] ss:$148 sps:$4 sm:$0xff]   ;;  %v15136_v3 = vld [vmem:[%s17614_s4 + $0x22b4] ss:$148 sps:$4 sm:$0xff]  }
  0xc7   : > { %9462 = vmatprep.subr.bf16.mxu0 %v15041_v4  ;;  %9591 = vmatprep.subr.bf16.mxu1 %v15043_v5  ;;  %v15139_v4 = vld [vmem:[%s17614_s4 + $0x22bc] ss:$148 sps:$4 sm:$0xff]  }
  0xc8   : > { %v15134_v5 = vld [vmem:[%s17614_s4 + $0x22b0] ss:$148 sps:$4 sm:$0xff]  }
  0xca   : > { %9463 = vmatpush1.bf16.msra.mxu0 %v15045_v6  ;;  %9592 = vmatpush1.bf16.msra.mxu1 %v15046_v7  ;;  %v15137_v6 = vld [vmem:[%s17614_s4 + $0x22b8] ss:$148 sps:$4 sm:$0xff]   ;;  %v15142_v7 = vld [vmem:[%s17614_s4 + $0x23dc] ss:$148 sps:$4 sm:$0xff]  }
  0xcb   : > { %9475 = vmatprep.subr.bf16.mxu0 %v15051_v8  ;;  %9604 = vmatprep.subr.bf16.mxu1 %v15054_v9  ;;  %v15145_v8 = vld [vmem:[%s17614_s4 + $0x23e4] ss:$148 sps:$4 sm:$0xff]  }
  0xcc   : > { %v15140_v9 = vld [vmem:[%s17614_s4 + $0x23d8] ss:$148 sps:$4 sm:$0xff]  }
  0xcd   : > { %9465 = vmatmul.mubr.bf16.vlgmr.msra.gmra.mrb[0].mxu0 %v15055_v12  ;;  %9594 = vmatmul.mubr.bf16.vlgmr.msra.gmra.mrb[0].mxu1 %v15055_v12  ;;  %v15153_v12 = vld [vmem:[%s17614_s4 + $0x250c] ss:$148 sps:$4 sm:$0xff]  }
  0xce   : > { %9476 = vmatpush1.bf16.msra.mxu0 %v15049_v10  ;;  %9605 = vmatpush1.bf16.msra.mxu1 %v15052_v11  ;;  %v15143_v10 = vld [vmem:[%s17614_s4 + $0x23e0] ss:$148 sps:$4 sm:$0xff]   ;;  %v15150_v11 = vld [vmem:[%s17614_s4 + $0x2504] ss:$148 sps:$4 sm:$0xff]  }
  0xcf   : > { %9477 = vmatprep.subr.bf16.mxu0 %v15058_v13  ;;  %9606 = vmatprep.subr.bf16.mxu1 %v15061_v14  ;;  %v15148_v13 = vld [vmem:[%s17614_s4 + $0x2500] ss:$148 sps:$4 sm:$0xff]  }
  0xd0   : > { %9507 = vmatprep.mubr.bf16.mxu0 %v15146_v36  ;;  %9636 = vmatprep.mubr.bf16.mxu1 %v15146_v36  ;;  %v15154_v14 = vld [vmem:[%s17612_s27 + $0x8] ss:$20 sps:$4 sm:$0xff]   ;;  %v15182_v36 = vld [vmem:[%s17614_s4 + $0x2ad0] ss:$148 sps:$4 sm:$0xff]  }
  0xd2   : > { %9478 = vmatpush1.bf16.msra.mxu0 %v15056_v15  ;;  %9607 = vmatpush1.bf16.msra.mxu1 %v15059_v16  ;;  %v15151_v15 = vld [vmem:[%s17614_s4 + $0x2508] ss:$148 sps:$4 sm:$0xff]   ;;  %v15157_v16 = vld [vmem:[%s17614_s4 + $0x262c] ss:$148 sps:$4 sm:$0xff]  }
  0xd3   : > { %9479 = vmatprep.subr.bf16.mxu0 %v15064_v17  ;;  %9608 = vmatprep.subr.bf16.mxu1 %v15067_v18  ;;  %v15160_v17 = vld [vmem:[%s17614_s4 + $0x2634] ss:$148 sps:$4 sm:$0xff]  }
  0xd4   : > { %v15155_v18 = vld [vmem:[%s17614_s4 + $0x2628] ss:$148 sps:$4 sm:$0xff]  }
  0xd6   : > { %9480 = vmatpush1.bf16.msra.mxu0 %v15062_v19  ;;  %9609 = vmatpush1.bf16.msra.mxu1 %v15065_v20  ;;  %v15158_v19 = vld [vmem:[%s17614_s4 + $0x2630] ss:$148 sps:$4 sm:$0xff]   ;;  %v15163_v20 = vld [vmem:[%s17614_s4 + $0x2754] ss:$148 sps:$4 sm:$0xff]  }
  0xd7   : > { %9481 = vmatprep.subr.bf16.mxu0 %v15070_v21  ;;  %9610 = vmatprep.subr.bf16.mxu1 %v15073_v22  ;;  %v15166_v21 = vld [vmem:[%s17614_s4 + $0x275c] ss:$148 sps:$4 sm:$0xff]   ;;  %v17459_v22 = vmov 0  }
  0xda   : > { %9482 = vmatpush1.bf16.msra.mxu0 %v15068_v23  ;;  %9611 = vmatpush1.bf16.msra.mxu1 %v15071_v24  ;;  %v15161_v23 = vld [vmem:[%s17614_s4 + $0x2750] ss:$148 sps:$4 sm:$0xff]   ;;  %v15164_v24 = vld [vmem:[%s17614_s4 + $0x2758] ss:$148 sps:$4 sm:$0xff]  }
  0xdb   : > { %9483 = vmatprep.subr.bf16.mxu0 %v15076_v25  ;;  %9612 = vmatprep.subr.bf16.mxu1 %v15079_v26  ;;  %v15169_v25 = vld [vmem:[%s17614_s4 + $0x287c] ss:$148 sps:$4 sm:$0xff]   ;;  %v15172_v26 = vld [vmem:[%s17614_s4 + $0x2884] ss:$148 sps:$4 sm:$0xff]  }
  0xde   : > { %9484 = vmatpush1.bf16.msra.mxu0 %v15074_v27  ;;  %9613 = vmatpush1.bf16.msra.mxu1 %v15077_v28  ;;  %v15167_v27 = vld [vmem:[%s17614_s4 + $0x2878] ss:$148 sps:$4 sm:$0xff]   ;;  %v15170_v28 = vld [vmem:[%s17614_s4 + $0x2880] ss:$148 sps:$4 sm:$0xff]  }
  0xdf   : > { %9485 = vmatprep.subr.bf16.mxu0 %v15082_v29  ;;  %9614 = vmatprep.subr.bf16.mxu1 %v15085_v30  ;;  %v15175_v29 = vld [vmem:[%s17614_s4 + $0x29a4] ss:$148 sps:$4 sm:$0xff]   ;;  %v15178_v30 = vld [vmem:[%s17614_s4 + $0x29ac] ss:$148 sps:$4 sm:$0xff]  }
  0xe2   : > { %9486 = vmatpush1.bf16.msra.mxu0 %v15080_v31  ;;  %9615 = vmatpush1.bf16.msra.mxu1 %v15083_v32  ;;  %v15173_v31 = vld [vmem:[%s17614_s4 + $0x29a0] ss:$148 sps:$4 sm:$0xff]   ;;  %v15176_v32 = vld [vmem:[%s17614_s4 + $0x29a8] ss:$148 sps:$4 sm:$0xff]  }
  0xe3   : > { %9487 = vmatprep.subr.bf16.mxu0 %v15088_v33  ;;  %9616 = vmatprep.subr.bf16.mxu1 %v15091_v34  ;;  %v15181_v33 = vld [vmem:[%s17614_s4 + $0x2acc] ss:$148 sps:$4 sm:$0xff]   ;;  %v15184_v34 = vld [vmem:[%s17614_s4 + $0x2ad4] ss:$148 sps:$4 sm:$0xff]  }
  0xe6   : > { %9488 = vmatpush1.bf16.msra.mxu0 %v15086_v35  ;;  %9617 = vmatpush1.bf16.msra.mxu1 %v15089_v37  ;;  %v15179_v35 = vld [vmem:[%s17614_s4 + $0x2ac8] ss:$148 sps:$4 sm:$0xff]  }
  0xe7   : > { %9489 = vmatprep.subr.bf16.mxu0 %v15094_v38  ;;  %9618 = vmatprep.subr.bf16.mxu1 %v15097_v39  ;;  %v15187_v37 = vld [vmem:[%s17614_s4 + $0x2bf4] ss:$148 sps:$4 sm:$0xff]   ;;  %v15190_v38 = vld [vmem:[%s17614_s4 + $0x2bfc] ss:$148 sps:$4 sm:$0xff]  }
  0xe8   : > { %v15185_v39 = vld [vmem:[%s17614_s4 + $0x2bf0] ss:$148 sps:$4 sm:$0xff]  }
  0xea   : > { %9490 = vmatpush1.bf16.msra.mxu0 %v15092_v40  ;;  %9619 = vmatpush1.bf16.msra.mxu1 %v15095_v41  ;;  %v15188_v40 = vld [vmem:[%s17614_s4 + $0x2bf8] ss:$148 sps:$4 sm:$0xff]   ;;  %v15193_v41 = vld [vmem:[%s17614_s4 + $0x2d1c] ss:$148 sps:$4 sm:$0xff]  }
  0xeb   : > { %9491 = vmatprep.subr.bf16.mxu0 %v15100_v42  ;;  %9620 = vmatprep.subr.bf16.mxu1 %v15103_v43  ;;  %v15196_v42 = vld [vmem:[%s17614_s4 + $0x2d24] ss:$148 sps:$4 sm:$0xff]  }
  0xec   : > { %v15191_v43 = vld [vmem:[%s17614_s4 + $0x2d18] ss:$148 sps:$4 sm:$0xff]  }
  0xee   : > { %9492 = vmatpush1.bf16.msra.mxu0 %v15098_v44  ;;  %9621 = vmatpush1.bf16.msra.mxu1 %v15101_v45  ;;  %v15194_v44 = vld [vmem:[%s17614_s4 + $0x2d20] ss:$148 sps:$4 sm:$0xff]  }
  0xef   : > { %9493 = vmatprep.subr.bf16.mxu0 %v15106_v46  ;;  %9622 = vmatprep.subr.bf16.mxu1 %v15109_v47  ;;  %v15200_v45 = vld [vmem:[%s17614_s4 + $0x14] ss:$148 sps:$4 sm:$0xff]   ;;  %v15203_v46 = vld [vmem:[%s17614_s4 + $0x1c] ss:$148 sps:$4 sm:$0xff]  }
  0xf0   : > { %v15197_v47 = vld [vmem:[%s17612_s27 + $0x10] ss:$20 sps:$4 sm:$0xff]  }
  0xf2   : > { %9494 = vmatpush1.bf16.msra.mxu0 %v15104_v48  ;;  %9623 = vmatpush1.bf16.msra.mxu1 %v15107_v49  ;;  %v15198_v48 = vld [vmem:[%s17614_s4 + $0x10] ss:$148 sps:$4 sm:$0xff]   ;;  %v15201_v49 = vld [vmem:[%s17614_s4 + $0x18] ss:$148 sps:$4 sm:$0xff]  }
  0xf3   : > { %9495 = vmatprep.subr.bf16.mxu0 %v15112_v50  ;;  %9624 = vmatprep.subr.bf16.mxu1 %v15115_v51  ;;  %v15206_v50 = vld [vmem:[%s17614_s4 + $0x13c] ss:$148 sps:$4 sm:$0xff]   ;;  %v15209_v51 = vld [vmem:[%s17614_s4 + $0x144] ss:$148 sps:$4 sm:$0xff]  }
  0xf6   : > { %9496 = vmatpush1.bf16.msra.mxu0 %v15110_v52  ;;  %9625 = vmatpush1.bf16.msra.mxu1 %v15113_v53  ;;  %v15204_v52 = vld [vmem:[%s17614_s4 + $0x138] ss:$148 sps:$4 sm:$0xff]   ;;  %v15207_v53 = vld [vmem:[%s17614_s4 + $0x140] ss:$148 sps:$4 sm:$0xff]  }
  0xf7   : > { %9497 = vmatprep.subr.bf16.mxu0 %v15118_v55  ;;  %9626 = vmatprep.subr.bf16.mxu1 %v15121_v56  ;;  %v15212_v55 = vld [vmem:[%s17614_s4 + $0x264] ss:$148 sps:$4 sm:$0xff]   ;;  %v15215_v56 = vld [vmem:[%s17614_s4 + $0x26c] ss:$148 sps:$4 sm:$0xff]  }
  0xfa   : > { %9498 = vmatpush1.bf16.msra.mxu0 %v15116_v57  ;;  %9627 = vmatpush1.bf16.msra.mxu1 %v15119_v58  ;;  %v15210_v57 = vld [vmem:[%s17614_s4 + $0x260] ss:$148 sps:$4 sm:$0xff]   ;;  %v15213_v58 = vld [vmem:[%s17614_s4 + $0x268] ss:$148 sps:$4 sm:$0xff]  }
  0xfb   : > { %9499 = vmatprep.subr.bf16.mxu0 %v15124_v59  ;;  %9628 = vmatprep.subr.bf16.mxu1 %v15127_v60  ;;  %v15218_v59 = vld [vmem:[%s17614_s4 + $0x38c] ss:$148 sps:$4 sm:$0xff]   ;;  %v15221_v60 = vld [vmem:[%s17614_s4 + $0x394] ss:$148 sps:$4 sm:$0xff]  }
  0xfe   : > { %9500 = vmatpush1.bf16.msra.mxu0 %v15122_v61  ;;  %9629 = vmatpush1.bf16.msra.mxu1 %v15125_v62  ;;  %v15216_v61 = vld [vmem:[%s17614_s4 + $0x388] ss:$148 sps:$4 sm:$0xff]   ;;  %v15219_v62 = vld [vmem:[%s17614_s4 + $0x390] ss:$148 sps:$4 sm:$0xff]  }
  0xff   : > { %9501 = vmatprep.subr.bf16.mxu0 %v15130_v63  ;;  %9630 = vmatprep.subr.bf16.mxu1 %v15133_v0  ;;  %v15227_v63 = vld [vmem:[%s17614_s4 + $0x4bc] ss:$148 sps:$4 sm:$0xff]  }
 0x100   : > { %v15222_v0 = vld [vmem:[%s17614_s4 + $0x4b0] ss:$148 sps:$4 sm:$0xff]  }
 0x102   : > { %9502 = vmatpush1.bf16.msra.mxu0 %v15128_v1  ;;  %9631 = vmatpush1.bf16.msra.mxu1 %v15131_v2  ;;  %v15225_v1 = vld [vmem:[%s17614_s4 + $0x4b8] ss:$148 sps:$4 sm:$0xff]   ;;  %v15230_v2 = vld [vmem:[%s17614_s4 + $0x5dc] ss:$148 sps:$4 sm:$0xff]  }
 0x103   : > { %9503 = vmatprep.subr.bf16.mxu0 %v15136_v3  ;;  %9632 = vmatprep.subr.bf16.mxu1 %v15139_v4  ;;  %v15233_v3 = vld [vmem:[%s17614_s4 + $0x5e4] ss:$148 sps:$4 sm:$0xff]  }
 0x104   : > { %v15228_v4 = vld [vmem:[%s17614_s4 + $0x5d8] ss:$148 sps:$4 sm:$0xff]  }
 0x106   : > { %9504 = vmatpush1.bf16.msra.mxu0 %v15134_v5  ;;  %9633 = vmatpush1.bf16.msra.mxu1 %v15137_v6  ;;  %v15231_v5 = vld [vmem:[%s17614_s4 + $0x5e0] ss:$148 sps:$4 sm:$0xff]   ;;  %v15236_v6 = vld [vmem:[%s17614_s4 + $0x704] ss:$148 sps:$4 sm:$0xff]  }
 0x107   : > { %9505 = vmatprep.subr.bf16.mxu0 %v15142_v7  ;;  %9634 = vmatprep.subr.bf16.mxu1 %v15145_v8  ;;  %v15239_v7 = vld [vmem:[%s17614_s4 + $0x70c] ss:$148 sps:$4 sm:$0xff]  }
 0x108   : > { %v15234_v8 = vld [vmem:[%s17614_s4 + $0x700] ss:$148 sps:$4 sm:$0xff]  }
 0x10a   : > { %9506 = vmatpush1.bf16.msra.mxu0 %v15140_v9  ;;  %9635 = vmatpush1.bf16.msra.mxu1 %v15143_v10  ;;  %v15237_v9 = vld [vmem:[%s17614_s4 + $0x708] ss:$148 sps:$4 sm:$0xff]   ;;  %v15242_v10 = vld [vmem:[%s17614_s4 + $0x82c] ss:$148 sps:$4 sm:$0xff]  }
 0x10b   : > { %9518 = vmatprep.subr.bf16.mxu0 %v15150_v11  ;;  %9647 = vmatprep.subr.bf16.mxu1 %v15153_v12  ;;  %v15245_v11 = vld [vmem:[%s17614_s4 + $0x834] ss:$148 sps:$4 sm:$0xff]  }
 0x10c   : > { %v15240_v12 = vld [vmem:[%s17614_s4 + $0x828] ss:$148 sps:$4 sm:$0xff]  }
 0x10d   : > { %9508 = vmatmul.mubr.bf16.vlgmr.msra.gmra.mrb[0].mxu0 %v15154_v14  ;;  %9637 = vmatmul.mubr.bf16.vlgmr.msra.gmra.mrb[0].mxu1 %v15154_v14  ;;  %v15248_v14 = vld [vmem:[%s17614_s4 + $0x954] ss:$148 sps:$4 sm:$0xff]  }
 0x10e   : > { %9519 = vmatpush1.bf16.msra.mxu0 %v15148_v13  ;;  %9648 = vmatpush1.bf16.msra.mxu1 %v15151_v15  ;;  %v15243_v13 = vld [vmem:[%s17614_s4 + $0x830] ss:$148 sps:$4 sm:$0xff]  }
 0x10f   : > { %9520 = vmatprep.subr.bf16.mxu0 %v15157_v16  ;;  %9649 = vmatprep.subr.bf16.mxu1 %v15160_v17  ;;  %v15251_v15 = vld [vmem:[%s17614_s4 + $0x95c] ss:$148 sps:$4 sm:$0xff]   ;;  %v15249_v17 = vld [vmem:[%s17614_s4 + $0x958] ss:$148 sps:$4 sm:$0xff]  }
 0x110   : > { %9550 = vmatprep.mubr.bf16.mxu0 %v17459_v22  ;;  %9679 = vmatprep.mubr.bf16.mxu1 %v17459_v22  ;;  %v15246_v16 = vld [vmem:[%s17614_s4 + $0x950] ss:$148 sps:$4 sm:$0xff]  }
 0x112   : > { %9521 = vmatpush1.bf16.msra.mxu0 %v15155_v18  ;;  %9650 = vmatpush1.bf16.msra.mxu1 %v15158_v19  ;;  %v15254_v18 = vld [vmem:[%s17614_s4 + $0xa7c] ss:$148 sps:$4 sm:$0xff]   ;;  %v15257_v19 = vld [vmem:[%s17614_s4 + $0xa84] ss:$148 sps:$4 sm:$0xff]  }
 0x113   : > { %9522 = vmatprep.subr.bf16.mxu0 %v15163_v20  ;;  %9651 = vmatprep.subr.bf16.mxu1 %v15166_v21  ;;  %v15252_v20 = vld [vmem:[%s17614_s4 + $0xa78] ss:$148 sps:$4 sm:$0xff]   ;;  %v15255_v21 = vld [vmem:[%s17614_s4 + $0xa80] ss:$148 sps:$4 sm:$0xff]  }
 0x116   : > { %9523 = vmatpush1.bf16.msra.mxu0 %v15161_v23  ;;  %9652 = vmatpush1.bf16.msra.mxu1 %v15164_v24  ;;  %v15260_v23 = vld [vmem:[%s17614_s4 + $0xba4] ss:$148 sps:$4 sm:$0xff]   ;;  %v15263_v24 = vld [vmem:[%s17614_s4 + $0xbac] ss:$148 sps:$4 sm:$0xff]  }
 0x117   : > { %9524 = vmatprep.subr.bf16.mxu0 %v15169_v25  ;;  %9653 = vmatprep.subr.bf16.mxu1 %v15172_v26  ;;  %v15258_v25 = vld [vmem:[%s17614_s4 + $0xba0] ss:$148 sps:$4 sm:$0xff]   ;;  %v15261_v26 = vld [vmem:[%s17614_s4 + $0xba8] ss:$148 sps:$4 sm:$0xff]  }
 0x11a   : > { %9525 = vmatpush1.bf16.msra.mxu0 %v15167_v27  ;;  %9654 = vmatpush1.bf16.msra.mxu1 %v15170_v28  ;;  %v15266_v27 = vld [vmem:[%s17614_s4 + $0xccc] ss:$148 sps:$4 sm:$0xff]   ;;  %v15269_v28 = vld [vmem:[%s17614_s4 + $0xcd4] ss:$148 sps:$4 sm:$0xff]  }
 0x11b   : > { %9526 = vmatprep.subr.bf16.mxu0 %v15175_v29  ;;  %9655 = vmatprep.subr.bf16.mxu1 %v15178_v30  ;;  %v15264_v29 = vld [vmem:[%s17614_s4 + $0xcc8] ss:$148 sps:$4 sm:$0xff]   ;;  %v15267_v30 = vld [vmem:[%s17614_s4 + $0xcd0] ss:$148 sps:$4 sm:$0xff]  }
 0x11e   : > { %9527 = vmatpush1.bf16.msra.mxu0 %v15173_v31  ;;  %9656 = vmatpush1.bf16.msra.mxu1 %v15176_v32  ;;  %v15272_v31 = vld [vmem:[%s17614_s4 + $0xdf4] ss:$148 sps:$4 sm:$0xff]   ;;  %v15275_v32 = vld [vmem:[%s17614_s4 + $0xdfc] ss:$148 sps:$4 sm:$0xff]  }
 0x11f   : > { %9528 = vmatprep.subr.bf16.mxu0 %v15181_v33  ;;  %9657 = vmatprep.subr.bf16.mxu1 %v15184_v34  ;;  %v15270_v33 = vld [vmem:[%s17614_s4 + $0xdf0] ss:$148 sps:$4 sm:$0xff]   ;;  %v15273_v34 = vld [vmem:[%s17614_s4 + $0xdf8] ss:$148 sps:$4 sm:$0xff]  }
 0x122   : > { %9529 = vmatpush1.bf16.msra.mxu0 %v15179_v35  ;;  %9658 = vmatpush1.bf16.msra.mxu1 %v15182_v36  ;;  %v15278_v35 = vld [vmem:[%s17614_s4 + $0xf1c] ss:$148 sps:$4 sm:$0xff]   ;;  %v15281_v36 = vld [vmem:[%s17614_s4 + $0xf24] ss:$148 sps:$4 sm:$0xff]  }
 0x123   : > { %9530 = vmatprep.subr.bf16.mxu0 %v15187_v37  ;;  %9659 = vmatprep.subr.bf16.mxu1 %v15190_v38  ;;  %v15276_v37 = vld [vmem:[%s17614_s4 + $0xf18] ss:$148 sps:$4 sm:$0xff]   ;;  %v15279_v38 = vld [vmem:[%s17614_s4 + $0xf20] ss:$148 sps:$4 sm:$0xff]  }
 0x126   : > { %9531 = vmatpush1.bf16.msra.mxu0 %v15185_v39  ;;  %9660 = vmatpush1.bf16.msra.mxu1 %v15188_v40  ;;  %v15284_v39 = vld [vmem:[%s17614_s4 + $0x1044] ss:$148 sps:$4 sm:$0xff]   ;;  %v15287_v40 = vld [vmem:[%s17614_s4 + $0x104c] ss:$148 sps:$4 sm:$0xff]  }
 0x127   : > { %9532 = vmatprep.subr.bf16.mxu0 %v15193_v41  ;;  %9661 = vmatprep.subr.bf16.mxu1 %v15196_v42  ;;  %v15282_v41 = vld [vmem:[%s17614_s4 + $0x1040] ss:$148 sps:$4 sm:$0xff]   ;;  %v15285_v42 = vld [vmem:[%s17614_s4 + $0x1048] ss:$148 sps:$4 sm:$0xff]  }
 0x12a   : > { %9533 = vmatpush1.bf16.msra.mxu0 %v15191_v43  ;;  %9662 = vmatpush1.bf16.msra.mxu1 %v15194_v44  ;;  %v15290_v43 = vld [vmem:[%s17614_s4 + $0x116c] ss:$148 sps:$4 sm:$0xff]   ;;  %v15293_v44 = vld [vmem:[%s17614_s4 + $0x1174] ss:$148 sps:$4 sm:$0xff]  }
 0x12b   : > { %9690 = vmatprep.subr.bf16.mxu0 %v15200_v45  ;;  %9819 = vmatprep.subr.bf16.mxu1 %v15203_v46  ;;  %v15288_v45 = vld [vmem:[%s17614_s4 + $0x1168] ss:$148 sps:$4 sm:$0xff]   ;;  %v15291_v46 = vld [vmem:[%s17614_s4 + $0x1170] ss:$148 sps:$4 sm:$0xff]  }
 0x12d   : > { %9551 = vmatmul.mubr.bf16.vlgmr.msra.gmra.mrb[0].mxu0 %v15197_v47  ;;  %9680 = vmatmul.mubr.bf16.vlgmr.msra.gmra.mrb[0].mxu1 %v15197_v47  ;;  %v15296_v47 = vld [vmem:[%s17614_s4 + $0x1294] ss:$148 sps:$4 sm:$0xff]  }
 0x12e   : > { %9691 = vmatpush1.bf16.msra.mxu0 %v15198_v48  ;;  %9820 = vmatpush1.bf16.msra.mxu1 %v15201_v49  ;;  %v15299_v48 = vld [vmem:[%s17614_s4 + $0x129c] ss:$148 sps:$4 sm:$0xff]  }
 0x12f   : > { %9692 = vmatprep.subr.bf16.mxu0 %v15206_v50  ;;  %9821 = vmatprep.subr.bf16.mxu1 %v15209_v51  ;;  %v15294_v49 = vld [vmem:[%s17614_s4 + $0x1290] ss:$148 sps:$4 sm:$0xff]   ;;  %v15297_v50 = vld [vmem:[%s17614_s4 + $0x1298] ss:$148 sps:$4 sm:$0xff]  }
 0x130   : > { %9722 = vmatprep.mubr.bf16.mxu0 %v17969_v54  ;;  %9851 = vmatprep.mubr.bf16.mxu1 %v17969_v54  ;;  %v15224_v54 = vld [vmem:[%s17614_s4 + $0x4b4] ss:$148 sps:$4 sm:$0xff]   ;;  %v15302_v51 = vld [vmem:[%s17614_s4 + $0x13bc] ss:$148 sps:$4 sm:$0xff]  }
 0x132   : > { %9693 = vmatpush1.bf16.msra.mxu0 %v15204_v52  ;;  %9822 = vmatpush1.bf16.msra.mxu1 %v15207_v53  ;;  %v15305_v52 = vld [vmem:[%s17614_s4 + $0x13c4] ss:$148 sps:$4 sm:$0xff]  }
 0x133   : > { %9694 = vmatprep.subr.bf16.mxu0 %v15212_v55  ;;  %9823 = vmatprep.subr.bf16.mxu1 %v15215_v56  ;;  %v17158_v53 = vld [vmem:[%s17612_s27] ss:$20 sps:$4 sm:$0xff]   ;;  %v15303_v56 = vld [vmem:[%s17614_s4 + $0x13c0] ss:$148 sps:$4 sm:$0xff]  }
 0x134   : > { %v15300_v55 = vld [vmem:[%s17614_s4 + $0x13b8] ss:$148 sps:$4 sm:$0xff]  }
 0x136   : > { %9695 = vmatpush1.bf16.msra.mxu0 %v15210_v57  ;;  %9824 = vmatpush1.bf16.msra.mxu1 %v15213_v58  ;;  %v15308_v57 = vld [vmem:[%s17614_s4 + $0x14e4] ss:$148 sps:$4 sm:$0xff]   ;;  %v15311_v58 = vld [vmem:[%s17614_s4 + $0x14ec] ss:$148 sps:$4 sm:$0xff]  }
 0x137   : > { %9696 = vmatprep.subr.bf16.mxu0 %v15218_v59  ;;  %9825 = vmatprep.subr.bf16.mxu1 %v15221_v60  ;;  %v17159_v59 = vld [vmem:[%s17612_s27 + $0xc] ss:$20 sps:$4 sm:$0xff]   ;;  %v15306_v60 = vld [vmem:[%s17614_s4 + $0x14e0] ss:$148 sps:$4 sm:$0xff]  }
 0x13a   : > { %9697 = vmatpush1.bf16.msra.mxu0 %v15216_v61  ;;  %9826 = vmatpush1.bf16.msra.mxu1 %v15219_v62  ;;  %v15309_v61 = vld [vmem:[%s17614_s4 + $0x14e8] ss:$148 sps:$4 sm:$0xff]   ;;  %v15314_v62 = vld [vmem:[%s17614_s4 + $0x160c] ss:$148 sps:$4 sm:$0xff]  }
 0x13b   : > { %9698 = vmatprep.subr.bf16.mxu0 %v15224_v54  ;;  %9827 = vmatprep.subr.bf16.mxu1 %v15227_v63  ;;  %v15317_v54 = vld [vmem:[%s17614_s4 + $0x1614] ss:$148 sps:$4 sm:$0xff]  }
 0x13c   : > { %v15312_v63 = vld [vmem:[%s17614_s4 + $0x1608] ss:$148 sps:$4 sm:$0xff]  }
 0x13e   : > { %9699 = vmatpush1.bf16.msra.mxu0 %v15222_v0  ;;  %9828 = vmatpush1.bf16.msra.mxu1 %v15225_v1  ;;  %v15315_v0 = vld [vmem:[%s17614_s4 + $0x1610] ss:$148 sps:$4 sm:$0xff]   ;;  %v15320_v1 = vld [vmem:[%s17614_s4 + $0x1734] ss:$148 sps:$4 sm:$0xff]  }
 0x13f   : > { %9700 = vmatprep.subr.bf16.mxu0 %v15230_v2  ;;  %9829 = vmatprep.subr.bf16.mxu1 %v15233_v3  ;;  %v15323_v2 = vld [vmem:[%s17614_s4 + $0x173c] ss:$148 sps:$4 sm:$0xff]  }
 0x140   : > { %v15318_v3 = vld [vmem:[%s17614_s4 + $0x1730] ss:$148 sps:$4 sm:$0xff]  }
 0x142   : > { %9701 = vmatpush1.bf16.msra.mxu0 %v15228_v4  ;;  %9830 = vmatpush1.bf16.msra.mxu1 %v15231_v5  ;;  %v15321_v4 = vld [vmem:[%s17614_s4 + $0x1738] ss:$148 sps:$4 sm:$0xff]   ;;  %v15326_v5 = vld [vmem:[%s17614_s4 + $0x185c] ss:$148 sps:$4 sm:$0xff]  }
 0x143   : > { %9702 = vmatprep.subr.bf16.mxu0 %v15236_v6  ;;  %9831 = vmatprep.subr.bf16.mxu1 %v15239_v7  ;;  %v15329_v6 = vld [vmem:[%s17614_s4 + $0x1864] ss:$148 sps:$4 sm:$0xff]  }
 0x144   : > { %v15324_v7 = vld [vmem:[%s17614_s4 + $0x1858] ss:$148 sps:$4 sm:$0xff]  }
 0x146   : > { %9703 = vmatpush1.bf16.msra.mxu0 %v15234_v8  ;;  %9832 = vmatpush1.bf16.msra.mxu1 %v15237_v9  ;;  %v15327_v8 = vld [vmem:[%s17614_s4 + $0x1860] ss:$148 sps:$4 sm:$0xff]   ;;  %v15332_v9 = vld [vmem:[%s17614_s4 + $0x1984] ss:$148 sps:$4 sm:$0xff]  }
 0x147   : > { %9704 = vmatprep.subr.bf16.mxu0 %v15242_v10  ;;  %9833 = vmatprep.subr.bf16.mxu1 %v15245_v11  ;;  %v15335_v10 = vld [vmem:[%s17614_s4 + $0x198c] ss:$148 sps:$4 sm:$0xff]  }
 0x148   : > { %v15330_v11 = vld [vmem:[%s17614_s4 + $0x1980] ss:$148 sps:$4 sm:$0xff]  }
 0x14a   : > { %9705 = vmatpush1.bf16.msra.mxu0 %v15240_v12  ;;  %9834 = vmatpush1.bf16.msra.mxu1 %v15243_v13  ;;  %v15333_v12 = vld [vmem:[%s17614_s4 + $0x1988] ss:$148 sps:$4 sm:$0xff]   ;;  %v15338_v13 = vld [vmem:[%s17614_s4 + $0x1aac] ss:$148 sps:$4 sm:$0xff]  }
 0x14b   : > { %9706 = vmatprep.subr.bf16.mxu0 %v15248_v14  ;;  %9835 = vmatprep.subr.bf16.mxu1 %v15251_v15  ;;  %v15341_v14 = vld [vmem:[%s17614_s4 + $0x1ab4] ss:$148 sps:$4 sm:$0xff]  }
 0x14c   : > { %v15336_v15 = vld [vmem:[%s17614_s4 + $0x1aa8] ss:$148 sps:$4 sm:$0xff]  }
 0x14e   : > { %9707 = vmatpush1.bf16.msra.mxu0 %v15246_v16  ;;  %9836 = vmatpush1.bf16.msra.mxu1 %v15249_v17  ;;  %v15339_v16 = vld [vmem:[%s17614_s4 + $0x1ab0] ss:$148 sps:$4 sm:$0xff]   ;;  %v15344_v17 = vld [vmem:[%s17614_s4 + $0x1bd4] ss:$148 sps:$4 sm:$0xff]  }
 0x14f   : > { %9708 = vmatprep.subr.bf16.mxu0 %v15254_v18  ;;  %9837 = vmatprep.subr.bf16.mxu1 %v15257_v19  ;;  %v15347_v18 = vld [vmem:[%s17614_s4 + $0x1bdc] ss:$148 sps:$4 sm:$0xff]  }
 0x150   : > { %v15342_v19 = vld [vmem:[%s17614_s4 + $0x1bd0] ss:$148 sps:$4 sm:$0xff]  }
 0x152   : > { %9709 = vmatpush1.bf16.msra.mxu0 %v15252_v20  ;;  %9838 = vmatpush1.bf16.msra.mxu1 %v15255_v21  ;;  %v15345_v20 = vld [vmem:[%s17614_s4 + $0x1bd8] ss:$148 sps:$4 sm:$0xff]   ;;  %v15350_v21 = vld [vmem:[%s17614_s4 + $0x1cfc] ss:$148 sps:$4 sm:$0xff]  }
 0x153   : > { %9710 = vmatprep.subr.bf16.mxu0 %v15260_v23  ;;  %9839 = vmatprep.subr.bf16.mxu1 %v15263_v24  ;;  %v15353_v23 = vld [vmem:[%s17614_s4 + $0x1d04] ss:$148 sps:$4 sm:$0xff]  }
 0x154   : > { %v15348_v24 = vld [vmem:[%s17614_s4 + $0x1cf8] ss:$148 sps:$4 sm:$0xff]  }
 0x156   : > { %9711 = vmatpush1.bf16.msra.mxu0 %v15258_v25  ;;  %9840 = vmatpush1.bf16.msra.mxu1 %v15261_v26  ;;  %v15351_v25 = vld [vmem:[%s17614_s4 + $0x1d00] ss:$148 sps:$4 sm:$0xff]   ;;  %v15356_v26 = vld [vmem:[%s17614_s4 + $0x1e24] ss:$148 sps:$4 sm:$0xff]  }
 0x157   : > { %9712 = vmatprep.subr.bf16.mxu0 %v15266_v27  ;;  %9841 = vmatprep.subr.bf16.mxu1 %v15269_v28  ;;  %v15359_v27 = vld [vmem:[%s17614_s4 + $0x1e2c] ss:$148 sps:$4 sm:$0xff]  }
 0x158   : > { %v15354_v28 = vld [vmem:[%s17614_s4 + $0x1e20] ss:$148 sps:$4 sm:$0xff]  }
 0x15a   : > { %9713 = vmatpush1.bf16.msra.mxu0 %v15264_v29  ;;  %9842 = vmatpush1.bf16.msra.mxu1 %v15267_v30  ;;  %v15357_v29 = vld [vmem:[%s17614_s4 + $0x1e28] ss:$148 sps:$4 sm:$0xff]   ;;  %v15362_v30 = vld [vmem:[%s17614_s4 + $0x1f4c] ss:$148 sps:$4 sm:$0xff]  }
 0x15b   : > { %9714 = vmatprep.subr.bf16.mxu0 %v15272_v31  ;;  %9843 = vmatprep.subr.bf16.mxu1 %v15275_v32  ;;  %v15365_v31 = vld [vmem:[%s17614_s4 + $0x1f54] ss:$148 sps:$4 sm:$0xff]  }
 0x15c   : > { %v15360_v32 = vld [vmem:[%s17614_s4 + $0x1f48] ss:$148 sps:$4 sm:$0xff]  }
 0x15e   : > { %9715 = vmatpush1.bf16.msra.mxu0 %v15270_v33  ;;  %9844 = vmatpush1.bf16.msra.mxu1 %v15273_v34  ;;  %v15363_v33 = vld [vmem:[%s17614_s4 + $0x1f50] ss:$148 sps:$4 sm:$0xff]   ;;  %v15368_v34 = vld [vmem:[%s17614_s4 + $0x2074] ss:$148 sps:$4 sm:$0xff]  }
 0x15f   : > { %9716 = vmatprep.subr.bf16.mxu0 %v15278_v35  ;;  %9845 = vmatprep.subr.bf16.mxu1 %v15281_v36  ;;  %v15371_v35 = vld [vmem:[%s17614_s4 + $0x207c] ss:$148 sps:$4 sm:$0xff]  }
 0x160   : > { %v15366_v36 = vld [vmem:[%s17614_s4 + $0x2070] ss:$148 sps:$4 sm:$0xff]  }
 0x162   : > { %9717 = vmatpush1.bf16.msra.mxu0 %v15276_v37  ;;  %9846 = vmatpush1.bf16.msra.mxu1 %v15279_v38  ;;  %v15369_v37 = vld [vmem:[%s17614_s4 + $0x2078] ss:$148 sps:$4 sm:$0xff]   ;;  %v15374_v38 = vld [vmem:[%s17614_s4 + $0x219c] ss:$148 sps:$4 sm:$0xff]  }
 0x163   : > { %9718 = vmatprep.subr.bf16.mxu0 %v15284_v39  ;;  %9847 = vmatprep.subr.bf16.mxu1 %v15287_v40  ;;  %v15377_v39 = vld [vmem:[%s17614_s4 + $0x21a4] ss:$148 sps:$4 sm:$0xff]  }
 0x164   : > { %v15372_v40 = vld [vmem:[%s17614_s4 + $0x2198] ss:$148 sps:$4 sm:$0xff]  }
 0x166   : > { %9719 = vmatpush1.bf16.msra.mxu0 %v15282_v41  ;;  %9848 = vmatpush1.bf16.msra.mxu1 %v15285_v42  ;;  %v15375_v41 = vld [vmem:[%s17614_s4 + $0x21a0] ss:$148 sps:$4 sm:$0xff]   ;;  %v15380_v42 = vld [vmem:[%s17614_s4 + $0x22c4] ss:$148 sps:$4 sm:$0xff]  }
 0x167   : > { %9720 = vmatprep.subr.bf16.mxu0 %v15290_v43  ;;  %9849 = vmatprep.subr.bf16.mxu1 %v15293_v44  ;;  %v15383_v43 = vld [vmem:[%s17614_s4 + $0x22cc] ss:$148 sps:$4 sm:$0xff]  }
 0x168   : > { %v15378_v44 = vld [vmem:[%s17614_s4 + $0x22c0] ss:$148 sps:$4 sm:$0xff]  }
 0x16a   : > { %9721 = vmatpush1.bf16.msra.mxu0 %v15288_v45  ;;  %9850 = vmatpush1.bf16.msra.mxu1 %v15291_v46  ;;  %v15381_v45 = vld [vmem:[%s17614_s4 + $0x22c8] ss:$148 sps:$4 sm:$0xff]   ;;  %v15386_v46 = vld [vmem:[%s17614_s4 + $0x23ec] ss:$148 sps:$4 sm:$0xff]  }
 0x16b   : > { %9733 = vmatprep.subr.bf16.mxu0 %v15296_v47  ;;  %9862 = vmatprep.subr.bf16.mxu1 %v15299_v48  ;;  %v15389_v47 = vld [vmem:[%s17614_s4 + $0x23f4] ss:$148 sps:$4 sm:$0xff]  }
 0x16c   : > { %v15384_v48 = vld [vmem:[%s17614_s4 + $0x23e8] ss:$148 sps:$4 sm:$0xff]  }
 0x16d   : > { %9723 = vmatmul.mubr.bf16.vlgmr.msra.gmra.mrb[4].mxu0 %v17158_v53  ;;  %9852 = vmatmul.mubr.bf16.vlgmr.msra.gmra.mrb[4].mxu1 %v17158_v53  ;;  %v15393_v53 = vld [vmem:[%s17614_s4 + $0x2518] ss:$148 sps:$4 sm:$0xff]  }
 0x16e   : > { %9734 = vmatpush1.bf16.msra.mxu0 %v15294_v49  ;;  %9863 = vmatpush1.bf16.msra.mxu1 %v15297_v50  ;;  %v15387_v49 = vld [vmem:[%s17614_s4 + $0x23f0] ss:$148 sps:$4 sm:$0xff]   ;;  %v15392_v50 = vld [vmem:[%s17614_s4 + $0x2514] ss:$148 sps:$4 sm:$0xff]  }
 0x16f   : > { %9735 = vmatprep.subr.bf16.mxu0 %v15302_v51  ;;  %9864 = vmatprep.subr.bf16.mxu1 %v15305_v52  ;;  %v15395_v51 = vld [vmem:[%s17614_s4 + $0x251c] ss:$148 sps:$4 sm:$0xff]  }
 0x170   : > { %9765 = vmatprep.mubr.bf16.mxu0 %v17159_v59  ;;  %9894 = vmatprep.mubr.bf16.mxu1 %v17159_v59  ;;  %v15390_v52 = vld [vmem:[%s17614_s4 + $0x2510] ss:$148 sps:$4 sm:$0xff]   ;;  %v15399_v59 = vld [vmem:[%s17614_s4 + $0x2640] ss:$148 sps:$4 sm:$0xff]  }
 0x172   : > { %9736 = vmatpush1.bf16.msra.mxu0 %v15300_v55  ;;  %9865 = vmatpush1.bf16.msra.mxu1 %v15303_v56  ;;  %v15398_v55 = vld [vmem:[%s17614_s4 + $0x263c] ss:$148 sps:$4 sm:$0xff]   ;;  %v15401_v56 = vld [vmem:[%s17614_s4 + $0x2644] ss:$148 sps:$4 sm:$0xff]  }
 0x173   : > { %9737 = vmatprep.subr.bf16.mxu0 %v15308_v57  ;;  %9866 = vmatprep.subr.bf16.mxu1 %v15311_v58  ;;  %v17160_v57 = vld [vmem:[%s17612_s27 + $0x8] ss:$20 sps:$4 sm:$0xff]  }
 0x174   : > { %v15396_v58 = vld [vmem:[%s17614_s4 + $0x2638] ss:$148 sps:$4 sm:$0xff]  }
 0x176   : > { %9738 = vmatpush1.bf16.msra.mxu0 %v15306_v60  ;;  %9867 = vmatpush1.bf16.msra.mxu1 %v15309_v61  ;;  %v15404_v60 = vld [vmem:[%s17614_s4 + $0x2764] ss:$148 sps:$4 sm:$0xff]   ;;  %v15407_v61 = vld [vmem:[%s17614_s4 + $0x276c] ss:$148 sps:$4 sm:$0xff]  }
 0x177   : > { %9739 = vmatprep.subr.bf16.mxu0 %v15314_v62  ;;  %9868 = vmatprep.subr.bf16.mxu1 %v15317_v54  ;;  %v15402_v62 = vld [vmem:[%s17614_s4 + $0x2760] ss:$148 sps:$4 sm:$0xff]   ;;  %v15405_v54 = vld [vmem:[%s17614_s4 + $0x2768] ss:$148 sps:$4 sm:$0xff]  }
 0x17a   : > { %9740 = vmatpush1.bf16.msra.mxu0 %v15312_v63  ;;  %9869 = vmatpush1.bf16.msra.mxu1 %v15315_v0  ;;  %v15410_v63 = vld [vmem:[%s17614_s4 + $0x288c] ss:$148 sps:$4 sm:$0xff]   ;;  %v15413_v0 = vld [vmem:[%s17614_s4 + $0x2894] ss:$148 sps:$4 sm:$0xff]  }
 0x17b   : > { %9741 = vmatprep.subr.bf16.mxu0 %v15320_v1  ;;  %9870 = vmatprep.subr.bf16.mxu1 %v15323_v2  ;;  %v15408_v1 = vld [vmem:[%s17614_s4 + $0x2888] ss:$148 sps:$4 sm:$0xff]   ;;  %v15411_v2 = vld [vmem:[%s17614_s4 + $0x2890] ss:$148 sps:$4 sm:$0xff]  }
 0x17e   : > { %9742 = vmatpush1.bf16.msra.mxu0 %v15318_v3  ;;  %9871 = vmatpush1.bf16.msra.mxu1 %v15321_v4  ;;  %v15416_v3 = vld [vmem:[%s17614_s4 + $0x29b4] ss:$148 sps:$4 sm:$0xff]   ;;  %v15419_v4 = vld [vmem:[%s17614_s4 + $0x29bc] ss:$148 sps:$4 sm:$0xff]  }
 0x17f   : > { %9743 = vmatprep.subr.bf16.mxu0 %v15326_v5  ;;  %9872 = vmatprep.subr.bf16.mxu1 %v15329_v6  ;;  %v15414_v5 = vld [vmem:[%s17614_s4 + $0x29b0] ss:$148 sps:$4 sm:$0xff]   ;;  %v15417_v6 = vld [vmem:[%s17614_s4 + $0x29b8] ss:$148 sps:$4 sm:$0xff]  }
 0x182   : > { %9744 = vmatpush1.bf16.msra.mxu0 %v15324_v7  ;;  %9873 = vmatpush1.bf16.msra.mxu1 %v15327_v8  ;;  %v15422_v7 = vld [vmem:[%s17614_s4 + $0x2adc] ss:$148 sps:$4 sm:$0xff]   ;;  %v15425_v8 = vld [vmem:[%s17614_s4 + $0x2ae4] ss:$148 sps:$4 sm:$0xff]  }
 0x183   : > { %9745 = vmatprep.subr.bf16.mxu0 %v15332_v9  ;;  %9874 = vmatprep.subr.bf16.mxu1 %v15335_v10  ;;  %v15420_v9 = vld [vmem:[%s17614_s4 + $0x2ad8] ss:$148 sps:$4 sm:$0xff]   ;;  %v15423_v10 = vld [vmem:[%s17614_s4 + $0x2ae0] ss:$148 sps:$4 sm:$0xff]  }
 0x186   : > { %9746 = vmatpush1.bf16.msra.mxu0 %v15330_v11  ;;  %9875 = vmatpush1.bf16.msra.mxu1 %v15333_v12  ;;  %v15428_v11 = vld [vmem:[%s17614_s4 + $0x2c04] ss:$148 sps:$4 sm:$0xff]   ;;  %v15431_v12 = vld [vmem:[%s17614_s4 + $0x2c0c] ss:$148 sps:$4 sm:$0xff]  }
 0x187   : > { %9747 = vmatprep.subr.bf16.mxu0 %v15338_v13  ;;  %9876 = vmatprep.subr.bf16.mxu1 %v15341_v14  ;;  %v15426_v13 = vld [vmem:[%s17614_s4 + $0x2c00] ss:$148 sps:$4 sm:$0xff]   ;;  %v15429_v14 = vld [vmem:[%s17614_s4 + $0x2c08] ss:$148 sps:$4 sm:$0xff]  }
 0x18a   : > { %9748 = vmatpush1.bf16.msra.mxu0 %v15336_v15  ;;  %9877 = vmatpush1.bf16.msra.mxu1 %v15339_v16  ;;  %v15434_v15 = vld [vmem:[%s17614_s4 + $0x2d2c] ss:$148 sps:$4 sm:$0xff]   ;;  %v15437_v16 = vld [vmem:[%s17614_s4 + $0x2d34] ss:$148 sps:$4 sm:$0xff]  }
 0x18b   : > { %9749 = vmatprep.subr.bf16.mxu0 %v15344_v17  ;;  %9878 = vmatprep.subr.bf16.mxu1 %v15347_v18  ;;  %v15432_v17 = vld [vmem:[%s17614_s4 + $0x2d28] ss:$148 sps:$4 sm:$0xff]   ;;  %v15435_v18 = vld [vmem:[%s17614_s4 + $0x2d30] ss:$148 sps:$4 sm:$0xff]  }
 0x18e   : > { %9750 = vmatpush1.bf16.msra.mxu0 %v15342_v19  ;;  %9879 = vmatpush1.bf16.msra.mxu1 %v15345_v20  ;;  %v15440_v19 = vld [vmem:[%s17614_s4 + $0x24] ss:$148 sps:$4 sm:$0xff]   ;;  %v15443_v20 = vld [vmem:[%s17614_s4 + $0x2c] ss:$148 sps:$4 sm:$0xff]  }
 0x18f   : > { %9751 = vmatprep.subr.bf16.mxu0 %v15350_v21  ;;  %9880 = vmatprep.subr.bf16.mxu1 %v15353_v23  ;;  %v15438_v21 = vld [vmem:[%s17614_s4 + $0x20] ss:$148 sps:$4 sm:$0xff]   ;;  %v15441_v23 = vld [vmem:[%s17614_s4 + $0x28] ss:$148 sps:$4 sm:$0xff]  }
 0x192   : > { %9752 = vmatpush1.bf16.msra.mxu0 %v15348_v24  ;;  %9881 = vmatpush1.bf16.msra.mxu1 %v15351_v25  ;;  %v15446_v24 = vld [vmem:[%s17614_s4 + $0x14c] ss:$148 sps:$4 sm:$0xff]   ;;  %v15449_v25 = vld [vmem:[%s17614_s4 + $0x154] ss:$148 sps:$4 sm:$0xff]  }
 0x193   : > { %9753 = vmatprep.subr.bf16.mxu0 %v15356_v26  ;;  %9882 = vmatprep.subr.bf16.mxu1 %v15359_v27  ;;  %v17161_v26 = vld [vmem:[%s17612_s27 + $0x10] ss:$20 sps:$4 sm:$0xff]  }
 0x194   : > { %v15444_v27 = vld [vmem:[%s17614_s4 + $0x148] ss:$148 sps:$4 sm:$0xff]  }
 0x196   : > { %9754 = vmatpush1.bf16.msra.mxu0 %v15354_v28  ;;  %9883 = vmatpush1.bf16.msra.mxu1 %v15357_v29  ;;  %v15447_v28 = vld [vmem:[%s17614_s4 + $0x150] ss:$148 sps:$4 sm:$0xff]   ;;  %v15452_v29 = vld [vmem:[%s17614_s4 + $0x274] ss:$148 sps:$4 sm:$0xff]  }
 0x197   : > { %9755 = vmatprep.subr.bf16.mxu0 %v15362_v30  ;;  %9884 = vmatprep.subr.bf16.mxu1 %v15365_v31  ;;  %v15455_v30 = vld [vmem:[%s17614_s4 + $0x27c] ss:$148 sps:$4 sm:$0xff]  }
 0x198   : > { %v17162_v31 = vld [vmem:[%s17612_s27 + $0x4] ss:$20 sps:$4 sm:$0xff]  }
 0x19a   : > { %9756 = vmatpush1.bf16.msra.mxu0 %v15360_v32  ;;  %9885 = vmatpush1.bf16.msra.mxu1 %v15363_v33  ;;  %v15450_v32 = vld [vmem:[%s17614_s4 + $0x270] ss:$148 sps:$4 sm:$0xff]   ;;  %v15453_v33 = vld [vmem:[%s17614_s4 + $0x278] ss:$148 sps:$4 sm:$0xff]  }
 0x19b   : > { %9757 = vmatprep.subr.bf16.mxu0 %v15368_v34  ;;  %9886 = vmatprep.subr.bf16.mxu1 %v15371_v35  ;;  %v15458_v34 = vld [vmem:[%s17614_s4 + $0x39c] ss:$148 sps:$4 sm:$0xff]   ;;  %v15461_v35 = vld [vmem:[%s17614_s4 + $0x3a4] ss:$148 sps:$4 sm:$0xff]  }
 0x19e   : > { %9758 = vmatpush1.bf16.msra.mxu0 %v15366_v36  ;;  %9887 = vmatpush1.bf16.msra.mxu1 %v15369_v37  ;;  %v15456_v36 = vld [vmem:[%s17614_s4 + $0x398] ss:$148 sps:$4 sm:$0xff]   ;;  %v15459_v37 = vld [vmem:[%s17614_s4 + $0x3a0] ss:$148 sps:$4 sm:$0xff]  }
 0x19f   : > { %9759 = vmatprep.subr.bf16.mxu0 %v15374_v38  ;;  %9888 = vmatprep.subr.bf16.mxu1 %v15377_v39  ;;  %v15464_v38 = vld [vmem:[%s17614_s4 + $0x4c4] ss:$148 sps:$4 sm:$0xff]   ;;  %v15467_v39 = vld [vmem:[%s17614_s4 + $0x4cc] ss:$148 sps:$4 sm:$0xff]  }
 0x1a2   : > { %9760 = vmatpush1.bf16.msra.mxu0 %v15372_v40  ;;  %9889 = vmatpush1.bf16.msra.mxu1 %v15375_v41  ;;  %v15462_v40 = vld [vmem:[%s17614_s4 + $0x4c0] ss:$148 sps:$4 sm:$0xff]   ;;  %v15465_v41 = vld [vmem:[%s17614_s4 + $0x4c8] ss:$148 sps:$4 sm:$0xff]  }
 0x1a3   : > { %9761 = vmatprep.subr.bf16.mxu0 %v15380_v42  ;;  %9890 = vmatprep.subr.bf16.mxu1 %v15383_v43  ;;  %v15470_v42 = vld [vmem:[%s17614_s4 + $0x5ec] ss:$148 sps:$4 sm:$0xff]   ;;  %v15473_v43 = vld [vmem:[%s17614_s4 + $0x5f4] ss:$148 sps:$4 sm:$0xff]  }
 0x1a6   : > { %9762 = vmatpush1.bf16.msra.mxu0 %v15378_v44  ;;  %9891 = vmatpush1.bf16.msra.mxu1 %v15381_v45  ;;  %v15468_v44 = vld [vmem:[%s17614_s4 + $0x5e8] ss:$148 sps:$4 sm:$0xff]   ;;  %v15471_v45 = vld [vmem:[%s17614_s4 + $0x5f0] ss:$148 sps:$4 sm:$0xff]  }
 0x1a7   : > { %9763 = vmatprep.subr.bf16.mxu0 %v15386_v46  ;;  %9892 = vmatprep.subr.bf16.mxu1 %v15389_v47  ;;  %v15476_v46 = vld [vmem:[%s17614_s4 + $0x714] ss:$148 sps:$4 sm:$0xff]   ;;  %v15479_v47 = vld [vmem:[%s17614_s4 + $0x71c] ss:$148 sps:$4 sm:$0xff]  }
 0x1aa   : > { %9764 = vmatpush1.bf16.msra.mxu0 %v15384_v48  ;;  %9893 = vmatpush1.bf16.msra.mxu1 %v15387_v49  ;;  %v15474_v48 = vld [vmem:[%s17614_s4 + $0x710] ss:$148 sps:$4 sm:$0xff]   ;;  %v15477_v49 = vld [vmem:[%s17614_s4 + $0x718] ss:$148 sps:$4 sm:$0xff]  }
 0x1ab   : > { %9776 = vmatprep.subr.bf16.mxu0 %v15392_v50  ;;  %9905 = vmatprep.subr.bf16.mxu1 %v15395_v51  ;;  %v15482_v50 = vld [vmem:[%s17614_s4 + $0x83c] ss:$148 sps:$4 sm:$0xff]   ;;  %v15485_v51 = vld [vmem:[%s17614_s4 + $0x844] ss:$148 sps:$4 sm:$0xff]  }
 0x1ad   : > { %9766 = vmatmul.mubr.bf16.vlgmr.msra.gmra.mrb[4].mxu0 %v17160_v57  ;;  %9895 = vmatmul.mubr.bf16.vlgmr.msra.gmra.mrb[4].mxu1 %v17160_v57  ;;  %v15486_v57 = vld [vmem:[%s17614_s4 + $0x960] ss:$148 sps:$4 sm:$0xff]  }
 0x1ae   : > { %9777 = vmatpush1.bf16.msra.mxu0 %v15390_v52  ;;  %9906 = vmatpush1.bf16.msra.mxu1 %v15393_v53  ;;  %v15480_v52 = vld [vmem:[%s17614_s4 + $0x838] ss:$148 sps:$4 sm:$0xff]   ;;  %v15483_v53 = vld [vmem:[%s17614_s4 + $0x840] ss:$148 sps:$4 sm:$0xff]  }
 0x1af   : > { %9778 = vmatprep.subr.bf16.mxu0 %v15398_v55  ;;  %9907 = vmatprep.subr.bf16.mxu1 %v15401_v56  ;;  %v15488_v55 = vld [vmem:[%s17614_s4 + $0x964] ss:$148 sps:$4 sm:$0xff]   ;;  %v15491_v56 = vld [vmem:[%s17614_s4 + $0x96c] ss:$148 sps:$4 sm:$0xff]  }
 0x1b0   : > { %9808 = vmatprep.mubr.bf16.mxu0 %v17459_v22  ;;  %9937 = vmatprep.mubr.bf16.mxu1 %v17459_v22 }
 0x1b2   : > { %9779 = vmatpush1.bf16.msra.mxu0 %v15396_v58  ;;  %9908 = vmatpush1.bf16.msra.mxu1 %v15399_v59  ;;  %v15489_v58 = vld [vmem:[%s17614_s4 + $0x968] ss:$148 sps:$4 sm:$0xff]   ;;  %v15494_v59 = vld [vmem:[%s17614_s4 + $0xa8c] ss:$148 sps:$4 sm:$0xff]  }
 0x1b3   : > { %9780 = vmatprep.subr.bf16.mxu0 %v15404_v60  ;;  %9909 = vmatprep.subr.bf16.mxu1 %v15407_v61  ;;  %v15497_v60 = vld [vmem:[%s17614_s4 + $0xa94] ss:$148 sps:$4 sm:$0xff]  }
 0x1b4   : > { %v15492_v61 = vld [vmem:[%s17614_s4 + $0xa88] ss:$148 sps:$4 sm:$0xff]  }
 0x1b6   : > { %9781 = vmatpush1.bf16.msra.mxu0 %v15402_v62  ;;  %9910 = vmatpush1.bf16.msra.mxu1 %v15405_v54  ;;  %v15495_v62 = vld [vmem:[%s17614_s4 + $0xa90] ss:$148 sps:$4 sm:$0xff]   ;;  %v15500_v54 = vld [vmem:[%s17614_s4 + $0xbb4] ss:$148 sps:$4 sm:$0xff]  }
 0x1b7   : > { %9782 = vmatprep.subr.bf16.mxu0 %v15410_v63  ;;  %9911 = vmatprep.subr.bf16.mxu1 %v15413_v0  ;;  %v15503_v63 = vld [vmem:[%s17614_s4 + $0xbbc] ss:$148 sps:$4 sm:$0xff]  }
 0x1b8   : > { %v15498_v0 = vld [vmem:[%s17614_s4 + $0xbb0] ss:$148 sps:$4 sm:$0xff]  }
 0x1ba   : > { %9783 = vmatpush1.bf16.msra.mxu0 %v15408_v1  ;;  %9912 = vmatpush1.bf16.msra.mxu1 %v15411_v2  ;;  %v15501_v1 = vld [vmem:[%s17614_s4 + $0xbb8] ss:$148 sps:$4 sm:$0xff]   ;;  %v15506_v2 = vld [vmem:[%s17614_s4 + $0xcdc] ss:$148 sps:$4 sm:$0xff]  }
 0x1bb   : > { %9784 = vmatprep.subr.bf16.mxu0 %v15416_v3  ;;  %9913 = vmatprep.subr.bf16.mxu1 %v15419_v4  ;;  %v15509_v3 = vld [vmem:[%s17614_s4 + $0xce4] ss:$148 sps:$4 sm:$0xff]  }
 0x1bc   : > { %v15504_v4 = vld [vmem:[%s17614_s4 + $0xcd8] ss:$148 sps:$4 sm:$0xff]  }
 0x1be   : > { %9785 = vmatpush1.bf16.msra.mxu0 %v15414_v5  ;;  %9914 = vmatpush1.bf16.msra.mxu1 %v15417_v6  ;;  %v15507_v5 = vld [vmem:[%s17614_s4 + $0xce0] ss:$148 sps:$4 sm:$0xff]   ;;  %v15512_v6 = vld [vmem:[%s17614_s4 + $0xe04] ss:$148 sps:$4 sm:$0xff]  }
 0x1bf   : > { %9786 = vmatprep.subr.bf16.mxu0 %v15422_v7  ;;  %9915 = vmatprep.subr.bf16.mxu1 %v15425_v8  ;;  %v15515_v7 = vld [vmem:[%s17614_s4 + $0xe0c] ss:$148 sps:$4 sm:$0xff]  }
 0x1c0   : > { %v15510_v8 = vld [vmem:[%s17614_s4 + $0xe00] ss:$148 sps:$4 sm:$0xff]  }
 0x1c2   : > { %9787 = vmatpush1.bf16.msra.mxu0 %v15420_v9  ;;  %9916 = vmatpush1.bf16.msra.mxu1 %v15423_v10  ;;  %v15513_v9 = vld [vmem:[%s17614_s4 + $0xe08] ss:$148 sps:$4 sm:$0xff]   ;;  %v15518_v10 = vld [vmem:[%s17614_s4 + $0xf2c] ss:$148 sps:$4 sm:$0xff]  }
 0x1c3   : > { %9788 = vmatprep.subr.bf16.mxu0 %v15428_v11  ;;  %9917 = vmatprep.subr.bf16.mxu1 %v15431_v12  ;;  %v15521_v11 = vld [vmem:[%s17614_s4 + $0xf34] ss:$148 sps:$4 sm:$0xff]  }
 0x1c4   : > { %v366_v12 = vld [vmem:[%s21394_s3] sm:$0xff] }
 0x1c6   : > { %9789 = vmatpush1.bf16.msra.mxu0 %v15426_v13  ;;  %9918 = vmatpush1.bf16.msra.mxu1 %v15429_v14  ;;  %v368_v13 = vld [vmem:[%s21394_s3 + $0x10] sm:$0xff]  ;;  %v15516_v14 = vld [vmem:[%s17614_s4 + $0xf28] ss:$148 sps:$4 sm:$0xff]  }
 0x1c7   : > { %9790 = vmatprep.subr.bf16.mxu0 %v15434_v15  ;;  %9919 = vmatprep.subr.bf16.mxu1 %v15437_v16  ;;  %v15519_v15 = vld [vmem:[%s17614_s4 + $0xf30] ss:$148 sps:$4 sm:$0xff]   ;;  %v367_v16 = vld [vmem:[%s21394_s3 + $0x8] sm:$0xff] }
 0x1ca   : > { %9791 = vmatpush1.bf16.msra.mxu0 %v15432_v17  ;;  %9920 = vmatpush1.bf16.msra.mxu1 %v15435_v18  ;;  %v369_v17 = vld [vmem:[%s21394_s3 + $0x18] sm:$0xff]  ;;  %v403_v18 = vld [vmem:[%s21394_s3 + $0x128] sm:$0xff] }
 0x1cb   : > { %9948 = vmatprep.subr.bf16.mxu0 %v15440_v19  ;;  %10077 = vmatprep.subr.bf16.mxu1 %v15443_v20  ;;  %v405_v19 = vld [vmem:[%s21394_s3 + $0x138] sm:$0xff]  ;;  %v404_v20 = vld [vmem:[%s21394_s3 + $0x130] sm:$0xff] }
 0x1cd   : > { %9809 = vmatmul.mubr.bf16.vlgmr.msra.gmra.mrb[4].mxu0 %v17161_v26  ;;  %9938 = vmatmul.mubr.bf16.vlgmr.msra.gmra.mrb[4].mxu1 %v17161_v26 }
 0x1ce   : > { %9949 = vmatpush1.bf16.msra.mxu0 %v15438_v21  ;;  %10078 = vmatpush1.bf16.msra.mxu1 %v15441_v23  ;;  %v406_v21 = vld [vmem:[%s21394_s3 + $0x140] sm:$0xff] }
 0x1cf   : > { %9950 = vmatprep.subr.bf16.mxu0 %v15446_v24  ;;  %10079 = vmatprep.subr.bf16.mxu1 %v15449_v25  ;;  %v15524_v23 = vld [vmem:[%s17614_s4 + $0x1054] ss:$148 sps:$4 sm:$0xff]   ;;  %v15527_v24 = vld [vmem:[%s17614_s4 + $0x105c] ss:$148 sps:$4 sm:$0xff]  }
 0x1d0   : > { %9980 = vmatprep.mubr.bf16.mxu0 %v17162_v31  ;;  %10109 = vmatprep.mubr.bf16.mxu1 %v17162_v31 }
 0x1d2   : > { %9951 = vmatpush1.bf16.msra.mxu0 %v15444_v27  ;;  %10080 = vmatpush1.bf16.msra.mxu1 %v15447_v28 }
 0x1d3   : > { %9952 = vmatprep.subr.bf16.mxu0 %v15452_v29  ;;  %10081 = vmatprep.subr.bf16.mxu1 %v15455_v30 }
 0x1d6   : > { %9953 = vmatpush1.bf16.msra.mxu0 %v15450_v32  ;;  %10082 = vmatpush1.bf16.msra.mxu1 %v15453_v33 }
 0x1d7   : > { %9954 = vmatprep.subr.bf16.mxu0 %v15458_v34  ;;  %10083 = vmatprep.subr.bf16.mxu1 %v15461_v35  ;;  %v15522_v35 = vld [vmem:[%s17614_s4 + $0x1050] ss:$148 sps:$4 sm:$0xff]  }
 0x1da   : > { %9955 = vmatpush1.bf16.msra.mxu0 %v15456_v36  ;;  %10084 = vmatpush1.bf16.msra.mxu1 %v15459_v37  ;;  %v15525_v36 = vld [vmem:[%s17614_s4 + $0x1058] ss:$148 sps:$4 sm:$0xff]  }
 0x1db   : > { %9956 = vmatprep.subr.bf16.mxu0 %v15464_v38  ;;  %10085 = vmatprep.subr.bf16.mxu1 %v15467_v39 }
 0x1de   : > { %9957 = vmatpush1.bf16.msra.mxu0 %v15462_v40  ;;  %10086 = vmatpush1.bf16.msra.mxu1 %v15465_v41  ;;  %v15530_v41 = vld [vmem:[%s17614_s4 + $0x117c] ss:$148 sps:$4 sm:$0xff]  }
 0x1df   : > { %9958 = vmatprep.subr.bf16.mxu0 %v15470_v42  ;;  %10087 = vmatprep.subr.bf16.mxu1 %v15473_v43  ;;  %v15533_v42 = vld [vmem:[%s17614_s4 + $0x1184] ss:$148 sps:$4 sm:$0xff]  }
 0x1e2   : > { %9959 = vmatpush1.bf16.msra.mxu0 %v15468_v44  ;;  %10088 = vmatpush1.bf16.msra.mxu1 %v15471_v45  ;;  %v15528_v45 = vld [vmem:[%s17614_s4 + $0x1178] ss:$148 sps:$4 sm:$0xff]  }
 0x1e3   : > { %9960 = vmatprep.subr.bf16.mxu0 %v15476_v46  ;;  %10089 = vmatprep.subr.bf16.mxu1 %v15479_v47  ;;  %v15531_v46 = vld [vmem:[%s17614_s4 + $0x1180] ss:$148 sps:$4 sm:$0xff]   ;;  %v15536_v47 = vld [vmem:[%s17614_s4 + $0x12a4] ss:$148 sps:$4 sm:$0xff]  }
 0x1e6   : > { %9961 = vmatpush1.bf16.msra.mxu0 %v15474_v48  ;;  %10090 = vmatpush1.bf16.msra.mxu1 %v15477_v49  ;;  %v15539_v48 = vld [vmem:[%s17614_s4 + $0x12ac] ss:$148 sps:$4 sm:$0xff]  }
 0x1e7   : > { %9962 = vmatprep.subr.bf16.mxu0 %v15482_v50  ;;  %10091 = vmatprep.subr.bf16.mxu1 %v15485_v51  ;;  %v15534_v49 = vld [vmem:[%s17614_s4 + $0x12a0] ss:$148 sps:$4 sm:$0xff]   ;;  %v15537_v50 = vld [vmem:[%s17614_s4 + $0x12a8] ss:$148 sps:$4 sm:$0xff]  }
 0x1e8   : > { %v15542_v51 = vld [vmem:[%s17614_s4 + $0x13cc] ss:$148 sps:$4 sm:$0xff]  }
 0x1ea   : > { %9963 = vmatpush1.bf16.msra.mxu0 %v15480_v52  ;;  %10092 = vmatpush1.bf16.msra.mxu1 %v15483_v53  ;;  %v15545_v52 = vld [vmem:[%s17614_s4 + $0x13d4] ss:$148 sps:$4 sm:$0xff]   ;;  %v17163_v53 = vld [vmem:[%s17612_s27] ss:$20 sps:$4 sm:$0xff]  }
 0x1eb   : > { %9964 = vmatprep.subr.bf16.mxu0 %v15488_v55  ;;  %10093 = vmatprep.subr.bf16.mxu1 %v15491_v56  ;;  %v15540_v55 = vld [vmem:[%s17614_s4 + $0x13c8] ss:$148 sps:$4 sm:$0xff]   ;;  %v15543_v56 = vld [vmem:[%s17614_s4 + $0x13d0] ss:$148 sps:$4 sm:$0xff]  }
 0x1ee   : > { %9965 = vmatpush1.bf16.msra.mxu0 %v15486_v57  ;;  %10094 = vmatpush1.bf16.msra.mxu1 %v15489_v58  ;;  %v15548_v57 = vld [vmem:[%s17614_s4 + $0x14f4] ss:$148 sps:$4 sm:$0xff]   ;;  %v15551_v58 = vld [vmem:[%s17614_s4 + $0x14fc] ss:$148 sps:$4 sm:$0xff]  }
 0x1ef   : > { %9966 = vmatprep.subr.bf16.mxu0 %v15494_v59  ;;  %10095 = vmatprep.subr.bf16.mxu1 %v15497_v60  ;;  %v17164_v59 = vld [vmem:[%s17612_s27 + $0xc] ss:$20 sps:$4 sm:$0xff]  }
 0x1f0   : > { %v15546_v60 = vld [vmem:[%s17614_s4 + $0x14f0] ss:$148 sps:$4 sm:$0xff]  }
 0x1f2   : > { %9967 = vmatpush1.bf16.msra.mxu0 %v15492_v61  ;;  %10096 = vmatpush1.bf16.msra.mxu1 %v15495_v62  ;;  %v15549_v61 = vld [vmem:[%s17614_s4 + $0x14f8] ss:$148 sps:$4 sm:$0xff]   ;;  %v15554_v62 = vld [vmem:[%s17614_s4 + $0x161c] ss:$148 sps:$4 sm:$0xff]  }
 0x1f3   : > { %9968 = vmatprep.subr.bf16.mxu0 %v15500_v54  ;;  %10097 = vmatprep.subr.bf16.mxu1 %v15503_v63  ;;  %v15557_v54 = vld [vmem:[%s17614_s4 + $0x1624] ss:$148 sps:$4 sm:$0xff]  }
 0x1f4   : > { %v15552_v63 = vld [vmem:[%s17614_s4 + $0x1618] ss:$148 sps:$4 sm:$0xff]  }
 0x1f6   : > { %9969 = vmatpush1.bf16.msra.mxu0 %v15498_v0  ;;  %10098 = vmatpush1.bf16.msra.mxu1 %v15501_v1  ;;  %v15555_v0 = vld [vmem:[%s17614_s4 + $0x1620] ss:$148 sps:$4 sm:$0xff]   ;;  %v15560_v1 = vld [vmem:[%s17614_s4 + $0x1744] ss:$148 sps:$4 sm:$0xff]  }
 0x1f7   : > { %9970 = vmatprep.subr.bf16.mxu0 %v15506_v2  ;;  %10099 = vmatprep.subr.bf16.mxu1 %v15509_v3  ;;  %v15563_v2 = vld [vmem:[%s17614_s4 + $0x174c] ss:$148 sps:$4 sm:$0xff]  }
 0x1f8   : > { %v15558_v3 = vld [vmem:[%s17614_s4 + $0x1740] ss:$148 sps:$4 sm:$0xff]  }
 0x1fa   : > { %9971 = vmatpush1.bf16.msra.mxu0 %v15504_v4  ;;  %10100 = vmatpush1.bf16.msra.mxu1 %v15507_v5  ;;  %v15561_v4 = vld [vmem:[%s17614_s4 + $0x1748] ss:$148 sps:$4 sm:$0xff]   ;;  %v15566_v5 = vld [vmem:[%s17614_s4 + $0x186c] ss:$148 sps:$4 sm:$0xff]  }
 0x1fb   : > { %9972 = vmatprep.subr.bf16.mxu0 %v15512_v6  ;;  %10101 = vmatprep.subr.bf16.mxu1 %v15515_v7  ;;  %v15569_v6 = vld [vmem:[%s17614_s4 + $0x1874] ss:$148 sps:$4 sm:$0xff]  }
 0x1fc   : > { %v15564_v7 = vld [vmem:[%s17614_s4 + $0x1868] ss:$148 sps:$4 sm:$0xff]  }
 0x1fe   : > { %9973 = vmatpush1.bf16.msra.mxu0 %v15510_v8  ;;  %10102 = vmatpush1.bf16.msra.mxu1 %v15513_v9  ;;  %v15567_v8 = vld [vmem:[%s17614_s4 + $0x1870] ss:$148 sps:$4 sm:$0xff]   ;;  %v15572_v9 = vld [vmem:[%s17614_s4 + $0x1994] ss:$148 sps:$4 sm:$0xff]  }
 0x1ff   : > { %9974 = vmatprep.subr.bf16.mxu0 %v15518_v10  ;;  %10103 = vmatprep.subr.bf16.mxu1 %v15521_v11  ;;  %v15575_v10 = vld [vmem:[%s17614_s4 + $0x199c] ss:$148 sps:$4 sm:$0xff]  }
 0x200   : > { %v9552_v25 = vpop.f32.mrb[0].mxu0  ;;  %v9681_v26 = vpop.f32.mrb[0].mxu1  ;;  %v15570_v11 = vld [vmem:[%s17614_s4 + $0x1990] ss:$148 sps:$4 sm:$0xff]  }
 0x201   : > { %v11877_v27 = vadd.f32 %v9552_v25, %v366_v12  ;;  %v11879_v28 = vadd.f32 %v9681_v26, %v368_v13  ;;  %v9554_v29 = vpop.f32.mrb[1].mxu0  ;;  %v9683_v30 = vpop.f32.mrb[1].mxu1  ;;  %v15573_v12 = vld [vmem:[%s17614_s4 + $0x1998] ss:$148 sps:$4 sm:$0xff]   ;;  %v15578_v13 = vld [vmem:[%s17614_s4 + $0x1abc] ss:$148 sps:$4 sm:$0xff]  }
 0x202   : > { %v11878_v31 = vadd.f32 %v9554_v29, %v367_v16  ;;  %v11880_v32 = vadd.f32 %v9683_v30, %v369_v17  ;;  %v9556_v33 = vpop.f32.mrb[2].mxu0  ;;  %v9685_v34 = vpop.f32.mrb[2].mxu1  ;;  %9975 = vmatpush1.bf16.msra.mxu0 %v15516_v14  ;;  %10104 = vmatpush1.bf16.msra.mxu1 %v15519_v15  ;;  %v15581_v14 = vld [vmem:[%s17614_s4 + $0x1ac4] ss:$148 sps:$4 sm:$0xff]   ;;  %v15579_v16 = vld [vmem:[%s17614_s4 + $0x1ac0] ss:$148 sps:$4 sm:$0xff]  }
 0x203   : > { %11951 = vst [vmem:[%s21394_s3] sm:$0xff] %v11877_v27  ;;  %11953 = vst [vmem:[%s21394_s3 + $0x10] sm:$0xff] %v11879_v28  ;;  %v11914_v37 = vadd.f32 %v9556_v33, %v403_v18  ;;  %v11916_v38 = vadd.f32 %v9685_v34, %v405_v19  ;;  %v9558_v39 = vpop.f32.mrb[3].mxu0  ;;  %v9687_v40 = vpop.f32.mrb[3].mxu1  ;;  %9976 = vmatprep.subr.bf16.mxu0 %v15524_v23  ;;  %10105 = vmatprep.subr.bf16.mxu1 %v15527_v24  ;;  %v15576_v15 = vld [vmem:[%s17614_s4 + $0x1ab8] ss:$148 sps:$4 sm:$0xff]  }
 0x204   : > { %11952 = vst [vmem:[%s21394_s3 + $0x8] sm:$0xff] %v11878_v31  ;;  %11954 = vst [vmem:[%s21394_s3 + $0x18] sm:$0xff] %v11880_v32  ;;  %v11915_v43 = vadd.f32 %v9558_v39, %v404_v20  ;;  %v11917_v44 = vadd.f32 %v9687_v40, %v406_v21  ;;  %v15584_v17 = vld [vmem:[%s17614_s4 + $0x1be4] ss:$148 sps:$4 sm:$0xff]   ;;  %v15587_v18 = vld [vmem:[%s17614_s4 + $0x1bec] ss:$148 sps:$4 sm:$0xff]  }
 0x205   : > { %11988 = vst [vmem:[%s21394_s3 + $0x128] sm:$0xff] %v11914_v37  ;;  %11990 = vst [vmem:[%s21394_s3 + $0x138] sm:$0xff] %v11916_v38  ;;  %v15582_v19 = vld [vmem:[%s17614_s4 + $0x1be0] ss:$148 sps:$4 sm:$0xff]   ;;  %v15585_v20 = vld [vmem:[%s17614_s4 + $0x1be8] ss:$148 sps:$4 sm:$0xff]  }
 0x206   : > { %11989 = vst [vmem:[%s21394_s3 + $0x130] sm:$0xff] %v11915_v43  ;;  %11991 = vst [vmem:[%s21394_s3 + $0x140] sm:$0xff] %v11917_v44  ;;  %9977 = vmatpush1.bf16.msra.mxu0 %v15522_v35  ;;  %10106 = vmatpush1.bf16.msra.mxu1 %v15525_v36  ;;  %v15590_v21 = vld [vmem:[%s17614_s4 + $0x1d0c] ss:$148 sps:$4 sm:$0xff]   ;;  %v15593_v23 = vld [vmem:[%s17614_s4 + $0x1d14] ss:$148 sps:$4 sm:$0xff]  }
 0x207   : > { %9978 = vmatprep.subr.bf16.mxu0 %v15530_v41  ;;  %10107 = vmatprep.subr.bf16.mxu1 %v15533_v42  ;;  %v15588_v24 = vld [vmem:[%s17614_s4 + $0x1d08] ss:$148 sps:$4 sm:$0xff]   ;;  %v15591_v25 = vld [vmem:[%s17614_s4 + $0x1d10] ss:$148 sps:$4 sm:$0xff]   ;;  %v15597_v29 = vld [vmem:[%s17614_s4 + $0x1e38] ss:$148 sps:$4 sm:$0xff]  }
 0x208   : > { %v15596_v26 = vld [vmem:[%s17614_s4 + $0x1e34] ss:$148 sps:$4 sm:$0xff]   ;;  %v15599_v27 = vld [vmem:[%s17614_s4 + $0x1e3c] ss:$148 sps:$4 sm:$0xff]   ;;  %v15605_v31 = vld [vmem:[%s17614_s4 + $0x1f64] ss:$148 sps:$4 sm:$0xff]  }
 0x209   : > { %v15594_v28 = vld [vmem:[%s17614_s4 + $0x1e30] ss:$148 sps:$4 sm:$0xff]   ;;  %v15600_v32 = vld [vmem:[%s17614_s4 + $0x1f58] ss:$148 sps:$4 sm:$0xff]   ;;  %v15603_v33 = vld [vmem:[%s17614_s4 + $0x1f60] ss:$148 sps:$4 sm:$0xff]  }
 0x20a   : > { %9979 = vmatpush1.bf16.msra.mxu0 %v15528_v45  ;;  %10108 = vmatpush1.bf16.msra.mxu1 %v15531_v46  ;;  %v15602_v30 = vld [vmem:[%s17614_s4 + $0x1f5c] ss:$148 sps:$4 sm:$0xff]   ;;  %v15608_v34 = vld [vmem:[%s17614_s4 + $0x2084] ss:$148 sps:$4 sm:$0xff]   ;;  %v15611_v35 = vld [vmem:[%s17614_s4 + $0x208c] ss:$148 sps:$4 sm:$0xff]  }
 0x20b   : > { %9991 = vmatprep.subr.bf16.mxu0 %v15536_v47  ;;  %10120 = vmatprep.subr.bf16.mxu1 %v15539_v48  ;;  %v15606_v36 = vld [vmem:[%s17614_s4 + $0x2080] ss:$148 sps:$4 sm:$0xff]   ;;  %v15609_v37 = vld [vmem:[%s17614_s4 + $0x2088] ss:$148 sps:$4 sm:$0xff]   ;;  %v15615_v41 = vld [vmem:[%s17614_s4 + $0x21b0] ss:$148 sps:$4 sm:$0xff]  }
 0x20c   : > { %v15614_v38 = vld [vmem:[%s17614_s4 + $0x21ac] ss:$148 sps:$4 sm:$0xff]   ;;  %v15617_v39 = vld [vmem:[%s17614_s4 + $0x21b4] ss:$148 sps:$4 sm:$0xff]   ;;  %v15623_v43 = vld [vmem:[%s17614_s4 + $0x22dc] ss:$148 sps:$4 sm:$0xff]  }
 0x20d   : > { %9981 = vmatmul.mubr.bf16.vlgmr.msra.gmra.mrb[8].mxu0 %v17163_v53  ;;  %10110 = vmatmul.mubr.bf16.vlgmr.msra.gmra.mrb[8].mxu1 %v17163_v53  ;;  %v15612_v40 = vld [vmem:[%s17614_s4 + $0x21a8] ss:$148 sps:$4 sm:$0xff]   ;;  %v15618_v44 = vld [vmem:[%s17614_s4 + $0x22d0] ss:$148 sps:$4 sm:$0xff]   ;;  %v15621_v45 = vld [vmem:[%s17614_s4 + $0x22d8] ss:$148 sps:$4 sm:$0xff]  }
 0x20e   : > { %9992 = vmatpush1.bf16.msra.mxu0 %v15534_v49  ;;  %10121 = vmatpush1.bf16.msra.mxu1 %v15537_v50  ;;  %v15620_v42 = vld [vmem:[%s17614_s4 + $0x22d4] ss:$148 sps:$4 sm:$0xff]   ;;  %v15626_v46 = vld [vmem:[%s17614_s4 + $0x23fc] ss:$148 sps:$4 sm:$0xff]   ;;  %v15629_v47 = vld [vmem:[%s17614_s4 + $0x2404] ss:$148 sps:$4 sm:$0xff]  }
 0x20f   : > { %9993 = vmatprep.subr.bf16.mxu0 %v15542_v51  ;;  %10122 = vmatprep.subr.bf16.mxu1 %v15545_v52  ;;  %v15624_v48 = vld [vmem:[%s17614_s4 + $0x23f8] ss:$148 sps:$4 sm:$0xff]   ;;  %v15627_v49 = vld [vmem:[%s17614_s4 + $0x2400] ss:$148 sps:$4 sm:$0xff]   ;;  %v15633_v53 = vld [vmem:[%s17614_s4 + $0x2528] ss:$148 sps:$4 sm:$0xff]  }
 0x210   : > { %10023 = vmatprep.mubr.bf16.mxu0 %v17164_v59  ;;  %10152 = vmatprep.mubr.bf16.mxu1 %v17164_v59  ;;  %v15632_v50 = vld [vmem:[%s17614_s4 + $0x2524] ss:$148 sps:$4 sm:$0xff]   ;;  %v15635_v51 = vld [vmem:[%s17614_s4 + $0x252c] ss:$148 sps:$4 sm:$0xff]  }
 0x211   : > { %v15630_v52 = vld [vmem:[%s17614_s4 + $0x2520] ss:$148 sps:$4 sm:$0xff]   ;;  %v15639_v59 = vld [vmem:[%s17614_s4 + $0x2650] ss:$148 sps:$4 sm:$0xff]  }
 0x212   : > { %9994 = vmatpush1.bf16.msra.mxu0 %v15540_v55  ;;  %10123 = vmatpush1.bf16.msra.mxu1 %v15543_v56  ;;  %v15638_v55 = vld [vmem:[%s17614_s4 + $0x264c] ss:$148 sps:$4 sm:$0xff]   ;;  %v15641_v56 = vld [vmem:[%s17614_s4 + $0x2654] ss:$148 sps:$4 sm:$0xff]  }
 0x213   : > { %9995 = vmatprep.subr.bf16.mxu0 %v15548_v57  ;;  %10124 = vmatprep.subr.bf16.mxu1 %v15551_v58  ;;  %v17165_v57 = vld [vmem:[%s17612_s27 + $0x8] ss:$20 sps:$4 sm:$0xff]   ;;  %v15636_v58 = vld [vmem:[%s17614_s4 + $0x2648] ss:$148 sps:$4 sm:$0xff]  }
 0x216   : > { %9996 = vmatpush1.bf16.msra.mxu0 %v15546_v60  ;;  %10125 = vmatpush1.bf16.msra.mxu1 %v15549_v61  ;;  %v15644_v60 = vld [vmem:[%s17614_s4 + $0x2774] ss:$148 sps:$4 sm:$0xff]   ;;  %v15647_v61 = vld [vmem:[%s17614_s4 + $0x277c] ss:$148 sps:$4 sm:$0xff]  }
 0x217   : > { %9997 = vmatprep.subr.bf16.mxu0 %v15554_v62  ;;  %10126 = vmatprep.subr.bf16.mxu1 %v15557_v54  ;;  %v15642_v62 = vld [vmem:[%s17614_s4 + $0x2770] ss:$148 sps:$4 sm:$0xff]   ;;  %v15645_v54 = vld [vmem:[%s17614_s4 + $0x2778] ss:$148 sps:$4 sm:$0xff]  }
 0x21a   : > { %9998 = vmatpush1.bf16.msra.mxu0 %v15552_v63  ;;  %10127 = vmatpush1.bf16.msra.mxu1 %v15555_v0  ;;  %v15650_v63 = vld [vmem:[%s17614_s4 + $0x289c] ss:$148 sps:$4 sm:$0xff]   ;;  %v15653_v0 = vld [vmem:[%s17614_s4 + $0x28a4] ss:$148 sps:$4 sm:$0xff]  }
 0x21b   : > { %9999 = vmatprep.subr.bf16.mxu0 %v15560_v1  ;;  %10128 = vmatprep.subr.bf16.mxu1 %v15563_v2  ;;  %v15648_v1 = vld [vmem:[%s17614_s4 + $0x2898] ss:$148 sps:$4 sm:$0xff]   ;;  %v15651_v2 = vld [vmem:[%s17614_s4 + $0x28a0] ss:$148 sps:$4 sm:$0xff]  }
 0x21e   : > { %10000 = vmatpush1.bf16.msra.mxu0 %v15558_v3  ;;  %10129 = vmatpush1.bf16.msra.mxu1 %v15561_v4  ;;  %v15656_v3 = vld [vmem:[%s17614_s4 + $0x29c4] ss:$148 sps:$4 sm:$0xff]   ;;  %v15659_v4 = vld [vmem:[%s17614_s4 + $0x29cc] ss:$148 sps:$4 sm:$0xff]  }
 0x21f   : > { %10001 = vmatprep.subr.bf16.mxu0 %v15566_v5  ;;  %10130 = vmatprep.subr.bf16.mxu1 %v15569_v6  ;;  %v15654_v5 = vld [vmem:[%s17614_s4 + $0x29c0] ss:$148 sps:$4 sm:$0xff]   ;;  %v15657_v6 = vld [vmem:[%s17614_s4 + $0x29c8] ss:$148 sps:$4 sm:$0xff]  }
 0x222   : > { %10002 = vmatpush1.bf16.msra.mxu0 %v15564_v7  ;;  %10131 = vmatpush1.bf16.msra.mxu1 %v15567_v8  ;;  %v15662_v7 = vld [vmem:[%s17614_s4 + $0x2aec] ss:$148 sps:$4 sm:$0xff]   ;;  %v15665_v8 = vld [vmem:[%s17614_s4 + $0x2af4] ss:$148 sps:$4 sm:$0xff]  }
 0x223   : > { %10003 = vmatprep.subr.bf16.mxu0 %v15572_v9  ;;  %10132 = vmatprep.subr.bf16.mxu1 %v15575_v10  ;;  %v15660_v9 = vld [vmem:[%s17614_s4 + $0x2ae8] ss:$148 sps:$4 sm:$0xff]   ;;  %v15663_v10 = vld [vmem:[%s17614_s4 + $0x2af0] ss:$148 sps:$4 sm:$0xff]  }
 0x226   : > { %10004 = vmatpush1.bf16.msra.mxu0 %v15570_v11  ;;  %10133 = vmatpush1.bf16.msra.mxu1 %v15573_v12  ;;  %v15668_v11 = vld [vmem:[%s17614_s4 + $0x2c14] ss:$148 sps:$4 sm:$0xff]   ;;  %v15671_v12 = vld [vmem:[%s17614_s4 + $0x2c1c] ss:$148 sps:$4 sm:$0xff]  }
 0x227   : > { %10005 = vmatprep.subr.bf16.mxu0 %v15578_v13  ;;  %10134 = vmatprep.subr.bf16.mxu1 %v15581_v14  ;;  %v15666_v13 = vld [vmem:[%s17614_s4 + $0x2c10] ss:$148 sps:$4 sm:$0xff]   ;;  %v15669_v14 = vld [vmem:[%s17614_s4 + $0x2c18] ss:$148 sps:$4 sm:$0xff]  }
 0x22a   : > { %10006 = vmatpush1.bf16.msra.mxu0 %v15576_v15  ;;  %10135 = vmatpush1.bf16.msra.mxu1 %v15579_v16  ;;  %v15674_v15 = vld [vmem:[%s17614_s4 + $0x2d3c] ss:$148 sps:$4 sm:$0xff]   ;;  %v15677_v16 = vld [vmem:[%s17614_s4 + $0x2d44] ss:$148 sps:$4 sm:$0xff]  }
 0x22b   : > { %10007 = vmatprep.subr.bf16.mxu0 %v15584_v17  ;;  %10136 = vmatprep.subr.bf16.mxu1 %v15587_v18  ;;  %v15672_v17 = vld [vmem:[%s17614_s4 + $0x2d38] ss:$148 sps:$4 sm:$0xff]   ;;  %v15675_v18 = vld [vmem:[%s17614_s4 + $0x2d40] ss:$148 sps:$4 sm:$0xff]  }
 0x22e   : > { %10008 = vmatpush1.bf16.msra.mxu0 %v15582_v19  ;;  %10137 = vmatpush1.bf16.msra.mxu1 %v15585_v20  ;;  %v15680_v19 = vld [vmem:[%s17614_s4 + $0x34] ss:$148 sps:$4 sm:$0xff]   ;;  %v15683_v20 = vld [vmem:[%s17614_s4 + $0x3c] ss:$148 sps:$4 sm:$0xff]  }
 0x22f   : > { %10009 = vmatprep.subr.bf16.mxu0 %v15590_v21  ;;  %10138 = vmatprep.subr.bf16.mxu1 %v15593_v23  ;;  %v15678_v21 = vld [vmem:[%s17614_s4 + $0x30] ss:$148 sps:$4 sm:$0xff]   ;;  %v15681_v23 = vld [vmem:[%s17614_s4 + $0x38] ss:$148 sps:$4 sm:$0xff]  }
 0x232   : > { %10010 = vmatpush1.bf16.msra.mxu0 %v15588_v24  ;;  %10139 = vmatpush1.bf16.msra.mxu1 %v15591_v25  ;;  %v15686_v24 = vld [vmem:[%s17614_s4 + $0x15c] ss:$148 sps:$4 sm:$0xff]   ;;  %v15689_v25 = vld [vmem:[%s17614_s4 + $0x164] ss:$148 sps:$4 sm:$0xff]  }
 0x233   : > { %10011 = vmatprep.subr.bf16.mxu0 %v15596_v26  ;;  %10140 = vmatprep.subr.bf16.mxu1 %v15599_v27  ;;  %v17166_v26 = vld [vmem:[%s17612_s27 + $0x10] ss:$20 sps:$4 sm:$0xff]   ;;  %v15684_v27 = vld [vmem:[%s17614_s4 + $0x158] ss:$148 sps:$4 sm:$0xff]  }
 0x236   : > { %10012 = vmatpush1.bf16.msra.mxu0 %v15594_v28  ;;  %10141 = vmatpush1.bf16.msra.mxu1 %v15597_v29  ;;  %v15687_v28 = vld [vmem:[%s17614_s4 + $0x160] ss:$148 sps:$4 sm:$0xff]   ;;  %v15692_v29 = vld [vmem:[%s17614_s4 + $0x284] ss:$148 sps:$4 sm:$0xff]  }
 0x237   : > { %10013 = vmatprep.subr.bf16.mxu0 %v15602_v30  ;;  %10142 = vmatprep.subr.bf16.mxu1 %v15605_v31  ;;  %v15695_v30 = vld [vmem:[%s17614_s4 + $0x28c] ss:$148 sps:$4 sm:$0xff]   ;;  %v17167_v31 = vld [vmem:[%s17612_s27 + $0x4] ss:$20 sps:$4 sm:$0xff]  }
 0x23a   : > { %10014 = vmatpush1.bf16.msra.mxu0 %v15600_v32  ;;  %10143 = vmatpush1.bf16.msra.mxu1 %v15603_v33  ;;  %v15690_v32 = vld [vmem:[%s17614_s4 + $0x280] ss:$148 sps:$4 sm:$0xff]   ;;  %v15693_v33 = vld [vmem:[%s17614_s4 + $0x288] ss:$148 sps:$4 sm:$0xff]  }
 0x23b   : > { %10015 = vmatprep.subr.bf16.mxu0 %v15608_v34  ;;  %10144 = vmatprep.subr.bf16.mxu1 %v15611_v35  ;;  %v15698_v34 = vld [vmem:[%s17614_s4 + $0x3ac] ss:$148 sps:$4 sm:$0xff]   ;;  %v15701_v35 = vld [vmem:[%s17614_s4 + $0x3b4] ss:$148 sps:$4 sm:$0xff]  }
 0x23e   : > { %10016 = vmatpush1.bf16.msra.mxu0 %v15606_v36  ;;  %10145 = vmatpush1.bf16.msra.mxu1 %v15609_v37  ;;  %v15696_v36 = vld [vmem:[%s17614_s4 + $0x3a8] ss:$148 sps:$4 sm:$0xff]   ;;  %v15699_v37 = vld [vmem:[%s17614_s4 + $0x3b0] ss:$148 sps:$4 sm:$0xff]  }
 0x23f   : > { %10017 = vmatprep.subr.bf16.mxu0 %v15614_v38  ;;  %10146 = vmatprep.subr.bf16.mxu1 %v15617_v39  ;;  %v15704_v38 = vld [vmem:[%s17614_s4 + $0x4d4] ss:$148 sps:$4 sm:$0xff]   ;;  %v15707_v39 = vld [vmem:[%s17614_s4 + $0x4dc] ss:$148 sps:$4 sm:$0xff]  }
 0x242   : > { %10018 = vmatpush1.bf16.msra.mxu0 %v15612_v40  ;;  %10147 = vmatpush1.bf16.msra.mxu1 %v15615_v41  ;;  %v15702_v40 = vld [vmem:[%s17614_s4 + $0x4d0] ss:$148 sps:$4 sm:$0xff]   ;;  %v15705_v41 = vld [vmem:[%s17614_s4 + $0x4d8] ss:$148 sps:$4 sm:$0xff]  }
 0x243   : > { %10019 = vmatprep.subr.bf16.mxu0 %v15620_v42  ;;  %10148 = vmatprep.subr.bf16.mxu1 %v15623_v43  ;;  %v15710_v42 = vld [vmem:[%s17614_s4 + $0x5fc] ss:$148 sps:$4 sm:$0xff]   ;;  %v15713_v43 = vld [vmem:[%s17614_s4 + $0x604] ss:$148 sps:$4 sm:$0xff]  }
 0x246   : > { %10020 = vmatpush1.bf16.msra.mxu0 %v15618_v44  ;;  %10149 = vmatpush1.bf16.msra.mxu1 %v15621_v45  ;;  %v15708_v44 = vld [vmem:[%s17614_s4 + $0x5f8] ss:$148 sps:$4 sm:$0xff]   ;;  %v15711_v45 = vld [vmem:[%s17614_s4 + $0x600] ss:$148 sps:$4 sm:$0xff]  }
 0x247   : > { %10021 = vmatprep.subr.bf16.mxu0 %v15626_v46  ;;  %10150 = vmatprep.subr.bf16.mxu1 %v15629_v47  ;;  %v15716_v46 = vld [vmem:[%s17614_s4 + $0x724] ss:$148 sps:$4 sm:$0xff]   ;;  %v15719_v47 = vld [vmem:[%s17614_s4 + $0x72c] ss:$148 sps:$4 sm:$0xff]  }
 0x24a   : > { %10022 = vmatpush1.bf16.msra.mxu0 %v15624_v48  ;;  %10151 = vmatpush1.bf16.msra.mxu1 %v15627_v49  ;;  %v15714_v48 = vld [vmem:[%s17614_s4 + $0x720] ss:$148 sps:$4 sm:$0xff]   ;;  %v15717_v49 = vld [vmem:[%s17614_s4 + $0x728] ss:$148 sps:$4 sm:$0xff]  }
 0x24b   : > { %10034 = vmatprep.subr.bf16.mxu0 %v15632_v50  ;;  %10163 = vmatprep.subr.bf16.mxu1 %v15635_v51  ;;  %v15722_v50 = vld [vmem:[%s17614_s4 + $0x84c] ss:$148 sps:$4 sm:$0xff]   ;;  %v15725_v51 = vld [vmem:[%s17614_s4 + $0x854] ss:$148 sps:$4 sm:$0xff]  }
 0x24d   : > { %10024 = vmatmul.mubr.bf16.vlgmr.msra.gmra.mrb[8].mxu0 %v17165_v57  ;;  %10153 = vmatmul.mubr.bf16.vlgmr.msra.gmra.mrb[8].mxu1 %v17165_v57  ;;  %v15726_v57 = vld [vmem:[%s17614_s4 + $0x970] ss:$148 sps:$4 sm:$0xff]  }
 0x24e   : > { %10035 = vmatpush1.bf16.msra.mxu0 %v15630_v52  ;;  %10164 = vmatpush1.bf16.msra.mxu1 %v15633_v53  ;;  %v15720_v52 = vld [vmem:[%s17614_s4 + $0x848] ss:$148 sps:$4 sm:$0xff]   ;;  %v15723_v53 = vld [vmem:[%s17614_s4 + $0x850] ss:$148 sps:$4 sm:$0xff]  }
 0x24f   : > { %10036 = vmatprep.subr.bf16.mxu0 %v15638_v55  ;;  %10165 = vmatprep.subr.bf16.mxu1 %v15641_v56  ;;  %v15728_v55 = vld [vmem:[%s17614_s4 + $0x974] ss:$148 sps:$4 sm:$0xff]   ;;  %v15731_v56 = vld [vmem:[%s17614_s4 + $0x97c] ss:$148 sps:$4 sm:$0xff]  }
 0x250   : > { %10066 = vmatprep.mubr.bf16.mxu0 %v17459_v22  ;;  %10195 = vmatprep.mubr.bf16.mxu1 %v17459_v22 }
 0x252   : > { %10037 = vmatpush1.bf16.msra.mxu0 %v15636_v58  ;;  %10166 = vmatpush1.bf16.msra.mxu1 %v15639_v59  ;;  %v15729_v58 = vld [vmem:[%s17614_s4 + $0x978] ss:$148 sps:$4 sm:$0xff]   ;;  %v15734_v59 = vld [vmem:[%s17614_s4 + $0xa9c] ss:$148 sps:$4 sm:$0xff]  }
 0x253   : > { %10038 = vmatprep.subr.bf16.mxu0 %v15644_v60  ;;  %10167 = vmatprep.subr.bf16.mxu1 %v15647_v61  ;;  %v15737_v60 = vld [vmem:[%s17614_s4 + $0xaa4] ss:$148 sps:$4 sm:$0xff]  }
 0x254   : > { %v15732_v61 = vld [vmem:[%s17614_s4 + $0xa98] ss:$148 sps:$4 sm:$0xff]  }
 0x256   : > { %10039 = vmatpush1.bf16.msra.mxu0 %v15642_v62  ;;  %10168 = vmatpush1.bf16.msra.mxu1 %v15645_v54  ;;  %v15735_v62 = vld [vmem:[%s17614_s4 + $0xaa0] ss:$148 sps:$4 sm:$0xff]   ;;  %v15740_v54 = vld [vmem:[%s17614_s4 + $0xbc4] ss:$148 sps:$4 sm:$0xff]  }
 0x257   : > { %10040 = vmatprep.subr.bf16.mxu0 %v15650_v63  ;;  %10169 = vmatprep.subr.bf16.mxu1 %v15653_v0  ;;  %v15743_v63 = vld [vmem:[%s17614_s4 + $0xbcc] ss:$148 sps:$4 sm:$0xff]  }
 0x258   : > { %v15738_v0 = vld [vmem:[%s17614_s4 + $0xbc0] ss:$148 sps:$4 sm:$0xff]  }
 0x25a   : > { %10041 = vmatpush1.bf16.msra.mxu0 %v15648_v1  ;;  %10170 = vmatpush1.bf16.msra.mxu1 %v15651_v2  ;;  %v15741_v1 = vld [vmem:[%s17614_s4 + $0xbc8] ss:$148 sps:$4 sm:$0xff]   ;;  %v15746_v2 = vld [vmem:[%s17614_s4 + $0xcec] ss:$148 sps:$4 sm:$0xff]  }
 0x25b   : > { %10042 = vmatprep.subr.bf16.mxu0 %v15656_v3  ;;  %10171 = vmatprep.subr.bf16.mxu1 %v15659_v4  ;;  %v15749_v3 = vld [vmem:[%s17614_s4 + $0xcf4] ss:$148 sps:$4 sm:$0xff]  }
 0x25c   : > { %v15744_v4 = vld [vmem:[%s17614_s4 + $0xce8] ss:$148 sps:$4 sm:$0xff]  }
 0x25e   : > { %10043 = vmatpush1.bf16.msra.mxu0 %v15654_v5  ;;  %10172 = vmatpush1.bf16.msra.mxu1 %v15657_v6  ;;  %v15747_v5 = vld [vmem:[%s17614_s4 + $0xcf0] ss:$148 sps:$4 sm:$0xff]   ;;  %v15752_v6 = vld [vmem:[%s17614_s4 + $0xe14] ss:$148 sps:$4 sm:$0xff]  }
 0x25f   : > { %10044 = vmatprep.subr.bf16.mxu0 %v15662_v7  ;;  %10173 = vmatprep.subr.bf16.mxu1 %v15665_v8  ;;  %v15755_v7 = vld [vmem:[%s17614_s4 + $0xe1c] ss:$148 sps:$4 sm:$0xff]  }
 0x260   : > { %v15750_v8 = vld [vmem:[%s17614_s4 + $0xe10] ss:$148 sps:$4 sm:$0xff]  }
 0x262   : > { %10045 = vmatpush1.bf16.msra.mxu0 %v15660_v9  ;;  %10174 = vmatpush1.bf16.msra.mxu1 %v15663_v10  ;;  %v15753_v9 = vld [vmem:[%s17614_s4 + $0xe18] ss:$148 sps:$4 sm:$0xff]   ;;  %v15758_v10 = vld [vmem:[%s17614_s4 + $0xf3c] ss:$148 sps:$4 sm:$0xff]  }
 0x263   : > { %10046 = vmatprep.subr.bf16.mxu0 %v15668_v11  ;;  %10175 = vmatprep.subr.bf16.mxu1 %v15671_v12  ;;  %v15761_v11 = vld [vmem:[%s17614_s4 + $0xf44] ss:$148 sps:$4 sm:$0xff]   ;;  %v370_v12 = vld [vmem:[%s21394_s3 + $0x20] sm:$0xff] }
 0x266   : > { %10047 = vmatpush1.bf16.msra.mxu0 %v15666_v13  ;;  %10176 = vmatpush1.bf16.msra.mxu1 %v15669_v14  ;;  %v372_v13 = vld [vmem:[%s21394_s3 + $0x30] sm:$0xff]  ;;  %v15756_v14 = vld [vmem:[%s17614_s4 + $0xf38] ss:$148 sps:$4 sm:$0xff]  }
 0x267   : > { %10048 = vmatprep.subr.bf16.mxu0 %v15674_v15  ;;  %10177 = vmatprep.subr.bf16.mxu1 %v15677_v16  ;;  %v15759_v15 = vld [vmem:[%s17614_s4 + $0xf40] ss:$148 sps:$4 sm:$0xff]   ;;  %v371_v16 = vld [vmem:[%s21394_s3 + $0x28] sm:$0xff] }
 0x26a   : > { %10049 = vmatpush1.bf16.msra.mxu0 %v15672_v17  ;;  %10178 = vmatpush1.bf16.msra.mxu1 %v15675_v18  ;;  %v373_v17 = vld [vmem:[%s21394_s3 + $0x38] sm:$0xff]  ;;  %v407_v18 = vld [vmem:[%s21394_s3 + $0x148] sm:$0xff] }
 0x26b   : > { %10206 = vmatprep.subr.bf16.mxu0 %v15680_v19  ;;  %10335 = vmatprep.subr.bf16.mxu1 %v15683_v20  ;;  %v409_v19 = vld [vmem:[%s21394_s3 + $0x158] sm:$0xff]  ;;  %v408_v20 = vld [vmem:[%s21394_s3 + $0x150] sm:$0xff] }
 0x26d   : > { %10067 = vmatmul.mubr.bf16.vlgmr.msra.gmra.mrb[8].mxu0 %v17166_v26  ;;  %10196 = vmatmul.mubr.bf16.vlgmr.msra.gmra.mrb[8].mxu1 %v17166_v26 }
 0x26e   : > { %10207 = vmatpush1.bf16.msra.mxu0 %v15678_v21  ;;  %10336 = vmatpush1.bf16.msra.mxu1 %v15681_v23  ;;  %v410_v21 = vld [vmem:[%s21394_s3 + $0x160] sm:$0xff]  ;;  %v15764_v23 = vld [vmem:[%s17614_s4 + $0x1064] ss:$148 sps:$4 sm:$0xff]  }
 0x26f   : > { %10208 = vmatprep.subr.bf16.mxu0 %v15686_v24  ;;  %10337 = vmatprep.subr.bf16.mxu1 %v15689_v25  ;;  %v15767_v24 = vld [vmem:[%s17614_s4 + $0x106c] ss:$148 sps:$4 sm:$0xff]  }
 0x270   : > { %10238 = vmatprep.mubr.bf16.mxu0 %v17167_v31  ;;  %10367 = vmatprep.mubr.bf16.mxu1 %v17167_v31 }
 0x272   : > { %10209 = vmatpush1.bf16.msra.mxu0 %v15684_v27  ;;  %10338 = vmatpush1.bf16.msra.mxu1 %v15687_v28 }
 0x273   : > { %10210 = vmatprep.subr.bf16.mxu0 %v15692_v29  ;;  %10339 = vmatprep.subr.bf16.mxu1 %v15695_v30 }
 0x276   : > { %10211 = vmatpush1.bf16.msra.mxu0 %v15690_v32  ;;  %10340 = vmatpush1.bf16.msra.mxu1 %v15693_v33 }
 0x277   : > { %10212 = vmatprep.subr.bf16.mxu0 %v15698_v34  ;;  %10341 = vmatprep.subr.bf16.mxu1 %v15701_v35  ;;  %v15762_v35 = vld [vmem:[%s17614_s4 + $0x1060] ss:$148 sps:$4 sm:$0xff]  }
 0x27a   : > { %10213 = vmatpush1.bf16.msra.mxu0 %v15696_v36  ;;  %10342 = vmatpush1.bf16.msra.mxu1 %v15699_v37  ;;  %v15765_v36 = vld [vmem:[%s17614_s4 + $0x1068] ss:$148 sps:$4 sm:$0xff]  }
 0x27b   : > { %10214 = vmatprep.subr.bf16.mxu0 %v15704_v38  ;;  %10343 = vmatprep.subr.bf16.mxu1 %v15707_v39 }
 0x27e   : > { %10215 = vmatpush1.bf16.msra.mxu0 %v15702_v40  ;;  %10344 = vmatpush1.bf16.msra.mxu1 %v15705_v41  ;;  %v15770_v41 = vld [vmem:[%s17614_s4 + $0x118c] ss:$148 sps:$4 sm:$0xff]  }
 0x27f   : > { %10216 = vmatprep.subr.bf16.mxu0 %v15710_v42  ;;  %10345 = vmatprep.subr.bf16.mxu1 %v15713_v43  ;;  %v15773_v42 = vld [vmem:[%s17614_s4 + $0x1194] ss:$148 sps:$4 sm:$0xff]  }
 0x282   : > { %10217 = vmatpush1.bf16.msra.mxu0 %v15708_v44  ;;  %10346 = vmatpush1.bf16.msra.mxu1 %v15711_v45  ;;  %v15768_v45 = vld [vmem:[%s17614_s4 + $0x1188] ss:$148 sps:$4 sm:$0xff]  }
 0x283   : > { %10218 = vmatprep.subr.bf16.mxu0 %v15716_v46  ;;  %10347 = vmatprep.subr.bf16.mxu1 %v15719_v47  ;;  %v15771_v46 = vld [vmem:[%s17614_s4 + $0x1190] ss:$148 sps:$4 sm:$0xff]   ;;  %v15776_v47 = vld [vmem:[%s17614_s4 + $0x12b4] ss:$148 sps:$4 sm:$0xff]  }
 0x286   : > { %10219 = vmatpush1.bf16.msra.mxu0 %v15714_v48  ;;  %10348 = vmatpush1.bf16.msra.mxu1 %v15717_v49  ;;  %v15779_v48 = vld [vmem:[%s17614_s4 + $0x12bc] ss:$148 sps:$4 sm:$0xff]  }
 0x287   : > { %10220 = vmatprep.subr.bf16.mxu0 %v15722_v50  ;;  %10349 = vmatprep.subr.bf16.mxu1 %v15725_v51  ;;  %v15774_v49 = vld [vmem:[%s17614_s4 + $0x12b0] ss:$148 sps:$4 sm:$0xff]   ;;  %v15777_v50 = vld [vmem:[%s17614_s4 + $0x12b8] ss:$148 sps:$4 sm:$0xff]  }
 0x288   : > { %v15782_v51 = vld [vmem:[%s17614_s4 + $0x13dc] ss:$148 sps:$4 sm:$0xff]  }
 0x28a   : > { %10221 = vmatpush1.bf16.msra.mxu0 %v15720_v52  ;;  %10350 = vmatpush1.bf16.msra.mxu1 %v15723_v53  ;;  %v15785_v52 = vld [vmem:[%s17614_s4 + $0x13e4] ss:$148 sps:$4 sm:$0xff]  }
 0x28b   : > { %10222 = vmatprep.subr.bf16.mxu0 %v15728_v55  ;;  %10351 = vmatprep.subr.bf16.mxu1 %v15731_v56  ;;  %v17168_v53 = vld [vmem:[%s17612_s27] ss:$20 sps:$4 sm:$0xff]   ;;  %v15783_v56 = vld [vmem:[%s17614_s4 + $0x13e0] ss:$148 sps:$4 sm:$0xff]  }
 0x28c   : > { %v15780_v55 = vld [vmem:[%s17614_s4 + $0x13d8] ss:$148 sps:$4 sm:$0xff]  }
 0x28e   : > { %10223 = vmatpush1.bf16.msra.mxu0 %v15726_v57  ;;  %10352 = vmatpush1.bf16.msra.mxu1 %v15729_v58  ;;  %v15788_v57 = vld [vmem:[%s17614_s4 + $0x1504] ss:$148 sps:$4 sm:$0xff]   ;;  %v15791_v58 = vld [vmem:[%s17614_s4 + $0x150c] ss:$148 sps:$4 sm:$0xff]  }
 0x28f   : > { %10224 = vmatprep.subr.bf16.mxu0 %v15734_v59  ;;  %10353 = vmatprep.subr.bf16.mxu1 %v15737_v60  ;;  %v17169_v59 = vld [vmem:[%s17612_s27 + $0xc] ss:$20 sps:$4 sm:$0xff]   ;;  %v15786_v60 = vld [vmem:[%s17614_s4 + $0x1500] ss:$148 sps:$4 sm:$0xff]  }
 0x292   : > { %10225 = vmatpush1.bf16.msra.mxu0 %v15732_v61  ;;  %10354 = vmatpush1.bf16.msra.mxu1 %v15735_v62  ;;  %v15789_v61 = vld [vmem:[%s17614_s4 + $0x1508] ss:$148 sps:$4 sm:$0xff]   ;;  %v15794_v62 = vld [vmem:[%s17614_s4 + $0x162c] ss:$148 sps:$4 sm:$0xff]  }
 0x293   : > { %10226 = vmatprep.subr.bf16.mxu0 %v15740_v54  ;;  %10355 = vmatprep.subr.bf16.mxu1 %v15743_v63  ;;  %v15797_v54 = vld [vmem:[%s17614_s4 + $0x1634] ss:$148 sps:$4 sm:$0xff]  }
 0x294   : > { %v15792_v63 = vld [vmem:[%s17614_s4 + $0x1628] ss:$148 sps:$4 sm:$0xff]  }
 0x296   : > { %10227 = vmatpush1.bf16.msra.mxu0 %v15738_v0  ;;  %10356 = vmatpush1.bf16.msra.mxu1 %v15741_v1  ;;  %v15795_v0 = vld [vmem:[%s17614_s4 + $0x1630] ss:$148 sps:$4 sm:$0xff]   ;;  %v15800_v1 = vld [vmem:[%s17614_s4 + $0x1754] ss:$148 sps:$4 sm:$0xff]  }
 0x297   : > { %10228 = vmatprep.subr.bf16.mxu0 %v15746_v2  ;;  %10357 = vmatprep.subr.bf16.mxu1 %v15749_v3  ;;  %v15803_v2 = vld [vmem:[%s17614_s4 + $0x175c] ss:$148 sps:$4 sm:$0xff]  }
 0x298   : > { %v15798_v3 = vld [vmem:[%s17614_s4 + $0x1750] ss:$148 sps:$4 sm:$0xff]  }
 0x29a   : > { %10229 = vmatpush1.bf16.msra.mxu0 %v15744_v4  ;;  %10358 = vmatpush1.bf16.msra.mxu1 %v15747_v5  ;;  %v15801_v4 = vld [vmem:[%s17614_s4 + $0x1758] ss:$148 sps:$4 sm:$0xff]   ;;  %v15806_v5 = vld [vmem:[%s17614_s4 + $0x187c] ss:$148 sps:$4 sm:$0xff]  }
 0x29b   : > { %10230 = vmatprep.subr.bf16.mxu0 %v15752_v6  ;;  %10359 = vmatprep.subr.bf16.mxu1 %v15755_v7  ;;  %v15809_v6 = vld [vmem:[%s17614_s4 + $0x1884] ss:$148 sps:$4 sm:$0xff]  }
 0x29c   : > { %v15804_v7 = vld [vmem:[%s17614_s4 + $0x1878] ss:$148 sps:$4 sm:$0xff]  }
 0x29e   : > { %10231 = vmatpush1.bf16.msra.mxu0 %v15750_v8  ;;  %10360 = vmatpush1.bf16.msra.mxu1 %v15753_v9  ;;  %v15807_v8 = vld [vmem:[%s17614_s4 + $0x1880] ss:$148 sps:$4 sm:$0xff]   ;;  %v15812_v9 = vld [vmem:[%s17614_s4 + $0x19a4] ss:$148 sps:$4 sm:$0xff]  }
 0x29f   : > { %10232 = vmatprep.subr.bf16.mxu0 %v15758_v10  ;;  %10361 = vmatprep.subr.bf16.mxu1 %v15761_v11  ;;  %v15815_v10 = vld [vmem:[%s17614_s4 + $0x19ac] ss:$148 sps:$4 sm:$0xff]  }
 0x2a0   : > { %v9810_v25 = vpop.f32.mrb[4].mxu0  ;;  %v9939_v26 = vpop.f32.mrb[4].mxu1  ;;  %v15810_v11 = vld [vmem:[%s17614_s4 + $0x19a0] ss:$148 sps:$4 sm:$0xff]  }
 0x2a1   : > { %v11881_v27 = vadd.f32 %v9810_v25, %v370_v12  ;;  %v11883_v28 = vadd.f32 %v9939_v26, %v372_v13  ;;  %v9812_v29 = vpop.f32.mrb[5].mxu0  ;;  %v9941_v30 = vpop.f32.mrb[5].mxu1  ;;  %v15813_v12 = vld [vmem:[%s17614_s4 + $0x19a8] ss:$148 sps:$4 sm:$0xff]   ;;  %v15818_v13 = vld [vmem:[%s17614_s4 + $0x1acc] ss:$148 sps:$4 sm:$0xff]  }
 0x2a2   : > { %v11882_v31 = vadd.f32 %v9812_v29, %v371_v16  ;;  %v11884_v32 = vadd.f32 %v9941_v30, %v373_v17  ;;  %v9814_v33 = vpop.f32.mrb[6].mxu0  ;;  %v9943_v34 = vpop.f32.mrb[6].mxu1  ;;  %10233 = vmatpush1.bf16.msra.mxu0 %v15756_v14  ;;  %10362 = vmatpush1.bf16.msra.mxu1 %v15759_v15  ;;  %v15821_v14 = vld [vmem:[%s17614_s4 + $0x1ad4] ss:$148 sps:$4 sm:$0xff]   ;;  %v15819_v16 = vld [vmem:[%s17614_s4 + $0x1ad0] ss:$148 sps:$4 sm:$0xff]  }
 0x2a3   : > { %11955 = vst [vmem:[%s21394_s3 + $0x20] sm:$0xff] %v11881_v27  ;;  %11957 = vst [vmem:[%s21394_s3 + $0x30] sm:$0xff] %v11883_v28  ;;  %v11918_v37 = vadd.f32 %v9814_v33, %v407_v18  ;;  %v11920_v38 = vadd.f32 %v9943_v34, %v409_v19  ;;  %v9816_v39 = vpop.f32.mrb[7].mxu0  ;;  %v9945_v40 = vpop.f32.mrb[7].mxu1  ;;  %10234 = vmatprep.subr.bf16.mxu0 %v15764_v23  ;;  %10363 = vmatprep.subr.bf16.mxu1 %v15767_v24  ;;  %v15816_v15 = vld [vmem:[%s17614_s4 + $0x1ac8] ss:$148 sps:$4 sm:$0xff]  }
 0x2a4   : > { %11956 = vst [vmem:[%s21394_s3 + $0x28] sm:$0xff] %v11882_v31  ;;  %11958 = vst [vmem:[%s21394_s3 + $0x38] sm:$0xff] %v11884_v32  ;;  %v11919_v43 = vadd.f32 %v9816_v39, %v408_v20  ;;  %v11921_v44 = vadd.f32 %v9945_v40, %v410_v21  ;;  %v15824_v17 = vld [vmem:[%s17614_s4 + $0x1bf4] ss:$148 sps:$4 sm:$0xff]   ;;  %v15827_v18 = vld [vmem:[%s17614_s4 + $0x1bfc] ss:$148 sps:$4 sm:$0xff]  }
 0x2a5   : > { %11992 = vst [vmem:[%s21394_s3 + $0x148] sm:$0xff] %v11918_v37  ;;  %11994 = vst [vmem:[%s21394_s3 + $0x158] sm:$0xff] %v11920_v38  ;;  %v15822_v19 = vld [vmem:[%s17614_s4 + $0x1bf0] ss:$148 sps:$4 sm:$0xff]   ;;  %v15825_v20 = vld [vmem:[%s17614_s4 + $0x1bf8] ss:$148 sps:$4 sm:$0xff]  }
 0x2a6   : > { %11993 = vst [vmem:[%s21394_s3 + $0x150] sm:$0xff] %v11919_v43  ;;  %11995 = vst [vmem:[%s21394_s3 + $0x160] sm:$0xff] %v11921_v44  ;;  %10235 = vmatpush1.bf16.msra.mxu0 %v15762_v35  ;;  %10364 = vmatpush1.bf16.msra.mxu1 %v15765_v36  ;;  %v15830_v21 = vld [vmem:[%s17614_s4 + $0x1d1c] ss:$148 sps:$4 sm:$0xff]   ;;  %v15833_v23 = vld [vmem:[%s17614_s4 + $0x1d24] ss:$148 sps:$4 sm:$0xff]  }
 0x2a7   : > { %10236 = vmatprep.subr.bf16.mxu0 %v15770_v41  ;;  %10365 = vmatprep.subr.bf16.mxu1 %v15773_v42  ;;  %v15828_v24 = vld [vmem:[%s17614_s4 + $0x1d18] ss:$148 sps:$4 sm:$0xff]   ;;  %v15831_v25 = vld [vmem:[%s17614_s4 + $0x1d20] ss:$148 sps:$4 sm:$0xff]   ;;  %v15837_v29 = vld [vmem:[%s17614_s4 + $0x1e48] ss:$148 sps:$4 sm:$0xff]  }
 0x2a8   : > { %v15836_v26 = vld [vmem:[%s17614_s4 + $0x1e44] ss:$148 sps:$4 sm:$0xff]   ;;  %v15839_v27 = vld [vmem:[%s17614_s4 + $0x1e4c] ss:$148 sps:$4 sm:$0xff]   ;;  %v15845_v31 = vld [vmem:[%s17614_s4 + $0x1f74] ss:$148 sps:$4 sm:$0xff]  }
 0x2a9   : > { %v15834_v28 = vld [vmem:[%s17614_s4 + $0x1e40] ss:$148 sps:$4 sm:$0xff]   ;;  %v15840_v32 = vld [vmem:[%s17614_s4 + $0x1f68] ss:$148 sps:$4 sm:$0xff]   ;;  %v15843_v33 = vld [vmem:[%s17614_s4 + $0x1f70] ss:$148 sps:$4 sm:$0xff]  }
 0x2aa   : > { %10237 = vmatpush1.bf16.msra.mxu0 %v15768_v45  ;;  %10366 = vmatpush1.bf16.msra.mxu1 %v15771_v46  ;;  %v15842_v30 = vld [vmem:[%s17614_s4 + $0x1f6c] ss:$148 sps:$4 sm:$0xff]   ;;  %v15848_v34 = vld [vmem:[%s17614_s4 + $0x2094] ss:$148 sps:$4 sm:$0xff]   ;;  %v15851_v35 = vld [vmem:[%s17614_s4 + $0x209c] ss:$148 sps:$4 sm:$0xff]  }
 0x2ab   : > { %10249 = vmatprep.subr.bf16.mxu0 %v15776_v47  ;;  %10378 = vmatprep.subr.bf16.mxu1 %v15779_v48  ;;  %v15846_v36 = vld [vmem:[%s17614_s4 + $0x2090] ss:$148 sps:$4 sm:$0xff]   ;;  %v15849_v37 = vld [vmem:[%s17614_s4 + $0x2098] ss:$148 sps:$4 sm:$0xff]   ;;  %v15855_v41 = vld [vmem:[%s17614_s4 + $0x21c0] ss:$148 sps:$4 sm:$0xff]  }
 0x2ac   : > { %v15854_v38 = vld [vmem:[%s17614_s4 + $0x21bc] ss:$148 sps:$4 sm:$0xff]   ;;  %v15857_v39 = vld [vmem:[%s17614_s4 + $0x21c4] ss:$148 sps:$4 sm:$0xff]   ;;  %v15863_v43 = vld [vmem:[%s17614_s4 + $0x22ec] ss:$148 sps:$4 sm:$0xff]  }
 0x2ad   : > { %10239 = vmatmul.mubr.bf16.vlgmr.msra.gmra.mrb[12].mxu0 %v17168_v53  ;;  %10368 = vmatmul.mubr.bf16.vlgmr.msra.gmra.mrb[12].mxu1 %v17168_v53  ;;  %v15852_v40 = vld [vmem:[%s17614_s4 + $0x21b8] ss:$148 sps:$4 sm:$0xff]   ;;  %v15858_v44 = vld [vmem:[%s17614_s4 + $0x22e0] ss:$148 sps:$4 sm:$0xff]   ;;  %v15861_v45 = vld [vmem:[%s17614_s4 + $0x22e8] ss:$148 sps:$4 sm:$0xff]  }
 0x2ae   : > { %10250 = vmatpush1.bf16.msra.mxu0 %v15774_v49  ;;  %10379 = vmatpush1.bf16.msra.mxu1 %v15777_v50  ;;  %v15860_v42 = vld [vmem:[%s17614_s4 + $0x22e4] ss:$148 sps:$4 sm:$0xff]   ;;  %v15866_v46 = vld [vmem:[%s17614_s4 + $0x240c] ss:$148 sps:$4 sm:$0xff]   ;;  %v15869_v47 = vld [vmem:[%s17614_s4 + $0x2414] ss:$148 sps:$4 sm:$0xff]  }
 0x2af   : > { %10251 = vmatprep.subr.bf16.mxu0 %v15782_v51  ;;  %10380 = vmatprep.subr.bf16.mxu1 %v15785_v52  ;;  %v15864_v48 = vld [vmem:[%s17614_s4 + $0x2408] ss:$148 sps:$4 sm:$0xff]   ;;  %v15867_v49 = vld [vmem:[%s17614_s4 + $0x2410] ss:$148 sps:$4 sm:$0xff]   ;;  %v15873_v53 = vld [vmem:[%s17614_s4 + $0x2538] ss:$148 sps:$4 sm:$0xff]  }
 0x2b0   : > { %10281 = vmatprep.mubr.bf16.mxu0 %v17169_v59  ;;  %10410 = vmatprep.mubr.bf16.mxu1 %v17169_v59  ;;  %v15872_v50 = vld [vmem:[%s17614_s4 + $0x2534] ss:$148 sps:$4 sm:$0xff]   ;;  %v15875_v51 = vld [vmem:[%s17614_s4 + $0x253c] ss:$148 sps:$4 sm:$0xff]  }
 0x2b1   : > { %v15870_v52 = vld [vmem:[%s17614_s4 + $0x2530] ss:$148 sps:$4 sm:$0xff]   ;;  %v15879_v59 = vld [vmem:[%s17614_s4 + $0x2660] ss:$148 sps:$4 sm:$0xff]  }
 0x2b2   : > { %10252 = vmatpush1.bf16.msra.mxu0 %v15780_v55  ;;  %10381 = vmatpush1.bf16.msra.mxu1 %v15783_v56  ;;  %v15878_v55 = vld [vmem:[%s17614_s4 + $0x265c] ss:$148 sps:$4 sm:$0xff]   ;;  %v15881_v56 = vld [vmem:[%s17614_s4 + $0x2664] ss:$148 sps:$4 sm:$0xff]  }
 0x2b3   : > { %10253 = vmatprep.subr.bf16.mxu0 %v15788_v57  ;;  %10382 = vmatprep.subr.bf16.mxu1 %v15791_v58  ;;  %v17170_v57 = vld [vmem:[%s17612_s27 + $0x8] ss:$20 sps:$4 sm:$0xff]  }
 0x2b4   : > { %v15876_v58 = vld [vmem:[%s17614_s4 + $0x2658] ss:$148 sps:$4 sm:$0xff]  }
 0x2b6   : > { %10254 = vmatpush1.bf16.msra.mxu0 %v15786_v60  ;;  %10383 = vmatpush1.bf16.msra.mxu1 %v15789_v61  ;;  %v15884_v60 = vld [vmem:[%s17614_s4 + $0x2784] ss:$148 sps:$4 sm:$0xff]   ;;  %v15887_v61 = vld [vmem:[%s17614_s4 + $0x278c] ss:$148 sps:$4 sm:$0xff]  }
 0x2b7   : > { %10255 = vmatprep.subr.bf16.mxu0 %v15794_v62  ;;  %10384 = vmatprep.subr.bf16.mxu1 %v15797_v54  ;;  %v15882_v62 = vld [vmem:[%s17614_s4 + $0x2780] ss:$148 sps:$4 sm:$0xff]   ;;  %v15885_v54 = vld [vmem:[%s17614_s4 + $0x2788] ss:$148 sps:$4 sm:$0xff]  }
 0x2ba   : > { %10256 = vmatpush1.bf16.msra.mxu0 %v15792_v63  ;;  %10385 = vmatpush1.bf16.msra.mxu1 %v15795_v0  ;;  %v15890_v63 = vld [vmem:[%s17614_s4 + $0x28ac] ss:$148 sps:$4 sm:$0xff]   ;;  %v15893_v0 = vld [vmem:[%s17614_s4 + $0x28b4] ss:$148 sps:$4 sm:$0xff]  }
 0x2bb   : > { %10257 = vmatprep.subr.bf16.mxu0 %v15800_v1  ;;  %10386 = vmatprep.subr.bf16.mxu1 %v15803_v2  ;;  %v15888_v1 = vld [vmem:[%s17614_s4 + $0x28a8] ss:$148 sps:$4 sm:$0xff]   ;;  %v15891_v2 = vld [vmem:[%s17614_s4 + $0x28b0] ss:$148 sps:$4 sm:$0xff]  }
 0x2be   : > { %10258 = vmatpush1.bf16.msra.mxu0 %v15798_v3  ;;  %10387 = vmatpush1.bf16.msra.mxu1 %v15801_v4  ;;  %v15896_v3 = vld [vmem:[%s17614_s4 + $0x29d4] ss:$148 sps:$4 sm:$0xff]   ;;  %v15899_v4 = vld [vmem:[%s17614_s4 + $0x29dc] ss:$148 sps:$4 sm:$0xff]  }
 0x2bf   : > { %10259 = vmatprep.subr.bf16.mxu0 %v15806_v5  ;;  %10388 = vmatprep.subr.bf16.mxu1 %v15809_v6  ;;  %v15894_v5 = vld [vmem:[%s17614_s4 + $0x29d0] ss:$148 sps:$4 sm:$0xff]   ;;  %v15897_v6 = vld [vmem:[%s17614_s4 + $0x29d8] ss:$148 sps:$4 sm:$0xff]  }
 0x2c2   : > { %10260 = vmatpush1.bf16.msra.mxu0 %v15804_v7  ;;  %10389 = vmatpush1.bf16.msra.mxu1 %v15807_v8  ;;  %v15902_v7 = vld [vmem:[%s17614_s4 + $0x2afc] ss:$148 sps:$4 sm:$0xff]   ;;  %v15905_v8 = vld [vmem:[%s17614_s4 + $0x2b04] ss:$148 sps:$4 sm:$0xff]  }
 0x2c3   : > { %10261 = vmatprep.subr.bf16.mxu0 %v15812_v9  ;;  %10390 = vmatprep.subr.bf16.mxu1 %v15815_v10  ;;  %v15900_v9 = vld [vmem:[%s17614_s4 + $0x2af8] ss:$148 sps:$4 sm:$0xff]   ;;  %v15903_v10 = vld [vmem:[%s17614_s4 + $0x2b00] ss:$148 sps:$4 sm:$0xff]  }
 0x2c6   : > { %10262 = vmatpush1.bf16.msra.mxu0 %v15810_v11  ;;  %10391 = vmatpush1.bf16.msra.mxu1 %v15813_v12  ;;  %v15908_v11 = vld [vmem:[%s17614_s4 + $0x2c24] ss:$148 sps:$4 sm:$0xff]   ;;  %v15911_v12 = vld [vmem:[%s17614_s4 + $0x2c2c] ss:$148 sps:$4 sm:$0xff]  }
 0x2c7   : > { %10263 = vmatprep.subr.bf16.mxu0 %v15818_v13  ;;  %10392 = vmatprep.subr.bf16.mxu1 %v15821_v14  ;;  %v15906_v13 = vld [vmem:[%s17614_s4 + $0x2c20] ss:$148 sps:$4 sm:$0xff]   ;;  %v15909_v14 = vld [vmem:[%s17614_s4 + $0x2c28] ss:$148 sps:$4 sm:$0xff]  }
 0x2ca   : > { %10264 = vmatpush1.bf16.msra.mxu0 %v15816_v15  ;;  %10393 = vmatpush1.bf16.msra.mxu1 %v15819_v16  ;;  %v15914_v15 = vld [vmem:[%s17614_s4 + $0x2d4c] ss:$148 sps:$4 sm:$0xff]   ;;  %v15917_v16 = vld [vmem:[%s17614_s4 + $0x2d54] ss:$148 sps:$4 sm:$0xff]  }
 0x2cb   : > { %10265 = vmatprep.subr.bf16.mxu0 %v15824_v17  ;;  %10394 = vmatprep.subr.bf16.mxu1 %v15827_v18  ;;  %v15912_v17 = vld [vmem:[%s17614_s4 + $0x2d48] ss:$148 sps:$4 sm:$0xff]   ;;  %v15915_v18 = vld [vmem:[%s17614_s4 + $0x2d50] ss:$148 sps:$4 sm:$0xff]  }
 0x2ce   : > { %10266 = vmatpush1.bf16.msra.mxu0 %v15822_v19  ;;  %10395 = vmatpush1.bf16.msra.mxu1 %v15825_v20  ;;  %v15920_v19 = vld [vmem:[%s17614_s4 + $0x44] ss:$148 sps:$4 sm:$0xff]   ;;  %v15923_v20 = vld [vmem:[%s17614_s4 + $0x4c] ss:$148 sps:$4 sm:$0xff]  }
 0x2cf   : > { %10267 = vmatprep.subr.bf16.mxu0 %v15830_v21  ;;  %10396 = vmatprep.subr.bf16.mxu1 %v15833_v23  ;;  %v15918_v21 = vld [vmem:[%s17614_s4 + $0x40] ss:$148 sps:$4 sm:$0xff]   ;;  %v15921_v23 = vld [vmem:[%s17614_s4 + $0x48] ss:$148 sps:$4 sm:$0xff]  }
 0x2d2   : > { %10268 = vmatpush1.bf16.msra.mxu0 %v15828_v24  ;;  %10397 = vmatpush1.bf16.msra.mxu1 %v15831_v25  ;;  %v15926_v24 = vld [vmem:[%s17614_s4 + $0x16c] ss:$148 sps:$4 sm:$0xff]   ;;  %v15929_v25 = vld [vmem:[%s17614_s4 + $0x174] ss:$148 sps:$4 sm:$0xff]  }
 0x2d3   : > { %10269 = vmatprep.subr.bf16.mxu0 %v15836_v26  ;;  %10398 = vmatprep.subr.bf16.mxu1 %v15839_v27  ;;  %v17171_v26 = vld [vmem:[%s17612_s27 + $0x10] ss:$20 sps:$4 sm:$0xff]  }
 0x2d4   : > { %v15924_v27 = vld [vmem:[%s17614_s4 + $0x168] ss:$148 sps:$4 sm:$0xff]  }
 0x2d6   : > { %10270 = vmatpush1.bf16.msra.mxu0 %v15834_v28  ;;  %10399 = vmatpush1.bf16.msra.mxu1 %v15837_v29  ;;  %v15927_v28 = vld [vmem:[%s17614_s4 + $0x170] ss:$148 sps:$4 sm:$0xff]   ;;  %v15932_v29 = vld [vmem:[%s17614_s4 + $0x294] ss:$148 sps:$4 sm:$0xff]  }
 0x2d7   : > { %10271 = vmatprep.subr.bf16.mxu0 %v15842_v30  ;;  %10400 = vmatprep.subr.bf16.mxu1 %v15845_v31  ;;  %v15935_v30 = vld [vmem:[%s17614_s4 + $0x29c] ss:$148 sps:$4 sm:$0xff]  }
 0x2d8   : > { %v17172_v31 = vld [vmem:[%s17612_s27 + $0x4] ss:$20 sps:$4 sm:$0xff]  }
 0x2da   : > { %10272 = vmatpush1.bf16.msra.mxu0 %v15840_v32  ;;  %10401 = vmatpush1.bf16.msra.mxu1 %v15843_v33  ;;  %v15930_v32 = vld [vmem:[%s17614_s4 + $0x290] ss:$148 sps:$4 sm:$0xff]   ;;  %v15933_v33 = vld [vmem:[%s17614_s4 + $0x298] ss:$148 sps:$4 sm:$0xff]  }
 0x2db   : > { %10273 = vmatprep.subr.bf16.mxu0 %v15848_v34  ;;  %10402 = vmatprep.subr.bf16.mxu1 %v15851_v35  ;;  %v15938_v34 = vld [vmem:[%s17614_s4 + $0x3bc] ss:$148 sps:$4 sm:$0xff]   ;;  %v15941_v35 = vld [vmem:[%s17614_s4 + $0x3c4] ss:$148 sps:$4 sm:$0xff]  }
 0x2de   : > { %10274 = vmatpush1.bf16.msra.mxu0 %v15846_v36  ;;  %10403 = vmatpush1.bf16.msra.mxu1 %v15849_v37  ;;  %v15936_v36 = vld [vmem:[%s17614_s4 + $0x3b8] ss:$148 sps:$4 sm:$0xff]   ;;  %v15939_v37 = vld [vmem:[%s17614_s4 + $0x3c0] ss:$148 sps:$4 sm:$0xff]  }
 0x2df   : > { %10275 = vmatprep.subr.bf16.mxu0 %v15854_v38  ;;  %10404 = vmatprep.subr.bf16.mxu1 %v15857_v39  ;;  %v15944_v38 = vld [vmem:[%s17614_s4 + $0x4e4] ss:$148 sps:$4 sm:$0xff]   ;;  %v15947_v39 = vld [vmem:[%s17614_s4 + $0x4ec] ss:$148 sps:$4 sm:$0xff]  }
 0x2e2   : > { %10276 = vmatpush1.bf16.msra.mxu0 %v15852_v40  ;;  %10405 = vmatpush1.bf16.msra.mxu1 %v15855_v41  ;;  %v15942_v40 = vld [vmem:[%s17614_s4 + $0x4e0] ss:$148 sps:$4 sm:$0xff]   ;;  %v15945_v41 = vld [vmem:[%s17614_s4 + $0x4e8] ss:$148 sps:$4 sm:$0xff]  }
 0x2e3   : > { %10277 = vmatprep.subr.bf16.mxu0 %v15860_v42  ;;  %10406 = vmatprep.subr.bf16.mxu1 %v15863_v43  ;;  %v15950_v42 = vld [vmem:[%s17614_s4 + $0x60c] ss:$148 sps:$4 sm:$0xff]   ;;  %v15953_v43 = vld [vmem:[%s17614_s4 + $0x614] ss:$148 sps:$4 sm:$0xff]  }
 0x2e6   : > { %10278 = vmatpush1.bf16.msra.mxu0 %v15858_v44  ;;  %10407 = vmatpush1.bf16.msra.mxu1 %v15861_v45  ;;  %v15948_v44 = vld [vmem:[%s17614_s4 + $0x608] ss:$148 sps:$4 sm:$0xff]   ;;  %v15951_v45 = vld [vmem:[%s17614_s4 + $0x610] ss:$148 sps:$4 sm:$0xff]  }
 0x2e7   : > { %10279 = vmatprep.subr.bf16.mxu0 %v15866_v46  ;;  %10408 = vmatprep.subr.bf16.mxu1 %v15869_v47  ;;  %v15956_v46 = vld [vmem:[%s17614_s4 + $0x734] ss:$148 sps:$4 sm:$0xff]   ;;  %v15959_v47 = vld [vmem:[%s17614_s4 + $0x73c] ss:$148 sps:$4 sm:$0xff]  }
 0x2ea   : > { %10280 = vmatpush1.bf16.msra.mxu0 %v15864_v48  ;;  %10409 = vmatpush1.bf16.msra.mxu1 %v15867_v49  ;;  %v15954_v48 = vld [vmem:[%s17614_s4 + $0x730] ss:$148 sps:$4 sm:$0xff]   ;;  %v15957_v49 = vld [vmem:[%s17614_s4 + $0x738] ss:$148 sps:$4 sm:$0xff]  }
 0x2eb   : > { %10292 = vmatprep.subr.bf16.mxu0 %v15872_v50  ;;  %10421 = vmatprep.subr.bf16.mxu1 %v15875_v51  ;;  %v15962_v50 = vld [vmem:[%s17614_s4 + $0x85c] ss:$148 sps:$4 sm:$0xff]   ;;  %v15965_v51 = vld [vmem:[%s17614_s4 + $0x864] ss:$148 sps:$4 sm:$0xff]  }
 0x2ed   : > { %10282 = vmatmul.mubr.bf16.vlgmr.msra.gmra.mrb[12].mxu0 %v17170_v57  ;;  %10411 = vmatmul.mubr.bf16.vlgmr.msra.gmra.mrb[12].mxu1 %v17170_v57  ;;  %v15966_v57 = vld [vmem:[%s17614_s4 + $0x980] ss:$148 sps:$4 sm:$0xff]  }
 0x2ee   : > { %10293 = vmatpush1.bf16.msra.mxu0 %v15870_v52  ;;  %10422 = vmatpush1.bf16.msra.mxu1 %v15873_v53  ;;  %v15960_v52 = vld [vmem:[%s17614_s4 + $0x858] ss:$148 sps:$4 sm:$0xff]   ;;  %v15963_v53 = vld [vmem:[%s17614_s4 + $0x860] ss:$148 sps:$4 sm:$0xff]  }
 0x2ef   : > { %10294 = vmatprep.subr.bf16.mxu0 %v15878_v55  ;;  %10423 = vmatprep.subr.bf16.mxu1 %v15881_v56  ;;  %v15968_v55 = vld [vmem:[%s17614_s4 + $0x984] ss:$148 sps:$4 sm:$0xff]   ;;  %v15971_v56 = vld [vmem:[%s17614_s4 + $0x98c] ss:$148 sps:$4 sm:$0xff]  }
 0x2f0   : > { %10324 = vmatprep.mubr.bf16.mxu0 %v17459_v22  ;;  %10453 = vmatprep.mubr.bf16.mxu1 %v17459_v22 }
 0x2f2   : > { %10295 = vmatpush1.bf16.msra.mxu0 %v15876_v58  ;;  %10424 = vmatpush1.bf16.msra.mxu1 %v15879_v59  ;;  %v15969_v58 = vld [vmem:[%s17614_s4 + $0x988] ss:$148 sps:$4 sm:$0xff]   ;;  %v15974_v59 = vld [vmem:[%s17614_s4 + $0xaac] ss:$148 sps:$4 sm:$0xff]  }
 0x2f3   : > { %10296 = vmatprep.subr.bf16.mxu0 %v15884_v60  ;;  %10425 = vmatprep.subr.bf16.mxu1 %v15887_v61  ;;  %v15977_v60 = vld [vmem:[%s17614_s4 + $0xab4] ss:$148 sps:$4 sm:$0xff]  }
 0x2f4   : > { %v15972_v61 = vld [vmem:[%s17614_s4 + $0xaa8] ss:$148 sps:$4 sm:$0xff]  }
 0x2f6   : > { %10297 = vmatpush1.bf16.msra.mxu0 %v15882_v62  ;;  %10426 = vmatpush1.bf16.msra.mxu1 %v15885_v54  ;;  %v15975_v62 = vld [vmem:[%s17614_s4 + $0xab0] ss:$148 sps:$4 sm:$0xff]   ;;  %v15980_v54 = vld [vmem:[%s17614_s4 + $0xbd4] ss:$148 sps:$4 sm:$0xff]  }
 0x2f7   : > { %10298 = vmatprep.subr.bf16.mxu0 %v15890_v63  ;;  %10427 = vmatprep.subr.bf16.mxu1 %v15893_v0  ;;  %v15983_v63 = vld [vmem:[%s17614_s4 + $0xbdc] ss:$148 sps:$4 sm:$0xff]  }
 0x2f8   : > { %v15978_v0 = vld [vmem:[%s17614_s4 + $0xbd0] ss:$148 sps:$4 sm:$0xff]  }
 0x2fa   : > { %10299 = vmatpush1.bf16.msra.mxu0 %v15888_v1  ;;  %10428 = vmatpush1.bf16.msra.mxu1 %v15891_v2  ;;  %v15981_v1 = vld [vmem:[%s17614_s4 + $0xbd8] ss:$148 sps:$4 sm:$0xff]   ;;  %v15986_v2 = vld [vmem:[%s17614_s4 + $0xcfc] ss:$148 sps:$4 sm:$0xff]  }
 0x2fb   : > { %10300 = vmatprep.subr.bf16.mxu0 %v15896_v3  ;;  %10429 = vmatprep.subr.bf16.mxu1 %v15899_v4  ;;  %v15989_v3 = vld [vmem:[%s17614_s4 + $0xd04] ss:$148 sps:$4 sm:$0xff]  }
 0x2fc   : > { %v15984_v4 = vld [vmem:[%s17614_s4 + $0xcf8] ss:$148 sps:$4 sm:$0xff]  }
 0x2fe   : > { %10301 = vmatpush1.bf16.msra.mxu0 %v15894_v5  ;;  %10430 = vmatpush1.bf16.msra.mxu1 %v15897_v6  ;;  %v15987_v5 = vld [vmem:[%s17614_s4 + $0xd00] ss:$148 sps:$4 sm:$0xff]   ;;  %v15992_v6 = vld [vmem:[%s17614_s4 + $0xe24] ss:$148 sps:$4 sm:$0xff]  }
 0x2ff   : > { %10302 = vmatprep.subr.bf16.mxu0 %v15902_v7  ;;  %10431 = vmatprep.subr.bf16.mxu1 %v15905_v8  ;;  %v15995_v7 = vld [vmem:[%s17614_s4 + $0xe2c] ss:$148 sps:$4 sm:$0xff]  }
 0x300   : > { %v15990_v8 = vld [vmem:[%s17614_s4 + $0xe20] ss:$148 sps:$4 sm:$0xff]  }
 0x302   : > { %10303 = vmatpush1.bf16.msra.mxu0 %v15900_v9  ;;  %10432 = vmatpush1.bf16.msra.mxu1 %v15903_v10  ;;  %v15993_v9 = vld [vmem:[%s17614_s4 + $0xe28] ss:$148 sps:$4 sm:$0xff]   ;;  %v15998_v10 = vld [vmem:[%s17614_s4 + $0xf4c] ss:$148 sps:$4 sm:$0xff]  }
 0x303   : > { %10304 = vmatprep.subr.bf16.mxu0 %v15908_v11  ;;  %10433 = vmatprep.subr.bf16.mxu1 %v15911_v12  ;;  %v16001_v11 = vld [vmem:[%s17614_s4 + $0xf54] ss:$148 sps:$4 sm:$0xff]  }
 0x304   : > { %v374_v12 = vld [vmem:[%s21394_s3 + $0x40] sm:$0xff] }
 0x306   : > { %10305 = vmatpush1.bf16.msra.mxu0 %v15906_v13  ;;  %10434 = vmatpush1.bf16.msra.mxu1 %v15909_v14  ;;  %v376_v13 = vld [vmem:[%s21394_s3 + $0x50] sm:$0xff]  ;;  %v15996_v14 = vld [vmem:[%s17614_s4 + $0xf48] ss:$148 sps:$4 sm:$0xff]  }
 0x307   : > { %10306 = vmatprep.subr.bf16.mxu0 %v15914_v15  ;;  %10435 = vmatprep.subr.bf16.mxu1 %v15917_v16  ;;  %v15999_v15 = vld [vmem:[%s17614_s4 + $0xf50] ss:$148 sps:$4 sm:$0xff]   ;;  %v375_v16 = vld [vmem:[%s21394_s3 + $0x48] sm:$0xff] }
 0x30a   : > { %10307 = vmatpush1.bf16.msra.mxu0 %v15912_v17  ;;  %10436 = vmatpush1.bf16.msra.mxu1 %v15915_v18  ;;  %v377_v17 = vld [vmem:[%s21394_s3 + $0x58] sm:$0xff]  ;;  %v411_v18 = vld [vmem:[%s21394_s3 + $0x168] sm:$0xff] }
 0x30b   : > { %10464 = vmatprep.subr.bf16.mxu0 %v15920_v19  ;;  %10593 = vmatprep.subr.bf16.mxu1 %v15923_v20  ;;  %v413_v19 = vld [vmem:[%s21394_s3 + $0x178] sm:$0xff]  ;;  %v412_v20 = vld [vmem:[%s21394_s3 + $0x170] sm:$0xff] }
 0x30d   : > { %10325 = vmatmul.mubr.bf16.vlgmr.msra.gmra.mrb[12].mxu0 %v17171_v26  ;;  %10454 = vmatmul.mubr.bf16.vlgmr.msra.gmra.mrb[12].mxu1 %v17171_v26 }
 0x30e   : > { %10465 = vmatpush1.bf16.msra.mxu0 %v15918_v21  ;;  %10594 = vmatpush1.bf16.msra.mxu1 %v15921_v23  ;;  %v414_v21 = vld [vmem:[%s21394_s3 + $0x180] sm:$0xff] }
 0x30f   : > { %10466 = vmatprep.subr.bf16.mxu0 %v15926_v24  ;;  %10595 = vmatprep.subr.bf16.mxu1 %v15929_v25  ;;  %v16004_v23 = vld [vmem:[%s17614_s4 + $0x1074] ss:$148 sps:$4 sm:$0xff]   ;;  %v16007_v24 = vld [vmem:[%s17614_s4 + $0x107c] ss:$148 sps:$4 sm:$0xff]  }
 0x310   : > { %10496 = vmatprep.mubr.bf16.mxu0 %v17172_v31  ;;  %10625 = vmatprep.mubr.bf16.mxu1 %v17172_v31 }
 0x312   : > { %10467 = vmatpush1.bf16.msra.mxu0 %v15924_v27  ;;  %10596 = vmatpush1.bf16.msra.mxu1 %v15927_v28 }
 0x313   : > { %10468 = vmatprep.subr.bf16.mxu0 %v15932_v29  ;;  %10597 = vmatprep.subr.bf16.mxu1 %v15935_v30 }
 0x316   : > { %10469 = vmatpush1.bf16.msra.mxu0 %v15930_v32  ;;  %10598 = vmatpush1.bf16.msra.mxu1 %v15933_v33 }
 0x317   : > { %10470 = vmatprep.subr.bf16.mxu0 %v15938_v34  ;;  %10599 = vmatprep.subr.bf16.mxu1 %v15941_v35  ;;  %v16002_v35 = vld [vmem:[%s17614_s4 + $0x1070] ss:$148 sps:$4 sm:$0xff]  }
 0x31a   : > { %10471 = vmatpush1.bf16.msra.mxu0 %v15936_v36  ;;  %10600 = vmatpush1.bf16.msra.mxu1 %v15939_v37  ;;  %v16005_v36 = vld [vmem:[%s17614_s4 + $0x1078] ss:$148 sps:$4 sm:$0xff]  }
 0x31b   : > { %10472 = vmatprep.subr.bf16.mxu0 %v15944_v38  ;;  %10601 = vmatprep.subr.bf16.mxu1 %v15947_v39 }
 0x31e   : > { %10473 = vmatpush1.bf16.msra.mxu0 %v15942_v40  ;;  %10602 = vmatpush1.bf16.msra.mxu1 %v15945_v41  ;;  %v16010_v41 = vld [vmem:[%s17614_s4 + $0x119c] ss:$148 sps:$4 sm:$0xff]  }
 0x31f   : > { %10474 = vmatprep.subr.bf16.mxu0 %v15950_v42  ;;  %10603 = vmatprep.subr.bf16.mxu1 %v15953_v43  ;;  %v16013_v42 = vld [vmem:[%s17614_s4 + $0x11a4] ss:$148 sps:$4 sm:$0xff]  }
 0x322   : > { %10475 = vmatpush1.bf16.msra.mxu0 %v15948_v44  ;;  %10604 = vmatpush1.bf16.msra.mxu1 %v15951_v45  ;;  %v16008_v45 = vld [vmem:[%s17614_s4 + $0x1198] ss:$148 sps:$4 sm:$0xff]  }
 0x323   : > { %10476 = vmatprep.subr.bf16.mxu0 %v15956_v46  ;;  %10605 = vmatprep.subr.bf16.mxu1 %v15959_v47  ;;  %v16011_v46 = vld [vmem:[%s17614_s4 + $0x11a0] ss:$148 sps:$4 sm:$0xff]   ;;  %v16016_v47 = vld [vmem:[%s17614_s4 + $0x12c4] ss:$148 sps:$4 sm:$0xff]  }
 0x326   : > { %10477 = vmatpush1.bf16.msra.mxu0 %v15954_v48  ;;  %10606 = vmatpush1.bf16.msra.mxu1 %v15957_v49  ;;  %v16019_v48 = vld [vmem:[%s17614_s4 + $0x12cc] ss:$148 sps:$4 sm:$0xff]  }
 0x327   : > { %10478 = vmatprep.subr.bf16.mxu0 %v15962_v50  ;;  %10607 = vmatprep.subr.bf16.mxu1 %v15965_v51  ;;  %v16014_v49 = vld [vmem:[%s17614_s4 + $0x12c0] ss:$148 sps:$4 sm:$0xff]   ;;  %v16017_v50 = vld [vmem:[%s17614_s4 + $0x12c8] ss:$148 sps:$4 sm:$0xff]  }
 0x328   : > { %v16022_v51 = vld [vmem:[%s17614_s4 + $0x13ec] ss:$148 sps:$4 sm:$0xff]  }
 0x32a   : > { %10479 = vmatpush1.bf16.msra.mxu0 %v15960_v52  ;;  %10608 = vmatpush1.bf16.msra.mxu1 %v15963_v53  ;;  %v16025_v52 = vld [vmem:[%s17614_s4 + $0x13f4] ss:$148 sps:$4 sm:$0xff]   ;;  %v17173_v53 = vld [vmem:[%s17612_s27] ss:$20 sps:$4 sm:$0xff]  }
 0x32b   : > { %10480 = vmatprep.subr.bf16.mxu0 %v15968_v55  ;;  %10609 = vmatprep.subr.bf16.mxu1 %v15971_v56  ;;  %v16020_v55 = vld [vmem:[%s17614_s4 + $0x13e8] ss:$148 sps:$4 sm:$0xff]   ;;  %v16023_v56 = vld [vmem:[%s17614_s4 + $0x13f0] ss:$148 sps:$4 sm:$0xff]  }
 0x32e   : > { %10481 = vmatpush1.bf16.msra.mxu0 %v15966_v57  ;;  %10610 = vmatpush1.bf16.msra.mxu1 %v15969_v58  ;;  %v16028_v57 = vld [vmem:[%s17614_s4 + $0x1514] ss:$148 sps:$4 sm:$0xff]   ;;  %v16031_v58 = vld [vmem:[%s17614_s4 + $0x151c] ss:$148 sps:$4 sm:$0xff]  }
 0x32f   : > { %10482 = vmatprep.subr.bf16.mxu0 %v15974_v59  ;;  %10611 = vmatprep.subr.bf16.mxu1 %v15977_v60  ;;  %v17174_v59 = vld [vmem:[%s17612_s27 + $0xc] ss:$20 sps:$4 sm:$0xff]  }
 0x330   : > { %v16026_v60 = vld [vmem:[%s17614_s4 + $0x1510] ss:$148 sps:$4 sm:$0xff]  }
 0x332   : > { %10483 = vmatpush1.bf16.msra.mxu0 %v15972_v61  ;;  %10612 = vmatpush1.bf16.msra.mxu1 %v15975_v62  ;;  %v16029_v61 = vld [vmem:[%s17614_s4 + $0x1518] ss:$148 sps:$4 sm:$0xff]   ;;  %v16034_v62 = vld [vmem:[%s17614_s4 + $0x163c] ss:$148 sps:$4 sm:$0xff]  }
 0x333   : > { %10484 = vmatprep.subr.bf16.mxu0 %v15980_v54  ;;  %10613 = vmatprep.subr.bf16.mxu1 %v15983_v63  ;;  %v16037_v54 = vld [vmem:[%s17614_s4 + $0x1644] ss:$148 sps:$4 sm:$0xff]  }
 0x334   : > { %v16032_v63 = vld [vmem:[%s17614_s4 + $0x1638] ss:$148 sps:$4 sm:$0xff]  }
 0x336   : > { %10485 = vmatpush1.bf16.msra.mxu0 %v15978_v0  ;;  %10614 = vmatpush1.bf16.msra.mxu1 %v15981_v1  ;;  %v16035_v0 = vld [vmem:[%s17614_s4 + $0x1640] ss:$148 sps:$4 sm:$0xff]   ;;  %v16040_v1 = vld [vmem:[%s17614_s4 + $0x1764] ss:$148 sps:$4 sm:$0xff]  }
 0x337   : > { %10486 = vmatprep.subr.bf16.mxu0 %v15986_v2  ;;  %10615 = vmatprep.subr.bf16.mxu1 %v15989_v3  ;;  %v16043_v2 = vld [vmem:[%s17614_s4 + $0x176c] ss:$148 sps:$4 sm:$0xff]  }
 0x338   : > { %v16038_v3 = vld [vmem:[%s17614_s4 + $0x1760] ss:$148 sps:$4 sm:$0xff]  }
 0x33a   : > { %10487 = vmatpush1.bf16.msra.mxu0 %v15984_v4  ;;  %10616 = vmatpush1.bf16.msra.mxu1 %v15987_v5  ;;  %v16041_v4 = vld [vmem:[%s17614_s4 + $0x1768] ss:$148 sps:$4 sm:$0xff]   ;;  %v16046_v5 = vld [vmem:[%s17614_s4 + $0x188c] ss:$148 sps:$4 sm:$0xff]  }
 0x33b   : > { %10488 = vmatprep.subr.bf16.mxu0 %v15992_v6  ;;  %10617 = vmatprep.subr.bf16.mxu1 %v15995_v7  ;;  %v16049_v6 = vld [vmem:[%s17614_s4 + $0x1894] ss:$148 sps:$4 sm:$0xff]  }
 0x33c   : > { %v16044_v7 = vld [vmem:[%s17614_s4 + $0x1888] ss:$148 sps:$4 sm:$0xff]  }
 0x33e   : > { %10489 = vmatpush1.bf16.msra.mxu0 %v15990_v8  ;;  %10618 = vmatpush1.bf16.msra.mxu1 %v15993_v9  ;;  %v16047_v8 = vld [vmem:[%s17614_s4 + $0x1890] ss:$148 sps:$4 sm:$0xff]   ;;  %v16052_v9 = vld [vmem:[%s17614_s4 + $0x19b4] ss:$148 sps:$4 sm:$0xff]  }
 0x33f   : > { %10490 = vmatprep.subr.bf16.mxu0 %v15998_v10  ;;  %10619 = vmatprep.subr.bf16.mxu1 %v16001_v11  ;;  %v16055_v10 = vld [vmem:[%s17614_s4 + $0x19bc] ss:$148 sps:$4 sm:$0xff]  }
 0x340   : > { %v10068_v25 = vpop.f32.mrb[8].mxu0  ;;  %v10197_v26 = vpop.f32.mrb[8].mxu1  ;;  %v16050_v11 = vld [vmem:[%s17614_s4 + $0x19b0] ss:$148 sps:$4 sm:$0xff]  }
 0x341   : > { %v11885_v27 = vadd.f32 %v10068_v25, %v374_v12  ;;  %v11887_v28 = vadd.f32 %v10197_v26, %v376_v13  ;;  %v10070_v29 = vpop.f32.mrb[9].mxu0  ;;  %v10199_v30 = vpop.f32.mrb[9].mxu1  ;;  %v16053_v12 = vld [vmem:[%s17614_s4 + $0x19b8] ss:$148 sps:$4 sm:$0xff]   ;;  %v16058_v13 = vld [vmem:[%s17614_s4 + $0x1adc] ss:$148 sps:$4 sm:$0xff]  }
 0x342   : > { %v11886_v31 = vadd.f32 %v10070_v29, %v375_v16  ;;  %v11888_v32 = vadd.f32 %v10199_v30, %v377_v17  ;;  %v10072_v33 = vpop.f32.mrb[10].mxu0  ;;  %v10201_v34 = vpop.f32.mrb[10].mxu1  ;;  %10491 = vmatpush1.bf16.msra.mxu0 %v15996_v14  ;;  %10620 = vmatpush1.bf16.msra.mxu1 %v15999_v15  ;;  %v16061_v14 = vld [vmem:[%s17614_s4 + $0x1ae4] ss:$148 sps:$4 sm:$0xff]   ;;  %v16059_v16 = vld [vmem:[%s17614_s4 + $0x1ae0] ss:$148 sps:$4 sm:$0xff]  }
 0x343   : > { %11959 = vst [vmem:[%s21394_s3 + $0x40] sm:$0xff] %v11885_v27  ;;  %11961 = vst [vmem:[%s21394_s3 + $0x50] sm:$0xff] %v11887_v28  ;;  %v11922_v37 = vadd.f32 %v10072_v33, %v411_v18  ;;  %v11924_v38 = vadd.f32 %v10201_v34, %v413_v19  ;;  %v10074_v39 = vpop.f32.mrb[11].mxu0  ;;  %v10203_v40 = vpop.f32.mrb[11].mxu1  ;;  %10492 = vmatprep.subr.bf16.mxu0 %v16004_v23  ;;  %10621 = vmatprep.subr.bf16.mxu1 %v16007_v24  ;;  %v16056_v15 = vld [vmem:[%s17614_s4 + $0x1ad8] ss:$148 sps:$4 sm:$0xff]  }
 0x344   : > { %11960 = vst [vmem:[%s21394_s3 + $0x48] sm:$0xff] %v11886_v31  ;;  %11962 = vst [vmem:[%s21394_s3 + $0x58] sm:$0xff] %v11888_v32  ;;  %v11923_v43 = vadd.f32 %v10074_v39, %v412_v20  ;;  %v11925_v44 = vadd.f32 %v10203_v40, %v414_v21  ;;  %v16064_v17 = vld [vmem:[%s17614_s4 + $0x1c04] ss:$148 sps:$4 sm:$0xff]   ;;  %v16067_v18 = vld [vmem:[%s17614_s4 + $0x1c0c] ss:$148 sps:$4 sm:$0xff]  }
 0x345   : > { %11996 = vst [vmem:[%s21394_s3 + $0x168] sm:$0xff] %v11922_v37  ;;  %11998 = vst [vmem:[%s21394_s3 + $0x178] sm:$0xff] %v11924_v38  ;;  %v16062_v19 = vld [vmem:[%s17614_s4 + $0x1c00] ss:$148 sps:$4 sm:$0xff]   ;;  %v16065_v20 = vld [vmem:[%s17614_s4 + $0x1c08] ss:$148 sps:$4 sm:$0xff]  }
 0x346   : > { %11997 = vst [vmem:[%s21394_s3 + $0x170] sm:$0xff] %v11923_v43  ;;  %11999 = vst [vmem:[%s21394_s3 + $0x180] sm:$0xff] %v11925_v44  ;;  %10493 = vmatpush1.bf16.msra.mxu0 %v16002_v35  ;;  %10622 = vmatpush1.bf16.msra.mxu1 %v16005_v36  ;;  %v16070_v21 = vld [vmem:[%s17614_s4 + $0x1d2c] ss:$148 sps:$4 sm:$0xff]   ;;  %v16073_v23 = vld [vmem:[%s17614_s4 + $0x1d34] ss:$148 sps:$4 sm:$0xff]  }
 0x347   : > { %10494 = vmatprep.subr.bf16.mxu0 %v16010_v41  ;;  %10623 = vmatprep.subr.bf16.mxu1 %v16013_v42  ;;  %v16068_v24 = vld [vmem:[%s17614_s4 + $0x1d28] ss:$148 sps:$4 sm:$0xff]   ;;  %v16071_v25 = vld [vmem:[%s17614_s4 + $0x1d30] ss:$148 sps:$4 sm:$0xff]   ;;  %v16077_v29 = vld [vmem:[%s17614_s4 + $0x1e58] ss:$148 sps:$4 sm:$0xff]  }
 0x348   : > { %v16076_v26 = vld [vmem:[%s17614_s4 + $0x1e54] ss:$148 sps:$4 sm:$0xff]   ;;  %v16079_v27 = vld [vmem:[%s17614_s4 + $0x1e5c] ss:$148 sps:$4 sm:$0xff]   ;;  %v16085_v31 = vld [vmem:[%s17614_s4 + $0x1f84] ss:$148 sps:$4 sm:$0xff]  }
 0x349   : > { %v16074_v28 = vld [vmem:[%s17614_s4 + $0x1e50] ss:$148 sps:$4 sm:$0xff]   ;;  %v16080_v32 = vld [vmem:[%s17614_s4 + $0x1f78] ss:$148 sps:$4 sm:$0xff]   ;;  %v16083_v33 = vld [vmem:[%s17614_s4 + $0x1f80] ss:$148 sps:$4 sm:$0xff]  }
 0x34a   : > { %10495 = vmatpush1.bf16.msra.mxu0 %v16008_v45  ;;  %10624 = vmatpush1.bf16.msra.mxu1 %v16011_v46  ;;  %v16082_v30 = vld [vmem:[%s17614_s4 + $0x1f7c] ss:$148 sps:$4 sm:$0xff]   ;;  %v16088_v34 = vld [vmem:[%s17614_s4 + $0x20a4] ss:$148 sps:$4 sm:$0xff]   ;;  %v16091_v35 = vld [vmem:[%s17614_s4 + $0x20ac] ss:$148 sps:$4 sm:$0xff]  }
 0x34b   : > { %10507 = vmatprep.subr.bf16.mxu0 %v16016_v47  ;;  %10636 = vmatprep.subr.bf16.mxu1 %v16019_v48  ;;  %v16086_v36 = vld [vmem:[%s17614_s4 + $0x20a0] ss:$148 sps:$4 sm:$0xff]   ;;  %v16089_v37 = vld [vmem:[%s17614_s4 + $0x20a8] ss:$148 sps:$4 sm:$0xff]   ;;  %v16095_v41 = vld [vmem:[%s17614_s4 + $0x21d0] ss:$148 sps:$4 sm:$0xff]  }
 0x34c   : > { %v16094_v38 = vld [vmem:[%s17614_s4 + $0x21cc] ss:$148 sps:$4 sm:$0xff]   ;;  %v16097_v39 = vld [vmem:[%s17614_s4 + $0x21d4] ss:$148 sps:$4 sm:$0xff]   ;;  %v16103_v43 = vld [vmem:[%s17614_s4 + $0x22fc] ss:$148 sps:$4 sm:$0xff]  }
 0x34d   : > { %10497 = vmatmul.mubr.bf16.vlgmr.msra.gmra.mrb[16].mxu0 %v17173_v53  ;;  %10626 = vmatmul.mubr.bf16.vlgmr.msra.gmra.mrb[16].mxu1 %v17173_v53  ;;  %v16092_v40 = vld [vmem:[%s17614_s4 + $0x21c8] ss:$148 sps:$4 sm:$0xff]   ;;  %v16098_v44 = vld [vmem:[%s17614_s4 + $0x22f0] ss:$148 sps:$4 sm:$0xff]   ;;  %v16101_v45 = vld [vmem:[%s17614_s4 + $0x22f8] ss:$148 sps:$4 sm:$0xff]  }
 0x34e   : > { %10508 = vmatpush1.bf16.msra.mxu0 %v16014_v49  ;;  %10637 = vmatpush1.bf16.msra.mxu1 %v16017_v50  ;;  %v16100_v42 = vld [vmem:[%s17614_s4 + $0x22f4] ss:$148 sps:$4 sm:$0xff]   ;;  %v16106_v46 = vld [vmem:[%s17614_s4 + $0x241c] ss:$148 sps:$4 sm:$0xff]   ;;  %v16109_v47 = vld [vmem:[%s17614_s4 + $0x2424] ss:$148 sps:$4 sm:$0xff]  }
 0x34f   : > { %10509 = vmatprep.subr.bf16.mxu0 %v16022_v51  ;;  %10638 = vmatprep.subr.bf16.mxu1 %v16025_v52  ;;  %v16104_v48 = vld [vmem:[%s17614_s4 + $0x2418] ss:$148 sps:$4 sm:$0xff]   ;;  %v16107_v49 = vld [vmem:[%s17614_s4 + $0x2420] ss:$148 sps:$4 sm:$0xff]   ;;  %v16113_v53 = vld [vmem:[%s17614_s4 + $0x2548] ss:$148 sps:$4 sm:$0xff]  }
 0x350   : > { %10539 = vmatprep.mubr.bf16.mxu0 %v17174_v59  ;;  %10668 = vmatprep.mubr.bf16.mxu1 %v17174_v59  ;;  %v16112_v50 = vld [vmem:[%s17614_s4 + $0x2544] ss:$148 sps:$4 sm:$0xff]   ;;  %v16115_v51 = vld [vmem:[%s17614_s4 + $0x254c] ss:$148 sps:$4 sm:$0xff]  }
 0x351   : > { %v16110_v52 = vld [vmem:[%s17614_s4 + $0x2540] ss:$148 sps:$4 sm:$0xff]   ;;  %v16119_v59 = vld [vmem:[%s17614_s4 + $0x2670] ss:$148 sps:$4 sm:$0xff]  }
 0x352   : > { %10510 = vmatpush1.bf16.msra.mxu0 %v16020_v55  ;;  %10639 = vmatpush1.bf16.msra.mxu1 %v16023_v56  ;;  %v16118_v55 = vld [vmem:[%s17614_s4 + $0x266c] ss:$148 sps:$4 sm:$0xff]   ;;  %v16121_v56 = vld [vmem:[%s17614_s4 + $0x2674] ss:$148 sps:$4 sm:$0xff]  }
 0x353   : > { %10511 = vmatprep.subr.bf16.mxu0 %v16028_v57  ;;  %10640 = vmatprep.subr.bf16.mxu1 %v16031_v58  ;;  %v17175_v57 = vld [vmem:[%s17612_s27 + $0x8] ss:$20 sps:$4 sm:$0xff]   ;;  %v16116_v58 = vld [vmem:[%s17614_s4 + $0x2668] ss:$148 sps:$4 sm:$0xff]  }
 0x356   : > { %10512 = vmatpush1.bf16.msra.mxu0 %v16026_v60  ;;  %10641 = vmatpush1.bf16.msra.mxu1 %v16029_v61  ;;  %v16124_v60 = vld [vmem:[%s17614_s4 + $0x2794] ss:$148 sps:$4 sm:$0xff]   ;;  %v16127_v61 = vld [vmem:[%s17614_s4 + $0x279c] ss:$148 sps:$4 sm:$0xff]  }
 0x357   : > { %10513 = vmatprep.subr.bf16.mxu0 %v16034_v62  ;;  %10642 = vmatprep.subr.bf16.mxu1 %v16037_v54  ;;  %v16122_v62 = vld [vmem:[%s17614_s4 + $0x2790] ss:$148 sps:$4 sm:$0xff]   ;;  %v16125_v54 = vld [vmem:[%s17614_s4 + $0x2798] ss:$148 sps:$4 sm:$0xff]  }
 0x35a   : > { %10514 = vmatpush1.bf16.msra.mxu0 %v16032_v63  ;;  %10643 = vmatpush1.bf16.msra.mxu1 %v16035_v0  ;;  %v16130_v63 = vld [vmem:[%s17614_s4 + $0x28bc] ss:$148 sps:$4 sm:$0xff]   ;;  %v16133_v0 = vld [vmem:[%s17614_s4 + $0x28c4] ss:$148 sps:$4 sm:$0xff]  }
 0x35b   : > { %10515 = vmatprep.subr.bf16.mxu0 %v16040_v1  ;;  %10644 = vmatprep.subr.bf16.mxu1 %v16043_v2  ;;  %v16128_v1 = vld [vmem:[%s17614_s4 + $0x28b8] ss:$148 sps:$4 sm:$0xff]   ;;  %v16131_v2 = vld [vmem:[%s17614_s4 + $0x28c0] ss:$148 sps:$4 sm:$0xff]  }
 0x35e   : > { %10516 = vmatpush1.bf16.msra.mxu0 %v16038_v3  ;;  %10645 = vmatpush1.bf16.msra.mxu1 %v16041_v4  ;;  %v16136_v3 = vld [vmem:[%s17614_s4 + $0x29e4] ss:$148 sps:$4 sm:$0xff]   ;;  %v16139_v4 = vld [vmem:[%s17614_s4 + $0x29ec] ss:$148 sps:$4 sm:$0xff]  }
 0x35f   : > { %10517 = vmatprep.subr.bf16.mxu0 %v16046_v5  ;;  %10646 = vmatprep.subr.bf16.mxu1 %v16049_v6  ;;  %v16134_v5 = vld [vmem:[%s17614_s4 + $0x29e0] ss:$148 sps:$4 sm:$0xff]   ;;  %v16137_v6 = vld [vmem:[%s17614_s4 + $0x29e8] ss:$148 sps:$4 sm:$0xff]  }
 0x362   : > { %10518 = vmatpush1.bf16.msra.mxu0 %v16044_v7  ;;  %10647 = vmatpush1.bf16.msra.mxu1 %v16047_v8  ;;  %v16142_v7 = vld [vmem:[%s17614_s4 + $0x2b0c] ss:$148 sps:$4 sm:$0xff]   ;;  %v16145_v8 = vld [vmem:[%s17614_s4 + $0x2b14] ss:$148 sps:$4 sm:$0xff]  }
 0x363   : > { %10519 = vmatprep.subr.bf16.mxu0 %v16052_v9  ;;  %10648 = vmatprep.subr.bf16.mxu1 %v16055_v10  ;;  %v16140_v9 = vld [vmem:[%s17614_s4 + $0x2b08] ss:$148 sps:$4 sm:$0xff]   ;;  %v16143_v10 = vld [vmem:[%s17614_s4 + $0x2b10] ss:$148 sps:$4 sm:$0xff]  }
 0x366   : > { %10520 = vmatpush1.bf16.msra.mxu0 %v16050_v11  ;;  %10649 = vmatpush1.bf16.msra.mxu1 %v16053_v12  ;;  %v16148_v11 = vld [vmem:[%s17614_s4 + $0x2c34] ss:$148 sps:$4 sm:$0xff]   ;;  %v16151_v12 = vld [vmem:[%s17614_s4 + $0x2c3c] ss:$148 sps:$4 sm:$0xff]  }
 0x367   : > { %10521 = vmatprep.subr.bf16.mxu0 %v16058_v13  ;;  %10650 = vmatprep.subr.bf16.mxu1 %v16061_v14  ;;  %v16146_v13 = vld [vmem:[%s17614_s4 + $0x2c30] ss:$148 sps:$4 sm:$0xff]   ;;  %v16149_v14 = vld [vmem:[%s17614_s4 + $0x2c38] ss:$148 sps:$4 sm:$0xff]  }
 0x36a   : > { %10522 = vmatpush1.bf16.msra.mxu0 %v16056_v15  ;;  %10651 = vmatpush1.bf16.msra.mxu1 %v16059_v16  ;;  %v16154_v15 = vld [vmem:[%s17614_s4 + $0x2d5c] ss:$148 sps:$4 sm:$0xff]   ;;  %v16157_v16 = vld [vmem:[%s17614_s4 + $0x2d64] ss:$148 sps:$4 sm:$0xff]  }
 0x36b   : > { %10523 = vmatprep.subr.bf16.mxu0 %v16064_v17  ;;  %10652 = vmatprep.subr.bf16.mxu1 %v16067_v18  ;;  %v16152_v17 = vld [vmem:[%s17614_s4 + $0x2d58] ss:$148 sps:$4 sm:$0xff]   ;;  %v16155_v18 = vld [vmem:[%s17614_s4 + $0x2d60] ss:$148 sps:$4 sm:$0xff]  }
 0x36e   : > { %10524 = vmatpush1.bf16.msra.mxu0 %v16062_v19  ;;  %10653 = vmatpush1.bf16.msra.mxu1 %v16065_v20  ;;  %v16160_v19 = vld [vmem:[%s17614_s4 + $0x54] ss:$148 sps:$4 sm:$0xff]   ;;  %v16163_v20 = vld [vmem:[%s17614_s4 + $0x5c] ss:$148 sps:$4 sm:$0xff]  }
 0x36f   : > { %10525 = vmatprep.subr.bf16.mxu0 %v16070_v21  ;;  %10654 = vmatprep.subr.bf16.mxu1 %v16073_v23  ;;  %v16158_v21 = vld [vmem:[%s17614_s4 + $0x50] ss:$148 sps:$4 sm:$0xff]   ;;  %v16161_v23 = vld [vmem:[%s17614_s4 + $0x58] ss:$148 sps:$4 sm:$0xff]  }
 0x372   : > { %10526 = vmatpush1.bf16.msra.mxu0 %v16068_v24  ;;  %10655 = vmatpush1.bf16.msra.mxu1 %v16071_v25  ;;  %v16166_v24 = vld [vmem:[%s17614_s4 + $0x17c] ss:$148 sps:$4 sm:$0xff]   ;;  %v16169_v25 = vld [vmem:[%s17614_s4 + $0x184] ss:$148 sps:$4 sm:$0xff]  }
 0x373   : > { %10527 = vmatprep.subr.bf16.mxu0 %v16076_v26  ;;  %10656 = vmatprep.subr.bf16.mxu1 %v16079_v27  ;;  %v18911_v26 = vld [vmem:[%s17612_s27 + $0x10] ss:$20 sps:$4 sm:$0xff]   ;;  %v16164_v27 = vld [vmem:[%s17614_s4 + $0x178] ss:$148 sps:$4 sm:$0xff]  }
 0x376   : > { %10528 = vmatpush1.bf16.msra.mxu0 %v16074_v28  ;;  %10657 = vmatpush1.bf16.msra.mxu1 %v16077_v29  ;;  %v16167_v28 = vld [vmem:[%s17614_s4 + $0x180] ss:$148 sps:$4 sm:$0xff]   ;;  %v16172_v29 = vld [vmem:[%s17614_s4 + $0x2a4] ss:$148 sps:$4 sm:$0xff]  }
 0x377   : > { %10529 = vmatprep.subr.bf16.mxu0 %v16082_v30  ;;  %10658 = vmatprep.subr.bf16.mxu1 %v16085_v31  ;;  %v16175_v30 = vld [vmem:[%s17614_s4 + $0x2ac] ss:$148 sps:$4 sm:$0xff]   ;;  %v18920_v31 = vld [vmem:[%s17612_s27 + $0x4] ss:$20 sps:$4 sm:$0xff]  }
 0x37a   : > { %10530 = vmatpush1.bf16.msra.mxu0 %v16080_v32  ;;  %10659 = vmatpush1.bf16.msra.mxu1 %v16083_v33  ;;  %v16170_v32 = vld [vmem:[%s17614_s4 + $0x2a0] ss:$148 sps:$4 sm:$0xff]   ;;  %v16173_v33 = vld [vmem:[%s17614_s4 + $0x2a8] ss:$148 sps:$4 sm:$0xff]  }
 0x37b   : > { %10531 = vmatprep.subr.bf16.mxu0 %v16088_v34  ;;  %10660 = vmatprep.subr.bf16.mxu1 %v16091_v35  ;;  %v16178_v34 = vld [vmem:[%s17614_s4 + $0x3cc] ss:$148 sps:$4 sm:$0xff]   ;;  %v16181_v35 = vld [vmem:[%s17614_s4 + $0x3d4] ss:$148 sps:$4 sm:$0xff]  }
 0x37e   : > { %10532 = vmatpush1.bf16.msra.mxu0 %v16086_v36  ;;  %10661 = vmatpush1.bf16.msra.mxu1 %v16089_v37  ;;  %v16176_v36 = vld [vmem:[%s17614_s4 + $0x3c8] ss:$148 sps:$4 sm:$0xff]   ;;  %v16179_v37 = vld [vmem:[%s17614_s4 + $0x3d0] ss:$148 sps:$4 sm:$0xff]  }
 0x37f   : > { %10533 = vmatprep.subr.bf16.mxu0 %v16094_v38  ;;  %10662 = vmatprep.subr.bf16.mxu1 %v16097_v39  ;;  %v16184_v38 = vld [vmem:[%s17614_s4 + $0x4f4] ss:$148 sps:$4 sm:$0xff]   ;;  %v16187_v39 = vld [vmem:[%s17614_s4 + $0x4fc] ss:$148 sps:$4 sm:$0xff]  }
 0x382   : > { %10534 = vmatpush1.bf16.msra.mxu0 %v16092_v40  ;;  %10663 = vmatpush1.bf16.msra.mxu1 %v16095_v41  ;;  %v16182_v40 = vld [vmem:[%s17614_s4 + $0x4f0] ss:$148 sps:$4 sm:$0xff]   ;;  %v16185_v41 = vld [vmem:[%s17614_s4 + $0x4f8] ss:$148 sps:$4 sm:$0xff]  }
 0x383   : > { %10535 = vmatprep.subr.bf16.mxu0 %v16100_v42  ;;  %10664 = vmatprep.subr.bf16.mxu1 %v16103_v43  ;;  %v16190_v42 = vld [vmem:[%s17614_s4 + $0x61c] ss:$148 sps:$4 sm:$0xff]   ;;  %v16193_v43 = vld [vmem:[%s17614_s4 + $0x624] ss:$148 sps:$4 sm:$0xff]  }
 0x386   : > { %10536 = vmatpush1.bf16.msra.mxu0 %v16098_v44  ;;  %10665 = vmatpush1.bf16.msra.mxu1 %v16101_v45  ;;  %v16188_v44 = vld [vmem:[%s17614_s4 + $0x618] ss:$148 sps:$4 sm:$0xff]   ;;  %v16191_v45 = vld [vmem:[%s17614_s4 + $0x620] ss:$148 sps:$4 sm:$0xff]  }
 0x387   : > { %10537 = vmatprep.subr.bf16.mxu0 %v16106_v46  ;;  %10666 = vmatprep.subr.bf16.mxu1 %v16109_v47  ;;  %v16196_v46 = vld [vmem:[%s17614_s4 + $0x744] ss:$148 sps:$4 sm:$0xff]   ;;  %v16199_v47 = vld [vmem:[%s17614_s4 + $0x74c] ss:$148 sps:$4 sm:$0xff]  }
 0x38a   : > { %10538 = vmatpush1.bf16.msra.mxu0 %v16104_v48  ;;  %10667 = vmatpush1.bf16.msra.mxu1 %v16107_v49  ;;  %v16194_v48 = vld [vmem:[%s17614_s4 + $0x740] ss:$148 sps:$4 sm:$0xff]   ;;  %v16197_v49 = vld [vmem:[%s17614_s4 + $0x748] ss:$148 sps:$4 sm:$0xff]  }
 0x38b   : > { %10550 = vmatprep.subr.bf16.mxu0 %v16112_v50  ;;  %10679 = vmatprep.subr.bf16.mxu1 %v16115_v51  ;;  %v16202_v50 = vld [vmem:[%s17614_s4 + $0x86c] ss:$148 sps:$4 sm:$0xff]   ;;  %v16205_v51 = vld [vmem:[%s17614_s4 + $0x874] ss:$148 sps:$4 sm:$0xff]  }
 0x38d   : > { %10540 = vmatmul.mubr.bf16.vlgmr.msra.gmra.mrb[16].mxu0 %v17175_v57  ;;  %10669 = vmatmul.mubr.bf16.vlgmr.msra.gmra.mrb[16].mxu1 %v17175_v57  ;;  %v16206_v57 = vld [vmem:[%s17614_s4 + $0x990] ss:$148 sps:$4 sm:$0xff]  }
 0x38e   : > { %10551 = vmatpush1.bf16.msra.mxu0 %v16110_v52  ;;  %10680 = vmatpush1.bf16.msra.mxu1 %v16113_v53  ;;  %v16200_v52 = vld [vmem:[%s17614_s4 + $0x868] ss:$148 sps:$4 sm:$0xff]   ;;  %v16203_v53 = vld [vmem:[%s17614_s4 + $0x870] ss:$148 sps:$4 sm:$0xff]  }
 0x38f   : > { %10552 = vmatprep.subr.bf16.mxu0 %v16118_v55  ;;  %10681 = vmatprep.subr.bf16.mxu1 %v16121_v56  ;;  %v16208_v55 = vld [vmem:[%s17614_s4 + $0x994] ss:$148 sps:$4 sm:$0xff]   ;;  %v16211_v56 = vld [vmem:[%s17614_s4 + $0x99c] ss:$148 sps:$4 sm:$0xff]  }
 0x390   : > { %10582 = vmatprep.mubr.bf16.mxu0 %v17459_v22  ;;  %10711 = vmatprep.mubr.bf16.mxu1 %v17459_v22 }
 0x392   : > { %10553 = vmatpush1.bf16.msra.mxu0 %v16116_v58  ;;  %10682 = vmatpush1.bf16.msra.mxu1 %v16119_v59  ;;  %v16209_v58 = vld [vmem:[%s17614_s4 + $0x998] ss:$148 sps:$4 sm:$0xff]   ;;  %v16214_v59 = vld [vmem:[%s17614_s4 + $0xabc] ss:$148 sps:$4 sm:$0xff]  }
 0x393   : > { %10554 = vmatprep.subr.bf16.mxu0 %v16124_v60  ;;  %10683 = vmatprep.subr.bf16.mxu1 %v16127_v61  ;;  %v16217_v60 = vld [vmem:[%s17614_s4 + $0xac4] ss:$148 sps:$4 sm:$0xff]  }
 0x394   : > { %v16212_v61 = vld [vmem:[%s17614_s4 + $0xab8] ss:$148 sps:$4 sm:$0xff]  }
 0x396   : > { %10555 = vmatpush1.bf16.msra.mxu0 %v16122_v62  ;;  %10684 = vmatpush1.bf16.msra.mxu1 %v16125_v54  ;;  %v16215_v62 = vld [vmem:[%s17614_s4 + $0xac0] ss:$148 sps:$4 sm:$0xff]   ;;  %v16220_v54 = vld [vmem:[%s17614_s4 + $0xbe4] ss:$148 sps:$4 sm:$0xff]  }
 0x397   : > { %10556 = vmatprep.subr.bf16.mxu0 %v16130_v63  ;;  %10685 = vmatprep.subr.bf16.mxu1 %v16133_v0  ;;  %v16223_v63 = vld [vmem:[%s17614_s4 + $0xbec] ss:$148 sps:$4 sm:$0xff]  }
 0x398   : > { %v16218_v0 = vld [vmem:[%s17614_s4 + $0xbe0] ss:$148 sps:$4 sm:$0xff]  }
 0x39a   : > { %10557 = vmatpush1.bf16.msra.mxu0 %v16128_v1  ;;  %10686 = vmatpush1.bf16.msra.mxu1 %v16131_v2  ;;  %v16221_v1 = vld [vmem:[%s17614_s4 + $0xbe8] ss:$148 sps:$4 sm:$0xff]   ;;  %v16226_v2 = vld [vmem:[%s17614_s4 + $0xd0c] ss:$148 sps:$4 sm:$0xff]  }
 0x39b   : > { %10558 = vmatprep.subr.bf16.mxu0 %v16136_v3  ;;  %10687 = vmatprep.subr.bf16.mxu1 %v16139_v4  ;;  %v16229_v3 = vld [vmem:[%s17614_s4 + $0xd14] ss:$148 sps:$4 sm:$0xff]  }
 0x39c   : > { %v16224_v4 = vld [vmem:[%s17614_s4 + $0xd08] ss:$148 sps:$4 sm:$0xff]  }
 0x39e   : > { %10559 = vmatpush1.bf16.msra.mxu0 %v16134_v5  ;;  %10688 = vmatpush1.bf16.msra.mxu1 %v16137_v6  ;;  %v16227_v5 = vld [vmem:[%s17614_s4 + $0xd10] ss:$148 sps:$4 sm:$0xff]   ;;  %v16232_v6 = vld [vmem:[%s17614_s4 + $0xe34] ss:$148 sps:$4 sm:$0xff]  }
 0x39f   : > { %10560 = vmatprep.subr.bf16.mxu0 %v16142_v7  ;;  %10689 = vmatprep.subr.bf16.mxu1 %v16145_v8  ;;  %v16235_v7 = vld [vmem:[%s17614_s4 + $0xe3c] ss:$148 sps:$4 sm:$0xff]  }
 0x3a0   : > { %v16230_v8 = vld [vmem:[%s17614_s4 + $0xe30] ss:$148 sps:$4 sm:$0xff]  }
 0x3a2   : > { %10561 = vmatpush1.bf16.msra.mxu0 %v16140_v9  ;;  %10690 = vmatpush1.bf16.msra.mxu1 %v16143_v10  ;;  %v16233_v9 = vld [vmem:[%s17614_s4 + $0xe38] ss:$148 sps:$4 sm:$0xff]   ;;  %v16238_v10 = vld [vmem:[%s17614_s4 + $0xf5c] ss:$148 sps:$4 sm:$0xff]  }
 0x3a3   : > { %10562 = vmatprep.subr.bf16.mxu0 %v16148_v11  ;;  %10691 = vmatprep.subr.bf16.mxu1 %v16151_v12  ;;  %v16241_v11 = vld [vmem:[%s17614_s4 + $0xf64] ss:$148 sps:$4 sm:$0xff]   ;;  %v378_v12 = vld [vmem:[%s21394_s3 + $0x60] sm:$0xff] }
 0x3a6   : > { %10563 = vmatpush1.bf16.msra.mxu0 %v16146_v13  ;;  %10692 = vmatpush1.bf16.msra.mxu1 %v16149_v14  ;;  %v380_v13 = vld [vmem:[%s21394_s3 + $0x70] sm:$0xff]  ;;  %v379_v14 = vld [vmem:[%s21394_s3 + $0x68] sm:$0xff] }
 0x3a7   : > { %10564 = vmatprep.subr.bf16.mxu0 %v16154_v15  ;;  %10693 = vmatprep.subr.bf16.mxu1 %v16157_v16  ;;  %v16236_v15 = vld [vmem:[%s17614_s4 + $0xf58] ss:$148 sps:$4 sm:$0xff]   ;;  %v16239_v16 = vld [vmem:[%s17614_s4 + $0xf60] ss:$148 sps:$4 sm:$0xff]  }
 0x3aa   : > { %10565 = vmatpush1.bf16.msra.mxu0 %v16152_v17  ;;  %10694 = vmatpush1.bf16.msra.mxu1 %v16155_v18  ;;  %v381_v17 = vld [vmem:[%s21394_s3 + $0x78] sm:$0xff]  ;;  %v16244_v18 = vld [vmem:[%s17614_s4 + $0x1084] ss:$148 sps:$4 sm:$0xff]  }
 0x3ab   : > { %10722 = vmatprep.subr.bf16.mxu0 %v16160_v19  ;;  %10851 = vmatprep.subr.bf16.mxu1 %v16163_v20  ;;  %v16247_v19 = vld [vmem:[%s17614_s4 + $0x108c] ss:$148 sps:$4 sm:$0xff]  }
 0x3ad   : > { %10583 = vmatmul.mubr.bf16.vlgmr.msra.gmra.mrb[16].mxu0 %v18911_v26  ;;  %10712 = vmatmul.mubr.bf16.vlgmr.msra.gmra.mrb[16].mxu1 %v18911_v26 }
 0x3ae   : > { %10723 = vmatpush1.bf16.msra.mxu0 %v16158_v21  ;;  %10852 = vmatpush1.bf16.msra.mxu1 %v16161_v23  ;;  %v415_v23 = vld [vmem:[%s21394_s3 + $0x188] sm:$0xff] }
 0x3af   : > { %10724 = vmatprep.subr.bf16.mxu0 %v16166_v24  ;;  %10853 = vmatprep.subr.bf16.mxu1 %v16169_v25  ;;  %v417_v24 = vld [vmem:[%s21394_s3 + $0x198] sm:$0xff] }
 0x3b0   : > { %10754 = vmatprep.mubr.bf16.mxu0 %v18920_v31  ;;  %10883 = vmatprep.mubr.bf16.mxu1 %v18920_v31 }
 0x3b2   : > { %10725 = vmatpush1.bf16.msra.mxu0 %v16164_v27  ;;  %10854 = vmatpush1.bf16.msra.mxu1 %v16167_v28 }
 0x3b3   : > { %10726 = vmatprep.subr.bf16.mxu0 %v16172_v29  ;;  %10855 = vmatprep.subr.bf16.mxu1 %v16175_v30  ;;  %v416_v30 = vld [vmem:[%s21394_s3 + $0x190] sm:$0xff] }
 0x3b6   : > { %10727 = vmatpush1.bf16.msra.mxu0 %v16170_v32  ;;  %10856 = vmatpush1.bf16.msra.mxu1 %v16173_v33  ;;  %v418_v32 = vld [vmem:[%s21394_s3 + $0x1a0] sm:$0xff] }
 0x3b7   : > { %10728 = vmatprep.subr.bf16.mxu0 %v16178_v34  ;;  %10857 = vmatprep.subr.bf16.mxu1 %v16181_v35 }
 0x3ba   : > { %10729 = vmatpush1.bf16.msra.mxu0 %v16176_v36  ;;  %10858 = vmatpush1.bf16.msra.mxu1 %v16179_v37  ;;  %v16242_v37 = vld [vmem:[%s17614_s4 + $0x1080] ss:$148 sps:$4 sm:$0xff]  }
 0x3bb   : > { %10730 = vmatprep.subr.bf16.mxu0 %v16184_v38  ;;  %10859 = vmatprep.subr.bf16.mxu1 %v16187_v39  ;;  %v16245_v38 = vld [vmem:[%s17614_s4 + $0x1088] ss:$148 sps:$4 sm:$0xff]  }
 0x3be   : > { %10731 = vmatpush1.bf16.msra.mxu0 %v16182_v40  ;;  %10860 = vmatpush1.bf16.msra.mxu1 %v16185_v41 }
 0x3bf   : > { %10732 = vmatprep.subr.bf16.mxu0 %v16190_v42  ;;  %10861 = vmatprep.subr.bf16.mxu1 %v16193_v43  ;;  %v16250_v43 = vld [vmem:[%s17614_s4 + $0x11ac] ss:$148 sps:$4 sm:$0xff]  }
 0x3c2   : > { %10733 = vmatpush1.bf16.msra.mxu0 %v16188_v44  ;;  %10862 = vmatpush1.bf16.msra.mxu1 %v16191_v45  ;;  %v16253_v44 = vld [vmem:[%s17614_s4 + $0x11b4] ss:$148 sps:$4 sm:$0xff]  }
 0x3c3   : > { %10734 = vmatprep.subr.bf16.mxu0 %v16196_v46  ;;  %10863 = vmatprep.subr.bf16.mxu1 %v16199_v47  ;;  %v16248_v47 = vld [vmem:[%s17614_s4 + $0x11a8] ss:$148 sps:$4 sm:$0xff]  }
 0x3c6   : > { %10735 = vmatpush1.bf16.msra.mxu0 %v16194_v48  ;;  %10864 = vmatpush1.bf16.msra.mxu1 %v16197_v49  ;;  %v16251_v48 = vld [vmem:[%s17614_s4 + $0x11b0] ss:$148 sps:$4 sm:$0xff]   ;;  %v16256_v49 = vld [vmem:[%s17614_s4 + $0x12d4] ss:$148 sps:$4 sm:$0xff]  }
 0x3c7   : > { %10736 = vmatprep.subr.bf16.mxu0 %v16202_v50  ;;  %10865 = vmatprep.subr.bf16.mxu1 %v16205_v51  ;;  %v16259_v50 = vld [vmem:[%s17614_s4 + $0x12dc] ss:$148 sps:$4 sm:$0xff]  }
 0x3c8   : > { %v16254_v51 = vld [vmem:[%s17614_s4 + $0x12d0] ss:$148 sps:$4 sm:$0xff]  }
 0x3ca   : > { %10737 = vmatpush1.bf16.msra.mxu0 %v16200_v52  ;;  %10866 = vmatpush1.bf16.msra.mxu1 %v16203_v53  ;;  %v16257_v52 = vld [vmem:[%s17614_s4 + $0x12d8] ss:$148 sps:$4 sm:$0xff]   ;;  %v16262_v53 = vld [vmem:[%s17614_s4 + $0x13fc] ss:$148 sps:$4 sm:$0xff]  }
 0x3cb   : > { %10738 = vmatprep.subr.bf16.mxu0 %v16208_v55  ;;  %10867 = vmatprep.subr.bf16.mxu1 %v16211_v56  ;;  %v16265_v55 = vld [vmem:[%s17614_s4 + $0x1404] ss:$148 sps:$4 sm:$0xff]  }
 0x3cc   : > { %v19033_v56 = vld [vmem:[%s17612_s27] ss:$20 sps:$4 sm:$0xff]  }
 0x3ce   : > { %10739 = vmatpush1.bf16.msra.mxu0 %v16206_v57  ;;  %10868 = vmatpush1.bf16.msra.mxu1 %v16209_v58  ;;  %v16260_v57 = vld [vmem:[%s17614_s4 + $0x13f8] ss:$148 sps:$4 sm:$0xff]   ;;  %v16263_v58 = vld [vmem:[%s17614_s4 + $0x1400] ss:$148 sps:$4 sm:$0xff]  }
 0x3cf   : > { %10740 = vmatprep.subr.bf16.mxu0 %v16214_v59  ;;  %10869 = vmatprep.subr.bf16.mxu1 %v16217_v60  ;;  %v16268_v59 = vld [vmem:[%s17614_s4 + $0x1524] ss:$148 sps:$4 sm:$0xff]   ;;  %v16271_v60 = vld [vmem:[%s17614_s4 + $0x152c] ss:$148 sps:$4 sm:$0xff]  }
 0x3d2   : > { %10741 = vmatpush1.bf16.msra.mxu0 %v16212_v61  ;;  %10870 = vmatpush1.bf16.msra.mxu1 %v16215_v62  ;;  %v19042_v61 = vld [vmem:[%s17612_s27 + $0xc] ss:$20 sps:$4 sm:$0xff]   ;;  %v16266_v62 = vld [vmem:[%s17614_s4 + $0x1520] ss:$148 sps:$4 sm:$0xff]  }
 0x3d3   : > { %10742 = vmatprep.subr.bf16.mxu0 %v16220_v54  ;;  %10871 = vmatprep.subr.bf16.mxu1 %v16223_v63  ;;  %v16269_v54 = vld [vmem:[%s17614_s4 + $0x1528] ss:$148 sps:$4 sm:$0xff]   ;;  %v16274_v63 = vld [vmem:[%s17614_s4 + $0x164c] ss:$148 sps:$4 sm:$0xff]  }
 0x3d6   : > { %10743 = vmatpush1.bf16.msra.mxu0 %v16218_v0  ;;  %10872 = vmatpush1.bf16.msra.mxu1 %v16221_v1  ;;  %v16277_v0 = vld [vmem:[%s17614_s4 + $0x1654] ss:$148 sps:$4 sm:$0xff]  }
 0x3d7   : > { %10744 = vmatprep.subr.bf16.mxu0 %v16226_v2  ;;  %10873 = vmatprep.subr.bf16.mxu1 %v16229_v3  ;;  %v16272_v1 = vld [vmem:[%s17614_s4 + $0x1648] ss:$148 sps:$4 sm:$0xff]   ;;  %v16275_v2 = vld [vmem:[%s17614_s4 + $0x1650] ss:$148 sps:$4 sm:$0xff]  }
 0x3d8   : > { %v16280_v3 = vld [vmem:[%s17614_s4 + $0x1774] ss:$148 sps:$4 sm:$0xff]  }
 0x3da   : > { %10745 = vmatpush1.bf16.msra.mxu0 %v16224_v4  ;;  %10874 = vmatpush1.bf16.msra.mxu1 %v16227_v5  ;;  %v16283_v4 = vld [vmem:[%s17614_s4 + $0x177c] ss:$148 sps:$4 sm:$0xff]  }
 0x3db   : > { %10746 = vmatprep.subr.bf16.mxu0 %v16232_v6  ;;  %10875 = vmatprep.subr.bf16.mxu1 %v16235_v7  ;;  %v16278_v5 = vld [vmem:[%s17614_s4 + $0x1770] ss:$148 sps:$4 sm:$0xff]   ;;  %v16281_v6 = vld [vmem:[%s17614_s4 + $0x1778] ss:$148 sps:$4 sm:$0xff]  }
 0x3dc   : > { %v16286_v7 = vld [vmem:[%s17614_s4 + $0x189c] ss:$148 sps:$4 sm:$0xff]  }
 0x3de   : > { %10747 = vmatpush1.bf16.msra.mxu0 %v16230_v8  ;;  %10876 = vmatpush1.bf16.msra.mxu1 %v16233_v9  ;;  %v16289_v8 = vld [vmem:[%s17614_s4 + $0x18a4] ss:$148 sps:$4 sm:$0xff]  }
 0x3df   : > { %10748 = vmatprep.subr.bf16.mxu0 %v16238_v10  ;;  %10877 = vmatprep.subr.bf16.mxu1 %v16241_v11  ;;  %v16284_v9 = vld [vmem:[%s17614_s4 + $0x1898] ss:$148 sps:$4 sm:$0xff]   ;;  %v16287_v10 = vld [vmem:[%s17614_s4 + $0x18a0] ss:$148 sps:$4 sm:$0xff]  }
 0x3e0   : > { %v10326_v20 = vpop.f32.mrb[12].mxu0  ;;  %v10455_v21 = vpop.f32.mrb[12].mxu1  ;;  %v16292_v11 = vld [vmem:[%s17614_s4 + $0x19c4] ss:$148 sps:$4 sm:$0xff]  }
 0x3e1   : > { %v11889_v25 = vadd.f32 %v10326_v20, %v378_v12  ;;  %v11891_v27 = vadd.f32 %v10455_v21, %v380_v13  ;;  %v10328_v28 = vpop.f32.mrb[13].mxu0  ;;  %v10457_v29 = vpop.f32.mrb[13].mxu1  ;;  %v16295_v12 = vld [vmem:[%s17614_s4 + $0x19cc] ss:$148 sps:$4 sm:$0xff]   ;;  %v16307_v20 = vld [vmem:[%s17614_s4 + $0x1c1c] ss:$148 sps:$4 sm:$0xff]  }
 0x3e2   : > { %v11890_v33 = vadd.f32 %v10328_v28, %v379_v14  ;;  %v11892_v34 = vadd.f32 %v10457_v29, %v381_v17  ;;  %v10330_v35 = vpop.f32.mrb[14].mxu0  ;;  %v10459_v36 = vpop.f32.mrb[14].mxu1  ;;  %10749 = vmatpush1.bf16.msra.mxu0 %v16236_v15  ;;  %10878 = vmatpush1.bf16.msra.mxu1 %v16239_v16  ;;  %v16290_v13 = vld [vmem:[%s17614_s4 + $0x19c0] ss:$148 sps:$4 sm:$0xff]   ;;  %v16293_v14 = vld [vmem:[%s17614_s4 + $0x19c8] ss:$148 sps:$4 sm:$0xff]  }
 0x3e3   : > { %11963 = vst [vmem:[%s21394_s3 + $0x60] sm:$0xff] %v11889_v25  ;;  %11965 = vst [vmem:[%s21394_s3 + $0x70] sm:$0xff] %v11891_v27  ;;  %v11926_v39 = vadd.f32 %v10330_v35, %v415_v23  ;;  %v11928_v40 = vadd.f32 %v10459_v36, %v417_v24  ;;  %v10332_v41 = vpop.f32.mrb[15].mxu0  ;;  %v10461_v42 = vpop.f32.mrb[15].mxu1  ;;  %10750 = vmatprep.subr.bf16.mxu0 %v16244_v18  ;;  %10879 = vmatprep.subr.bf16.mxu1 %v16247_v19  ;;  %v16298_v15 = vld [vmem:[%s17614_s4 + $0x1aec] ss:$148 sps:$4 sm:$0xff]  }
 0x3e4   : > { %11964 = vst [vmem:[%s21394_s3 + $0x68] sm:$0xff] %v11890_v33  ;;  %11966 = vst [vmem:[%s21394_s3 + $0x78] sm:$0xff] %v11892_v34  ;;  %v11927_v45 = vadd.f32 %v10332_v41, %v416_v30  ;;  %v11929_v46 = vadd.f32 %v10461_v42, %v418_v32  ;;  %v16301_v16 = vld [vmem:[%s17614_s4 + $0x1af4] ss:$148 sps:$4 sm:$0xff]   ;;  %v16299_v18 = vld [vmem:[%s17614_s4 + $0x1af0] ss:$148 sps:$4 sm:$0xff]  }
 0x3e5   : > { %12000 = vst [vmem:[%s21394_s3 + $0x188] sm:$0xff] %v11926_v39  ;;  %12002 = vst [vmem:[%s21394_s3 + $0x198] sm:$0xff] %v11928_v40  ;;  %v16296_v17 = vld [vmem:[%s17614_s4 + $0x1ae8] ss:$148 sps:$4 sm:$0xff]   ;;  %v16302_v21 = vld [vmem:[%s17614_s4 + $0x1c10] ss:$148 sps:$4 sm:$0xff]  }
 0x3e6   : > { %12001 = vst [vmem:[%s21394_s3 + $0x190] sm:$0xff] %v11927_v45  ;;  %12003 = vst [vmem:[%s21394_s3 + $0x1a0] sm:$0xff] %v11929_v46  ;;  %10751 = vmatpush1.bf16.msra.mxu0 %v16242_v37  ;;  %10880 = vmatpush1.bf16.msra.mxu1 %v16245_v38  ;;  %v16304_v19 = vld [vmem:[%s17614_s4 + $0x1c14] ss:$148 sps:$4 sm:$0xff]   ;;  %v16305_v23 = vld [vmem:[%s17614_s4 + $0x1c18] ss:$148 sps:$4 sm:$0xff]  }
 0x3e7   : > { %10752 = vmatprep.subr.bf16.mxu0 %v16250_v43  ;;  %10881 = vmatprep.subr.bf16.mxu1 %v16253_v44  ;;  %v16310_v24 = vld [vmem:[%s17614_s4 + $0x1d3c] ss:$148 sps:$4 sm:$0xff]   ;;  %v16313_v25 = vld [vmem:[%s17614_s4 + $0x1d44] ss:$148 sps:$4 sm:$0xff]   ;;  %v16311_v28 = vld [vmem:[%s17614_s4 + $0x1d40] ss:$148 sps:$4 sm:$0xff]  }
 0x3e8   : > { %v16308_v27 = vld [vmem:[%s17614_s4 + $0x1d38] ss:$148 sps:$4 sm:$0xff]   ;;  %v16314_v32 = vld [vmem:[%s17614_s4 + $0x1e60] ss:$148 sps:$4 sm:$0xff]   ;;  %v16317_v33 = vld [vmem:[%s17614_s4 + $0x1e68] ss:$148 sps:$4 sm:$0xff]  }
 0x3e9   : > { %v16316_v29 = vld [vmem:[%s17614_s4 + $0x1e64] ss:$148 sps:$4 sm:$0xff]   ;;  %v16319_v30 = vld [vmem:[%s17614_s4 + $0x1e6c] ss:$148 sps:$4 sm:$0xff]   ;;  %v16325_v35 = vld [vmem:[%s17614_s4 + $0x1f94] ss:$148 sps:$4 sm:$0xff]  }
 0x3ea   : > { %10753 = vmatpush1.bf16.msra.mxu0 %v16248_v47  ;;  %10882 = vmatpush1.bf16.msra.mxu1 %v16251_v48  ;;  %v16322_v34 = vld [vmem:[%s17614_s4 + $0x1f8c] ss:$148 sps:$4 sm:$0xff]   ;;  %v16320_v36 = vld [vmem:[%s17614_s4 + $0x1f88] ss:$148 sps:$4 sm:$0xff]   ;;  %v16323_v37 = vld [vmem:[%s17614_s4 + $0x1f90] ss:$148 sps:$4 sm:$0xff]  }
 0x3eb   : > { %10765 = vmatprep.subr.bf16.mxu0 %v16256_v49  ;;  %10894 = vmatprep.subr.bf16.mxu1 %v16259_v50  ;;  %v16328_v38 = vld [vmem:[%s17614_s4 + $0x20b4] ss:$148 sps:$4 sm:$0xff]   ;;  %v16331_v39 = vld [vmem:[%s17614_s4 + $0x20bc] ss:$148 sps:$4 sm:$0xff]   ;;  %v16329_v41 = vld [vmem:[%s17614_s4 + $0x20b8] ss:$148 sps:$4 sm:$0xff]  }
 0x3ec   : > { %v16326_v40 = vld [vmem:[%s17614_s4 + $0x20b0] ss:$148 sps:$4 sm:$0xff]   ;;  %v16332_v44 = vld [vmem:[%s17614_s4 + $0x21d8] ss:$148 sps:$4 sm:$0xff]   ;;  %v16335_v45 = vld [vmem:[%s17614_s4 + $0x21e0] ss:$148 sps:$4 sm:$0xff]  }
 0x3ed   : > { %10755 = vmatmul.mubr.bf16.vlgmr.msra.gmra.mrb[20].mxu0 %v19033_v56  ;;  %10884 = vmatmul.mubr.bf16.vlgmr.msra.gmra.mrb[20].mxu1 %v19033_v56  ;;  %v16334_v42 = vld [vmem:[%s17614_s4 + $0x21dc] ss:$148 sps:$4 sm:$0xff]   ;;  %v16337_v43 = vld [vmem:[%s17614_s4 + $0x21e4] ss:$148 sps:$4 sm:$0xff]   ;;  %v16343_v47 = vld [vmem:[%s17614_s4 + $0x230c] ss:$148 sps:$4 sm:$0xff]  }
 0x3ee   : > { %10766 = vmatpush1.bf16.msra.mxu0 %v16254_v51  ;;  %10895 = vmatpush1.bf16.msra.mxu1 %v16257_v52  ;;  %v16340_v46 = vld [vmem:[%s17614_s4 + $0x2304] ss:$148 sps:$4 sm:$0xff]   ;;  %v16338_v48 = vld [vmem:[%s17614_s4 + $0x2300] ss:$148 sps:$4 sm:$0xff]   ;;  %v16341_v49 = vld [vmem:[%s17614_s4 + $0x2308] ss:$148 sps:$4 sm:$0xff]  }
 0x3ef   : > { %10767 = vmatprep.subr.bf16.mxu0 %v16262_v53  ;;  %10896 = vmatprep.subr.bf16.mxu1 %v16265_v55  ;;  %v16346_v50 = vld [vmem:[%s17614_s4 + $0x242c] ss:$148 sps:$4 sm:$0xff]   ;;  %v16349_v51 = vld [vmem:[%s17614_s4 + $0x2434] ss:$148 sps:$4 sm:$0xff]   ;;  %v16347_v53 = vld [vmem:[%s17614_s4 + $0x2430] ss:$148 sps:$4 sm:$0xff]  }
 0x3f0   : > { %10797 = vmatprep.mubr.bf16.mxu0 %v19042_v61  ;;  %10926 = vmatprep.mubr.bf16.mxu1 %v19042_v61  ;;  %v16344_v52 = vld [vmem:[%s17614_s4 + $0x2428] ss:$148 sps:$4 sm:$0xff]  }
 0x3f1   : > { %v16352_v55 = vld [vmem:[%s17614_s4 + $0x2554] ss:$148 sps:$4 sm:$0xff]  }
 0x3f2   : > { %10768 = vmatpush1.bf16.msra.mxu0 %v16260_v57  ;;  %10897 = vmatpush1.bf16.msra.mxu1 %v16263_v58  ;;  %v16355_v57 = vld [vmem:[%s17614_s4 + $0x255c] ss:$148 sps:$4 sm:$0xff]  }
 0x3f3   : > { %10769 = vmatprep.subr.bf16.mxu0 %v16268_v59  ;;  %10898 = vmatprep.subr.bf16.mxu1 %v16271_v60  ;;  %v16350_v58 = vld [vmem:[%s17614_s4 + $0x2550] ss:$148 sps:$4 sm:$0xff]   ;;  %v16353_v59 = vld [vmem:[%s17614_s4 + $0x2558] ss:$148 sps:$4 sm:$0xff]  }
 0x3f4   : > { %v16358_v60 = vld [vmem:[%s17614_s4 + $0x267c] ss:$148 sps:$4 sm:$0xff]  }
 0x3f6   : > { %10770 = vmatpush1.bf16.msra.mxu0 %v16266_v62  ;;  %10899 = vmatpush1.bf16.msra.mxu1 %v16269_v54  ;;  %v16361_v62 = vld [vmem:[%s17614_s4 + $0x2684] ss:$148 sps:$4 sm:$0xff]  }
 0x3f7   : > { %10771 = vmatprep.subr.bf16.mxu0 %v16274_v63  ;;  %10900 = vmatprep.subr.bf16.mxu1 %v16277_v0  ;;  %v19107_v54 = vld [vmem:[%s17612_s27 + $0x8] ss:$20 sps:$4 sm:$0xff]  }
 0x3f8   : > { %v16356_v63 = vld [vmem:[%s17614_s4 + $0x2678] ss:$148 sps:$4 sm:$0xff]   ;;  %v16359_v0 = vld [vmem:[%s17614_s4 + $0x2680] ss:$148 sps:$4 sm:$0xff]  }
 0x3fa   : > { %10772 = vmatpush1.bf16.msra.mxu0 %v16272_v1  ;;  %10901 = vmatpush1.bf16.msra.mxu1 %v16275_v2  ;;  %v16364_v1 = vld [vmem:[%s17614_s4 + $0x27a4] ss:$148 sps:$4 sm:$0xff]   ;;  %v16367_v2 = vld [vmem:[%s17614_s4 + $0x27ac] ss:$148 sps:$4 sm:$0xff]  }
 0x3fb   : > { %10773 = vmatprep.subr.bf16.mxu0 %v16280_v3  ;;  %10902 = vmatprep.subr.bf16.mxu1 %v16283_v4  ;;  %v16362_v3 = vld [vmem:[%s17614_s4 + $0x27a0] ss:$148 sps:$4 sm:$0xff]   ;;  %v16365_v4 = vld [vmem:[%s17614_s4 + $0x27a8] ss:$148 sps:$4 sm:$0xff]  }
 0x3fe   : > { %10774 = vmatpush1.bf16.msra.mxu0 %v16278_v5  ;;  %10903 = vmatpush1.bf16.msra.mxu1 %v16281_v6  ;;  %v16370_v5 = vld [vmem:[%s17614_s4 + $0x28cc] ss:$148 sps:$4 sm:$0xff]   ;;  %v16373_v6 = vld [vmem:[%s17614_s4 + $0x28d4] ss:$148 sps:$4 sm:$0xff]  }
 0x3ff   : > { %10775 = vmatprep.subr.bf16.mxu0 %v16286_v7  ;;  %10904 = vmatprep.subr.bf16.mxu1 %v16289_v8  ;;  %v16368_v7 = vld [vmem:[%s17614_s4 + $0x28c8] ss:$148 sps:$4 sm:$0xff]   ;;  %v16371_v8 = vld [vmem:[%s17614_s4 + $0x28d0] ss:$148 sps:$4 sm:$0xff]  }
 0x402   : > { %10776 = vmatpush1.bf16.msra.mxu0 %v16284_v9  ;;  %10905 = vmatpush1.bf16.msra.mxu1 %v16287_v10  ;;  %v16376_v9 = vld [vmem:[%s17614_s4 + $0x29f4] ss:$148 sps:$4 sm:$0xff]   ;;  %v16379_v10 = vld [vmem:[%s17614_s4 + $0x29fc] ss:$148 sps:$4 sm:$0xff]  }
 0x403   : > { %10777 = vmatprep.subr.bf16.mxu0 %v16292_v11  ;;  %10906 = vmatprep.subr.bf16.mxu1 %v16295_v12  ;;  %v16374_v11 = vld [vmem:[%s17614_s4 + $0x29f0] ss:$148 sps:$4 sm:$0xff]   ;;  %v16377_v12 = vld [vmem:[%s17614_s4 + $0x29f8] ss:$148 sps:$4 sm:$0xff]  }
 0x406   : > { %10778 = vmatpush1.bf16.msra.mxu0 %v16290_v13  ;;  %10907 = vmatpush1.bf16.msra.mxu1 %v16293_v14  ;;  %v16382_v13 = vld [vmem:[%s17614_s4 + $0x2b1c] ss:$148 sps:$4 sm:$0xff]   ;;  %v16385_v14 = vld [vmem:[%s17614_s4 + $0x2b24] ss:$148 sps:$4 sm:$0xff]  }
 0x407   : > { %10779 = vmatprep.subr.bf16.mxu0 %v16298_v15  ;;  %10908 = vmatprep.subr.bf16.mxu1 %v16301_v16  ;;  %v16380_v15 = vld [vmem:[%s17614_s4 + $0x2b18] ss:$148 sps:$4 sm:$0xff]   ;;  %v16383_v16 = vld [vmem:[%s17614_s4 + $0x2b20] ss:$148 sps:$4 sm:$0xff]  }
 0x40a   : > { %10780 = vmatpush1.bf16.msra.mxu0 %v16296_v17  ;;  %10909 = vmatpush1.bf16.msra.mxu1 %v16299_v18  ;;  %v16388_v17 = vld [vmem:[%s17614_s4 + $0x2c44] ss:$148 sps:$4 sm:$0xff]   ;;  %v16391_v18 = vld [vmem:[%s17614_s4 + $0x2c4c] ss:$148 sps:$4 sm:$0xff]  }
 0x40b   : > { %10781 = vmatprep.subr.bf16.mxu0 %v16304_v19  ;;  %10910 = vmatprep.subr.bf16.mxu1 %v16307_v20  ;;  %v16386_v19 = vld [vmem:[%s17614_s4 + $0x2c40] ss:$148 sps:$4 sm:$0xff]   ;;  %v16389_v20 = vld [vmem:[%s17614_s4 + $0x2c48] ss:$148 sps:$4 sm:$0xff]  }
 0x40e   : > { %10782 = vmatpush1.bf16.msra.mxu0 %v16302_v21  ;;  %10911 = vmatpush1.bf16.msra.mxu1 %v16305_v23  ;;  %v16394_v21 = vld [vmem:[%s17614_s4 + $0x2d6c] ss:$148 sps:$4 sm:$0xff]   ;;  %v16397_v23 = vld [vmem:[%s17614_s4 + $0x2d74] ss:$148 sps:$4 sm:$0xff]  }
 0x40f   : > { %10783 = vmatprep.subr.bf16.mxu0 %v16310_v24  ;;  %10912 = vmatprep.subr.bf16.mxu1 %v16313_v25  ;;  %v16392_v24 = vld [vmem:[%s17614_s4 + $0x2d68] ss:$148 sps:$4 sm:$0xff]   ;;  %v16395_v25 = vld [vmem:[%s17614_s4 + $0x2d70] ss:$148 sps:$4 sm:$0xff]  }
 0x412   : > { %10784 = vmatpush1.bf16.msra.mxu0 %v16308_v27  ;;  %10913 = vmatpush1.bf16.msra.mxu1 %v16311_v28  ;;  %v16400_v27 = vld [vmem:[%s17614_s4 + $0x64] ss:$148 sps:$4 sm:$0xff]   ;;  %v16403_v28 = vld [vmem:[%s17614_s4 + $0x6c] ss:$148 sps:$4 sm:$0xff]  }
 0x413   : > { %10785 = vmatprep.subr.bf16.mxu0 %v16316_v29  ;;  %10914 = vmatprep.subr.bf16.mxu1 %v16319_v30  ;;  %v16398_v29 = vld [vmem:[%s17614_s4 + $0x60] ss:$148 sps:$4 sm:$0xff]   ;;  %v16401_v30 = vld [vmem:[%s17614_s4 + $0x68] ss:$148 sps:$4 sm:$0xff]  }
 0x416   : > { %10786 = vmatpush1.bf16.msra.mxu0 %v16314_v32  ;;  %10915 = vmatpush1.bf16.msra.mxu1 %v16317_v33  ;;  %v16406_v32 = vld [vmem:[%s17614_s4 + $0x18c] ss:$148 sps:$4 sm:$0xff]   ;;  %v16409_v33 = vld [vmem:[%s17614_s4 + $0x194] ss:$148 sps:$4 sm:$0xff]  }
 0x417   : > { %10787 = vmatprep.subr.bf16.mxu0 %v16322_v34  ;;  %10916 = vmatprep.subr.bf16.mxu1 %v16325_v35  ;;  %v16404_v34 = vld [vmem:[%s17614_s4 + $0x188] ss:$148 sps:$4 sm:$0xff]   ;;  %v16407_v35 = vld [vmem:[%s17614_s4 + $0x190] ss:$148 sps:$4 sm:$0xff]  }
 0x41a   : > { %10788 = vmatpush1.bf16.msra.mxu0 %v16320_v36  ;;  %10917 = vmatpush1.bf16.msra.mxu1 %v16323_v37  ;;  %v16412_v36 = vld [vmem:[%s17614_s4 + $0x2b4] ss:$148 sps:$4 sm:$0xff]   ;;  %v16415_v37 = vld [vmem:[%s17614_s4 + $0x2bc] ss:$148 sps:$4 sm:$0xff]  }
 0x41b   : > { %10789 = vmatprep.subr.bf16.mxu0 %v16328_v38  ;;  %10918 = vmatprep.subr.bf16.mxu1 %v16331_v39  ;;  %v16413_v38 = vld [vmem:[%s17614_s4 + $0x2b8] ss:$148 sps:$4 sm:$0xff]   ;;  %v16418_v39 = vld [vmem:[%s17614_s4 + $0x3dc] ss:$148 sps:$4 sm:$0xff]  }
 0x41e   : > { %10790 = vmatpush1.bf16.msra.mxu0 %v16326_v40  ;;  %10919 = vmatpush1.bf16.msra.mxu1 %v16329_v41  ;;  %v16421_v40 = vld [vmem:[%s17614_s4 + $0x3e4] ss:$148 sps:$4 sm:$0xff]  }
 0x41f   : > { %10791 = vmatprep.subr.bf16.mxu0 %v16334_v42  ;;  %10920 = vmatprep.subr.bf16.mxu1 %v16337_v43  ;;  %v16416_v41 = vld [vmem:[%s17614_s4 + $0x3d8] ss:$148 sps:$4 sm:$0xff]   ;;  %v16419_v42 = vld [vmem:[%s17614_s4 + $0x3e0] ss:$148 sps:$4 sm:$0xff]  }
 0x420   : > { %v16427_v43 = vld [vmem:[%s17614_s4 + $0x50c] ss:$148 sps:$4 sm:$0xff]  }
 0x422   : > { %10792 = vmatpush1.bf16.msra.mxu0 %v16332_v44  ;;  %10921 = vmatpush1.bf16.msra.mxu1 %v16335_v45  ;;  %v16422_v44 = vld [vmem:[%s17614_s4 + $0x500] ss:$148 sps:$4 sm:$0xff]   ;;  %v16425_v45 = vld [vmem:[%s17614_s4 + $0x508] ss:$148 sps:$4 sm:$0xff]  }
 0x423   : > { %10793 = vmatprep.subr.bf16.mxu0 %v16340_v46  ;;  %10922 = vmatprep.subr.bf16.mxu1 %v16343_v47  ;;  %v16430_v46 = vld [vmem:[%s17614_s4 + $0x62c] ss:$148 sps:$4 sm:$0xff]   ;;  %v16433_v47 = vld [vmem:[%s17614_s4 + $0x634] ss:$148 sps:$4 sm:$0xff]  }
 0x426   : > { %10794 = vmatpush1.bf16.msra.mxu0 %v16338_v48  ;;  %10923 = vmatpush1.bf16.msra.mxu1 %v16341_v49  ;;  %v16428_v48 = vld [vmem:[%s17614_s4 + $0x628] ss:$148 sps:$4 sm:$0xff]   ;;  %v16431_v49 = vld [vmem:[%s17614_s4 + $0x630] ss:$148 sps:$4 sm:$0xff]  }
 0x427   : > { %10795 = vmatprep.subr.bf16.mxu0 %v16346_v50  ;;  %10924 = vmatprep.subr.bf16.mxu1 %v16349_v51  ;;  %v16436_v50 = vld [vmem:[%s17614_s4 + $0x754] ss:$148 sps:$4 sm:$0xff]   ;;  %v16439_v51 = vld [vmem:[%s17614_s4 + $0x75c] ss:$148 sps:$4 sm:$0xff]  }
 0x42a   : > { %10796 = vmatpush1.bf16.msra.mxu0 %v16344_v52  ;;  %10925 = vmatpush1.bf16.msra.mxu1 %v16347_v53  ;;  %v16434_v52 = vld [vmem:[%s17614_s4 + $0x750] ss:$148 sps:$4 sm:$0xff]   ;;  %v16437_v53 = vld [vmem:[%s17614_s4 + $0x758] ss:$148 sps:$4 sm:$0xff]  }
 0x42b   : > { %10808 = vmatprep.subr.bf16.mxu0 %v16352_v55  ;;  %10937 = vmatprep.subr.bf16.mxu1 %v16355_v57  ;;  %v16442_v55 = vld [vmem:[%s17614_s4 + $0x87c] ss:$148 sps:$4 sm:$0xff]   ;;  %v16445_v57 = vld [vmem:[%s17614_s4 + $0x884] ss:$148 sps:$4 sm:$0xff]  }
 0x42d   : > { %10798 = vmatmul.mubr.bf16.vlgmr.msra.gmra.mrb[20].mxu0 %v19107_v54  ;;  %10927 = vmatmul.mubr.bf16.vlgmr.msra.gmra.mrb[20].mxu1 %v19107_v54 }
 0x42e   : > { %10809 = vmatpush1.bf16.msra.mxu0 %v16350_v58  ;;  %10938 = vmatpush1.bf16.msra.mxu1 %v16353_v59  ;;  %v16440_v58 = vld [vmem:[%s17614_s4 + $0x878] ss:$148 sps:$4 sm:$0xff]   ;;  %v16443_v59 = vld [vmem:[%s17614_s4 + $0x880] ss:$148 sps:$4 sm:$0xff]  }
 0x42f   : > { %10810 = vmatprep.subr.bf16.mxu0 %v16358_v60  ;;  %10939 = vmatprep.subr.bf16.mxu1 %v16361_v62  ;;  %v16448_v60 = vld [vmem:[%s17614_s4 + $0x9a4] ss:$148 sps:$4 sm:$0xff]   ;;  %v16451_v62 = vld [vmem:[%s17614_s4 + $0x9ac] ss:$148 sps:$4 sm:$0xff]  }
 0x430   : > { %10840 = vmatprep.mubr.bf16.mxu0 %v17459_v22  ;;  %10969 = vmatprep.mubr.bf16.mxu1 %v17459_v22 }
 0x432   : > { %10811 = vmatpush1.bf16.msra.mxu0 %v16356_v63  ;;  %10940 = vmatpush1.bf16.msra.mxu1 %v16359_v0  ;;  %v16446_v63 = vld [vmem:[%s17614_s4 + $0x9a0] ss:$148 sps:$4 sm:$0xff]   ;;  %v16449_v0 = vld [vmem:[%s17614_s4 + $0x9a8] ss:$148 sps:$4 sm:$0xff]  }
 0x433   : > { %10812 = vmatprep.subr.bf16.mxu0 %v16364_v1  ;;  %10941 = vmatprep.subr.bf16.mxu1 %v16367_v2  ;;  %v16454_v1 = vld [vmem:[%s17614_s4 + $0xacc] ss:$148 sps:$4 sm:$0xff]   ;;  %v16457_v2 = vld [vmem:[%s17614_s4 + $0xad4] ss:$148 sps:$4 sm:$0xff]  }
 0x436   : > { %10813 = vmatpush1.bf16.msra.mxu0 %v16362_v3  ;;  %10942 = vmatpush1.bf16.msra.mxu1 %v16365_v4  ;;  %v16452_v3 = vld [vmem:[%s17614_s4 + $0xac8] ss:$148 sps:$4 sm:$0xff]   ;;  %v16455_v4 = vld [vmem:[%s17614_s4 + $0xad0] ss:$148 sps:$4 sm:$0xff]  }
 0x437   : > { %10814 = vmatprep.subr.bf16.mxu0 %v16370_v5  ;;  %10943 = vmatprep.subr.bf16.mxu1 %v16373_v6  ;;  %v16460_v5 = vld [vmem:[%s17614_s4 + $0xbf4] ss:$148 sps:$4 sm:$0xff]   ;;  %v16463_v6 = vld [vmem:[%s17614_s4 + $0xbfc] ss:$148 sps:$4 sm:$0xff]  }
 0x43a   : > { %10815 = vmatpush1.bf16.msra.mxu0 %v16368_v7  ;;  %10944 = vmatpush1.bf16.msra.mxu1 %v16371_v8  ;;  %v16458_v7 = vld [vmem:[%s17614_s4 + $0xbf0] ss:$148 sps:$4 sm:$0xff]   ;;  %v16461_v8 = vld [vmem:[%s17614_s4 + $0xbf8] ss:$148 sps:$4 sm:$0xff]  }
 0x43b   : > { %10816 = vmatprep.subr.bf16.mxu0 %v16376_v9  ;;  %10945 = vmatprep.subr.bf16.mxu1 %v16379_v10  ;;  %v16466_v9 = vld [vmem:[%s17614_s4 + $0xd1c] ss:$148 sps:$4 sm:$0xff]   ;;  %v16469_v10 = vld [vmem:[%s17614_s4 + $0xd24] ss:$148 sps:$4 sm:$0xff]  }
 0x43e   : > { %10817 = vmatpush1.bf16.msra.mxu0 %v16374_v11  ;;  %10946 = vmatpush1.bf16.msra.mxu1 %v16377_v12  ;;  %v16464_v11 = vld [vmem:[%s17614_s4 + $0xd18] ss:$148 sps:$4 sm:$0xff]   ;;  %v16467_v12 = vld [vmem:[%s17614_s4 + $0xd20] ss:$148 sps:$4 sm:$0xff]  }
 0x43f   : > { %10818 = vmatprep.subr.bf16.mxu0 %v16382_v13  ;;  %10947 = vmatprep.subr.bf16.mxu1 %v16385_v14  ;;  %v16472_v13 = vld [vmem:[%s17614_s4 + $0xe44] ss:$148 sps:$4 sm:$0xff]   ;;  %v16475_v14 = vld [vmem:[%s17614_s4 + $0xe4c] ss:$148 sps:$4 sm:$0xff]  }
 0x442   : > { %10819 = vmatpush1.bf16.msra.mxu0 %v16380_v15  ;;  %10948 = vmatpush1.bf16.msra.mxu1 %v16383_v16  ;;  %v16470_v15 = vld [vmem:[%s17614_s4 + $0xe40] ss:$148 sps:$4 sm:$0xff]   ;;  %v16473_v16 = vld [vmem:[%s17614_s4 + $0xe48] ss:$148 sps:$4 sm:$0xff]  }
 0x443   : > { %10820 = vmatprep.subr.bf16.mxu0 %v16388_v17  ;;  %10949 = vmatprep.subr.bf16.mxu1 %v16391_v18  ;;  %v16478_v17 = vld [vmem:[%s17614_s4 + $0xf6c] ss:$148 sps:$4 sm:$0xff]   ;;  %v16481_v18 = vld [vmem:[%s17614_s4 + $0xf74] ss:$148 sps:$4 sm:$0xff]  }
 0x446   : > { %10821 = vmatpush1.bf16.msra.mxu0 %v16386_v19  ;;  %10950 = vmatpush1.bf16.msra.mxu1 %v16389_v20  ;;  %v382_v19 = vld [vmem:[%s21394_s3 + $0x80] sm:$0xff]  ;;  %v384_v20 = vld [vmem:[%s21394_s3 + $0x90] sm:$0xff] }
 0x447   : > { %10822 = vmatprep.subr.bf16.mxu0 %v16394_v21  ;;  %10951 = vmatprep.subr.bf16.mxu1 %v16397_v23  ;;  %v383_v21 = vld [vmem:[%s21394_s3 + $0x88] sm:$0xff] }
 0x448   : > { %v16476_v23 = vld [vmem:[%s17614_s4 + $0xf68] ss:$148 sps:$4 sm:$0xff]  }
 0x44a   : > { %10823 = vmatpush1.bf16.msra.mxu0 %v16392_v24  ;;  %10952 = vmatpush1.bf16.msra.mxu1 %v16395_v25  ;;  %v16479_v24 = vld [vmem:[%s17614_s4 + $0xf70] ss:$148 sps:$4 sm:$0xff]   ;;  %v385_v25 = vld [vmem:[%s21394_s3 + $0x98] sm:$0xff] }
 0x44b   : > { %10980 = vmatprep.subr.bf16.mxu0 %v16400_v27  ;;  %11109 = vmatprep.subr.bf16.mxu1 %v16403_v28  ;;  %v16484_v27 = vld [vmem:[%s17614_s4 + $0x1094] ss:$148 sps:$4 sm:$0xff]   ;;  %v16487_v28 = vld [vmem:[%s17614_s4 + $0x109c] ss:$148 sps:$4 sm:$0xff]  }
 0x44d   : > { %10841 = vmatmul.mubr.bf16.vlgmr.msra.gmra.mrb[20].mxu0 %v18911_v26  ;;  %10970 = vmatmul.mubr.bf16.vlgmr.msra.gmra.mrb[20].mxu1 %v18911_v26  ;;  %v16410_v26 = vld [vmem:[%s17614_s4 + $0x2b0] ss:$148 sps:$4 sm:$0xff]  }
 0x44e   : > { %10981 = vmatpush1.bf16.msra.mxu0 %v16398_v29  ;;  %11110 = vmatpush1.bf16.msra.mxu1 %v16401_v30 }
 0x44f   : > { %10982 = vmatprep.subr.bf16.mxu0 %v16406_v32  ;;  %11111 = vmatprep.subr.bf16.mxu1 %v16409_v33  ;;  %v419_v32 = vld [vmem:[%s21394_s3 + $0x1a8] sm:$0xff]  ;;  %v421_v33 = vld [vmem:[%s21394_s3 + $0x1b8] sm:$0xff] }
 0x450   : > { %11012 = vmatprep.mubr.bf16.mxu0 %v18920_v31  ;;  %11141 = vmatprep.mubr.bf16.mxu1 %v18920_v31  ;;  %v16424_v31 = vld [vmem:[%s17614_s4 + $0x504] ss:$148 sps:$4 sm:$0xff]  }
 0x452   : > { %10983 = vmatpush1.bf16.msra.mxu0 %v16404_v34  ;;  %11112 = vmatpush1.bf16.msra.mxu1 %v16407_v35 }
 0x453   : > { %10984 = vmatprep.subr.bf16.mxu0 %v16412_v36  ;;  %11113 = vmatprep.subr.bf16.mxu1 %v16415_v37 }
 0x456   : > { %10985 = vmatpush1.bf16.msra.mxu0 %v16410_v26  ;;  %11114 = vmatpush1.bf16.msra.mxu1 %v16413_v38  ;;  %v420_v26 = vld [vmem:[%s21394_s3 + $0x1b0] sm:$0xff]  ;;  %v422_v38 = vld [vmem:[%s21394_s3 + $0x1c0] sm:$0xff] }
 0x457   : > { %10986 = vmatprep.subr.bf16.mxu0 %v16418_v39  ;;  %11115 = vmatprep.subr.bf16.mxu1 %v16421_v40 }
 0x45a   : > { %10987 = vmatpush1.bf16.msra.mxu0 %v16416_v41  ;;  %11116 = vmatpush1.bf16.msra.mxu1 %v16419_v42 }
 0x45b   : > { %10988 = vmatprep.subr.bf16.mxu0 %v16424_v31  ;;  %11117 = vmatprep.subr.bf16.mxu1 %v16427_v43  ;;  %v16482_v31 = vld [vmem:[%s17614_s4 + $0x1090] ss:$148 sps:$4 sm:$0xff]   ;;  %v16485_v43 = vld [vmem:[%s17614_s4 + $0x1098] ss:$148 sps:$4 sm:$0xff]  }
 0x45e   : > { %10989 = vmatpush1.bf16.msra.mxu0 %v16422_v44  ;;  %11118 = vmatpush1.bf16.msra.mxu1 %v16425_v45 }
 0x45f   : > { %10990 = vmatprep.subr.bf16.mxu0 %v16430_v46  ;;  %11119 = vmatprep.subr.bf16.mxu1 %v16433_v47 }
 0x462   : > { %10991 = vmatpush1.bf16.msra.mxu0 %v16428_v48  ;;  %11120 = vmatpush1.bf16.msra.mxu1 %v16431_v49  ;;  %v16490_v48 = vld [vmem:[%s17614_s4 + $0x11bc] ss:$148 sps:$4 sm:$0xff]   ;;  %v16493_v49 = vld [vmem:[%s17614_s4 + $0x11c4] ss:$148 sps:$4 sm:$0xff]  }
 0x463   : > { %10992 = vmatprep.subr.bf16.mxu0 %v16436_v50  ;;  %11121 = vmatprep.subr.bf16.mxu1 %v16439_v51 }
 0x466   : > { %10993 = vmatpush1.bf16.msra.mxu0 %v16434_v52  ;;  %11122 = vmatpush1.bf16.msra.mxu1 %v16437_v53  ;;  %v16488_v52 = vld [vmem:[%s17614_s4 + $0x11b8] ss:$148 sps:$4 sm:$0xff]   ;;  %v16491_v53 = vld [vmem:[%s17614_s4 + $0x11c0] ss:$148 sps:$4 sm:$0xff]  }
 0x467   : > { %10994 = vmatprep.subr.bf16.mxu0 %v16442_v55  ;;  %11123 = vmatprep.subr.bf16.mxu1 %v16445_v57  ;;  %v16496_v55 = vld [vmem:[%s17614_s4 + $0x12e4] ss:$148 sps:$4 sm:$0xff]   ;;  %v16499_v57 = vld [vmem:[%s17614_s4 + $0x12ec] ss:$148 sps:$4 sm:$0xff]  }
 0x46a   : > { %10995 = vmatpush1.bf16.msra.mxu0 %v16440_v58  ;;  %11124 = vmatpush1.bf16.msra.mxu1 %v16443_v59  ;;  %v16494_v58 = vld [vmem:[%s17614_s4 + $0x12e0] ss:$148 sps:$4 sm:$0xff]   ;;  %v16497_v59 = vld [vmem:[%s17614_s4 + $0x12e8] ss:$148 sps:$4 sm:$0xff]  }
 0x46b   : > { %10996 = vmatprep.subr.bf16.mxu0 %v16448_v60  ;;  %11125 = vmatprep.subr.bf16.mxu1 %v16451_v62  ;;  %v16502_v60 = vld [vmem:[%s17614_s4 + $0x140c] ss:$148 sps:$4 sm:$0xff]   ;;  %v16505_v62 = vld [vmem:[%s17614_s4 + $0x1414] ss:$148 sps:$4 sm:$0xff]  }
 0x46e   : > { %10997 = vmatpush1.bf16.msra.mxu0 %v16446_v63  ;;  %11126 = vmatpush1.bf16.msra.mxu1 %v16449_v0  ;;  %v16500_v63 = vld [vmem:[%s17614_s4 + $0x1408] ss:$148 sps:$4 sm:$0xff]   ;;  %v16503_v0 = vld [vmem:[%s17614_s4 + $0x1410] ss:$148 sps:$4 sm:$0xff]  }
 0x46f   : > { %10998 = vmatprep.subr.bf16.mxu0 %v16454_v1  ;;  %11127 = vmatprep.subr.bf16.mxu1 %v16457_v2  ;;  %v16508_v1 = vld [vmem:[%s17614_s4 + $0x1534] ss:$148 sps:$4 sm:$0xff]   ;;  %v16511_v2 = vld [vmem:[%s17614_s4 + $0x153c] ss:$148 sps:$4 sm:$0xff]  }
 0x472   : > { %10999 = vmatpush1.bf16.msra.mxu0 %v16452_v3  ;;  %11128 = vmatpush1.bf16.msra.mxu1 %v16455_v4  ;;  %v16509_v3 = vld [vmem:[%s17614_s4 + $0x1538] ss:$148 sps:$4 sm:$0xff]   ;;  %v16514_v4 = vld [vmem:[%s17614_s4 + $0x165c] ss:$148 sps:$4 sm:$0xff]  }
 0x473   : > { %11000 = vmatprep.subr.bf16.mxu0 %v16460_v5  ;;  %11129 = vmatprep.subr.bf16.mxu1 %v16463_v6  ;;  %v16517_v5 = vld [vmem:[%s17614_s4 + $0x1664] ss:$148 sps:$4 sm:$0xff]  }
 0x474   : > { %v16512_v6 = vld [vmem:[%s17614_s4 + $0x1658] ss:$148 sps:$4 sm:$0xff]  }
 0x476   : > { %11001 = vmatpush1.bf16.msra.mxu0 %v16458_v7  ;;  %11130 = vmatpush1.bf16.msra.mxu1 %v16461_v8  ;;  %v16515_v7 = vld [vmem:[%s17614_s4 + $0x1660] ss:$148 sps:$4 sm:$0xff]  }
 0x477   : > { %11002 = vmatprep.subr.bf16.mxu0 %v16466_v9  ;;  %11131 = vmatprep.subr.bf16.mxu1 %v16469_v10  ;;  %v16523_v8 = vld [vmem:[%s17614_s4 + $0x178c] ss:$148 sps:$4 sm:$0xff]   ;;  %v16521_v10 = vld [vmem:[%s17614_s4 + $0x1788] ss:$148 sps:$4 sm:$0xff]  }
 0x478   : > { %v16518_v9 = vld [vmem:[%s17614_s4 + $0x1780] ss:$148 sps:$4 sm:$0xff]  }
 0x47a   : > { %11003 = vmatpush1.bf16.msra.mxu0 %v16464_v11  ;;  %11132 = vmatpush1.bf16.msra.mxu1 %v16467_v12  ;;  %v16526_v11 = vld [vmem:[%s17614_s4 + $0x18ac] ss:$148 sps:$4 sm:$0xff]   ;;  %v16529_v12 = vld [vmem:[%s17614_s4 + $0x18b4] ss:$148 sps:$4 sm:$0xff]  }
 0x47b   : > { %11004 = vmatprep.subr.bf16.mxu0 %v16472_v13  ;;  %11133 = vmatprep.subr.bf16.mxu1 %v16475_v14  ;;  %v16524_v13 = vld [vmem:[%s17614_s4 + $0x18a8] ss:$148 sps:$4 sm:$0xff]   ;;  %v16527_v14 = vld [vmem:[%s17614_s4 + $0x18b0] ss:$148 sps:$4 sm:$0xff]  }
 0x47e   : > { %11005 = vmatpush1.bf16.msra.mxu0 %v16470_v15  ;;  %11134 = vmatpush1.bf16.msra.mxu1 %v16473_v16  ;;  %v16532_v15 = vld [vmem:[%s17614_s4 + $0x19d4] ss:$148 sps:$4 sm:$0xff]   ;;  %v16535_v16 = vld [vmem:[%s17614_s4 + $0x19dc] ss:$148 sps:$4 sm:$0xff]  }
 0x47f   : > { %11006 = vmatprep.subr.bf16.mxu0 %v16478_v17  ;;  %11135 = vmatprep.subr.bf16.mxu1 %v16481_v18  ;;  %v16530_v17 = vld [vmem:[%s17614_s4 + $0x19d0] ss:$148 sps:$4 sm:$0xff]   ;;  %v16533_v18 = vld [vmem:[%s17614_s4 + $0x19d8] ss:$148 sps:$4 sm:$0xff]  }
 0x480   : > { %v10584_v29 = vpop.f32.mrb[16].mxu0  ;;  %v10713_v30 = vpop.f32.mrb[16].mxu1 }
 0x481   : > { %v11893_v34 = vadd.f32 %v10584_v29, %v382_v19  ;;  %v11895_v35 = vadd.f32 %v10713_v30, %v384_v20  ;;  %v10586_v36 = vpop.f32.mrb[17].mxu0  ;;  %v10715_v37 = vpop.f32.mrb[17].mxu1  ;;  %v16538_v19 = vld [vmem:[%s17614_s4 + $0x1afc] ss:$148 sps:$4 sm:$0xff]   ;;  %v16541_v20 = vld [vmem:[%s17614_s4 + $0x1b04] ss:$148 sps:$4 sm:$0xff]  }
 0x482   : > { %v11894_v39 = vadd.f32 %v10586_v36, %v383_v21  ;;  %v11896_v40 = vadd.f32 %v10715_v37, %v385_v25  ;;  %v10588_v41 = vpop.f32.mrb[18].mxu0  ;;  %v10717_v42 = vpop.f32.mrb[18].mxu1  ;;  %11007 = vmatpush1.bf16.msra.mxu0 %v16476_v23  ;;  %11136 = vmatpush1.bf16.msra.mxu1 %v16479_v24  ;;  %v16536_v21 = vld [vmem:[%s17614_s4 + $0x1af8] ss:$148 sps:$4 sm:$0xff]   ;;  %v16539_v23 = vld [vmem:[%s17614_s4 + $0x1b00] ss:$148 sps:$4 sm:$0xff]  }
 0x483   : > { %11967 = vst [vmem:[%s21394_s3 + $0x80] sm:$0xff] %v11893_v34  ;;  %11969 = vst [vmem:[%s21394_s3 + $0x90] sm:$0xff] %v11895_v35  ;;  %v11930_v44 = vadd.f32 %v10588_v41, %v419_v32  ;;  %v11932_v45 = vadd.f32 %v10717_v42, %v421_v33  ;;  %v10590_v46 = vpop.f32.mrb[19].mxu0  ;;  %v10719_v47 = vpop.f32.mrb[19].mxu1  ;;  %11008 = vmatprep.subr.bf16.mxu0 %v16484_v27  ;;  %11137 = vmatprep.subr.bf16.mxu1 %v16487_v28  ;;  %v16544_v24 = vld [vmem:[%s17614_s4 + $0x1c24] ss:$148 sps:$4 sm:$0xff]  }
 0x484   : > { %11968 = vst [vmem:[%s21394_s3 + $0x88] sm:$0xff] %v11894_v39  ;;  %11970 = vst [vmem:[%s21394_s3 + $0x98] sm:$0xff] %v11896_v40  ;;  %v11931_v50 = vadd.f32 %v10590_v46, %v420_v26  ;;  %v11933_v51 = vadd.f32 %v10719_v47, %v422_v38  ;;  %v16547_v25 = vld [vmem:[%s17614_s4 + $0x1c2c] ss:$148 sps:$4 sm:$0xff]   ;;  %v16545_v28 = vld [vmem:[%s17614_s4 + $0x1c28] ss:$148 sps:$4 sm:$0xff]  }
 0x485   : > { %12004 = vst [vmem:[%s21394_s3 + $0x1a8] sm:$0xff] %v11930_v44  ;;  %12006 = vst [vmem:[%s21394_s3 + $0x1b8] sm:$0xff] %v11932_v45  ;;  %v16542_v27 = vld [vmem:[%s17614_s4 + $0x1c20] ss:$148 sps:$4 sm:$0xff]   ;;  %v16548_v32 = vld [vmem:[%s17614_s4 + $0x1d48] ss:$148 sps:$4 sm:$0xff]  }
 0x486   : > { %12005 = vst [vmem:[%s21394_s3 + $0x1b0] sm:$0xff] %v11931_v50  ;;  %12007 = vst [vmem:[%s21394_s3 + $0x1c0] sm:$0xff] %v11933_v51  ;;  %11009 = vmatpush1.bf16.msra.mxu0 %v16482_v31  ;;  %11138 = vmatpush1.bf16.msra.mxu1 %v16485_v43  ;;  %v16550_v29 = vld [vmem:[%s17614_s4 + $0x1d4c] ss:$148 sps:$4 sm:$0xff]   ;;  %v16553_v30 = vld [vmem:[%s17614_s4 + $0x1d54] ss:$148 sps:$4 sm:$0xff]  }
 0x487   : > { %11010 = vmatprep.subr.bf16.mxu0 %v16490_v48  ;;  %11139 = vmatprep.subr.bf16.mxu1 %v16493_v49  ;;  %v16551_v33 = vld [vmem:[%s17614_s4 + $0x1d50] ss:$148 sps:$4 sm:$0xff]   ;;  %v16556_v34 = vld [vmem:[%s17614_s4 + $0x1e74] ss:$148 sps:$4 sm:$0xff]   ;;  %v16557_v37 = vld [vmem:[%s17614_s4 + $0x1e78] ss:$148 sps:$4 sm:$0xff]  }
 0x488   : > { %v16559_v35 = vld [vmem:[%s17614_s4 + $0x1e7c] ss:$148 sps:$4 sm:$0xff]   ;;  %v16565_v38 = vld [vmem:[%s17614_s4 + $0x1fa4] ss:$148 sps:$4 sm:$0xff]   ;;  %v16563_v40 = vld [vmem:[%s17614_s4 + $0x1fa0] ss:$148 sps:$4 sm:$0xff]  }
 0x489   : > { %v16554_v36 = vld [vmem:[%s17614_s4 + $0x1e70] ss:$148 sps:$4 sm:$0xff]   ;;  %v16560_v39 = vld [vmem:[%s17614_s4 + $0x1f98] ss:$148 sps:$4 sm:$0xff]   ;;  %v16566_v31 = vld [vmem:[%s17614_s4 + $0x20c0] ss:$148 sps:$4 sm:$0xff]  }
 0x48a   : > { %11011 = vmatpush1.bf16.msra.mxu0 %v16488_v52  ;;  %11140 = vmatpush1.bf16.msra.mxu1 %v16491_v53  ;;  %v16562_v26 = vld [vmem:[%s17614_s4 + $0x1f9c] ss:$148 sps:$4 sm:$0xff]   ;;  %v16568_v41 = vld [vmem:[%s17614_s4 + $0x20c4] ss:$148 sps:$4 sm:$0xff]   ;;  %v16571_v42 = vld [vmem:[%s17614_s4 + $0x20cc] ss:$148 sps:$4 sm:$0xff]  }
 0x48b   : > { %11023 = vmatprep.subr.bf16.mxu0 %v16496_v55  ;;  %11152 = vmatprep.subr.bf16.mxu1 %v16499_v57  ;;  %v16569_v43 = vld [vmem:[%s17614_s4 + $0x20c8] ss:$148 sps:$4 sm:$0xff]   ;;  %v16574_v44 = vld [vmem:[%s17614_s4 + $0x21ec] ss:$148 sps:$4 sm:$0xff]   ;;  %v16575_v47 = vld [vmem:[%s17614_s4 + $0x21f0] ss:$148 sps:$4 sm:$0xff]  }
 0x48c   : > { %v16577_v45 = vld [vmem:[%s17614_s4 + $0x21f4] ss:$148 sps:$4 sm:$0xff]   ;;  %v16583_v49 = vld [vmem:[%s17614_s4 + $0x231c] ss:$148 sps:$4 sm:$0xff]   ;;  %v16581_v51 = vld [vmem:[%s17614_s4 + $0x2318] ss:$148 sps:$4 sm:$0xff]  }
 0x48d   : > { %11013 = vmatmul.mubr.bf16.vlgmr.msra.gmra.mrb[24].mxu0 %v19033_v56  ;;  %11142 = vmatmul.mubr.bf16.vlgmr.msra.gmra.mrb[24].mxu1 %v19033_v56  ;;  %v16506_v56 = vld [vmem:[%s17614_s4 + $0x1530] ss:$148 sps:$4 sm:$0xff]   ;;  %v16572_v46 = vld [vmem:[%s17614_s4 + $0x21e8] ss:$148 sps:$4 sm:$0xff]   ;;  %v16584_v55 = vld [vmem:[%s17614_s4 + $0x2438] ss:$148 sps:$4 sm:$0xff]  }
 0x48e   : > { %11024 = vmatpush1.bf16.msra.mxu0 %v16494_v58  ;;  %11153 = vmatpush1.bf16.msra.mxu1 %v16497_v59  ;;  %v16580_v48 = vld [vmem:[%s17614_s4 + $0x2314] ss:$148 sps:$4 sm:$0xff]   ;;  %v16578_v50 = vld [vmem:[%s17614_s4 + $0x2310] ss:$148 sps:$4 sm:$0xff]   ;;  %v16595_v59 = vld [vmem:[%s17614_s4 + $0x256c] ss:$148 sps:$4 sm:$0xff]  }
 0x48f   : > { %11025 = vmatprep.subr.bf16.mxu0 %v16502_v60  ;;  %11154 = vmatprep.subr.bf16.mxu1 %v16505_v62  ;;  %v16586_v52 = vld [vmem:[%s17614_s4 + $0x243c] ss:$148 sps:$4 sm:$0xff]   ;;  %v16589_v53 = vld [vmem:[%s17614_s4 + $0x2444] ss:$148 sps:$4 sm:$0xff]   ;;  %v16587_v57 = vld [vmem:[%s17614_s4 + $0x2440] ss:$148 sps:$4 sm:$0xff]  }
 0x490   : > { %11055 = vmatprep.mubr.bf16.mxu0 %v19042_v61  ;;  %11184 = vmatprep.mubr.bf16.mxu1 %v19042_v61  ;;  %v16520_v61 = vld [vmem:[%s17614_s4 + $0x1784] ss:$148 sps:$4 sm:$0xff]   ;;  %v16590_v60 = vld [vmem:[%s17614_s4 + $0x2560] ss:$148 sps:$4 sm:$0xff]   ;;  %v16593_v62 = vld [vmem:[%s17614_s4 + $0x2568] ss:$148 sps:$4 sm:$0xff]  }
 0x491   : > { %v16592_v58 = vld [vmem:[%s17614_s4 + $0x2564] ss:$148 sps:$4 sm:$0xff]  }
 0x492   : > { %11026 = vmatpush1.bf16.msra.mxu0 %v16500_v63  ;;  %11155 = vmatpush1.bf16.msra.mxu1 %v16503_v0  ;;  %v16598_v63 = vld [vmem:[%s17614_s4 + $0x268c] ss:$148 sps:$4 sm:$0xff]   ;;  %v16601_v0 = vld [vmem:[%s17614_s4 + $0x2694] ss:$148 sps:$4 sm:$0xff]  }
 0x493   : > { %11027 = vmatprep.subr.bf16.mxu0 %v16508_v1  ;;  %11156 = vmatprep.subr.bf16.mxu1 %v16511_v2  ;;  %v16596_v1 = vld [vmem:[%s17614_s4 + $0x2688] ss:$148 sps:$4 sm:$0xff]   ;;  %v16599_v2 = vld [vmem:[%s17614_s4 + $0x2690] ss:$148 sps:$4 sm:$0xff]  }
 0x496   : > { %11028 = vmatpush1.bf16.msra.mxu0 %v16506_v56  ;;  %11157 = vmatpush1.bf16.msra.mxu1 %v16509_v3  ;;  %v16604_v56 = vld [vmem:[%s17614_s4 + $0x27b4] ss:$148 sps:$4 sm:$0xff]   ;;  %v16607_v3 = vld [vmem:[%s17614_s4 + $0x27bc] ss:$148 sps:$4 sm:$0xff]  }
 0x497   : > { %11029 = vmatprep.subr.bf16.mxu0 %v16514_v4  ;;  %11158 = vmatprep.subr.bf16.mxu1 %v16517_v5  ;;  %v16605_v4 = vld [vmem:[%s17614_s4 + $0x27b8] ss:$148 sps:$4 sm:$0xff]   ;;  %v16610_v5 = vld [vmem:[%s17614_s4 + $0x28dc] ss:$148 sps:$4 sm:$0xff]  }
 0x49a   : > { %11030 = vmatpush1.bf16.msra.mxu0 %v16512_v6  ;;  %11159 = vmatpush1.bf16.msra.mxu1 %v16515_v7  ;;  %v16613_v6 = vld [vmem:[%s17614_s4 + $0x28e4] ss:$148 sps:$4 sm:$0xff]  }
 0x49b   : > { %11031 = vmatprep.subr.bf16.mxu0 %v16520_v61  ;;  %11160 = vmatprep.subr.bf16.mxu1 %v16523_v8  ;;  %v16608_v7 = vld [vmem:[%s17614_s4 + $0x28d8] ss:$148 sps:$4 sm:$0xff]   ;;  %v16611_v61 = vld [vmem:[%s17614_s4 + $0x28e0] ss:$148 sps:$4 sm:$0xff]  }
 0x49c   : > { %v16616_v8 = vld [vmem:[%s17614_s4 + $0x2a04] ss:$148 sps:$4 sm:$0xff]  }
 0x49e   : > { %11032 = vmatpush1.bf16.msra.mxu0 %v16518_v9  ;;  %11161 = vmatpush1.bf16.msra.mxu1 %v16521_v10  ;;  %v16619_v9 = vld [vmem:[%s17614_s4 + $0x2a0c] ss:$148 sps:$4 sm:$0xff]  }
 0x49f   : > { %11033 = vmatprep.subr.bf16.mxu0 %v16526_v11  ;;  %11162 = vmatprep.subr.bf16.mxu1 %v16529_v12  ;;  %v16614_v10 = vld [vmem:[%s17614_s4 + $0x2a00] ss:$148 sps:$4 sm:$0xff]   ;;  %v16617_v11 = vld [vmem:[%s17614_s4 + $0x2a08] ss:$148 sps:$4 sm:$0xff]  }
 0x4a0   : > { %v16622_v12 = vld [vmem:[%s17614_s4 + $0x2b2c] ss:$148 sps:$4 sm:$0xff]  }
 0x4a2   : > { %11034 = vmatpush1.bf16.msra.mxu0 %v16524_v13  ;;  %11163 = vmatpush1.bf16.msra.mxu1 %v16527_v14  ;;  %v16625_v13 = vld [vmem:[%s17614_s4 + $0x2b34] ss:$148 sps:$4 sm:$0xff]  }
 0x4a3   : > { %11035 = vmatprep.subr.bf16.mxu0 %v16532_v15  ;;  %11164 = vmatprep.subr.bf16.mxu1 %v16535_v16  ;;  %v16620_v14 = vld [vmem:[%s17614_s4 + $0x2b28] ss:$148 sps:$4 sm:$0xff]   ;;  %v16623_v15 = vld [vmem:[%s17614_s4 + $0x2b30] ss:$148 sps:$4 sm:$0xff]  }
 0x4a4   : > { %v16628_v16 = vld [vmem:[%s17614_s4 + $0x2c54] ss:$148 sps:$4 sm:$0xff]  }
 0x4a6   : > { %11036 = vmatpush1.bf16.msra.mxu0 %v16530_v17  ;;  %11165 = vmatpush1.bf16.msra.mxu1 %v16533_v18  ;;  %v16631_v17 = vld [vmem:[%s17614_s4 + $0x2c5c] ss:$148 sps:$4 sm:$0xff]  }
 0x4a7   : > { %11037 = vmatprep.subr.bf16.mxu0 %v16538_v19  ;;  %11166 = vmatprep.subr.bf16.mxu1 %v16541_v20  ;;  %v16626_v18 = vld [vmem:[%s17614_s4 + $0x2c50] ss:$148 sps:$4 sm:$0xff]   ;;  %v16629_v19 = vld [vmem:[%s17614_s4 + $0x2c58] ss:$148 sps:$4 sm:$0xff]  }
 0x4a8   : > { %v16634_v20 = vld [vmem:[%s17614_s4 + $0x2d7c] ss:$148 sps:$4 sm:$0xff]  }
 0x4aa   : > { %11038 = vmatpush1.bf16.msra.mxu0 %v16536_v21  ;;  %11167 = vmatpush1.bf16.msra.mxu1 %v16539_v23  ;;  %v16637_v21 = vld [vmem:[%s17614_s4 + $0x2d84] ss:$148 sps:$4 sm:$0xff]  }
 0x4ab   : > { %11039 = vmatprep.subr.bf16.mxu0 %v16544_v24  ;;  %11168 = vmatprep.subr.bf16.mxu1 %v16547_v25  ;;  %v16632_v23 = vld [vmem:[%s17614_s4 + $0x2d78] ss:$148 sps:$4 sm:$0xff]   ;;  %v16635_v24 = vld [vmem:[%s17614_s4 + $0x2d80] ss:$148 sps:$4 sm:$0xff]  }
 0x4ac   : > { %v16640_v25 = vld [vmem:[%s17614_s4 + $0x74] ss:$148 sps:$4 sm:$0xff]  }
 0x4ae   : > { %11040 = vmatpush1.bf16.msra.mxu0 %v16542_v27  ;;  %11169 = vmatpush1.bf16.msra.mxu1 %v16545_v28  ;;  %v16643_v27 = vld [vmem:[%s17614_s4 + $0x7c] ss:$148 sps:$4 sm:$0xff]  }
 0x4af   : > { %11041 = vmatprep.subr.bf16.mxu0 %v16550_v29  ;;  %11170 = vmatprep.subr.bf16.mxu1 %v16553_v30  ;;  %v16638_v28 = vld [vmem:[%s17614_s4 + $0x70] ss:$148 sps:$4 sm:$0xff]   ;;  %v16641_v29 = vld [vmem:[%s17614_s4 + $0x78] ss:$148 sps:$4 sm:$0xff]  }
 0x4b0   : > { %v16646_v30 = vld [vmem:[%s17614_s4 + $0x19c] ss:$148 sps:$4 sm:$0xff]  }
 0x4b2   : > { %11042 = vmatpush1.bf16.msra.mxu0 %v16548_v32  ;;  %11171 = vmatpush1.bf16.msra.mxu1 %v16551_v33  ;;  %v16649_v32 = vld [vmem:[%s17614_s4 + $0x1a4] ss:$148 sps:$4 sm:$0xff]   ;;  %v19366_v33 = vld [vmem:[%s17612_s27 + $0x10] ss:$20 sps:$4 sm:$0xff]  }
 0x4b3   : > { %11043 = vmatprep.subr.bf16.mxu0 %v16556_v34  ;;  %11172 = vmatprep.subr.bf16.mxu1 %v16559_v35  ;;  %v16644_v34 = vld [vmem:[%s17614_s4 + $0x198] ss:$148 sps:$4 sm:$0xff]   ;;  %v16647_v35 = vld [vmem:[%s17614_s4 + $0x1a0] ss:$148 sps:$4 sm:$0xff]  }
 0x4b6   : > { %11044 = vmatpush1.bf16.msra.mxu0 %v16554_v36  ;;  %11173 = vmatpush1.bf16.msra.mxu1 %v16557_v37  ;;  %v16652_v36 = vld [vmem:[%s17614_s4 + $0x2c4] ss:$148 sps:$4 sm:$0xff]   ;;  %v16655_v37 = vld [vmem:[%s17614_s4 + $0x2cc] ss:$148 sps:$4 sm:$0xff]  }
 0x4b7   : > { %11045 = vmatprep.subr.bf16.mxu0 %v16562_v26  ;;  %11174 = vmatprep.subr.bf16.mxu1 %v16565_v38  ;;  %v19375_v26 = vld [vmem:[%s17612_s27 + $0x4] ss:$20 sps:$4 sm:$0xff]  }
 0x4b8   : > { %v16650_v38 = vld [vmem:[%s17614_s4 + $0x2c0] ss:$148 sps:$4 sm:$0xff]  }
 0x4ba   : > { %11046 = vmatpush1.bf16.msra.mxu0 %v16560_v39  ;;  %11175 = vmatpush1.bf16.msra.mxu1 %v16563_v40  ;;  %v16653_v39 = vld [vmem:[%s17614_s4 + $0x2c8] ss:$148 sps:$4 sm:$0xff]   ;;  %v16658_v40 = vld [vmem:[%s17614_s4 + $0x3ec] ss:$148 sps:$4 sm:$0xff]  }
 0x4bb   : > { %11047 = vmatprep.subr.bf16.mxu0 %v16568_v41  ;;  %11176 = vmatprep.subr.bf16.mxu1 %v16571_v42  ;;  %v16661_v41 = vld [vmem:[%s17614_s4 + $0x3f4] ss:$148 sps:$4 sm:$0xff]  }
 0x4bc   : > { %v16656_v42 = vld [vmem:[%s17614_s4 + $0x3e8] ss:$148 sps:$4 sm:$0xff]  }
 0x4be   : > { %11048 = vmatpush1.bf16.msra.mxu0 %v16566_v31  ;;  %11177 = vmatpush1.bf16.msra.mxu1 %v16569_v43  ;;  %v16659_v31 = vld [vmem:[%s17614_s4 + $0x3f0] ss:$148 sps:$4 sm:$0xff]   ;;  %v16664_v43 = vld [vmem:[%s17614_s4 + $0x514] ss:$148 sps:$4 sm:$0xff]  }
 0x4bf   : > { %11049 = vmatprep.subr.bf16.mxu0 %v16574_v44  ;;  %11178 = vmatprep.subr.bf16.mxu1 %v16577_v45  ;;  %v16667_v44 = vld [vmem:[%s17614_s4 + $0x51c] ss:$148 sps:$4 sm:$0xff]  }
 0x4c0   : > { %v16662_v45 = vld [vmem:[%s17614_s4 + $0x510] ss:$148 sps:$4 sm:$0xff]  }
 0x4c2   : > { %11050 = vmatpush1.bf16.msra.mxu0 %v16572_v46  ;;  %11179 = vmatpush1.bf16.msra.mxu1 %v16575_v47  ;;  %v16665_v46 = vld [vmem:[%s17614_s4 + $0x518] ss:$148 sps:$4 sm:$0xff]   ;;  %v16670_v47 = vld [vmem:[%s17614_s4 + $0x63c] ss:$148 sps:$4 sm:$0xff]  }
 0x4c3   : > { %11051 = vmatprep.subr.bf16.mxu0 %v16580_v48  ;;  %11180 = vmatprep.subr.bf16.mxu1 %v16583_v49  ;;  %v16673_v48 = vld [vmem:[%s17614_s4 + $0x644] ss:$148 sps:$4 sm:$0xff]  }
 0x4c4   : > { %v16668_v49 = vld [vmem:[%s17614_s4 + $0x638] ss:$148 sps:$4 sm:$0xff]  }
 0x4c6   : > { %11052 = vmatpush1.bf16.msra.mxu0 %v16578_v50  ;;  %11181 = vmatpush1.bf16.msra.mxu1 %v16581_v51  ;;  %v16671_v50 = vld [vmem:[%s17614_s4 + $0x640] ss:$148 sps:$4 sm:$0xff]   ;;  %v16676_v51 = vld [vmem:[%s17614_s4 + $0x764] ss:$148 sps:$4 sm:$0xff]  }
 0x4c7   : > { %11053 = vmatprep.subr.bf16.mxu0 %v16586_v52  ;;  %11182 = vmatprep.subr.bf16.mxu1 %v16589_v53  ;;  %v16679_v52 = vld [vmem:[%s17614_s4 + $0x76c] ss:$148 sps:$4 sm:$0xff]  }
 0x4c8   : > { %v16674_v53 = vld [vmem:[%s17614_s4 + $0x760] ss:$148 sps:$4 sm:$0xff]  }
 0x4ca   : > { %11054 = vmatpush1.bf16.msra.mxu0 %v16584_v55  ;;  %11183 = vmatpush1.bf16.msra.mxu1 %v16587_v57  ;;  %v16677_v55 = vld [vmem:[%s17614_s4 + $0x768] ss:$148 sps:$4 sm:$0xff]   ;;  %v16682_v57 = vld [vmem:[%s17614_s4 + $0x88c] ss:$148 sps:$4 sm:$0xff]  }
 0x4cb   : > { %11066 = vmatprep.subr.bf16.mxu0 %v16592_v58  ;;  %11195 = vmatprep.subr.bf16.mxu1 %v16595_v59  ;;  %v16685_v58 = vld [vmem:[%s17614_s4 + $0x894] ss:$148 sps:$4 sm:$0xff]  }
 0x4cc   : > { %v16680_v59 = vld [vmem:[%s17614_s4 + $0x888] ss:$148 sps:$4 sm:$0xff]  }
 0x4cd   : > { %11056 = vmatmul.mubr.bf16.vlgmr.msra.gmra.mrb[24].mxu0 %v19107_v54  ;;  %11185 = vmatmul.mubr.bf16.vlgmr.msra.gmra.mrb[24].mxu1 %v19107_v54  ;;  %v16602_v54 = vld [vmem:[%s17614_s4 + $0x27b0] ss:$148 sps:$4 sm:$0xff]  }
 0x4ce   : > { %11067 = vmatpush1.bf16.msra.mxu0 %v16590_v60  ;;  %11196 = vmatpush1.bf16.msra.mxu1 %v16593_v62  ;;  %v16683_v60 = vld [vmem:[%s17614_s4 + $0x890] ss:$148 sps:$4 sm:$0xff]   ;;  %v16688_v62 = vld [vmem:[%s17614_s4 + $0x9b4] ss:$148 sps:$4 sm:$0xff]  }
 0x4cf   : > { %11068 = vmatprep.subr.bf16.mxu0 %v16598_v63  ;;  %11197 = vmatprep.subr.bf16.mxu1 %v16601_v0  ;;  %v16691_v63 = vld [vmem:[%s17614_s4 + $0x9bc] ss:$148 sps:$4 sm:$0xff]  }
 0x4d0   : > { %11098 = vmatprep.mubr.bf16.mxu0 %v17459_v22  ;;  %11227 = vmatprep.mubr.bf16.mxu1 %v17459_v22  ;;  %v16686_v0 = vld [vmem:[%s17614_s4 + $0x9b0] ss:$148 sps:$4 sm:$0xff]  }
 0x4d2   : > { %11069 = vmatpush1.bf16.msra.mxu0 %v16596_v1  ;;  %11198 = vmatpush1.bf16.msra.mxu1 %v16599_v2  ;;  %v16689_v1 = vld [vmem:[%s17614_s4 + $0x9b8] ss:$148 sps:$4 sm:$0xff]   ;;  %v16694_v2 = vld [vmem:[%s17614_s4 + $0xadc] ss:$148 sps:$4 sm:$0xff]  }
 0x4d3   : > { %11070 = vmatprep.subr.bf16.mxu0 %v16604_v56  ;;  %11199 = vmatprep.subr.bf16.mxu1 %v16607_v3  ;;  %v16697_v56 = vld [vmem:[%s17614_s4 + $0xae4] ss:$148 sps:$4 sm:$0xff]  }
 0x4d4   : > { %v16692_v3 = vld [vmem:[%s17614_s4 + $0xad8] ss:$148 sps:$4 sm:$0xff]  }
 0x4d6   : > { %11071 = vmatpush1.bf16.msra.mxu0 %v16602_v54  ;;  %11200 = vmatpush1.bf16.msra.mxu1 %v16605_v4  ;;  %v16695_v54 = vld [vmem:[%s17614_s4 + $0xae0] ss:$148 sps:$4 sm:$0xff]   ;;  %v16700_v4 = vld [vmem:[%s17614_s4 + $0xc04] ss:$148 sps:$4 sm:$0xff]  }
 0x4d7   : > { %11072 = vmatprep.subr.bf16.mxu0 %v16610_v5  ;;  %11201 = vmatprep.subr.bf16.mxu1 %v16613_v6  ;;  %v16703_v5 = vld [vmem:[%s17614_s4 + $0xc0c] ss:$148 sps:$4 sm:$0xff]  }
 0x4d8   : > { %v16698_v6 = vld [vmem:[%s17614_s4 + $0xc00] ss:$148 sps:$4 sm:$0xff]  }
 0x4da   : > { %11073 = vmatpush1.bf16.msra.mxu0 %v16608_v7  ;;  %11202 = vmatpush1.bf16.msra.mxu1 %v16611_v61  ;;  %v16701_v7 = vld [vmem:[%s17614_s4 + $0xc08] ss:$148 sps:$4 sm:$0xff]   ;;  %v16706_v61 = vld [vmem:[%s17614_s4 + $0xd2c] ss:$148 sps:$4 sm:$0xff]  }
 0x4db   : > { %11074 = vmatprep.subr.bf16.mxu0 %v16616_v8  ;;  %11203 = vmatprep.subr.bf16.mxu1 %v16619_v9  ;;  %v16709_v8 = vld [vmem:[%s17614_s4 + $0xd34] ss:$148 sps:$4 sm:$0xff]  }
 0x4dc   : > { %v16704_v9 = vld [vmem:[%s17614_s4 + $0xd28] ss:$148 sps:$4 sm:$0xff]  }
 0x4de   : > { %11075 = vmatpush1.bf16.msra.mxu0 %v16614_v10  ;;  %11204 = vmatpush1.bf16.msra.mxu1 %v16617_v11  ;;  %v16707_v10 = vld [vmem:[%s17614_s4 + $0xd30] ss:$148 sps:$4 sm:$0xff]   ;;  %v16712_v11 = vld [vmem:[%s17614_s4 + $0xe54] ss:$148 sps:$4 sm:$0xff]  }
 0x4df   : > { %11076 = vmatprep.subr.bf16.mxu0 %v16622_v12  ;;  %11205 = vmatprep.subr.bf16.mxu1 %v16625_v13  ;;  %v16715_v12 = vld [vmem:[%s17614_s4 + $0xe5c] ss:$148 sps:$4 sm:$0xff]  }
 0x4e0   : > { %v16710_v13 = vld [vmem:[%s17614_s4 + $0xe50] ss:$148 sps:$4 sm:$0xff]  }
 0x4e2   : > { %11077 = vmatpush1.bf16.msra.mxu0 %v16620_v14  ;;  %11206 = vmatpush1.bf16.msra.mxu1 %v16623_v15  ;;  %v16713_v14 = vld [vmem:[%s17614_s4 + $0xe58] ss:$148 sps:$4 sm:$0xff]   ;;  %v16718_v15 = vld [vmem:[%s17614_s4 + $0xf7c] ss:$148 sps:$4 sm:$0xff]  }
 0x4e3   : > { %11078 = vmatprep.subr.bf16.mxu0 %v16628_v16  ;;  %11207 = vmatprep.subr.bf16.mxu1 %v16631_v17  ;;  %v16721_v16 = vld [vmem:[%s17614_s4 + $0xf84] ss:$148 sps:$4 sm:$0xff]   ;;  %v386_v17 = vld [vmem:[%s21394_s3 + $0xa0] sm:$0xff] }
 0x4e6   : > { %11079 = vmatpush1.bf16.msra.mxu0 %v16626_v18  ;;  %11208 = vmatpush1.bf16.msra.mxu1 %v16629_v19  ;;  %v388_v18 = vld [vmem:[%s21394_s3 + $0xb0] sm:$0xff]  ;;  %v387_v19 = vld [vmem:[%s21394_s3 + $0xa8] sm:$0xff] }
 0x4e7   : > { %11080 = vmatprep.subr.bf16.mxu0 %v16634_v20  ;;  %11209 = vmatprep.subr.bf16.mxu1 %v16637_v21  ;;  %v16716_v20 = vld [vmem:[%s17614_s4 + $0xf78] ss:$148 sps:$4 sm:$0xff]   ;;  %v16719_v21 = vld [vmem:[%s17614_s4 + $0xf80] ss:$148 sps:$4 sm:$0xff]  }
 0x4ea   : > { %11081 = vmatpush1.bf16.msra.mxu0 %v16632_v23  ;;  %11210 = vmatpush1.bf16.msra.mxu1 %v16635_v24  ;;  %v389_v23 = vld [vmem:[%s21394_s3 + $0xb8] sm:$0xff]  ;;  %v16724_v24 = vld [vmem:[%s17614_s4 + $0x10a4] ss:$148 sps:$4 sm:$0xff]  }
 0x4eb   : > { %11238 = vmatprep.subr.bf16.mxu0 %v16640_v25  ;;  %11367 = vmatprep.subr.bf16.mxu1 %v16643_v27  ;;  %v16727_v25 = vld [vmem:[%s17614_s4 + $0x10ac] ss:$148 sps:$4 sm:$0xff]  }
 0x4ed   : > { %11099 = vmatmul.mubr.bf16.vlgmr.msra.gmra.mrb[24].mxu0 %v19366_v33  ;;  %11228 = vmatmul.mubr.bf16.vlgmr.msra.gmra.mrb[24].mxu1 %v19366_v33 }
 0x4ee   : > { %11239 = vmatpush1.bf16.msra.mxu0 %v16638_v28  ;;  %11368 = vmatpush1.bf16.msra.mxu1 %v16641_v29  ;;  %v423_v29 = vld [vmem:[%s21394_s3 + $0x1c8] sm:$0xff] }
 0x4ef   : > { %11240 = vmatprep.subr.bf16.mxu0 %v16646_v30  ;;  %11369 = vmatprep.subr.bf16.mxu1 %v16649_v32  ;;  %v425_v30 = vld [vmem:[%s21394_s3 + $0x1d8] sm:$0xff] }
 0x4f0   : > { %11270 = vmatprep.mubr.bf16.mxu0 %v19375_v26  ;;  %11399 = vmatprep.mubr.bf16.mxu1 %v19375_v26 }
 0x4f2   : > { %11241 = vmatpush1.bf16.msra.mxu0 %v16644_v34  ;;  %11370 = vmatpush1.bf16.msra.mxu1 %v16647_v35 }
 0x4f3   : > { %11242 = vmatprep.subr.bf16.mxu0 %v16652_v36  ;;  %11371 = vmatprep.subr.bf16.mxu1 %v16655_v37  ;;  %v424_v37 = vld [vmem:[%s21394_s3 + $0x1d0] sm:$0xff] }
 0x4f6   : > { %11243 = vmatpush1.bf16.msra.mxu0 %v16650_v38  ;;  %11372 = vmatpush1.bf16.msra.mxu1 %v16653_v39  ;;  %v426_v38 = vld [vmem:[%s21394_s3 + $0x1e0] sm:$0xff] }
 0x4f7   : > { %11244 = vmatprep.subr.bf16.mxu0 %v16658_v40  ;;  %11373 = vmatprep.subr.bf16.mxu1 %v16661_v41 }
 0x4fa   : > { %11245 = vmatpush1.bf16.msra.mxu0 %v16656_v42  ;;  %11374 = vmatpush1.bf16.msra.mxu1 %v16659_v31  ;;  %v16722_v31 = vld [vmem:[%s17614_s4 + $0x10a0] ss:$148 sps:$4 sm:$0xff]  }
 0x4fb   : > { %11246 = vmatprep.subr.bf16.mxu0 %v16664_v43  ;;  %11375 = vmatprep.subr.bf16.mxu1 %v16667_v44  ;;  %v16725_v43 = vld [vmem:[%s17614_s4 + $0x10a8] ss:$148 sps:$4 sm:$0xff]  }
 0x4fe   : > { %11247 = vmatpush1.bf16.msra.mxu0 %v16662_v45  ;;  %11376 = vmatpush1.bf16.msra.mxu1 %v16665_v46 }
 0x4ff   : > { %11248 = vmatprep.subr.bf16.mxu0 %v16670_v47  ;;  %11377 = vmatprep.subr.bf16.mxu1 %v16673_v48  ;;  %v16730_v48 = vld [vmem:[%s17614_s4 + $0x11cc] ss:$148 sps:$4 sm:$0xff]  }
 0x502   : > { %11249 = vmatpush1.bf16.msra.mxu0 %v16668_v49  ;;  %11378 = vmatpush1.bf16.msra.mxu1 %v16671_v50  ;;  %v16733_v49 = vld [vmem:[%s17614_s4 + $0x11d4] ss:$148 sps:$4 sm:$0xff]  }
 0x503   : > { %11250 = vmatprep.subr.bf16.mxu0 %v16676_v51  ;;  %11379 = vmatprep.subr.bf16.mxu1 %v16679_v52  ;;  %v16728_v52 = vld [vmem:[%s17614_s4 + $0x11c8] ss:$148 sps:$4 sm:$0xff]  }
 0x506   : > { %11251 = vmatpush1.bf16.msra.mxu0 %v16674_v53  ;;  %11380 = vmatpush1.bf16.msra.mxu1 %v16677_v55  ;;  %v16731_v53 = vld [vmem:[%s17614_s4 + $0x11d0] ss:$148 sps:$4 sm:$0xff]   ;;  %v16736_v55 = vld [vmem:[%s17614_s4 + $0x12f4] ss:$148 sps:$4 sm:$0xff]  }
 0x507   : > { %11252 = vmatprep.subr.bf16.mxu0 %v16682_v57  ;;  %11381 = vmatprep.subr.bf16.mxu1 %v16685_v58  ;;  %v16739_v57 = vld [vmem:[%s17614_s4 + $0x12fc] ss:$148 sps:$4 sm:$0xff]  }
 0x508   : > { %v16734_v58 = vld [vmem:[%s17614_s4 + $0x12f0] ss:$148 sps:$4 sm:$0xff]  }
 0x50a   : > { %11253 = vmatpush1.bf16.msra.mxu0 %v16680_v59  ;;  %11382 = vmatpush1.bf16.msra.mxu1 %v16683_v60  ;;  %v16737_v59 = vld [vmem:[%s17614_s4 + $0x12f8] ss:$148 sps:$4 sm:$0xff]   ;;  %v16742_v60 = vld [vmem:[%s17614_s4 + $0x141c] ss:$148 sps:$4 sm:$0xff]  }
 0x50b   : > { %11254 = vmatprep.subr.bf16.mxu0 %v16688_v62  ;;  %11383 = vmatprep.subr.bf16.mxu1 %v16691_v63  ;;  %v16745_v62 = vld [vmem:[%s17614_s4 + $0x1424] ss:$148 sps:$4 sm:$0xff]  }
 0x50c   : > { %v19488_v63 = vld [vmem:[%s17612_s27] ss:$20 sps:$4 sm:$0xff]  }
 0x50e   : > { %11255 = vmatpush1.bf16.msra.mxu0 %v16686_v0  ;;  %11384 = vmatpush1.bf16.msra.mxu1 %v16689_v1  ;;  %v16740_v0 = vld [vmem:[%s17614_s4 + $0x1418] ss:$148 sps:$4 sm:$0xff]   ;;  %v16743_v1 = vld [vmem:[%s17614_s4 + $0x1420] ss:$148 sps:$4 sm:$0xff]  }
 0x50f   : > { %11256 = vmatprep.subr.bf16.mxu0 %v16694_v2  ;;  %11385 = vmatprep.subr.bf16.mxu1 %v16697_v56  ;;  %v16748_v2 = vld [vmem:[%s17614_s4 + $0x1544] ss:$148 sps:$4 sm:$0xff]   ;;  %v16751_v56 = vld [vmem:[%s17614_s4 + $0x154c] ss:$148 sps:$4 sm:$0xff]  }
 0x512   : > { %11257 = vmatpush1.bf16.msra.mxu0 %v16692_v3  ;;  %11386 = vmatpush1.bf16.msra.mxu1 %v16695_v54  ;;  %v19497_v3 = vld [vmem:[%s17612_s27 + $0xc] ss:$20 sps:$4 sm:$0xff]   ;;  %v16746_v54 = vld [vmem:[%s17614_s4 + $0x1540] ss:$148 sps:$4 sm:$0xff]  }
 0x513   : > { %11258 = vmatprep.subr.bf16.mxu0 %v16700_v4  ;;  %11387 = vmatprep.subr.bf16.mxu1 %v16703_v5  ;;  %v16749_v4 = vld [vmem:[%s17614_s4 + $0x1548] ss:$148 sps:$4 sm:$0xff]   ;;  %v16754_v5 = vld [vmem:[%s17614_s4 + $0x166c] ss:$148 sps:$4 sm:$0xff]  }
 0x516   : > { %11259 = vmatpush1.bf16.msra.mxu0 %v16698_v6  ;;  %11388 = vmatpush1.bf16.msra.mxu1 %v16701_v7  ;;  %v16757_v6 = vld [vmem:[%s17614_s4 + $0x1674] ss:$148 sps:$4 sm:$0xff]  }
 0x517   : > { %11260 = vmatprep.subr.bf16.mxu0 %v16706_v61  ;;  %11389 = vmatprep.subr.bf16.mxu1 %v16709_v8  ;;  %v16752_v7 = vld [vmem:[%s17614_s4 + $0x1668] ss:$148 sps:$4 sm:$0xff]   ;;  %v16755_v61 = vld [vmem:[%s17614_s4 + $0x1670] ss:$148 sps:$4 sm:$0xff]  }
 0x518   : > { %v16760_v8 = vld [vmem:[%s17614_s4 + $0x1794] ss:$148 sps:$4 sm:$0xff]  }
 0x51a   : > { %11261 = vmatpush1.bf16.msra.mxu0 %v16704_v9  ;;  %11390 = vmatpush1.bf16.msra.mxu1 %v16707_v10  ;;  %v16763_v9 = vld [vmem:[%s17614_s4 + $0x179c] ss:$148 sps:$4 sm:$0xff]  }
 0x51b   : > { %11262 = vmatprep.subr.bf16.mxu0 %v16712_v11  ;;  %11391 = vmatprep.subr.bf16.mxu1 %v16715_v12  ;;  %v16758_v10 = vld [vmem:[%s17614_s4 + $0x1790] ss:$148 sps:$4 sm:$0xff]   ;;  %v16761_v11 = vld [vmem:[%s17614_s4 + $0x1798] ss:$148 sps:$4 sm:$0xff]  }
 0x51c   : > { %v16766_v12 = vld [vmem:[%s17614_s4 + $0x18bc] ss:$148 sps:$4 sm:$0xff]  }
 0x51e   : > { %11263 = vmatpush1.bf16.msra.mxu0 %v16710_v13  ;;  %11392 = vmatpush1.bf16.msra.mxu1 %v16713_v14  ;;  %v16769_v13 = vld [vmem:[%s17614_s4 + $0x18c4] ss:$148 sps:$4 sm:$0xff]  }
 0x51f   : > { %11264 = vmatprep.subr.bf16.mxu0 %v16718_v15  ;;  %11393 = vmatprep.subr.bf16.mxu1 %v16721_v16  ;;  %v16764_v14 = vld [vmem:[%s17614_s4 + $0x18b8] ss:$148 sps:$4 sm:$0xff]   ;;  %v16767_v15 = vld [vmem:[%s17614_s4 + $0x18c0] ss:$148 sps:$4 sm:$0xff]  }
 0x520   : > { %v10842_v27 = vpop.f32.mrb[20].mxu0  ;;  %v10971_v28 = vpop.f32.mrb[20].mxu1  ;;  %v16772_v16 = vld [vmem:[%s17614_s4 + $0x19e4] ss:$148 sps:$4 sm:$0xff]  }
 0x521   : > { %v11897_v32 = vadd.f32 %v10842_v27, %v386_v17  ;;  %v11899_v34 = vadd.f32 %v10971_v28, %v388_v18  ;;  %v10844_v35 = vpop.f32.mrb[21].mxu0  ;;  %v10973_v36 = vpop.f32.mrb[21].mxu1  ;;  %v16775_v17 = vld [vmem:[%s17614_s4 + $0x19ec] ss:$148 sps:$4 sm:$0xff]   ;;  %v16787_v27 = vld [vmem:[%s17614_s4 + $0x1c3c] ss:$148 sps:$4 sm:$0xff]  }
 0x522   : > { %v11898_v39 = vadd.f32 %v10844_v35, %v387_v19  ;;  %v11900_v40 = vadd.f32 %v10973_v36, %v389_v23  ;;  %v10846_v41 = vpop.f32.mrb[22].mxu0  ;;  %v10975_v42 = vpop.f32.mrb[22].mxu1  ;;  %11265 = vmatpush1.bf16.msra.mxu0 %v16716_v20  ;;  %11394 = vmatpush1.bf16.msra.mxu1 %v16719_v21  ;;  %v16770_v18 = vld [vmem:[%s17614_s4 + $0x19e0] ss:$148 sps:$4 sm:$0xff]   ;;  %v16773_v19 = vld [vmem:[%s17614_s4 + $0x19e8] ss:$148 sps:$4 sm:$0xff]  }
 0x523   : > { %11971 = vst [vmem:[%s21394_s3 + $0xa0] sm:$0xff] %v11897_v32  ;;  %11973 = vst [vmem:[%s21394_s3 + $0xb0] sm:$0xff] %v11899_v34  ;;  %v11934_v44 = vadd.f32 %v10846_v41, %v423_v29  ;;  %v11936_v45 = vadd.f32 %v10975_v42, %v425_v30  ;;  %v10848_v46 = vpop.f32.mrb[23].mxu0  ;;  %v10977_v47 = vpop.f32.mrb[23].mxu1  ;;  %11266 = vmatprep.subr.bf16.mxu0 %v16724_v24  ;;  %11395 = vmatprep.subr.bf16.mxu1 %v16727_v25  ;;  %v16778_v20 = vld [vmem:[%s17614_s4 + $0x1b0c] ss:$148 sps:$4 sm:$0xff]  }
 0x524   : > { %11972 = vst [vmem:[%s21394_s3 + $0xa8] sm:$0xff] %v11898_v39  ;;  %11974 = vst [vmem:[%s21394_s3 + $0xb8] sm:$0xff] %v11900_v40  ;;  %v11935_v50 = vadd.f32 %v10848_v46, %v424_v37  ;;  %v11937_v51 = vadd.f32 %v10977_v47, %v426_v38  ;;  %v16781_v21 = vld [vmem:[%s17614_s4 + $0x1b14] ss:$148 sps:$4 sm:$0xff]   ;;  %v16779_v24 = vld [vmem:[%s17614_s4 + $0x1b10] ss:$148 sps:$4 sm:$0xff]  }
 0x525   : > { %12008 = vst [vmem:[%s21394_s3 + $0x1c8] sm:$0xff] %v11934_v44  ;;  %12010 = vst [vmem:[%s21394_s3 + $0x1d8] sm:$0xff] %v11936_v45  ;;  %v16776_v23 = vld [vmem:[%s17614_s4 + $0x1b08] ss:$148 sps:$4 sm:$0xff]   ;;  %v16782_v28 = vld [vmem:[%s17614_s4 + $0x1c30] ss:$148 sps:$4 sm:$0xff]  }
 0x526   : > { %12009 = vst [vmem:[%s21394_s3 + $0x1d0] sm:$0xff] %v11935_v50  ;;  %12011 = vst [vmem:[%s21394_s3 + $0x1e0] sm:$0xff] %v11937_v51  ;;  %11267 = vmatpush1.bf16.msra.mxu0 %v16722_v31  ;;  %11396 = vmatpush1.bf16.msra.mxu1 %v16725_v43  ;;  %v16784_v25 = vld [vmem:[%s17614_s4 + $0x1c34] ss:$148 sps:$4 sm:$0xff]   ;;  %v16785_v29 = vld [vmem:[%s17614_s4 + $0x1c38] ss:$148 sps:$4 sm:$0xff]  }
 0x527   : > { %11268 = vmatprep.subr.bf16.mxu0 %v16730_v48  ;;  %11397 = vmatprep.subr.bf16.mxu1 %v16733_v49  ;;  %v16790_v30 = vld [vmem:[%s17614_s4 + $0x1d5c] ss:$148 sps:$4 sm:$0xff]   ;;  %v16793_v32 = vld [vmem:[%s17614_s4 + $0x1d64] ss:$148 sps:$4 sm:$0xff]   ;;  %v16791_v35 = vld [vmem:[%s17614_s4 + $0x1d60] ss:$148 sps:$4 sm:$0xff]  }
 0x528   : > { %v16788_v34 = vld [vmem:[%s17614_s4 + $0x1d58] ss:$148 sps:$4 sm:$0xff]   ;;  %v16794_v38 = vld [vmem:[%s17614_s4 + $0x1e80] ss:$148 sps:$4 sm:$0xff]   ;;  %v16797_v39 = vld [vmem:[%s17614_s4 + $0x1e88] ss:$148 sps:$4 sm:$0xff]  }
 0x529   : > { %v16796_v36 = vld [vmem:[%s17614_s4 + $0x1e84] ss:$148 sps:$4 sm:$0xff]   ;;  %v16799_v37 = vld [vmem:[%s17614_s4 + $0x1e8c] ss:$148 sps:$4 sm:$0xff]   ;;  %v16805_v41 = vld [vmem:[%s17614_s4 + $0x1fb4] ss:$148 sps:$4 sm:$0xff]  }
 0x52a   : > { %11269 = vmatpush1.bf16.msra.mxu0 %v16728_v52  ;;  %11398 = vmatpush1.bf16.msra.mxu1 %v16731_v53  ;;  %v16802_v40 = vld [vmem:[%s17614_s4 + $0x1fac] ss:$148 sps:$4 sm:$0xff]   ;;  %v16800_v42 = vld [vmem:[%s17614_s4 + $0x1fa8] ss:$148 sps:$4 sm:$0xff]   ;;  %v16803_v31 = vld [vmem:[%s17614_s4 + $0x1fb0] ss:$148 sps:$4 sm:$0xff]  }
 0x52b   : > { %11281 = vmatprep.subr.bf16.mxu0 %v16736_v55  ;;  %11410 = vmatprep.subr.bf16.mxu1 %v16739_v57  ;;  %v16808_v43 = vld [vmem:[%s17614_s4 + $0x20d4] ss:$148 sps:$4 sm:$0xff]   ;;  %v16811_v44 = vld [vmem:[%s17614_s4 + $0x20dc] ss:$148 sps:$4 sm:$0xff]   ;;  %v16809_v46 = vld [vmem:[%s17614_s4 + $0x20d8] ss:$148 sps:$4 sm:$0xff]  }
 0x52c   : > { %v16806_v45 = vld [vmem:[%s17614_s4 + $0x20d0] ss:$148 sps:$4 sm:$0xff]   ;;  %v16812_v49 = vld [vmem:[%s17614_s4 + $0x21f8] ss:$148 sps:$4 sm:$0xff]   ;;  %v16815_v50 = vld [vmem:[%s17614_s4 + $0x2200] ss:$148 sps:$4 sm:$0xff]  }
 0x52d   : > { %11271 = vmatmul.mubr.bf16.vlgmr.msra.gmra.mrb[28].mxu0 %v19488_v63  ;;  %11400 = vmatmul.mubr.bf16.vlgmr.msra.gmra.mrb[28].mxu1 %v19488_v63  ;;  %v16814_v47 = vld [vmem:[%s17614_s4 + $0x21fc] ss:$148 sps:$4 sm:$0xff]   ;;  %v16817_v48 = vld [vmem:[%s17614_s4 + $0x2204] ss:$148 sps:$4 sm:$0xff]   ;;  %v16823_v52 = vld [vmem:[%s17614_s4 + $0x232c] ss:$148 sps:$4 sm:$0xff]  }
 0x52e   : > { %11282 = vmatpush1.bf16.msra.mxu0 %v16734_v58  ;;  %11411 = vmatpush1.bf16.msra.mxu1 %v16737_v59  ;;  %v16820_v51 = vld [vmem:[%s17614_s4 + $0x2324] ss:$148 sps:$4 sm:$0xff]   ;;  %v16818_v53 = vld [vmem:[%s17614_s4 + $0x2320] ss:$148 sps:$4 sm:$0xff]   ;;  %v16821_v55 = vld [vmem:[%s17614_s4 + $0x2328] ss:$148 sps:$4 sm:$0xff]  }
 0x52f   : > { %11283 = vmatprep.subr.bf16.mxu0 %v16742_v60  ;;  %11412 = vmatprep.subr.bf16.mxu1 %v16745_v62  ;;  %v16826_v57 = vld [vmem:[%s17614_s4 + $0x244c] ss:$148 sps:$4 sm:$0xff]   ;;  %v16829_v58 = vld [vmem:[%s17614_s4 + $0x2454] ss:$148 sps:$4 sm:$0xff]   ;;  %v16827_v60 = vld [vmem:[%s17614_s4 + $0x2450] ss:$148 sps:$4 sm:$0xff]  }
 0x530   : > { %11313 = vmatprep.mubr.bf16.mxu0 %v19497_v3  ;;  %11442 = vmatprep.mubr.bf16.mxu1 %v19497_v3  ;;  %v16824_v59 = vld [vmem:[%s17614_s4 + $0x2448] ss:$148 sps:$4 sm:$0xff]  }
 0x531   : > { %v16832_v62 = vld [vmem:[%s17614_s4 + $0x2574] ss:$148 sps:$4 sm:$0xff]  }
 0x532   : > { %11284 = vmatpush1.bf16.msra.mxu0 %v16740_v0  ;;  %11413 = vmatpush1.bf16.msra.mxu1 %v16743_v1  ;;  %v16835_v0 = vld [vmem:[%s17614_s4 + $0x257c] ss:$148 sps:$4 sm:$0xff]  }
 0x533   : > { %11285 = vmatprep.subr.bf16.mxu0 %v16748_v2  ;;  %11414 = vmatprep.subr.bf16.mxu1 %v16751_v56  ;;  %v16830_v1 = vld [vmem:[%s17614_s4 + $0x2570] ss:$148 sps:$4 sm:$0xff]   ;;  %v16833_v2 = vld [vmem:[%s17614_s4 + $0x2578] ss:$148 sps:$4 sm:$0xff]  }
 0x534   : > { %v16838_v56 = vld [vmem:[%s17614_s4 + $0x269c] ss:$148 sps:$4 sm:$0xff]  }
 0x536   : > { %11286 = vmatpush1.bf16.msra.mxu0 %v16746_v54  ;;  %11415 = vmatpush1.bf16.msra.mxu1 %v16749_v4  ;;  %v16841_v54 = vld [vmem:[%s17614_s4 + $0x26a4] ss:$148 sps:$4 sm:$0xff]  }
 0x537   : > { %11287 = vmatprep.subr.bf16.mxu0 %v16754_v5  ;;  %11416 = vmatprep.subr.bf16.mxu1 %v16757_v6  ;;  %v19562_v4 = vld [vmem:[%s17612_s27 + $0x8] ss:$20 sps:$4 sm:$0xff]  }
 0x538   : > { %v16836_v5 = vld [vmem:[%s17614_s4 + $0x2698] ss:$148 sps:$4 sm:$0xff]   ;;  %v16839_v6 = vld [vmem:[%s17614_s4 + $0x26a0] ss:$148 sps:$4 sm:$0xff]  }
 0x53a   : > { %11288 = vmatpush1.bf16.msra.mxu0 %v16752_v7  ;;  %11417 = vmatpush1.bf16.msra.mxu1 %v16755_v61  ;;  %v16844_v7 = vld [vmem:[%s17614_s4 + $0x27c4] ss:$148 sps:$4 sm:$0xff]   ;;  %v16847_v61 = vld [vmem:[%s17614_s4 + $0x27cc] ss:$148 sps:$4 sm:$0xff]  }
 0x53b   : > { %11289 = vmatprep.subr.bf16.mxu0 %v16760_v8  ;;  %11418 = vmatprep.subr.bf16.mxu1 %v16763_v9  ;;  %v16842_v8 = vld [vmem:[%s17614_s4 + $0x27c0] ss:$148 sps:$4 sm:$0xff]   ;;  %v16845_v9 = vld [vmem:[%s17614_s4 + $0x27c8] ss:$148 sps:$4 sm:$0xff]  }
 0x53e   : > { %11290 = vmatpush1.bf16.msra.mxu0 %v16758_v10  ;;  %11419 = vmatpush1.bf16.msra.mxu1 %v16761_v11  ;;  %v16850_v10 = vld [vmem:[%s17614_s4 + $0x28ec] ss:$148 sps:$4 sm:$0xff]   ;;  %v16853_v11 = vld [vmem:[%s17614_s4 + $0x28f4] ss:$148 sps:$4 sm:$0xff]  }
 0x53f   : > { %11291 = vmatprep.subr.bf16.mxu0 %v16766_v12  ;;  %11420 = vmatprep.subr.bf16.mxu1 %v16769_v13  ;;  %v16848_v12 = vld [vmem:[%s17614_s4 + $0x28e8] ss:$148 sps:$4 sm:$0xff]   ;;  %v16851_v13 = vld [vmem:[%s17614_s4 + $0x28f0] ss:$148 sps:$4 sm:$0xff]  }
 0x542   : > { %11292 = vmatpush1.bf16.msra.mxu0 %v16764_v14  ;;  %11421 = vmatpush1.bf16.msra.mxu1 %v16767_v15  ;;  %v16856_v14 = vld [vmem:[%s17614_s4 + $0x2a14] ss:$148 sps:$4 sm:$0xff]   ;;  %v16859_v15 = vld [vmem:[%s17614_s4 + $0x2a1c] ss:$148 sps:$4 sm:$0xff]  }
 0x543   : > { %11293 = vmatprep.subr.bf16.mxu0 %v16772_v16  ;;  %11422 = vmatprep.subr.bf16.mxu1 %v16775_v17  ;;  %v16854_v16 = vld [vmem:[%s17614_s4 + $0x2a10] ss:$148 sps:$4 sm:$0xff]   ;;  %v16857_v17 = vld [vmem:[%s17614_s4 + $0x2a18] ss:$148 sps:$4 sm:$0xff]  }
 0x546   : > { %11294 = vmatpush1.bf16.msra.mxu0 %v16770_v18  ;;  %11423 = vmatpush1.bf16.msra.mxu1 %v16773_v19  ;;  %v16862_v18 = vld [vmem:[%s17614_s4 + $0x2b3c] ss:$148 sps:$4 sm:$0xff]   ;;  %v16865_v19 = vld [vmem:[%s17614_s4 + $0x2b44] ss:$148 sps:$4 sm:$0xff]  }
 0x547   : > { %11295 = vmatprep.subr.bf16.mxu0 %v16778_v20  ;;  %11424 = vmatprep.subr.bf16.mxu1 %v16781_v21  ;;  %v16860_v20 = vld [vmem:[%s17614_s4 + $0x2b38] ss:$148 sps:$4 sm:$0xff]   ;;  %v16863_v21 = vld [vmem:[%s17614_s4 + $0x2b40] ss:$148 sps:$4 sm:$0xff]  }
 0x54a   : > { %11296 = vmatpush1.bf16.msra.mxu0 %v16776_v23  ;;  %11425 = vmatpush1.bf16.msra.mxu1 %v16779_v24  ;;  %v16868_v23 = vld [vmem:[%s17614_s4 + $0x2c64] ss:$148 sps:$4 sm:$0xff]   ;;  %v16871_v24 = vld [vmem:[%s17614_s4 + $0x2c6c] ss:$148 sps:$4 sm:$0xff]  }
 0x54b   : > { %11297 = vmatprep.subr.bf16.mxu0 %v16784_v25  ;;  %11426 = vmatprep.subr.bf16.mxu1 %v16787_v27  ;;  %v16866_v25 = vld [vmem:[%s17614_s4 + $0x2c60] ss:$148 sps:$4 sm:$0xff]   ;;  %v16869_v27 = vld [vmem:[%s17614_s4 + $0x2c68] ss:$148 sps:$4 sm:$0xff]  }
 0x54e   : > { %11298 = vmatpush1.bf16.msra.mxu0 %v16782_v28  ;;  %11427 = vmatpush1.bf16.msra.mxu1 %v16785_v29  ;;  %v16874_v28 = vld [vmem:[%s17614_s4 + $0x2d8c] ss:$148 sps:$4 sm:$0xff]   ;;  %v16877_v29 = vld [vmem:[%s17614_s4 + $0x2d94] ss:$148 sps:$4 sm:$0xff]  }
 0x54f   : > { %11299 = vmatprep.subr.bf16.mxu0 %v16790_v30  ;;  %11428 = vmatprep.subr.bf16.mxu1 %v16793_v32  ;;  %v16872_v30 = vld [vmem:[%s17614_s4 + $0x2d88] ss:$148 sps:$4 sm:$0xff]   ;;  %v16875_v32 = vld [vmem:[%s17614_s4 + $0x2d90] ss:$148 sps:$4 sm:$0xff]  }
 0x552   : > { %11300 = vmatpush1.bf16.msra.mxu0 %v16788_v34  ;;  %11429 = vmatpush1.bf16.msra.mxu1 %v16791_v35  ;;  %v16880_v34 = vld [vmem:[%s17614_s4 + $0x84] ss:$148 sps:$4 sm:$0xff]   ;;  %v16883_v35 = vld [vmem:[%s17614_s4 + $0x8c] ss:$148 sps:$4 sm:$0xff]  }
 0x553   : > { %11301 = vmatprep.subr.bf16.mxu0 %v16796_v36  ;;  %11430 = vmatprep.subr.bf16.mxu1 %v16799_v37  ;;  %v16878_v36 = vld [vmem:[%s17614_s4 + $0x80] ss:$148 sps:$4 sm:$0xff]   ;;  %v16881_v37 = vld [vmem:[%s17614_s4 + $0x88] ss:$148 sps:$4 sm:$0xff]  }
 0x556   : > { %11302 = vmatpush1.bf16.msra.mxu0 %v16794_v38  ;;  %11431 = vmatpush1.bf16.msra.mxu1 %v16797_v39  ;;  %v16886_v38 = vld [vmem:[%s17614_s4 + $0x1ac] ss:$148 sps:$4 sm:$0xff]   ;;  %v16889_v39 = vld [vmem:[%s17614_s4 + $0x1b4] ss:$148 sps:$4 sm:$0xff]  }
 0x557   : > { %11303 = vmatprep.subr.bf16.mxu0 %v16802_v40  ;;  %11432 = vmatprep.subr.bf16.mxu1 %v16805_v41  ;;  %v16884_v40 = vld [vmem:[%s17614_s4 + $0x1a8] ss:$148 sps:$4 sm:$0xff]   ;;  %v16887_v41 = vld [vmem:[%s17614_s4 + $0x1b0] ss:$148 sps:$4 sm:$0xff]  }
 0x55a   : > { %11304 = vmatpush1.bf16.msra.mxu0 %v16800_v42  ;;  %11433 = vmatpush1.bf16.msra.mxu1 %v16803_v31  ;;  %v16892_v42 = vld [vmem:[%s17614_s4 + $0x2d4] ss:$148 sps:$4 sm:$0xff]   ;;  %v16895_v31 = vld [vmem:[%s17614_s4 + $0x2dc] ss:$148 sps:$4 sm:$0xff]  }
 0x55b   : > { %11305 = vmatprep.subr.bf16.mxu0 %v16808_v43  ;;  %11434 = vmatprep.subr.bf16.mxu1 %v16811_v44  ;;  %v16893_v43 = vld [vmem:[%s17614_s4 + $0x2d8] ss:$148 sps:$4 sm:$0xff]   ;;  %v16898_v44 = vld [vmem:[%s17614_s4 + $0x3fc] ss:$148 sps:$4 sm:$0xff]  }
 0x55e   : > { %11306 = vmatpush1.bf16.msra.mxu0 %v16806_v45  ;;  %11435 = vmatpush1.bf16.msra.mxu1 %v16809_v46  ;;  %v16901_v45 = vld [vmem:[%s17614_s4 + $0x404] ss:$148 sps:$4 sm:$0xff]  }
 0x55f   : > { %11307 = vmatprep.subr.bf16.mxu0 %v16814_v47  ;;  %11436 = vmatprep.subr.bf16.mxu1 %v16817_v48  ;;  %v16896_v46 = vld [vmem:[%s17614_s4 + $0x3f8] ss:$148 sps:$4 sm:$0xff]   ;;  %v16899_v47 = vld [vmem:[%s17614_s4 + $0x400] ss:$148 sps:$4 sm:$0xff]  }
 0x560   : > { %v16907_v48 = vld [vmem:[%s17614_s4 + $0x52c] ss:$148 sps:$4 sm:$0xff]  }
 0x562   : > { %11308 = vmatpush1.bf16.msra.mxu0 %v16812_v49  ;;  %11437 = vmatpush1.bf16.msra.mxu1 %v16815_v50  ;;  %v16902_v49 = vld [vmem:[%s17614_s4 + $0x520] ss:$148 sps:$4 sm:$0xff]   ;;  %v16905_v50 = vld [vmem:[%s17614_s4 + $0x528] ss:$148 sps:$4 sm:$0xff]  }
 0x563   : > { %11309 = vmatprep.subr.bf16.mxu0 %v16820_v51  ;;  %11438 = vmatprep.subr.bf16.mxu1 %v16823_v52  ;;  %v16910_v51 = vld [vmem:[%s17614_s4 + $0x64c] ss:$148 sps:$4 sm:$0xff]   ;;  %v16913_v52 = vld [vmem:[%s17614_s4 + $0x654] ss:$148 sps:$4 sm:$0xff]  }
 0x566   : > { %11310 = vmatpush1.bf16.msra.mxu0 %v16818_v53  ;;  %11439 = vmatpush1.bf16.msra.mxu1 %v16821_v55  ;;  %v16908_v53 = vld [vmem:[%s17614_s4 + $0x648] ss:$148 sps:$4 sm:$0xff]   ;;  %v16911_v55 = vld [vmem:[%s17614_s4 + $0x650] ss:$148 sps:$4 sm:$0xff]  }
 0x567   : > { %11311 = vmatprep.subr.bf16.mxu0 %v16826_v57  ;;  %11440 = vmatprep.subr.bf16.mxu1 %v16829_v58  ;;  %v16916_v57 = vld [vmem:[%s17614_s4 + $0x774] ss:$148 sps:$4 sm:$0xff]   ;;  %v16919_v58 = vld [vmem:[%s17614_s4 + $0x77c] ss:$148 sps:$4 sm:$0xff]  }
 0x56a   : > { %11312 = vmatpush1.bf16.msra.mxu0 %v16824_v59  ;;  %11441 = vmatpush1.bf16.msra.mxu1 %v16827_v60  ;;  %v16914_v59 = vld [vmem:[%s17614_s4 + $0x770] ss:$148 sps:$4 sm:$0xff]   ;;  %v16917_v60 = vld [vmem:[%s17614_s4 + $0x778] ss:$148 sps:$4 sm:$0xff]  }
 0x56b   : > { %11324 = vmatprep.subr.bf16.mxu0 %v16832_v62  ;;  %11453 = vmatprep.subr.bf16.mxu1 %v16835_v0  ;;  %v16922_v62 = vld [vmem:[%s17614_s4 + $0x89c] ss:$148 sps:$4 sm:$0xff]   ;;  %v16925_v0 = vld [vmem:[%s17614_s4 + $0x8a4] ss:$148 sps:$4 sm:$0xff]  }
 0x56d   : > { %11314 = vmatmul.mubr.bf16.vlgmr.msra.gmra.mrb[28].mxu0 %v19562_v4  ;;  %11443 = vmatmul.mubr.bf16.vlgmr.msra.gmra.mrb[28].mxu1 %v19562_v4 }
 0x56e   : > { %11325 = vmatpush1.bf16.msra.mxu0 %v16830_v1  ;;  %11454 = vmatpush1.bf16.msra.mxu1 %v16833_v2  ;;  %v16920_v1 = vld [vmem:[%s17614_s4 + $0x898] ss:$148 sps:$4 sm:$0xff]   ;;  %v16923_v2 = vld [vmem:[%s17614_s4 + $0x8a0] ss:$148 sps:$4 sm:$0xff]  }
 0x56f   : > { %11326 = vmatprep.subr.bf16.mxu0 %v16838_v56  ;;  %11455 = vmatprep.subr.bf16.mxu1 %v16841_v54  ;;  %v16928_v56 = vld [vmem:[%s17614_s4 + $0x9c4] ss:$148 sps:$4 sm:$0xff]   ;;  %v16931_v54 = vld [vmem:[%s17614_s4 + $0x9cc] ss:$148 sps:$4 sm:$0xff]  }
 0x570   : > { %11356 = vmatprep.mubr.bf16.mxu0 %v17459_v22  ;;  %11485 = vmatprep.mubr.bf16.mxu1 %v17459_v22 }
 0x572   : > { %11327 = vmatpush1.bf16.msra.mxu0 %v16836_v5  ;;  %11456 = vmatpush1.bf16.msra.mxu1 %v16839_v6  ;;  %v16926_v5 = vld [vmem:[%s17614_s4 + $0x9c0] ss:$148 sps:$4 sm:$0xff]   ;;  %v16929_v6 = vld [vmem:[%s17614_s4 + $0x9c8] ss:$148 sps:$4 sm:$0xff]  }
 0x573   : > { %11328 = vmatprep.subr.bf16.mxu0 %v16844_v7  ;;  %11457 = vmatprep.subr.bf16.mxu1 %v16847_v61  ;;  %v16934_v7 = vld [vmem:[%s17614_s4 + $0xaec] ss:$148 sps:$4 sm:$0xff]   ;;  %v16937_v61 = vld [vmem:[%s17614_s4 + $0xaf4] ss:$148 sps:$4 sm:$0xff]  }
 0x576   : > { %11329 = vmatpush1.bf16.msra.mxu0 %v16842_v8  ;;  %11458 = vmatpush1.bf16.msra.mxu1 %v16845_v9  ;;  %v16932_v8 = vld [vmem:[%s17614_s4 + $0xae8] ss:$148 sps:$4 sm:$0xff]   ;;  %v16935_v9 = vld [vmem:[%s17614_s4 + $0xaf0] ss:$148 sps:$4 sm:$0xff]  }
 0x577   : > { %11330 = vmatprep.subr.bf16.mxu0 %v16850_v10  ;;  %11459 = vmatprep.subr.bf16.mxu1 %v16853_v11  ;;  %v16940_v10 = vld [vmem:[%s17614_s4 + $0xc14] ss:$148 sps:$4 sm:$0xff]   ;;  %v16943_v11 = vld [vmem:[%s17614_s4 + $0xc1c] ss:$148 sps:$4 sm:$0xff]  }
 0x57a   : > { %11331 = vmatpush1.bf16.msra.mxu0 %v16848_v12  ;;  %11460 = vmatpush1.bf16.msra.mxu1 %v16851_v13  ;;  %v16938_v12 = vld [vmem:[%s17614_s4 + $0xc10] ss:$148 sps:$4 sm:$0xff]   ;;  %v16941_v13 = vld [vmem:[%s17614_s4 + $0xc18] ss:$148 sps:$4 sm:$0xff]  }
 0x57b   : > { %11332 = vmatprep.subr.bf16.mxu0 %v16856_v14  ;;  %11461 = vmatprep.subr.bf16.mxu1 %v16859_v15  ;;  %v16946_v14 = vld [vmem:[%s17614_s4 + $0xd3c] ss:$148 sps:$4 sm:$0xff]   ;;  %v16949_v15 = vld [vmem:[%s17614_s4 + $0xd44] ss:$148 sps:$4 sm:$0xff]  }
 0x57e   : > { %11333 = vmatpush1.bf16.msra.mxu0 %v16854_v16  ;;  %11462 = vmatpush1.bf16.msra.mxu1 %v16857_v17  ;;  %v16944_v16 = vld [vmem:[%s17614_s4 + $0xd38] ss:$148 sps:$4 sm:$0xff]   ;;  %v16947_v17 = vld [vmem:[%s17614_s4 + $0xd40] ss:$148 sps:$4 sm:$0xff]  }
 0x57f   : > { %11334 = vmatprep.subr.bf16.mxu0 %v16862_v18  ;;  %11463 = vmatprep.subr.bf16.mxu1 %v16865_v19  ;;  %v16952_v18 = vld [vmem:[%s17614_s4 + $0xe64] ss:$148 sps:$4 sm:$0xff]   ;;  %v16955_v19 = vld [vmem:[%s17614_s4 + $0xe6c] ss:$148 sps:$4 sm:$0xff]  }
 0x582   : > { %11335 = vmatpush1.bf16.msra.mxu0 %v16860_v20  ;;  %11464 = vmatpush1.bf16.msra.mxu1 %v16863_v21  ;;  %v16950_v20 = vld [vmem:[%s17614_s4 + $0xe60] ss:$148 sps:$4 sm:$0xff]   ;;  %v16953_v21 = vld [vmem:[%s17614_s4 + $0xe68] ss:$148 sps:$4 sm:$0xff]  }
 0x583   : > { %11336 = vmatprep.subr.bf16.mxu0 %v16868_v23  ;;  %11465 = vmatprep.subr.bf16.mxu1 %v16871_v24  ;;  %v16958_v23 = vld [vmem:[%s17614_s4 + $0xf8c] ss:$148 sps:$4 sm:$0xff]   ;;  %v16961_v24 = vld [vmem:[%s17614_s4 + $0xf94] ss:$148 sps:$4 sm:$0xff]  }
 0x586   : > { %11337 = vmatpush1.bf16.msra.mxu0 %v16866_v25  ;;  %11466 = vmatpush1.bf16.msra.mxu1 %v16869_v27  ;;  %v390_v25 = vld [vmem:[%s21394_s3 + $0xc0] sm:$0xff]  ;;  %v392_v27 = vld [vmem:[%s21394_s3 + $0xd0] sm:$0xff] }
 0x587   : > { %11338 = vmatprep.subr.bf16.mxu0 %v16874_v28  ;;  %11467 = vmatprep.subr.bf16.mxu1 %v16877_v29  ;;  %v391_v28 = vld [vmem:[%s21394_s3 + $0xc8] sm:$0xff] }
 0x588   : > { %v16956_v29 = vld [vmem:[%s17614_s4 + $0xf88] ss:$148 sps:$4 sm:$0xff]  }
 0x58a   : > { %11339 = vmatpush1.bf16.msra.mxu0 %v16872_v30  ;;  %11468 = vmatpush1.bf16.msra.mxu1 %v16875_v32  ;;  %v16959_v30 = vld [vmem:[%s17614_s4 + $0xf90] ss:$148 sps:$4 sm:$0xff]   ;;  %v393_v32 = vld [vmem:[%s21394_s3 + $0xd8] sm:$0xff] }
 0x58b   : > { %11496 = vmatprep.subr.bf16.mxu0 %v16880_v34  ;;  %11625 = vmatprep.subr.bf16.mxu1 %v16883_v35  ;;  %v16964_v34 = vld [vmem:[%s17614_s4 + $0x10b4] ss:$148 sps:$4 sm:$0xff]   ;;  %v16967_v35 = vld [vmem:[%s17614_s4 + $0x10bc] ss:$148 sps:$4 sm:$0xff]  }
 0x58d   : > { %11357 = vmatmul.mubr.bf16.vlgmr.msra.gmra.mrb[28].mxu0 %v19366_v33  ;;  %11486 = vmatmul.mubr.bf16.vlgmr.msra.gmra.mrb[28].mxu1 %v19366_v33  ;;  %v16890_v33 = vld [vmem:[%s17614_s4 + $0x2d0] ss:$148 sps:$4 sm:$0xff]  }
 0x58e   : > { %11497 = vmatpush1.bf16.msra.mxu0 %v16878_v36  ;;  %11626 = vmatpush1.bf16.msra.mxu1 %v16881_v37 }
 0x58f   : > { %11498 = vmatprep.subr.bf16.mxu0 %v16886_v38  ;;  %11627 = vmatprep.subr.bf16.mxu1 %v16889_v39  ;;  %v427_v38 = vld [vmem:[%s21394_s3 + $0x1e8] sm:$0xff]  ;;  %v429_v39 = vld [vmem:[%s21394_s3 + $0x1f8] sm:$0xff] }
 0x590   : > { %11528 = vmatprep.mubr.bf16.mxu0 %v19375_v26  ;;  %11657 = vmatprep.mubr.bf16.mxu1 %v19375_v26  ;;  %v16904_v26 = vld [vmem:[%s17614_s4 + $0x524] ss:$148 sps:$4 sm:$0xff]  }
 0x592   : > { %11499 = vmatpush1.bf16.msra.mxu0 %v16884_v40  ;;  %11628 = vmatpush1.bf16.msra.mxu1 %v16887_v41 }
 0x593   : > { %11500 = vmatprep.subr.bf16.mxu0 %v16892_v42  ;;  %11629 = vmatprep.subr.bf16.mxu1 %v16895_v31 }
 0x596   : > { %11501 = vmatpush1.bf16.msra.mxu0 %v16890_v33  ;;  %11630 = vmatpush1.bf16.msra.mxu1 %v16893_v43  ;;  %v428_v33 = vld [vmem:[%s21394_s3 + $0x1f0] sm:$0xff]  ;;  %v430_v43 = vld [vmem:[%s21394_s3 + $0x200] sm:$0xff] }
 0x597   : > { %11502 = vmatprep.subr.bf16.mxu0 %v16898_v44  ;;  %11631 = vmatprep.subr.bf16.mxu1 %v16901_v45 }
 0x59a   : > { %11503 = vmatpush1.bf16.msra.mxu0 %v16896_v46  ;;  %11632 = vmatpush1.bf16.msra.mxu1 %v16899_v47 }
 0x59b   : > { %11504 = vmatprep.subr.bf16.mxu0 %v16904_v26  ;;  %11633 = vmatprep.subr.bf16.mxu1 %v16907_v48  ;;  %v16962_v26 = vld [vmem:[%s17614_s4 + $0x10b0] ss:$148 sps:$4 sm:$0xff]   ;;  %v16965_v48 = vld [vmem:[%s17614_s4 + $0x10b8] ss:$148 sps:$4 sm:$0xff]  }
 0x59e   : > { %11505 = vmatpush1.bf16.msra.mxu0 %v16902_v49  ;;  %11634 = vmatpush1.bf16.msra.mxu1 %v16905_v50 }
 0x59f   : > { %11506 = vmatprep.subr.bf16.mxu0 %v16910_v51  ;;  %11635 = vmatprep.subr.bf16.mxu1 %v16913_v52 }
 0x5a2   : > { %11507 = vmatpush1.bf16.msra.mxu0 %v16908_v53  ;;  %11636 = vmatpush1.bf16.msra.mxu1 %v16911_v55  ;;  %v16970_v53 = vld [vmem:[%s17614_s4 + $0x11dc] ss:$148 sps:$4 sm:$0xff]   ;;  %v16973_v55 = vld [vmem:[%s17614_s4 + $0x11e4] ss:$148 sps:$4 sm:$0xff]  }
 0x5a3   : > { %11508 = vmatprep.subr.bf16.mxu0 %v16916_v57  ;;  %11637 = vmatprep.subr.bf16.mxu1 %v16919_v58 }
 0x5a6   : > { %11509 = vmatpush1.bf16.msra.mxu0 %v16914_v59  ;;  %11638 = vmatpush1.bf16.msra.mxu1 %v16917_v60  ;;  %v16968_v59 = vld [vmem:[%s17614_s4 + $0x11d8] ss:$148 sps:$4 sm:$0xff]   ;;  %v16971_v60 = vld [vmem:[%s17614_s4 + $0x11e0] ss:$148 sps:$4 sm:$0xff]  }
 0x5a7   : > { %11510 = vmatprep.subr.bf16.mxu0 %v16922_v62  ;;  %11639 = vmatprep.subr.bf16.mxu1 %v16925_v0  ;;  %v16976_v62 = vld [vmem:[%s17614_s4 + $0x1304] ss:$148 sps:$4 sm:$0xff]   ;;  %v16979_v0 = vld [vmem:[%s17614_s4 + $0x130c] ss:$148 sps:$4 sm:$0xff]  }
 0x5aa   : > { %11511 = vmatpush1.bf16.msra.mxu0 %v16920_v1  ;;  %11640 = vmatpush1.bf16.msra.mxu1 %v16923_v2  ;;  %v16974_v1 = vld [vmem:[%s17614_s4 + $0x1300] ss:$148 sps:$4 sm:$0xff]   ;;  %v16977_v2 = vld [vmem:[%s17614_s4 + $0x1308] ss:$148 sps:$4 sm:$0xff]  }
 0x5ab   : > { %11512 = vmatprep.subr.bf16.mxu0 %v16928_v56  ;;  %11641 = vmatprep.subr.bf16.mxu1 %v16931_v54  ;;  %v16982_v56 = vld [vmem:[%s17614_s4 + $0x142c] ss:$148 sps:$4 sm:$0xff]   ;;  %v16985_v54 = vld [vmem:[%s17614_s4 + $0x1434] ss:$148 sps:$4 sm:$0xff]  }
 0x5ae   : > { %11513 = vmatpush1.bf16.msra.mxu0 %v16926_v5  ;;  %11642 = vmatpush1.bf16.msra.mxu1 %v16929_v6  ;;  %v16980_v5 = vld [vmem:[%s17614_s4 + $0x1428] ss:$148 sps:$4 sm:$0xff]   ;;  %v16983_v6 = vld [vmem:[%s17614_s4 + $0x1430] ss:$148 sps:$4 sm:$0xff]  }
 0x5af   : > { %11514 = vmatprep.subr.bf16.mxu0 %v16934_v7  ;;  %11643 = vmatprep.subr.bf16.mxu1 %v16937_v61  ;;  %v16988_v7 = vld [vmem:[%s17614_s4 + $0x1554] ss:$148 sps:$4 sm:$0xff]   ;;  %v16991_v61 = vld [vmem:[%s17614_s4 + $0x155c] ss:$148 sps:$4 sm:$0xff]  }
 0x5b2   : > { %11515 = vmatpush1.bf16.msra.mxu0 %v16932_v8  ;;  %11644 = vmatpush1.bf16.msra.mxu1 %v16935_v9  ;;  %v16989_v8 = vld [vmem:[%s17614_s4 + $0x1558] ss:$148 sps:$4 sm:$0xff]   ;;  %v16994_v9 = vld [vmem:[%s17614_s4 + $0x167c] ss:$148 sps:$4 sm:$0xff]  }
 0x5b3   : > { %11516 = vmatprep.subr.bf16.mxu0 %v16940_v10  ;;  %11645 = vmatprep.subr.bf16.mxu1 %v16943_v11  ;;  %v16997_v10 = vld [vmem:[%s17614_s4 + $0x1684] ss:$148 sps:$4 sm:$0xff]  }
 0x5b4   : > { %v16992_v11 = vld [vmem:[%s17614_s4 + $0x1678] ss:$148 sps:$4 sm:$0xff]  }
 0x5b6   : > { %11517 = vmatpush1.bf16.msra.mxu0 %v16938_v12  ;;  %11646 = vmatpush1.bf16.msra.mxu1 %v16941_v13  ;;  %v16995_v12 = vld [vmem:[%s17614_s4 + $0x1680] ss:$148 sps:$4 sm:$0xff]  }
 0x5b7   : > { %11518 = vmatprep.subr.bf16.mxu0 %v16946_v14  ;;  %11647 = vmatprep.subr.bf16.mxu1 %v16949_v15  ;;  %v17003_v13 = vld [vmem:[%s17614_s4 + $0x17ac] ss:$148 sps:$4 sm:$0xff]   ;;  %v17001_v15 = vld [vmem:[%s17614_s4 + $0x17a8] ss:$148 sps:$4 sm:$0xff]  }
 0x5b8   : > { %v16998_v14 = vld [vmem:[%s17614_s4 + $0x17a0] ss:$148 sps:$4 sm:$0xff]  }
 0x5ba   : > { %11519 = vmatpush1.bf16.msra.mxu0 %v16944_v16  ;;  %11648 = vmatpush1.bf16.msra.mxu1 %v16947_v17  ;;  %v17006_v16 = vld [vmem:[%s17614_s4 + $0x18cc] ss:$148 sps:$4 sm:$0xff]   ;;  %v17009_v17 = vld [vmem:[%s17614_s4 + $0x18d4] ss:$148 sps:$4 sm:$0xff]  }
 0x5bb   : > { %11520 = vmatprep.subr.bf16.mxu0 %v16952_v18  ;;  %11649 = vmatprep.subr.bf16.mxu1 %v16955_v19  ;;  %v17004_v18 = vld [vmem:[%s17614_s4 + $0x18c8] ss:$148 sps:$4 sm:$0xff]   ;;  %v17007_v19 = vld [vmem:[%s17614_s4 + $0x18d0] ss:$148 sps:$4 sm:$0xff]  }
 0x5be   : > { %11521 = vmatpush1.bf16.msra.mxu0 %v16950_v20  ;;  %11650 = vmatpush1.bf16.msra.mxu1 %v16953_v21  ;;  %v17012_v20 = vld [vmem:[%s17614_s4 + $0x19f4] ss:$148 sps:$4 sm:$0xff]   ;;  %v17015_v21 = vld [vmem:[%s17614_s4 + $0x19fc] ss:$148 sps:$4 sm:$0xff]  }
 0x5bf   : > { %11522 = vmatprep.subr.bf16.mxu0 %v16958_v23  ;;  %11651 = vmatprep.subr.bf16.mxu1 %v16961_v24  ;;  %v17010_v23 = vld [vmem:[%s17614_s4 + $0x19f0] ss:$148 sps:$4 sm:$0xff]   ;;  %v17013_v24 = vld [vmem:[%s17614_s4 + $0x19f8] ss:$148 sps:$4 sm:$0xff]  }
 0x5c0   : > { %v11100_v36 = vpop.f32.mrb[24].mxu0  ;;  %v11229_v37 = vpop.f32.mrb[24].mxu1 }
 0x5c1   : > { %v11901_v40 = vadd.f32 %v11100_v36, %v390_v25  ;;  %v11903_v41 = vadd.f32 %v11229_v37, %v392_v27  ;;  %v11102_v42 = vpop.f32.mrb[25].mxu0  ;;  %v11231_v31 = vpop.f32.mrb[25].mxu1  ;;  %v17018_v25 = vld [vmem:[%s17614_s4 + $0x1b1c] ss:$148 sps:$4 sm:$0xff]   ;;  %v17021_v27 = vld [vmem:[%s17614_s4 + $0x1b24] ss:$148 sps:$4 sm:$0xff]  }
 0x5c2   : > { %v11902_v44 = vadd.f32 %v11102_v42, %v391_v28  ;;  %v11904_v45 = vadd.f32 %v11231_v31, %v393_v32  ;;  %v11104_v46 = vpop.f32.mrb[26].mxu0  ;;  %v11233_v47 = vpop.f32.mrb[26].mxu1  ;;  %11523 = vmatpush1.bf16.msra.mxu0 %v16956_v29  ;;  %11652 = vmatpush1.bf16.msra.mxu1 %v16959_v30  ;;  %v17016_v28 = vld [vmem:[%s17614_s4 + $0x1b18] ss:$148 sps:$4 sm:$0xff]   ;;  %v17019_v29 = vld [vmem:[%s17614_s4 + $0x1b20] ss:$148 sps:$4 sm:$0xff]  }
 0x5c3   : > { %11975 = vst [vmem:[%s21394_s3 + $0xc0] sm:$0xff] %v11901_v40  ;;  %11977 = vst [vmem:[%s21394_s3 + $0xd0] sm:$0xff] %v11903_v41  ;;  %v11938_v49 = vadd.f32 %v11104_v46, %v427_v38  ;;  %v11940_v50 = vadd.f32 %v11233_v47, %v429_v39  ;;  %v11106_v51 = vpop.f32.mrb[27].mxu0  ;;  %v11235_v52 = vpop.f32.mrb[27].mxu1  ;;  %11524 = vmatprep.subr.bf16.mxu0 %v16964_v34  ;;  %11653 = vmatprep.subr.bf16.mxu1 %v16967_v35  ;;  %v17024_v30 = vld [vmem:[%s17614_s4 + $0x1c44] ss:$148 sps:$4 sm:$0xff]  }
 0x5c4   : > { %11976 = vst [vmem:[%s21394_s3 + $0xc8] sm:$0xff] %v11902_v44  ;;  %11978 = vst [vmem:[%s21394_s3 + $0xd8] sm:$0xff] %v11904_v45  ;;  %v11939_v57 = vadd.f32 %v11106_v51, %v428_v33  ;;  %v11941_v58 = vadd.f32 %v11235_v52, %v430_v43  ;;  %v17027_v32 = vld [vmem:[%s17614_s4 + $0x1c4c] ss:$148 sps:$4 sm:$0xff]   ;;  %v17025_v35 = vld [vmem:[%s17614_s4 + $0x1c48] ss:$148 sps:$4 sm:$0xff]  }
 0x5c5   : > { %12012 = vst [vmem:[%s21394_s3 + $0x1e8] sm:$0xff] %v11938_v49  ;;  %12014 = vst [vmem:[%s21394_s3 + $0x1f8] sm:$0xff] %v11940_v50  ;;  %v17022_v34 = vld [vmem:[%s17614_s4 + $0x1c40] ss:$148 sps:$4 sm:$0xff]   ;;  %v17028_v38 = vld [vmem:[%s17614_s4 + $0x1d68] ss:$148 sps:$4 sm:$0xff]  }
 0x5c6   : > { %12013 = vst [vmem:[%s21394_s3 + $0x1f0] sm:$0xff] %v11939_v57  ;;  %12015 = vst [vmem:[%s21394_s3 + $0x200] sm:$0xff] %v11941_v58  ;;  %11525 = vmatpush1.bf16.msra.mxu0 %v16962_v26  ;;  %11654 = vmatpush1.bf16.msra.mxu1 %v16965_v48  ;;  %v17030_v36 = vld [vmem:[%s17614_s4 + $0x1d6c] ss:$148 sps:$4 sm:$0xff]   ;;  %v17033_v37 = vld [vmem:[%s17614_s4 + $0x1d74] ss:$148 sps:$4 sm:$0xff]  }
 0x5c7   : > { %11526 = vmatprep.subr.bf16.mxu0 %v16970_v53  ;;  %11655 = vmatprep.subr.bf16.mxu1 %v16973_v55  ;;  %v17031_v39 = vld [vmem:[%s17614_s4 + $0x1d70] ss:$148 sps:$4 sm:$0xff]   ;;  %v17036_v40 = vld [vmem:[%s17614_s4 + $0x1e94] ss:$148 sps:$4 sm:$0xff]   ;;  %v17037_v31 = vld [vmem:[%s17614_s4 + $0x1e98] ss:$148 sps:$4 sm:$0xff]  }
 0x5c8   : > { %v17039_v41 = vld [vmem:[%s17614_s4 + $0x1e9c] ss:$148 sps:$4 sm:$0xff]   ;;  %v17045_v43 = vld [vmem:[%s17614_s4 + $0x1fc4] ss:$148 sps:$4 sm:$0xff]   ;;  %v17043_v45 = vld [vmem:[%s17614_s4 + $0x1fc0] ss:$148 sps:$4 sm:$0xff]  }
 0x5c9   : > { %v17034_v42 = vld [vmem:[%s17614_s4 + $0x1e90] ss:$148 sps:$4 sm:$0xff]   ;;  %v17040_v44 = vld [vmem:[%s17614_s4 + $0x1fb8] ss:$148 sps:$4 sm:$0xff]   ;;  %v17046_v26 = vld [vmem:[%s17614_s4 + $0x20e0] ss:$148 sps:$4 sm:$0xff]  }
 0x5ca   : > { %11527 = vmatpush1.bf16.msra.mxu0 %v16968_v59  ;;  %11656 = vmatpush1.bf16.msra.mxu1 %v16971_v60  ;;  %v17042_v33 = vld [vmem:[%s17614_s4 + $0x1fbc] ss:$148 sps:$4 sm:$0xff]   ;;  %v17048_v46 = vld [vmem:[%s17614_s4 + $0x20e4] ss:$148 sps:$4 sm:$0xff]   ;;  %v17051_v47 = vld [vmem:[%s17614_s4 + $0x20ec] ss:$148 sps:$4 sm:$0xff]  }
 0x5cb   : > { %11539 = vmatprep.subr.bf16.mxu0 %v16976_v62  ;;  %11668 = vmatprep.subr.bf16.mxu1 %v16979_v0  ;;  %v17049_v48 = vld [vmem:[%s17614_s4 + $0x20e8] ss:$148 sps:$4 sm:$0xff]   ;;  %v17054_v49 = vld [vmem:[%s17614_s4 + $0x220c] ss:$148 sps:$4 sm:$0xff]   ;;  %v17055_v52 = vld [vmem:[%s17614_s4 + $0x2210] ss:$148 sps:$4 sm:$0xff]  }
 0x5cc   : > { %v17057_v50 = vld [vmem:[%s17614_s4 + $0x2214] ss:$148 sps:$4 sm:$0xff]   ;;  %v17063_v55 = vld [vmem:[%s17614_s4 + $0x233c] ss:$148 sps:$4 sm:$0xff]   ;;  %v17061_v58 = vld [vmem:[%s17614_s4 + $0x2338] ss:$148 sps:$4 sm:$0xff]  }
 0x5cd   : > { %11529 = vmatmul.mubr.bf16.vlgmr.msra.gmra.mrb[32].mxu0 %v19488_v63  ;;  %11658 = vmatmul.mubr.bf16.vlgmr.msra.gmra.mrb[32].mxu1 %v19488_v63  ;;  %v16986_v63 = vld [vmem:[%s17614_s4 + $0x1550] ss:$148 sps:$4 sm:$0xff]   ;;  %v17052_v51 = vld [vmem:[%s17614_s4 + $0x2208] ss:$148 sps:$4 sm:$0xff]   ;;  %v17064_v62 = vld [vmem:[%s17614_s4 + $0x2458] ss:$148 sps:$4 sm:$0xff]  }
 0x5ce   : > { %11540 = vmatpush1.bf16.msra.mxu0 %v16974_v1  ;;  %11669 = vmatpush1.bf16.msra.mxu1 %v16977_v2  ;;  %v17060_v53 = vld [vmem:[%s17614_s4 + $0x2334] ss:$148 sps:$4 sm:$0xff]   ;;  %v17058_v57 = vld [vmem:[%s17614_s4 + $0x2330] ss:$148 sps:$4 sm:$0xff]   ;;  %v17075_v2 = vld [vmem:[%s17614_s4 + $0x258c] ss:$148 sps:$4 sm:$0xff]  }
 0x5cf   : > { %11541 = vmatprep.subr.bf16.mxu0 %v16982_v56  ;;  %11670 = vmatprep.subr.bf16.mxu1 %v16985_v54  ;;  %v17066_v59 = vld [vmem:[%s17614_s4 + $0x245c] ss:$148 sps:$4 sm:$0xff]   ;;  %v17069_v60 = vld [vmem:[%s17614_s4 + $0x2464] ss:$148 sps:$4 sm:$0xff]   ;;  %v17067_v0 = vld [vmem:[%s17614_s4 + $0x2460] ss:$148 sps:$4 sm:$0xff]  }
 0x5d0   : > { %11571 = vmatprep.mubr.bf16.mxu0 %v19497_v3  ;;  %11700 = vmatprep.mubr.bf16.mxu1 %v19497_v3  ;;  %v17000_v3 = vld [vmem:[%s17614_s4 + $0x17a4] ss:$148 sps:$4 sm:$0xff]   ;;  %v17070_v56 = vld [vmem:[%s17614_s4 + $0x2580] ss:$148 sps:$4 sm:$0xff]   ;;  %v17073_v54 = vld [vmem:[%s17614_s4 + $0x2588] ss:$148 sps:$4 sm:$0xff]  }
 0x5d1   : > { %v17072_v1 = vld [vmem:[%s17614_s4 + $0x2584] ss:$148 sps:$4 sm:$0xff]  }
 0x5d2   : > { %11542 = vmatpush1.bf16.msra.mxu0 %v16980_v5  ;;  %11671 = vmatpush1.bf16.msra.mxu1 %v16983_v6  ;;  %v17078_v5 = vld [vmem:[%s17614_s4 + $0x26ac] ss:$148 sps:$4 sm:$0xff]   ;;  %v17081_v6 = vld [vmem:[%s17614_s4 + $0x26b4] ss:$148 sps:$4 sm:$0xff]  }
 0x5d3   : > { %11543 = vmatprep.subr.bf16.mxu0 %v16988_v7  ;;  %11672 = vmatprep.subr.bf16.mxu1 %v16991_v61  ;;  %v17076_v7 = vld [vmem:[%s17614_s4 + $0x26a8] ss:$148 sps:$4 sm:$0xff]   ;;  %v17079_v61 = vld [vmem:[%s17614_s4 + $0x26b0] ss:$148 sps:$4 sm:$0xff]  }
 0x5d6   : > { %11544 = vmatpush1.bf16.msra.mxu0 %v16986_v63  ;;  %11673 = vmatpush1.bf16.msra.mxu1 %v16989_v8  ;;  %v17084_v63 = vld [vmem:[%s17614_s4 + $0x27d4] ss:$148 sps:$4 sm:$0xff]   ;;  %v17087_v8 = vld [vmem:[%s17614_s4 + $0x27dc] ss:$148 sps:$4 sm:$0xff]  }
 0x5d7   : > { %11545 = vmatprep.subr.bf16.mxu0 %v16994_v9  ;;  %11674 = vmatprep.subr.bf16.mxu1 %v16997_v10  ;;  %v17082_v9 = vld [vmem:[%s17614_s4 + $0x27d0] ss:$148 sps:$4 sm:$0xff]   ;;  %v17085_v10 = vld [vmem:[%s17614_s4 + $0x27d8] ss:$148 sps:$4 sm:$0xff]  }
 0x5da   : > { %11546 = vmatpush1.bf16.msra.mxu0 %v16992_v11  ;;  %11675 = vmatpush1.bf16.msra.mxu1 %v16995_v12  ;;  %v17090_v11 = vld [vmem:[%s17614_s4 + $0x28fc] ss:$148 sps:$4 sm:$0xff]   ;;  %v17093_v12 = vld [vmem:[%s17614_s4 + $0x2904] ss:$148 sps:$4 sm:$0xff]  }
 0x5db   : > { %11547 = vmatprep.subr.bf16.mxu0 %v17000_v3  ;;  %11676 = vmatprep.subr.bf16.mxu1 %v17003_v13  ;;  %v17088_v3 = vld [vmem:[%s17614_s4 + $0x28f8] ss:$148 sps:$4 sm:$0xff]   ;;  %v17091_v13 = vld [vmem:[%s17614_s4 + $0x2900] ss:$148 sps:$4 sm:$0xff]  }
 0x5de   : > { %11548 = vmatpush1.bf16.msra.mxu0 %v16998_v14  ;;  %11677 = vmatpush1.bf16.msra.mxu1 %v17001_v15  ;;  %v17099_v14 = vld [vmem:[%s17614_s4 + $0x2a2c] ss:$148 sps:$4 sm:$0xff]  }
 0x5df   : > { %11549 = vmatprep.subr.bf16.mxu0 %v17006_v16  ;;  %11678 = vmatprep.subr.bf16.mxu1 %v17009_v17  ;;  %v17094_v15 = vld [vmem:[%s17614_s4 + $0x2a20] ss:$148 sps:$4 sm:$0xff]   ;;  %v17097_v16 = vld [vmem:[%s17614_s4 + $0x2a28] ss:$148 sps:$4 sm:$0xff]  }
 0x5e0   : > { %v17102_v17 = vld [vmem:[%s17614_s4 + $0x2b4c] ss:$148 sps:$4 sm:$0xff]  }
 0x5e2   : > { %11550 = vmatpush1.bf16.msra.mxu0 %v17004_v18  ;;  %11679 = vmatpush1.bf16.msra.mxu1 %v17007_v19  ;;  %v17105_v18 = vld [vmem:[%s17614_s4 + $0x2b54] ss:$148 sps:$4 sm:$0xff]  }
 0x5e3   : > { %11551 = vmatprep.subr.bf16.mxu0 %v17012_v20  ;;  %11680 = vmatprep.subr.bf16.mxu1 %v17015_v21  ;;  %v17100_v19 = vld [vmem:[%s17614_s4 + $0x2b48] ss:$148 sps:$4 sm:$0xff]   ;;  %v17103_v20 = vld [vmem:[%s17614_s4 + $0x2b50] ss:$148 sps:$4 sm:$0xff]  }
 0x5e4   : > { %v17108_v21 = vld [vmem:[%s17614_s4 + $0x2c74] ss:$148 sps:$4 sm:$0xff]  }
 0x5e6   : > { %11552 = vmatpush1.bf16.msra.mxu0 %v17010_v23  ;;  %11681 = vmatpush1.bf16.msra.mxu1 %v17013_v24  ;;  %v17111_v23 = vld [vmem:[%s17614_s4 + $0x2c7c] ss:$148 sps:$4 sm:$0xff]  }
 0x5e7   : > { %11553 = vmatprep.subr.bf16.mxu0 %v17018_v25  ;;  %11682 = vmatprep.subr.bf16.mxu1 %v17021_v27  ;;  %v17106_v24 = vld [vmem:[%s17614_s4 + $0x2c70] ss:$148 sps:$4 sm:$0xff]   ;;  %v17109_v25 = vld [vmem:[%s17614_s4 + $0x2c78] ss:$148 sps:$4 sm:$0xff]  }
 0x5e8   : > { %v17114_v27 = vld [vmem:[%s17614_s4 + $0x2d9c] ss:$148 sps:$4 sm:$0xff]  }
 0x5ea   : > { %11554 = vmatpush1.bf16.msra.mxu0 %v17016_v28  ;;  %11683 = vmatpush1.bf16.msra.mxu1 %v17019_v29  ;;  %v17117_v28 = vld [vmem:[%s17614_s4 + $0x2da4] ss:$148 sps:$4 sm:$0xff]  }
 0x5eb   : > { %11555 = vmatprep.subr.bf16.mxu0 %v17024_v30  ;;  %11684 = vmatprep.subr.bf16.mxu1 %v17027_v32  ;;  %v17112_v29 = vld [vmem:[%s17614_s4 + $0x2d98] ss:$148 sps:$4 sm:$0xff]   ;;  %v17115_v30 = vld [vmem:[%s17614_s4 + $0x2da0] ss:$148 sps:$4 sm:$0xff]   ;;  %v17118_v32 = vld [vmem:[%s17614_s4 + $0x9d0] ss:$148 sps:$4 sm:$0xff]  }
 0x5ee   : > { %11556 = vmatpush1.bf16.msra.mxu0 %v17022_v34  ;;  %11685 = vmatpush1.bf16.msra.mxu1 %v17025_v35  ;;  %v17119_v34 = vld [vmem:[%s17614_s4 + $0x1c50] ss:$148 sps:$4 sm:$0xff]  }
 0x5ef   : > { %11557 = vmatprep.subr.bf16.mxu0 %v17030_v36  ;;  %11686 = vmatprep.subr.bf16.mxu1 %v17033_v37  ;;  %v17120_v35 = vld [vmem:[%s17614_s4 + $0x90] ss:$148 sps:$4 sm:$0xff]   ;;  %v17122_v37 = vld [vmem:[%s17614_s4 + $0xaf8] ss:$148 sps:$4 sm:$0xff]  }
 0x5f0   : > { %v17121_v36 = vld [vmem:[%s17614_s4 + $0x1310] ss:$148 sps:$4 sm:$0xff]  }
 0x5f2   : > { %11558 = vmatpush1.bf16.msra.mxu0 %v17028_v38  ;;  %11687 = vmatpush1.bf16.msra.mxu1 %v17031_v39  ;;  %v17123_v38 = vld [vmem:[%s17614_s4 + $0x1d78] ss:$148 sps:$4 sm:$0xff]   ;;  %v19821_v39 = vld [vmem:[%s17612_s27 + $0x10] ss:$20 sps:$4 sm:$0xff]  }
 0x5f3   : > { %11559 = vmatprep.subr.bf16.mxu0 %v17036_v40  ;;  %11688 = vmatprep.subr.bf16.mxu1 %v17039_v41  ;;  %v17124_v40 = vld [vmem:[%s17614_s4 + $0x1b8] ss:$148 sps:$4 sm:$0xff]  }
 0x5f4   : > { %v17125_v41 = vld [vmem:[%s17614_s4 + $0x1438] ss:$148 sps:$4 sm:$0xff]  }
 0x5f6   : > { %11560 = vmatpush1.bf16.msra.mxu0 %v17034_v42  ;;  %11689 = vmatpush1.bf16.msra.mxu1 %v17037_v31  ;;  %v17126_v42 = vld [vmem:[%s17614_s4 + $0xc20] ss:$148 sps:$4 sm:$0xff]  }
 0x5f7   : > { %11561 = vmatprep.subr.bf16.mxu0 %v17042_v33  ;;  %11690 = vmatprep.subr.bf16.mxu1 %v17045_v43  ;;  %v17127_v31 = vld [vmem:[%s17614_s4 + $0x1ea0] ss:$148 sps:$4 sm:$0xff]   ;;  %v17188_v43 = vld [vmem:[%s17612_s27 + $0xc] ss:$20 sps:$4 sm:$0xff]  }
 0x5f8   : > { %v17187_v33 = vld [vmem:[%s17612_s27 + $0x4] ss:$20 sps:$4 sm:$0xff]  }
 0x5fa   : > { %11562 = vmatpush1.bf16.msra.mxu0 %v17040_v44  ;;  %11691 = vmatpush1.bf16.msra.mxu1 %v17043_v45  ;;  %v17128_v44 = vld [vmem:[%s17614_s4 + $0x2e0] ss:$148 sps:$4 sm:$0xff]  }
 0x5fb   : > { %11563 = vmatprep.subr.bf16.mxu0 %v17048_v46  ;;  %11692 = vmatprep.subr.bf16.mxu1 %v17051_v47  ;;  %v17129_v45 = vld [vmem:[%s17614_s4 + $0x1560] ss:$148 sps:$4 sm:$0xff]   ;;  %v17130_v46 = vld [vmem:[%s17614_s4 + $0xd48] ss:$148 sps:$4 sm:$0xff]  }
 0x5fc   : > { %v17131_v47 = vld [vmem:[%s17614_s4 + $0x1fc8] ss:$148 sps:$4 sm:$0xff]  }
 0x5fe   : > { %11564 = vmatpush1.bf16.msra.mxu0 %v17046_v26  ;;  %11693 = vmatpush1.bf16.msra.mxu1 %v17049_v48  ;;  %v17132_v26 = vld [vmem:[%s17614_s4 + $0x408] ss:$148 sps:$4 sm:$0xff]  }
 0x5ff   : > { %11565 = vmatprep.subr.bf16.mxu0 %v17054_v49  ;;  %11694 = vmatprep.subr.bf16.mxu1 %v17057_v50  ;;  %v17133_v48 = vld [vmem:[%s17614_s4 + $0x1688] ss:$148 sps:$4 sm:$0xff]   ;;  %v17134_v49 = vld [vmem:[%s17614_s4 + $0xe70] ss:$148 sps:$4 sm:$0xff]  }
 0x600   : > { %v17135_v50 = vld [vmem:[%s17614_s4 + $0x20f0] ss:$148 sps:$4 sm:$0xff]  }
 0x602   : > { %11566 = vmatpush1.bf16.msra.mxu0 %v17052_v51  ;;  %11695 = vmatpush1.bf16.msra.mxu1 %v17055_v52  ;;  %v17136_v51 = vld [vmem:[%s17614_s4 + $0x530] ss:$148 sps:$4 sm:$0xff]  }
 0x603   : > { %11567 = vmatprep.subr.bf16.mxu0 %v17060_v53  ;;  %11696 = vmatprep.subr.bf16.mxu1 %v17063_v55  ;;  %v17137_v52 = vld [vmem:[%s17614_s4 + $0x17b0] ss:$148 sps:$4 sm:$0xff]   ;;  %v17138_v53 = vld [vmem:[%s17614_s4 + $0xf98] ss:$148 sps:$4 sm:$0xff]  }
 0x604   : > { %v17139_v55 = vld [vmem:[%s17614_s4 + $0x2218] ss:$148 sps:$4 sm:$0xff]  }
 0x606   : > { %11568 = vmatpush1.bf16.msra.mxu0 %v17058_v57  ;;  %11697 = vmatpush1.bf16.msra.mxu1 %v17061_v58  ;;  %v17140_v57 = vld [vmem:[%s17614_s4 + $0x658] ss:$148 sps:$4 sm:$0xff]  }
 0x607   : > { %11569 = vmatprep.subr.bf16.mxu0 %v17066_v59  ;;  %11698 = vmatprep.subr.bf16.mxu1 %v17069_v60  ;;  %v17141_v58 = vld [vmem:[%s17614_s4 + $0x18d8] ss:$148 sps:$4 sm:$0xff]   ;;  %v17142_v59 = vld [vmem:[%s17614_s4 + $0x10c0] ss:$148 sps:$4 sm:$0xff]  }
 0x608   : > { %v17143_v60 = vld [vmem:[%s17614_s4 + $0x2340] ss:$148 sps:$4 sm:$0xff]  }
 0x60a   : > { %11570 = vmatpush1.bf16.msra.mxu0 %v17064_v62  ;;  %11699 = vmatpush1.bf16.msra.mxu1 %v17067_v0  ;;  %v17144_v62 = vld [vmem:[%s17614_s4 + $0x780] ss:$148 sps:$4 sm:$0xff]  }
 0x60b   : > { %11582 = vmatprep.subr.bf16.mxu0 %v17072_v1  ;;  %11711 = vmatprep.subr.bf16.mxu1 %v17075_v2  ;;  %v17145_v0 = vld [vmem:[%s17614_s4 + $0x1a00] ss:$148 sps:$4 sm:$0xff]   ;;  %v17146_v1 = vld [vmem:[%s17614_s4 + $0x11e8] ss:$148 sps:$4 sm:$0xff]  }
 0x60c   : > { %v17147_v2 = vld [vmem:[%s17614_s4 + $0x2468] ss:$148 sps:$4 sm:$0xff]  }
 0x60d   : > { %11572 = vmatmul.mubr.bf16.vlgmr.msra.gmra.mrb[32].mxu0 %v19562_v4  ;;  %11701 = vmatmul.mubr.bf16.vlgmr.msra.gmra.mrb[32].mxu1 %v19562_v4 }
 0x60e   : > { %11583 = vmatpush1.bf16.msra.mxu0 %v17070_v56  ;;  %11712 = vmatpush1.bf16.msra.mxu1 %v17073_v54  ;;  %v17148_v56 = vld [vmem:[%s17614_s4 + $0x8a8] ss:$148 sps:$4 sm:$0xff]  }
 0x60f   : > { %11584 = vmatprep.subr.bf16.mxu0 %v17078_v5  ;;  %11713 = vmatprep.subr.bf16.mxu1 %v17081_v6  ;;  %v17149_v54 = vld [vmem:[%s17614_s4 + $0x1b28] ss:$148 sps:$4 sm:$0xff]   ;;  %v17150_v5 = vld [vmem:[%s17614_s4 + $0x2590] ss:$148 sps:$4 sm:$0xff]   ;;  %v17460_v6 = vmov 0.0  }
 0x610   : > { %11614 = vmatprep.mubr.bf16.mxu0 %v17459_v22  ;;  %11743 = vmatprep.mubr.bf16.mxu1 %v17459_v22  ;;  %v17096_v22 = vld [vmem:[%s17614_s4 + $0x2a24] ss:$148 sps:$4 sm:$0xff]  }
 0x612   : > { %11585 = vmatpush1.bf16.msra.mxu0 %v17076_v7  ;;  %11714 = vmatpush1.bf16.msra.mxu1 %v17079_v61  ;;  %v17189_v7 = vld [vmem:[%s17612_s27] ss:$20 sps:$4 sm:$0xff]  }
 0x613   : > { %11586 = vmatprep.subr.bf16.mxu0 %v17084_v63  ;;  %11715 = vmatprep.subr.bf16.mxu1 %v17087_v8  ;;  %v17151_v61 = vld [vmem:[%s17614_s4 + $0x26b8] ss:$148 sps:$4 sm:$0xff]   ;;  %v17152_v63 = vld [vmem:[%s17614_s4 + $0x27e0] ss:$148 sps:$4 sm:$0xff]   ;;  %v17153_v8 = vld [vmem:[%s17614_s4 + $0x2908] ss:$148 sps:$4 sm:$0xff]  }
 0x616   : > { %11587 = vmatpush1.bf16.msra.mxu0 %v17082_v9  ;;  %11716 = vmatpush1.bf16.msra.mxu1 %v17085_v10  ;;  %v17154_v9 = vld [vmem:[%s17614_s4 + $0x2a30] ss:$148 sps:$4 sm:$0xff]  }
 0x617   : > { %11588 = vmatprep.subr.bf16.mxu0 %v17090_v11  ;;  %11717 = vmatprep.subr.bf16.mxu1 %v17093_v12  ;;  %v396_v10 = vld [vmem:[%s21394_s3 + $0xf0] sm:$0xff]  ;;  %v17155_v11 = vld [vmem:[%s17614_s4 + $0x2b58] ss:$148 sps:$4 sm:$0xff]  }
 0x618   : > { %v395_v12 = vld [vmem:[%s21394_s3 + $0xe8] sm:$0xff] }
 0x61a   : > { %11589 = vmatpush1.bf16.msra.mxu0 %v17088_v3  ;;  %11718 = vmatpush1.bf16.msra.mxu1 %v17091_v13  ;;  %v397_v3 = vld [vmem:[%s21394_s3 + $0xf8] sm:$0xff] }
 0x61b   : > { %11590 = vmatprep.subr.bf16.mxu0 %v17096_v22  ;;  %11719 = vmatprep.subr.bf16.mxu1 %v17099_v14  ;;  %v431_v14 = vld [vmem:[%s21394_s3 + $0x208] sm:$0xff] }
 0x61e   : > { %11591 = vmatpush1.bf16.msra.mxu0 %v17094_v15  ;;  %11720 = vmatpush1.bf16.msra.mxu1 %v17097_v16  ;;  %v433_v15 = vld [vmem:[%s21394_s3 + $0x218] sm:$0xff] }
 0x61f   : > { %11592 = vmatprep.subr.bf16.mxu0 %v17102_v17  ;;  %11721 = vmatprep.subr.bf16.mxu1 %v17105_v18 }
 0x622   : > { %11593 = vmatpush1.bf16.msra.mxu0 %v17100_v19  ;;  %11722 = vmatpush1.bf16.msra.mxu1 %v17103_v20  ;;  %v432_v20 = vld [vmem:[%s21394_s3 + $0x210] sm:$0xff] }
 0x623   : > { %11594 = vmatprep.subr.bf16.mxu0 %v17108_v21  ;;  %11723 = vmatprep.subr.bf16.mxu1 %v17111_v23  ;;  %v434_v21 = vld [vmem:[%s21394_s3 + $0x220] sm:$0xff] }
 0x626   : > { %11595 = vmatpush1.bf16.msra.mxu0 %v17106_v24  ;;  %11724 = vmatpush1.bf16.msra.mxu1 %v17109_v25 }
 0x627   : > { %11596 = vmatprep.subr.bf16.mxu0 %v17114_v27  ;;  %11725 = vmatprep.subr.bf16.mxu1 %v17117_v28  ;;  %v17156_v28 = vld [vmem:[%s17614_s4 + $0x2c80] ss:$148 sps:$4 sm:$0xff]  }
 0x62a   : > { %11597 = vmatpush1.bf16.msra.mxu0 %v17112_v29  ;;  %11726 = vmatpush1.bf16.msra.mxu1 %v17115_v30 }
 0x62b   : > { %14661 = vmatprep.subr.bf16.mxu0 %v17118_v32  ;;  %14683 = vmatprep.subr.bf16.mxu1 %v17119_v34 }
 0x62d   : > { %11615 = vmatmul.mubr.bf16.vlgmr.msra.gmra.mrb[32].mxu0 %v19821_v39  ;;  %11744 = vmatmul.mubr.bf16.vlgmr.msra.gmra.mrb[32].mxu1 %v19821_v39 }
 0x62e   : > { %14662 = vmatpush3.bf16.msra.mxu0 %v17120_v35  ;;  %14684 = vmatpush3.bf16.msra.mxu1 %v17121_v36 }
 0x62f   : > { %14663 = vmatprep.subr.bf16.mxu0 %v17122_v37  ;;  %14685 = vmatprep.subr.bf16.mxu1 %v17123_v38  ;;  %v17157_v37 = vld [vmem:[%s17614_s4 + $0x2da8] ss:$148 sps:$4 sm:$0xff]   ;;  %v398_v38 = vld [vmem:[%s21394_s3 + $0x100] sm:$0xff] }
 0x630   : > { %11786 = vmatprep.mubr.bf16.mxu0 %v17187_v33  ;;  %11827 = vmatprep.mubr.bf16.mxu1 %v17188_v43  ;;  %v437_v43 = vld [vmem:[%s21394_s3 + $0x238] sm:$0xff] }
 0x632   : > { %14664 = vmatpush3.bf16.msra.mxu0 %v17124_v40  ;;  %14686 = vmatpush3.bf16.msra.mxu1 %v17125_v41  ;;  %v400_v40 = vld [vmem:[%s21394_s3 + $0x110] sm:$0xff]  ;;  %v399_v41 = vld [vmem:[%s21394_s3 + $0x108] sm:$0xff] }
 0x633   : > { %14665 = vmatprep.subr.bf16.mxu0 %v17126_v42  ;;  %14687 = vmatprep.subr.bf16.mxu1 %v17127_v31  ;;  %v401_v42 = vld [vmem:[%s21394_s3 + $0x118] sm:$0xff] }
 0x636   : > { %14666 = vmatpush3.bf16.msra.mxu0 %v17128_v44  ;;  %14688 = vmatpush3.bf16.msra.mxu1 %v17129_v45 }
 0x637   : > { %14667 = vmatprep.subr.bf16.mxu0 %v17130_v46  ;;  %14689 = vmatprep.subr.bf16.mxu1 %v17131_v47 }
 0x63a   : > { %14668 = vmatpush3.bf16.msra.mxu0 %v17132_v26  ;;  %14690 = vmatpush3.bf16.msra.mxu1 %v17133_v48  ;;  %v436_v26 = vld [vmem:[%s21394_s3 + $0x230] sm:$0xff]  ;;  %v438_v48 = vld [vmem:[%s21394_s3 + $0x240] sm:$0xff] }
 0x63b   : > { %14669 = vmatprep.subr.bf16.mxu0 %v17134_v49  ;;  %14691 = vmatprep.subr.bf16.mxu1 %v17135_v50 }
 0x63e   : > { %14670 = vmatpush3.bf16.msra.mxu0 %v17136_v51  ;;  %14692 = vmatpush3.bf16.msra.mxu1 %v17137_v52 }
 0x63f   : > { %14671 = vmatprep.subr.bf16.mxu0 %v17138_v53  ;;  %14693 = vmatprep.subr.bf16.mxu1 %v17139_v55 }
 0x642   : > { %14672 = vmatpush3.bf16.msra.mxu0 %v17140_v57  ;;  %14694 = vmatpush3.bf16.msra.mxu1 %v17141_v58 }
 0x643   : > { %14673 = vmatprep.subr.bf16.mxu0 %v17142_v59  ;;  %14695 = vmatprep.subr.bf16.mxu1 %v17143_v60 }
 0x646   : > { %14674 = vmatpush3.bf16.msra.mxu0 %v17144_v62  ;;  %14696 = vmatpush3.bf16.msra.mxu1 %v17145_v0 }
 0x647   : > { %14675 = vmatprep.subr.bf16.mxu0 %v17146_v1  ;;  %14697 = vmatprep.subr.bf16.mxu1 %v17147_v2 }
 0x64a   : > { %14676 = vmatpush3.bf16.msra.mxu0 %v17148_v56  ;;  %14698 = vmatpush3.bf16.msra.mxu1 %v17149_v54 }
 0x64b   : > { %14714 = vmatprep.subr.bf16.mxu0 %v17460_v6 }
 0x64d   : > { %11787 = vmatmul.mubr.bf16.vlgmr.msra.gmra.mrb[36].mxu0 %v17189_v7  ;;  %11828 = vmatmul.mubr.bf16.vlgmr.msra.gmra.mrb[36].mxu1 %v19562_v4  ;;  %v394_v4 = vld [vmem:[%s21394_s3 + $0xe0] sm:$0xff] }
 0x64e   : > { %14715 = vmatpush3.bf16.msra.mxu0 %v17150_v5  ;;  %14730 = vmatprep.mubr.msk.bf16.mxu0 %vm17461_vm0, %v17460_v6 }
 0x64f   : > { %14716 = vmatprep.subr.bf16.mxu0 %v17460_v6 }
 0x652   : > { %14717 = vmatpush3.bf16.msra.mxu0 %v17151_v61 }
 0x653   : > { %14718 = vmatprep.subr.bf16.mxu0 %v17460_v6 }
 0x656   : > { %14719 = vmatpush3.bf16.msra.mxu0 %v17152_v63 }
 0x657   : > { %14720 = vmatprep.subr.bf16.mxu0 %v17460_v6 }
 0x65a   : > { %14721 = vmatpush3.bf16.msra.mxu0 %v17153_v8 }
 0x65b   : > { %14722 = vmatprep.subr.bf16.mxu0 %v17460_v6 }
 0x65e   : > { %14723 = vmatpush3.bf16.msra.mxu0 %v17154_v9 }
 0x65f   : > { %14724 = vmatprep.subr.bf16.mxu0 %v17460_v6 }
 0x660   : > { %v11358_v13 = vpop.f32.mrb[28].mxu0  ;;  %v11487_v22 = vpop.f32.mrb[28].mxu1 }
 0x661   : > { %v11905_v16 = vadd.f32 %v11358_v13, %v394_v4  ;;  %v11907_v17 = vadd.f32 %v11487_v22, %v396_v10  ;;  %v11360_v18 = vpop.f32.mrb[29].mxu0  ;;  %v11489_v19 = vpop.f32.mrb[29].mxu1  ;;  %v402_v10 = vld [vmem:[%s21394_s3 + $0x120] sm:$0xff]  ;;  %v439_v13 = vld [vmem:[%s21394_s3 + $0x248] sm:$0xff] }
 0x662   : > { %v11906_v23 = vadd.f32 %v11360_v18, %v395_v12  ;;  %v11908_v24 = vadd.f32 %v11489_v19, %v397_v3  ;;  %v11362_v25 = vpop.f32.mrb[30].mxu0  ;;  %v11491_v27 = vpop.f32.mrb[30].mxu1  ;;  %14725 = vmatpush3.bf16.msra.mxu0 %v17155_v11 }
 0x663   : > { %11979 = vst [vmem:[%s21394_s3 + $0xe0] sm:$0xff] %v11905_v16  ;;  %11981 = vst [vmem:[%s21394_s3 + $0xf0] sm:$0xff] %v11907_v17  ;;  %v11942_v29 = vadd.f32 %v11362_v25, %v431_v14  ;;  %v11944_v30 = vadd.f32 %v11491_v27, %v433_v15  ;;  %v11364_v32 = vpop.f32.mrb[31].mxu0  ;;  %v11493_v34 = vpop.f32.mrb[31].mxu1  ;;  %14726 = vmatprep.subr.bf16.mxu0 %v17460_v6 }
 0x664   : > { %11980 = vst [vmem:[%s21394_s3 + $0xe8] sm:$0xff] %v11906_v23  ;;  %11982 = vst [vmem:[%s21394_s3 + $0xf8] sm:$0xff] %v11908_v24  ;;  %v11943_v35 = vadd.f32 %v11364_v32, %v432_v20  ;;  %v11945_v36 = vadd.f32 %v11493_v34, %v434_v21 }
 0x665   : > { %12016 = vst [vmem:[%s21394_s3 + $0x208] sm:$0xff] %v11942_v29  ;;  %12018 = vst [vmem:[%s21394_s3 + $0x218] sm:$0xff] %v11944_v30 }
 0x666   : > { %12017 = vst [vmem:[%s21394_s3 + $0x210] sm:$0xff] %v11943_v35  ;;  %12019 = vst [vmem:[%s21394_s3 + $0x220] sm:$0xff] %v11945_v36  ;;  %14727 = vmatpush3.bf16.msra.mxu0 %v17156_v28 }
 0x667   : > { %14728 = vmatprep.subr.bf16.mxu0 %v17460_v6 }
 0x66a   : > { %14729 = vmatpush3.bf16.msra.mxu0 %v17157_v37 }
 0x66d   : > { %14731 = vmatmul.mubr.bf16.vlgmr.msra.gmra.mrb[40].mxu0 %v19821_v39  ;;  %v435_v39 = vld [vmem:[%s21394_s3 + $0x228] sm:$0xff] }
 0x700   : > { %v11616_v31 = vpop.f32.mrb[32].mxu0  ;;  %v11745_v33 = vpop.f32.mrb[32].mxu1 }
 0x701   : > { %v11909_v44 = vadd.f32 %v11616_v31, %v398_v38  ;;  %v11911_v45 = vadd.f32 %v11745_v33, %v400_v40  ;;  %v11618_v46 = vpop.f32.mrb[33].mxu0  ;;  %v11747_v47 = vpop.f32.mrb[33].mxu1 }
 0x702   : > { %v11910_v49 = vadd.f32 %v11618_v46, %v399_v41  ;;  %v11912_v50 = vadd.f32 %v11747_v47, %v401_v42  ;;  %v11620_v51 = vpop.f32.mrb[34].mxu0  ;;  %v11749_v52 = vpop.f32.mrb[34].mxu1 }
 0x703   : > { %11983 = vst [vmem:[%s21394_s3 + $0x100] sm:$0xff] %v11909_v44  ;;  %11985 = vst [vmem:[%s21394_s3 + $0x110] sm:$0xff] %v11911_v45  ;;  %v11946_v53 = vadd.f32 %v11620_v51, %v435_v39  ;;  %v11948_v55 = vadd.f32 %v11749_v52, %v437_v43  ;;  %v11622_v57 = vpop.f32.mrb[35].mxu0  ;;  %v11751_v58 = vpop.f32.mrb[35].mxu1 }
 0x704   : > { %11984 = vst [vmem:[%s21394_s3 + $0x108] sm:$0xff] %v11910_v49  ;;  %11986 = vst [vmem:[%s21394_s3 + $0x118] sm:$0xff] %v11912_v50  ;;  %v11947_v59 = vadd.f32 %v11622_v57, %v436_v26  ;;  %v11949_v60 = vadd.f32 %v11751_v58, %v438_v48 }
 0x705   : > { %12020 = vst [vmem:[%s21394_s3 + $0x228] sm:$0xff] %v11946_v53  ;;  %12022 = vst [vmem:[%s21394_s3 + $0x238] sm:$0xff] %v11948_v55 }
 0x706   : > { %12021 = vst [vmem:[%s21394_s3 + $0x230] sm:$0xff] %v11947_v59  ;;  %12023 = vst [vmem:[%s21394_s3 + $0x240] sm:$0xff] %v11949_v60 }
 0x720   : > { %v14677_v62 = vpop.f32.mrb[36].mxu0  ;;  %v14699_v0 = vpop.f32.mrb[36].mxu1 }
 0x721   : > { %v14678_v1 = vpop.f32.mrb[37].mxu0  ;;  %v14700_v2 = vpop.f32.mrb[37].mxu1 }
 0x722   : > { %v14679_v56 = vadd.f32 %v14678_v1, %v14677_v62  ;;  %v14701_v54 = vadd.f32 %v14700_v2, %v14699_v0  ;;  %v14680_v5 = vpop.f32.mrb[38].mxu0  ;;  %v14702_v6 = vpop.f32.mrb[38].mxu1 }
 0x723   : > { %v14681_v7 = vpop.f32.mrb[39].mxu0  ;;  %v14703_v61 = vpop.f32.mrb[39].mxu1 }
 0x724   : > { %v14682_v63 = vadd.f32 %v14681_v7, %v14680_v5  ;;  %v14704_v8 = vadd.f32 %v14703_v61, %v14702_v6  ;;  %v11830_v9 = vadd.f32 %v14701_v54, %v14679_v56 }
 0x726   : > { %v11833_v4 = vadd.f32 %v14704_v8, %v14682_v63 }
 0x740   : > { %v11870_v11 = vpop.f32.mrb[40].mxu0 }
 0x741   : > { %v11871_v12 = vadd.f32 %v11870_v11, %v11830_v9  ;;  %v14732_v3 = vpop.f32.mrb[41].mxu0  ;;  %12028 = sbr.rel (%p14655_p4) target bundleno = 2357 (0x935), region = 74 }
 0x742   : > { %v11873_v22 = vpop.f32.mrb[42].mxu0 }
 0x743   : > { %v11913_v14 = vadd.f32 %v11871_v12, %v402_v10  ;;  %v11874_v15 = vadd.f32 %v11873_v22, %v11833_v4  ;;  %v14733_v16 = vpop.f32.mrb[43].mxu0 }
 0x745   : > { %11987 = vst [vmem:[%s21394_s3 + $0x120] sm:$0xff] %v11913_v14  ;;  %v11950_v17 = vadd.f32 %v11874_v15, %v439_v13 }
 0x747   : > { %12024 = vst [vmem:[%s21394_s3 + $0x248] sm:$0xff] %v11950_v17 }
 0x748   : > { %v12113_v18 = vlaneseq  ;;  %v12103_v25 = vld [vmem:[#allocation5] sm:$0xff]  ;;  %v12029_v34 = vld [vmem:[%s21394_s3] sm:$0xff]  ;;  %v12104_v35 = vld [vmem:[#allocation5 + $0x8] sm:$0xff] }
 0x749   : > { %v12030_v41 = vld [vmem:[%s21394_s3 + $0x8] sm:$0xff]  ;;  %v12031_v42 = vld [vmem:[%s21394_s3 + $0x10] sm:$0xff]  ;;  %v12032_v31 = vld [vmem:[%s21394_s3 + $0x18] sm:$0xff] }
 0x74a   : > { %v12114_v19 = vshrl.u32 %v12113_v18, 7  ;;  %v12373_v29 = vand.u32 127, %v12113_v18  ;;  %v12033_v44 = vld [vmem:[%s21394_s3 + $0x20] sm:$0xff]  ;;  %v12034_v45 = vld [vmem:[%s21394_s3 + $0x28] sm:$0xff]  ;;  %v12035_v55 = vld [vmem:[%s21394_s3 + $0x30] sm:$0xff] }
 0x74b   : > { %v12105_v49 = vld [vmem:[#allocation5 + $0x10] sm:$0xff]  ;;  %v12036_v57 = vld [vmem:[%s21394_s3 + $0x38] sm:$0xff]  ;;  %v12038_v5 = vld [vmem:[%s21394_s3 + $0x48] sm:$0xff] }
 0x74c   : > { %v19973_v20 = vsub.s32 0, %v12114_v19  ;;  %v19975_v21 = vsub.s32 1, %v12114_v19  ;;  %v19977_v23 = vsub.s32 2, %v12114_v19  ;;  %v19979_v24 = vsub.s32 3, %v12114_v19  ;;  %v12037_v54 = vld [vmem:[%s21394_s3 + $0x40] sm:$0xff]  ;;  %v12106_v8 = vld [vmem:[#allocation5 + $0x18] sm:$0xff] }
 0x74d   : > { %v19981_v27 = vsub.s32 4, %v12114_v19  ;;  %v19983_v28 = vsub.s32 5, %v12114_v19  ;;  %v19985_v30 = vsub.s32 6, %v12114_v19  ;;  %v19987_v32 = vsub.s32 7, %v12114_v19  ;;  %v12039_v12 = vld [vmem:[%s21394_s3 + $0x50] sm:$0xff]  ;;  %v12040_v3 = vld [vmem:[%s21394_s3 + $0x58] sm:$0xff] }
 0x74e   : > { %v19993_v36 = vrot.slane %v12103_v25, %v19973_v20  ;;  %v19996_v37 = vrot.slane %v12103_v25, %v19975_v21  ;;  %v19999_v38 = vrot.slane %v12103_v25, %v19977_v23  ;;  %v20002_v40 = vrot.slane %v12103_v25, %v19979_v24 }
 0x74f   : > { %v20014_v33 = vrot.slane %v12103_v25, %v19981_v27  ;;  %v20017_v39 = vrot.slane %v12103_v25, %v19983_v28  ;;  %v20019_v43 = vadd.s32 4608, %v12373_v29  ;;  %v20028_v46 = vrot.slane %v12103_v25, %v19985_v30  ;;  %v12042_v29 = vld [vmem:[%s21394_s3 + $0x68] sm:$0xff] }
 0x750   : > { %v20031_v47 = vrot.slane %v12103_v25, %v19987_v32  ;;  %v20034_v26 = vrot.slane %v12104_v35, %v19973_v20  ;;  %v20037_v48 = vrot.slane %v12104_v35, %v19975_v21  ;;  %v20040_v50 = vadd.f32 %v19993_v36, %v12029_v34  ;;  %v12041_v25 = vld [vmem:[%s21394_s3 + $0x60] sm:$0xff] }
 0x751   : > { %v20043_v51 = vadd.f32 %v19996_v37, %v12030_v41  ;;  %v20046_v52 = vadd.f32 %v19999_v38, %v12031_v42  ;;  %v20049_v53 = vadd.f32 %v20002_v40, %v12032_v31  ;;  %v20058_v58 = vrot.slane %v12104_v35, %v19977_v23  ;;  %v12107_v31 = vld [vmem:[#allocation5 + $0x20] sm:$0x1f] }
 0x752   : > { %v20061_v59 = vrot.slane %v12104_v35, %v19979_v24  ;;  %v20064_v60 = vrot.slane %v12104_v35, %v19981_v27  ;;  %v20067_v62 = vrot.slane %v12104_v35, %v19983_v28  ;;  %v20070_v0 = vrot.slane %v12104_v35, %v19985_v30 }
 0x753   : > { %21467 = vst [vmem:[#allocation9_spill] sm:$0xff] %v20043_v51  ;;  %21468 = vst [vmem:[#allocation10_spill] sm:$0xff] %v20046_v52  ;;  %v20073_v1 = vrot.slane %v12104_v35, %v19987_v32  ;;  %v20076_v2 = vadd.f32 %v20014_v33, %v12033_v44  ;;  %v20079_v56 = vadd.f32 %v20017_v39, %v12034_v45  ;;  %vm12446_vm1 = vcmp.lt.s32.totalorder %v20019_v43, 4672 }
 0x754   : > { %21469 = vst [vmem:[#allocation11_spill] sm:$0xff] %v20049_v53  ;;  %v20088_v6 = vrot.slane %v12105_v49, %v19973_v20  ;;  %v20091_v7 = vrot.slane %v12105_v49, %v19975_v21  ;;  %v20094_v61 = vrot.slane %v12105_v49, %v19977_v23  ;;  %v20097_v63 = vrot.slane %v12105_v49, %v19979_v24 }
 0x755   : > { %21470 = vst [vmem:[#allocation12_spill] sm:$0xff] %v20076_v2  ;;  %21471 = vst [vmem:[#allocation13_spill] sm:$0xff] %v20079_v56  ;;  %v20100_v9 = vadd.f32 %v20028_v46, %v12035_v55  ;;  %v20103_v4 = vadd.f32 %v20031_v47, %v12036_v57  ;;  %v12521_v10 = vmax.f32 %v20040_v50, %v20046_v52  ;;  %v12043_v57 = vld [vmem:[%s21394_s3 + $0x70] sm:$0xff] }
 0x756   : > { %v12522_v11 = vmax.f32 %v20043_v51, %v20049_v53  ;;  %v20116_v13 = vrot.slane %v12105_v49, %v19981_v27  ;;  %v20119_v22 = vrot.slane %v12105_v49, %v19983_v28  ;;  %v20122_v14 = vrot.slane %v12105_v49, %v19985_v30 }
 0x757   : > { %21472 = vst [vmem:[#allocation14_spill] sm:$0xff] %v20100_v9  ;;  %21473 = vst [vmem:[#allocation15_spill] sm:$0xff] %v20103_v4  ;;  %v20125_v15 = vrot.slane %v12105_v49, %v19987_v32  ;;  %v20128_v16 = vadd.f32 %v20034_v26, %v12037_v54  ;;  %v20131_v17 = vadd.f32 %v20037_v48, %v12038_v5  ;;  %v12044_v54 = vld [vmem:[%s21394_s3 + $0x78] sm:$0xff] }
 0x758   : > { %v12523_v18 = vmax.f32 %v12521_v10, %v20076_v2  ;;  %v12524_v19 = vmax.f32 %v12522_v11, %v20079_v56  ;;  %v20142_v34 = vrot.slane %v12106_v8, %v19973_v20  ;;  %v20145_v35 = vrot.slane %v12106_v8, %v19975_v21 }
 0x759   : > { %21474 = vst [vmem:[#allocation16_spill] sm:$0xff] %v20128_v16  ;;  %21475 = vst [vmem:[#allocation17_spill] sm:$0xff] %v20131_v17  ;;  %v20148_v41 = vrot.slane %v12106_v8, %v19977_v23  ;;  %v20151_v42 = vrot.slane %v12106_v8, %v19979_v24  ;;  %v20154_v44 = vadd.f32 %v20058_v58, %v12039_v12 }
 0x75a   : > { %v20157_v45 = vadd.f32 %v20061_v59, %v12040_v3  ;;  %v12525_v49 = vmax.f32 %v12523_v18, %v20100_v9  ;;  %v12526_v55 = vmax.f32 %v12524_v19, %v20103_v4  ;;  %v20168_v5 = vrot.slane %v12106_v8, %v19981_v27  ;;  %v12066_v3 = vld [vmem:[%s21394_s3 + $0x128] sm:$0xff]  ;;  %v12047_v9 = vld [vmem:[%s21394_s3 + $0x90] sm:$0xff]  ;;  %v21497_v43 = vld [vmem:[#allocation10_spill] sm:$0xff] }
 0x75b   : > { %21476 = vst [vmem:[#allocation18_spill] sm:$0xff] %v20154_v44  ;;  %v20171_v10 = vrot.slane %v12106_v8, %v19983_v28  ;;  %v20174_v11 = vrot.slane %v12106_v8, %v19985_v30  ;;  %v20177_v12 = vrot.slane %v12106_v8, %v19987_v32  ;;  %v20183_v18 = vadd.f32 %v20064_v60, %v12041_v25  ;;  %v12067_v30 = vld [vmem:[%s21394_s3 + $0x130] sm:$0xff]  ;;  %v12068_v32 = vld [vmem:[%s21394_s3 + $0x138] sm:$0xff]  ;;  %v12069_v8 = vld [vmem:[%s21394_s3 + $0x140] sm:$0xff] }
 0x75c   : > { %21477 = vst [vmem:[#allocation19_spill] sm:$0xff] %v20157_v45  ;;  %v20186_v19 = vadd.f32 %v20067_v62, %v12042_v29  ;;  %v12527_v4 = vmax.f32 %v12525_v49, %v20128_v16  ;;  %v12528_v28 = vmax.f32 %v12526_v55, %v20131_v17  ;;  %v12045_v25 = vld [vmem:[%s21394_s3 + $0x80] sm:$0xff]  ;;  %v12046_v29 = vld [vmem:[%s21394_s3 + $0x88] sm:$0xff]  ;;  %v20206_v49 = vrot.slane %v12107_v31, %v19973_v20 }
 0x75d   : > { %v20209_v55 = vrot.slane %v12107_v31, %v19975_v21  ;;  %v20212_v17 = vrot.slane %v12107_v31, %v19977_v23  ;;  %v20215_v16 = vrot.slane %v12107_v31, %v19979_v24  ;;  %v20221_v56 = vadd.f32 %v20070_v0, %v12043_v57  ;;  %v12070_v23 = vld [vmem:[%s21394_s3 + $0x148] sm:$0xff]  ;;  %v12071_v24 = vld [vmem:[%s21394_s3 + $0x150] sm:$0xff]  ;;  %v12048_v57 = vld [vmem:[%s21394_s3 + $0x98] sm:$0xff] }
 0x75e   : > { %v20224_v2 = vadd.f32 %v20073_v1, %v12044_v54  ;;  %v12529_v20 = vmax.f32 %v12527_v4, %v20154_v44  ;;  %v12530_v21 = vmax.f32 %v12528_v28, %v20157_v45  ;;  %v12049_v54 = vld [vmem:[%s21394_s3 + $0xa0] sm:$0xff]  ;;  %v20241_v4 = vadd.f32 %v19993_v36, %v12066_v3  ;;  %v12051_v3 = vld [vmem:[%s21394_s3 + $0xb0] sm:$0xff] }
 0x75f   : > { %v20244_v28 = vadd.f32 %v19996_v37, %v12067_v30  ;;  %v20247_v45 = vadd.f32 %v19999_v38, %v12068_v32  ;;  %v20250_v44 = vadd.f32 %v20002_v40, %v12069_v8  ;;  %v20253_v53 = vadd.f32 %v20088_v6, %v12045_v25  ;;  %v12072_v37 = vld [vmem:[%s21394_s3 + $0x158] sm:$0xff]  ;;  %v12073_v38 = vld [vmem:[%s21394_s3 + $0x160] sm:$0xff]  ;;  %v12050_v40 = vld [vmem:[%s21394_s3 + $0xa8] sm:$0xff] }
 0x760   : > { %21478 = vst [vmem:[#allocation20_spill] sm:$0xff] %v20224_v2  ;;  %21479 = vst [vmem:[#allocation21_spill] sm:$0xff] %v20241_v4  ;;  %v20256_v52 = vadd.f32 %v20091_v7, %v12046_v29  ;;  %v12531_v51 = vmax.f32 %v12529_v20, %v20183_v18  ;;  %v12532_v36 = vmax.f32 %v12530_v21, %v20186_v19 }
 0x761   : > { %21480 = vst [vmem:[#allocation22_spill] sm:$0xff] %v20244_v28  ;;  %21481 = vst [vmem:[#allocation23_spill] sm:$0xff] %v20247_v45  ;;  %v20273_v30 = vrot.slane %v12107_v31, %v19981_v27  ;;  %v20276_v32 = vadd.f32 %v20094_v61, %v12047_v9  ;;  %v20279_v8 = vadd.f32 %v20014_v33, %v12070_v23  ;;  %v12074_v9 = vld [vmem:[%s21394_s3 + $0x168] sm:$0xff]  ;;  %v12075_v33 = vld [vmem:[%s21394_s3 + $0x170] sm:$0xff] }
 0x762   : > { %21482 = vst [vmem:[#allocation24_spill] sm:$0xff] %v20250_v44  ;;  %21483 = vst [vmem:[#allocation25_spill] sm:$0xff] %v20256_v52  ;;  %v20282_v25 = vadd.f32 %v20017_v39, %v12071_v24  ;;  %v20285_v29 = vadd.f32 %v20097_v63, %v12048_v57  ;;  %v20288_v20 = vadd.f32 %v20116_v13, %v12049_v54  ;;  %v12052_v39 = vld [vmem:[%s21394_s3 + $0xb8] sm:$0xff]  ;;  %v12053_v31 = vld [vmem:[%s21394_s3 + $0xc0] sm:$0xff] }
 0x763   : > { %21484 = vst [vmem:[#allocation26_spill] sm:$0xff] %v20279_v8  ;;  %v12533_v21 = vmax.f32 %v12531_v51, %v20221_v56  ;;  %v12534_v27 = vmax.f32 %v12532_v36, %v20224_v2  ;;  %v20305_v51 = vadd.f32 %v20028_v46, %v12072_v37  ;;  %v20308_v23 = vadd.f32 %v20031_v47, %v12073_v38  ;;  %v12076_v47 = vld [vmem:[%s21394_s3 + $0x178] sm:$0xff]  ;;  %v12077_v37 = vld [vmem:[%s21394_s3 + $0x180] sm:$0xff]  ;;  %v12054_v38 = vld [vmem:[%s21394_s3 + $0xc8] sm:$0xff] }
 0x764   : > { %21485 = vst [vmem:[#allocation27_spill] sm:$0xff] %v20282_v25  ;;  %v12559_v24 = vmax.f32 %v20241_v4, %v20247_v45  ;;  %v12560_v57 = vmax.f32 %v20244_v28, %v20250_v44  ;;  %v20315_v54 = vadd.f32 %v20119_v22, %v12050_v40  ;;  %v20318_v36 = vadd.f32 %v20122_v14, %v12051_v3  ;;  %v12055_v40 = vld [vmem:[%s21394_s3 + $0xd0] sm:$0xff] }
 0x765   : > { %21486 = vst [vmem:[#allocation28_spill] sm:$0xff] %v20305_v51  ;;  %21487 = vst [vmem:[#allocation29_spill] sm:$0xff] %v20308_v23  ;;  %v12535_v2 = vmax.f32 %v12533_v21, %v20253_v53  ;;  %v12536_v46 = vmax.f32 %v12534_v27, %v20256_v52  ;;  %v20335_v3 = vadd.f32 %v20034_v26, %v12074_v9  ;;  %v12078_v26 = vld [vmem:[%s21394_s3 + $0x188] sm:$0xff]  ;;  %v12056_v9 = vld [vmem:[%s21394_s3 + $0xd8] sm:$0xff] }
 0x766   : > { %v20338_v21 = vadd.f32 %v20037_v48, %v12075_v33  ;;  %v12561_v27 = vmax.f32 %v12559_v24, %v20279_v8  ;;  %v12562_v44 = vmax.f32 %v12560_v57, %v20282_v25  ;;  %v20343_v45 = vadd.f32 %v20125_v15, %v12052_v39  ;;  %v12079_v48 = vld [vmem:[%s21394_s3 + $0x190] sm:$0xff]  ;;  %v12057_v33 = vld [vmem:[%s21394_s3 + $0xe0] sm:$0xff] }
 0x767   : > { %21488 = vst [vmem:[#allocation30_spill] sm:$0xff] %v20335_v3  ;;  %v20346_v28 = vadd.f32 %v20142_v34, %v12053_v31  ;;  %v12537_v4 = vmax.f32 %v12535_v2, %v20276_v32  ;;  %v12538_v52 = vmax.f32 %v12536_v46, %v20285_v29  ;;  %v20363_v2 = vadd.f32 %v20058_v58, %v12076_v47  ;;  %v12080_v58 = vld [vmem:[%s21394_s3 + $0x198] sm:$0xff]  ;;  %v12059_v47 = vld [vmem:[%s21394_s3 + $0xf0] sm:$0xff] }
 0x768   : > { %21489 = vst [vmem:[#allocation31_spill] sm:$0xff] %v20338_v21  ;;  %v20366_v39 = vadd.f32 %v20061_v59, %v12077_v37  ;;  %v12563_v31 = vmax.f32 %v12561_v27, %v20305_v51  ;;  %v12564_v24 = vmax.f32 %v12562_v44, %v20308_v23  ;;  %v20371_v57 = vadd.f32 %v20145_v35, %v12054_v38  ;;  %v12081_v59 = vld [vmem:[%s21394_s3 + $0x1a0] sm:$0xff]  ;;  %v12058_v44 = vld [vmem:[%s21394_s3 + $0xe8] sm:$0xff] }
 0x769   : > { %21490 = vst [vmem:[#allocation32_spill] sm:$0xff] %v20363_v2  ;;  %v20374_v46 = vadd.f32 %v20148_v41, %v12055_v40  ;;  %v12539_v25 = vmax.f32 %v12537_v4, %v20288_v20  ;;  %v12540_v8 = vmax.f32 %v12538_v52, %v20315_v54  ;;  %v20392_v52 = vadd.f32 %v20064_v60, %v12078_v26  ;;  %v12082_v60 = vld [vmem:[%s21394_s3 + $0x1a8] sm:$0xff]  ;;  %v12060_v26 = vld [vmem:[%s21394_s3 + $0xf8] sm:$0xff] }
 0x76a   : > { %21491 = vst [vmem:[#allocation33_spill] sm:$0xff] %v20366_v39  ;;  %v20395_v4 = vadd.f32 %v20067_v62, %v12079_v48  ;;  %v12565_v37 = vmax.f32 %v12563_v31, %v20335_v3  ;;  %v12566_v38 = vmax.f32 %v12564_v24, %v20338_v21  ;;  %v20400_v40 = vadd.f32 %v20151_v42, %v12056_v9  ;;  %v12083_v62 = vld [vmem:[%s21394_s3 + $0x1b0] sm:$0xff]  ;;  %v12061_v48 = vld [vmem:[%s21394_s3 + $0x100] sm:$0xff] }
 0x76b   : > { %21492 = vst [vmem:[#allocation34_spill] sm:$0xff] %v20392_v52  ;;  %v20403_v27 = vadd.f32 %v20168_v5, %v12057_v33  ;;  %v12541_v23 = vmax.f32 %v12539_v25, %v20318_v36  ;;  %v12542_v51 = vmax.f32 %v12540_v8, %v20343_v45  ;;  %v20420_v25 = vadd.f32 %v20070_v0, %v12080_v58  ;;  %v12084_v0 = vld [vmem:[%s21394_s3 + $0x1b8] sm:$0xff]  ;;  %v12062_v58 = vld [vmem:[%s21394_s3 + $0x108] sm:$0xff] }
 0x76c   : > { %21493 = vst [vmem:[#allocation35_spill] sm:$0xff] %v20395_v4  ;;  %v20423_v8 = vadd.f32 %v20073_v1, %v12081_v59  ;;  %v12567_v9 = vmax.f32 %v12565_v37, %v20363_v2  ;;  %v12568_v33 = vmax.f32 %v12566_v38, %v20366_v39  ;;  %v20428_v31 = vadd.f32 %v20171_v10, %v12058_v44  ;;  %v12085_v1 = vld [vmem:[%s21394_s3 + $0x1c0] sm:$0xff] }
 0x76d   : > { %v20431_v24 = vadd.f32 %v20174_v11, %v12059_v47  ;;  %v12543_v21 = vmax.f32 %v12541_v23, %v20346_v28  ;;  %v12544_v3 = vmax.f32 %v12542_v51, %v20371_v57  ;;  %v12065_v59 = vld [vmem:[%s21394_s3 + $0x120] sm:$0xff]  ;;  %v20448_v23 = vadd.f32 %v20088_v6, %v12082_v60  ;;  %v12086_v6 = vld [vmem:[%s21394_s3 + $0x1c8] sm:$0xff]  ;;  %v12063_v60 = vld [vmem:[%s21394_s3 + $0x110] sm:$0xff] }
 0x76e   : > { %v20451_v51 = vadd.f32 %v20091_v7, %v12083_v62  ;;  %v12569_v44 = vmax.f32 %v12567_v9, %v20392_v52  ;;  %v12570_v47 = vmax.f32 %v12568_v33, %v20395_v4  ;;  %v20456_v37 = vadd.f32 %v20177_v12, %v12060_v26  ;;  %v12087_v7 = vld [vmem:[%s21394_s3 + $0x1d0] sm:$0xff]  ;;  %v12064_v62 = vld [vmem:[%s21394_s3 + $0x118] sm:$0xff] }
 0x76f   : > { %v20459_v38 = vadd.f32 %v20206_v49, %v12061_v48  ;;  %v12545_v39 = vmax.f32 %v12543_v21, %v20374_v46  ;;  %v12546_v2 = vmax.f32 %v12544_v3, %v20400_v40  ;;  %v20476_v21 = vadd.f32 %v20094_v61, %v12084_v0  ;;  %v12088_v61 = vld [vmem:[%s21394_s3 + $0x1d8] sm:$0xff] }
 0x770   : > { %v20479_v3 = vadd.f32 %v20097_v63, %v12085_v1  ;;  %v12571_v26 = vmax.f32 %v12569_v44, %v20420_v25  ;;  %v12572_v48 = vmax.f32 %v12570_v47, %v20423_v8  ;;  %v20484_v9 = vadd.f32 %v20209_v55, %v12062_v58  ;;  %v12089_v63 = vld [vmem:[%s21394_s3 + $0x1e0] sm:$0xff] }
 0x771   : > { %v12334_v33 = vadd.f32 %v20273_v30, %v12065_v59  ;;  %v12547_v4 = vmax.f32 %v12545_v39, %v20403_v27  ;;  %v12548_v52 = vmax.f32 %v12546_v2, %v20428_v31  ;;  %v20496_v0 = vadd.f32 %v20116_v13, %v12086_v6  ;;  %v12090_v13 = vld [vmem:[%s21394_s3 + $0x1e8] sm:$0xff] }
 0x772   : > { %v20499_v1 = vadd.f32 %v20119_v22, %v12087_v7  ;;  %v12573_v58 = vmax.f32 %v12571_v26, %v20448_v23  ;;  %v12574_v39 = vmax.f32 %v12572_v48, %v20451_v51  ;;  %v20504_v2 = vadd.f32 %v20212_v17, %v12063_v60  ;;  %v12091_v22 = vld [vmem:[%s21394_s3 + $0x1f0] sm:$0xff] }
 0x773   : > { %v20507_v59 = vadd.f32 %v20215_v16, %v12064_v62  ;;  %v12549_v44 = vmax.f32 %v12547_v4, %v20431_v24  ;;  %v12550_v47 = vmax.f32 %v12548_v52, %v20456_v37  ;;  %v20518_v6 = vadd.f32 %v20122_v14, %v12088_v61  ;;  %v12092_v14 = vld [vmem:[%s21394_s3 + $0x1f8] sm:$0xff] }
 0x774   : > { %v20521_v7 = vadd.f32 %v20125_v15, %v12089_v63  ;;  %v12575_v60 = vmax.f32 %v12573_v58, %v20476_v21  ;;  %v12576_v4 = vmax.f32 %v12574_v39, %v20479_v3  ;;  %v20527_v52 = vsel %vm12446_vm1, %v12334_v33, -1e+30  ;;  %v12093_v15 = vld [vmem:[%s21394_s3 + $0x200] sm:$0xff] }
 0x775   : > { %v12551_v62 = vmax.f32 %v12549_v44, %v20459_v38  ;;  %v12552_v26 = vmax.f32 %v12550_v47, %v20484_v9  ;;  %v20538_v48 = vadd.f32 %v20142_v34, %v12090_v13  ;;  %v20541_v61 = vadd.f32 %v20145_v35, %v12091_v22  ;;  %v12094_v44 = vld [vmem:[%s21394_s3 + $0x208] sm:$0xff]  ;;  %v12095_v34 = vld [vmem:[%s21394_s3 + $0x210] sm:$0xff] }
 0x776   : > { %v12577_v33 = vmax.f32 %v12575_v60, %v20496_v0  ;;  %v12578_v63 = vmax.f32 %v12576_v4, %v20499_v1  ;;  %v20554_v47 = vadd.f32 %v20148_v41, %v12092_v14  ;;  %v20557_v35 = vadd.f32 %v20151_v42, %v12093_v15  ;;  %v12096_v4 = vld [vmem:[%s21394_s3 + $0x218] sm:$0xff] }
 0x777   : > { %v12553_v58 = vmax.f32 %v12551_v62, %v20504_v2  ;;  %v12554_v39 = vmax.f32 %v12552_v26, %v20507_v59  ;;  %v12097_v62 = vld [vmem:[%s21394_s3 + $0x220] sm:$0xff]  ;;  %v20569_v41 = vadd.f32 %v20168_v5, %v12094_v44  ;;  %v20572_v42 = vadd.f32 %v20171_v10, %v12095_v34  ;;  %v12102_v5 = vld [vmem:[%s21394_s3 + $0x248] sm:$0xff]  ;;  %v12100_v34 = vld [vmem:[%s21394_s3 + $0x238] sm:$0xff] }
 0x778   : > { %v12579_v13 = vmax.f32 %v12577_v33, %v20518_v6  ;;  %v12580_v22 = vmax.f32 %v12578_v63, %v20521_v7  ;;  %v12098_v33 = vld [vmem:[%s21394_s3 + $0x228] sm:$0xff]  ;;  %v12099_v63 = vld [vmem:[%s21394_s3 + $0x230] sm:$0xff]  ;;  %v20586_v10 = vadd.f32 %v20174_v11, %v12096_v4  ;;  %v12371_v4 = vadd.f32 %v20273_v30, %v12102_v5 }
 0x779   : > { %v12555_v60 = vmax.f32 %v12553_v58, %v20527_v52  ;;  %v20589_v58 = vadd.f32 %v20177_v12, %v12097_v62  ;;  %v20603_v11 = vadd.f32 %v20209_v55, %v12099_v63  ;;  %v20609_v62 = vadd.f32 %v20212_v17, %v12100_v34 }
 0x77a   : > { %v12581_v26 = vmax.f32 %v12579_v13, %v20538_v48  ;;  %v12582_v14 = vmax.f32 %v12580_v22, %v20541_v61  ;;  %v12101_v13 = vld [vmem:[%s21394_s3 + $0x240] sm:$0xff]  ;;  %v20600_v22 = vadd.f32 %v20206_v49, %v12098_v33  ;;  %v20620_v33 = vsel %vm12446_vm1, %v12371_v4, -1e+30 }
 0x77b   : > { %v12556_v15 = vmax.f32 %v12555_v60, %v12554_v39 }
 0x77c   : > { %v12583_v39 = vmax.f32 %v12581_v26, %v20554_v47  ;;  %v12584_v44 = vmax.f32 %v12582_v14, %v20557_v35  ;;  %v20612_v26 = vadd.f32 %v20215_v16, %v12101_v13 }
 0x77d   : > { %12557 = vmax.xlane.f32.xlu0 %v12556_v15 }
 0x77e   : > { %v12585_v12 = vmax.f32 %v12583_v39, %v20569_v41  ;;  %v12586_v60 = vmax.f32 %v12584_v44, %v20572_v42  ;;  %v21495_v44 = vld [vmem:[#allocation9_spill] sm:$0xff] }
 0x780   : > { %v12587_v14 = vmax.f32 %v12585_v12, %v20586_v10  ;;  %v12588_v49 = vmax.f32 %v12586_v60, %v20589_v58  ;;  %v21499_v12 = vld [vmem:[#allocation11_spill] sm:$0xff] }
 0x782   : > { %v12589_v15 = vmax.f32 %v12587_v14, %v20600_v22  ;;  %v12590_v55 = vmax.f32 %v12588_v49, %v20603_v11  ;;  %v21501_v49 = vld [vmem:[#allocation12_spill] sm:$0xff] }
 0x784   : > { %v12591_v30 = vmax.f32 %v12589_v15, %v20609_v62  ;;  %v12592_v17 = vmax.f32 %v12590_v55, %v20612_v26  ;;  %v21503_v55 = vld [vmem:[#allocation13_spill] sm:$0xff] }
 0x786   : > { %v12593_v63 = vmax.f32 %v12591_v30, %v20620_v33 }
 0x788   : > { %v12594_v16 = vmax.f32 %v12593_v63, %v12592_v17  ;;  %v21505_v63 = vld [vmem:[#allocation14_spill] sm:$0xff] }
 0x78a   : > { %12595 = vmax.xlane.f32.xlu0 %v12594_v16 }
 0x80a   : > { %v20625_v5 = vpop.xlane.xlu0 %12557 }
 0x80b   : > { %v20629_v39 = vsub.f32 %v20040_v50, %v20625_v5  ;;  %v20633_v34 = vsub.f32 %v21495_v44, %v20625_v5  ;;  %v20637_v13 = vsub.f32 %v21497_v43, %v20625_v5  ;;  %v20641_v60 = vsub.f32 %v21499_v12, %v20625_v5  ;;  %v21507_v43 = vld [vmem:[#allocation15_spill] sm:$0xff] }
 0x80c   : > { %v20647_v50 = vsub.f32 %v21501_v49, %v20625_v5  ;;  %v20652_v30 = vsub.f32 %v21503_v55, %v20625_v5  ;;  %v20657_v16 = vsub.f32 %v21505_v63, %v20625_v5  ;;  %v20662_v12 = vsub.f32 %v21507_v43, %v20625_v5  ;;  %v21509_v49 = vld [vmem:[#allocation16_spill] sm:$0xff]  ;;  %v21511_v63 = vld [vmem:[#allocation17_spill] sm:$0xff] }
 0x80d   : > { %21494 = vst [vmem:[#allocation36_spill] sm:$0xff] %v20629_v39  ;;  %21496 = vst [vmem:[#allocation9_spill] sm:$0xff] %v20633_v34  ;;  %v12671_v4 = vmul.f32 1.442695, %v20629_v39  ;;  %v12673_v14 = vmul.f32 1.442695, %v20633_v34  ;;  %v20667_v55 = vsub.f32 %v21509_v49, %v20625_v5  ;;  %v20687_v39 = vsub.f32 %v20183_v18, %v20625_v5 }
 0x80e   : > { %21498 = vst [vmem:[#allocation10_spill] sm:$0xff] %v20637_v13  ;;  %21500 = vst [vmem:[#allocation11_spill] sm:$0xff] %v20641_v60  ;;  %v12675_v15 = vmul.f32 1.442695, %v20637_v13  ;;  %v12677_v17 = vmul.f32 1.442695, %v20641_v60  ;;  %v20672_v60 = vsub.f32 %v21511_v63, %v20625_v5 }
 0x80f   : > { %21502 = vst [vmem:[#allocation12_spill] sm:$0xff] %v20647_v50  ;;  %17190 = vpow2.f32 %v12671_v4  ;;  %21504 = vst [vmem:[#allocation13_spill] sm:$0xff] %v20652_v30  ;;  %v12679_v44 = vmul.f32 1.442695, %v20647_v50  ;;  %v12681_v4 = vmul.f32 1.442695, %v20652_v30 }
 0x810   : > { %17192 = vpow2.f32 %v12673_v14  ;;  %21506 = vst [vmem:[#allocation14_spill] sm:$0xff] %v20657_v16  ;;  %21508 = vst [vmem:[#allocation15_spill] sm:$0xff] %v20662_v12  ;;  %v12683_v14 = vmul.f32 1.442695, %v20657_v16  ;;  %v12687_v49 = vmul.f32 1.442695, %v20667_v55 }
 0x811   : > { %17194 = vpow2.f32 %v12675_v15  ;;  %21510 = vst [vmem:[#allocation16_spill] sm:$0xff] %v20667_v55  ;;  %v12685_v15 = vmul.f32 1.442695, %v20662_v12  ;;  %v21513_v16 = vld [vmem:[#allocation19_spill] sm:$0xff]  ;;  %v12695_v18 = vmul.f32 1.442695, %v20687_v39 }
 0x812   : > { %17196 = vpow2.f32 %v12677_v17  ;;  %v21512_v17 = vld [vmem:[#allocation18_spill] sm:$0xff]  ;;  %v20682_v34 = vsub.f32 %v21513_v16, %v20625_v5 }
 0x813   : > { %17198 = vpow2.f32 %v12679_v44  ;;  %v20677_v13 = vsub.f32 %v21512_v17, %v20625_v5 }
 0x814   : > { %17200 = vpow2.f32 %v12681_v4  ;;  %21514 = vst [vmem:[#allocation17_spill] sm:$0xff] %v20682_v34  ;;  %v12689_v4 = vmul.f32 1.442695, %v20672_v60  ;;  %v12693_v16 = vmul.f32 1.442695, %v20682_v34 }
 0x815   : > { %17202 = vpow2.f32 %v12683_v14  ;;  %v12691_v14 = vmul.f32 1.442695, %v20677_v13 }
 0x816   : > { %17204 = vpow2.f32 %v12685_v15 }
 0x817   : > { %17206 = vpow2.f32 %v12687_v49 }
 0x818   : > { %17208 = vpow2.f32 %v12689_v4 }
 0x819   : > { %v17191_v50 = vpop.eup %17190  ;;  %17210 = vpow2.f32 %v12691_v14 }
 0x81a   : > { %v17193_v43 = vpop.eup %17192  ;;  %17212 = vpow2.f32 %v12693_v16 }
 0x81b   : > { %v12819_v30 = vadd.f32 %v17193_v43, %v17191_v50  ;;  %v17195_v44 = vpop.eup %17194  ;;  %v20692_v50 = vsub.f32 %v20186_v19, %v20625_v5  ;;  %17214 = vpow2.f32 %v12695_v18 }
 0x81c   : > { %v17197_v12 = vpop.eup %17196 }
 0x81d   : > { %v12820_v63 = vadd.f32 %v17195_v44, %v12819_v30  ;;  %v17199_v55 = vpop.eup %17198  ;;  %v20697_v30 = vsub.f32 %v20221_v56, %v20625_v5  ;;  %v12697_v19 = vmul.f32 1.442695, %v20692_v50 }
 0x81e   : > { %v17201_v43 = vpop.eup %17200 }
 0x81f   : > { %v12821_v17 = vadd.f32 %v17197_v12, %v12820_v63  ;;  %21515 = vst [vmem:[#allocation18_spill] sm:$0xff] %v20697_v30  ;;  %v17203_v44 = vpop.eup %17202  ;;  %v21516_v12 = vld [vmem:[#allocation20_spill] sm:$0xff]  ;;  %v12699_v56 = vmul.f32 1.442695, %v20697_v30  ;;  %17216 = vpow2.f32 %v12697_v19 }
 0x820   : > { %v20702_v63 = vsub.f32 %v21516_v12, %v20625_v5  ;;  %v17205_v34 = vpop.eup %17204  ;;  %v20715_v12 = vpop.xlane.xlu0 %12595 }
 0x821   : > { %v12822_v15 = vadd.f32 %v17199_v55, %v12821_v17  ;;  %v20707_v55 = vsub.f32 %v20253_v53, %v20625_v5  ;;  %v17207_v17 = vpop.eup %17206  ;;  %v20719_v53 = vsub.f32 %v20276_v32, %v20625_v5  ;;  %17218 = vpow2.f32 %v12699_v56  ;;  %v21524_v32 = vld [vmem:[#allocation22_spill] sm:$0xff] }
 0x822   : > { %21517 = vst [vmem:[#allocation19_spill] sm:$0xff] %v20702_v63  ;;  %v12701_v16 = vmul.f32 1.442695, %v20702_v63  ;;  %v21522_v63 = vld [vmem:[#allocation21_spill] sm:$0xff]  ;;  %v20733_v30 = vsub.f32 %v21524_v32, %v20715_v12 }
 0x823   : > { %v12823_v49 = vadd.f32 %v17201_v43, %v12822_v15  ;;  %21518 = vst [vmem:[#allocation20_spill] sm:$0xff] %v20707_v55  ;;  %v21519_v15 = vld [vmem:[#allocation25_spill] sm:$0xff]  ;;  %v12703_v18 = vmul.f32 1.442695, %v20707_v55  ;;  %v20737_v55 = vsub.f32 %v20288_v20, %v20625_v5 }
 0x824   : > { %v20712_v43 = vsub.f32 %v21519_v15, %v20625_v5  ;;  %17220 = vpow2.f32 %v12701_v16  ;;  %21525 = vst [vmem:[#allocation22_spill] sm:$0xff] %v20733_v30 }
 0x825   : > { %v12824_v4 = vadd.f32 %v17203_v44, %v12823_v49  ;;  %v17209_v44 = vpop.eup %17208  ;;  %21526 = vst [vmem:[#allocation38_spill] sm:$0xff] %v20737_v55  ;;  %17222 = vpow2.f32 %v12703_v18  ;;  %v21529_v18 = vld [vmem:[#allocation24_spill] sm:$0xff] }
 0x826   : > { %21520 = vst [vmem:[#allocation25_spill] sm:$0xff] %v20712_v43  ;;  %v17211_v15 = vpop.eup %17210  ;;  %v12705_v19 = vmul.f32 1.442695, %v20712_v43  ;;  %v20752_v43 = vsub.f32 %v21529_v18, %v20715_v12  ;;  %v20767_v18 = vsub.f32 %v20343_v45, %v20625_v5 }
 0x827   : > { %v12825_v14 = vadd.f32 %v17205_v34, %v12824_v4  ;;  %v20724_v34 = vsub.f32 %v20285_v29, %v20625_v5  ;;  %v17213_v56 = vpop.eup %17212  ;;  %v12707_v29 = vmul.f32 1.442695, %v20719_v53 }
 0x828   : > { %17224 = vpow2.f32 %v12705_v19  ;;  %21530 = vst [vmem:[#allocation24_spill] sm:$0xff] %v20752_v43  ;;  %v21531_v19 = vld [vmem:[#allocation26_spill] sm:$0xff] }
 0x829   : > { %v12826_v49 = vadd.f32 %v17207_v17, %v12825_v14  ;;  %21521 = vst [vmem:[#allocation37_spill] sm:$0xff] %v20724_v34  ;;  %v20729_v14 = vsub.f32 %v21522_v63, %v20715_v12  ;;  %v12709_v16 = vmul.f32 1.442695, %v20724_v34  ;;  %v12747_v34 = vmul.f32 1.442695, %v20733_v30 }
 0x82a   : > { %17226 = vpow2.f32 %v12707_v29  ;;  %v21533_v29 = vld [vmem:[#allocation27_spill] sm:$0xff] }
 0x82b   : > { %v12827_v4 = vadd.f32 %v17209_v44, %v12826_v49  ;;  %21523 = vst [vmem:[#allocation21_spill] sm:$0xff] %v20729_v14  ;;  %v21527_v44 = vld [vmem:[#allocation23_spill] sm:$0xff]  ;;  %v12745_v32 = vmul.f32 1.442695, %v20729_v14  ;;  %17228 = vpow2.f32 %v12709_v16  ;;  %v20762_v14 = vsub.f32 %v21531_v19, %v20715_v12 }
 0x82c   : > { %v20743_v63 = vsub.f32 %v21527_v44, %v20715_v12  ;;  %v12711_v44 = vmul.f32 1.442695, %v20737_v55  ;;  %v20772_v55 = vsub.f32 %v21533_v29, %v20715_v12  ;;  %v12751_v16 = vmul.f32 1.442695, %v20752_v43 }
 0x82d   : > { %v12828_v17 = vadd.f32 %v17211_v15, %v12827_v4  ;;  %v17215_v4 = vpop.eup %17214  ;;  %v20747_v15 = vsub.f32 %v20315_v54, %v20625_v5  ;;  %21532 = vst [vmem:[#allocation26_spill] sm:$0xff] %v20762_v14  ;;  %17230 = vpow2.f32 %v12745_v32 }
 0x82e   : > { %21528 = vst [vmem:[#allocation23_spill] sm:$0xff] %v20743_v63  ;;  %21534 = vst [vmem:[#allocation27_spill] sm:$0xff] %v20772_v55  ;;  %17232 = vpow2.f32 %v12747_v34  ;;  %v20787_v34 = vsub.f32 %v20371_v57, %v20625_v5 }
 0x82f   : > { %v12829_v49 = vadd.f32 %v17213_v56, %v12828_v17  ;;  %v17217_v17 = vpop.eup %17216  ;;  %v20757_v56 = vsub.f32 %v20318_v36, %v20625_v5  ;;  %v12713_v30 = vmul.f32 1.442695, %v20747_v15  ;;  %17234 = vpow2.f32 %v12711_v44  ;;  %v21538_v44 = vld [vmem:[#allocation29_spill] sm:$0xff] }
 0x830   : > { %21537 = vst [vmem:[#allocation39_spill] sm:$0xff] %v20787_v34  ;;  %v20792_v43 = vsub.f32 %v21538_v44, %v20715_v12 }
 0x831   : > { %v12830_v20 = vadd.f32 %v17215_v4, %v12829_v49  ;;  %v12749_v49 = vmul.f32 1.442695, %v20743_v63  ;;  %v17219_v4 = vpop.eup %17218  ;;  %v12715_v45 = vmul.f32 1.442695, %v20757_v56  ;;  %v21535_v63 = vld [vmem:[#allocation28_spill] sm:$0xff] }
 0x832   : > { %v20782_v32 = vsub.f32 %v21535_v63, %v20715_v12  ;;  %21539 = vst [vmem:[#allocation29_spill] sm:$0xff] %v20792_v43  ;;  %v12755_v63 = vmul.f32 1.442695, %v20772_v55  ;;  %v21544_v55 = vld [vmem:[#allocation31_spill] sm:$0xff] }
 0x833   : > { %v12831_v54 = vadd.f32 %v17217_v17, %v12830_v20  ;;  %v17221_v20 = vpop.eup %17220  ;;  %v20777_v17 = vsub.f32 %v20346_v28, %v20625_v5  ;;  %17236 = vpow2.f32 %v12749_v49  ;;  %v12717_v28 = vmul.f32 1.442695, %v20767_v18 }
 0x834   : > { %21536 = vst [vmem:[#allocation28_spill] sm:$0xff] %v20782_v32  ;;  %17238 = vpow2.f32 %v12713_v30  ;;  %v20797_v49 = vsub.f32 %v20374_v46, %v20625_v5  ;;  %v21541_v30 = vld [vmem:[#allocation30_spill] sm:$0xff]  ;;  %v12721_v46 = vmul.f32 1.442695, %v20787_v34  ;;  %v21546_v34 = vld [vmem:[#allocation32_spill] sm:$0xff] }
 0x835   : > { %v12832_v36 = vadd.f32 %v17219_v4, %v12831_v54  ;;  %v12753_v54 = vmul.f32 1.442695, %v20762_v14  ;;  %v17223_v4 = vpop.eup %17222  ;;  %17240 = vpow2.f32 %v12751_v16  ;;  %v12719_v57 = vmul.f32 1.442695, %v20777_v17 }
 0x836   : > { %21540 = vst [vmem:[#allocation40_spill] sm:$0xff] %v20797_v49  ;;  %17242 = vpow2.f32 %v12715_v45  ;;  %v20802_v14 = vsub.f32 %v21541_v30, %v20715_v12  ;;  %v20807_v16 = vsub.f32 %v20400_v40, %v20625_v5  ;;  %v20817_v30 = vsub.f32 %v20403_v27, %v20625_v5 }
 0x837   : > { %v12833_v19 = vadd.f32 %v17221_v20, %v12832_v36  ;;  %v17225_v36 = vpop.eup %17224  ;;  %17244 = vpow2.f32 %v12753_v54  ;;  %v12723_v40 = vmul.f32 1.442695, %v20797_v49 }
 0x838   : > { %21542 = vst [vmem:[#allocation30_spill] sm:$0xff] %v20802_v14  ;;  %21543 = vst [vmem:[#allocation41_spill] sm:$0xff] %v20807_v16  ;;  %17246 = vpow2.f32 %v12717_v28  ;;  %v12725_v27 = vmul.f32 1.442695, %v20807_v16 }
 0x839   : > { %v12834_v29 = vadd.f32 %v17223_v4, %v12833_v19  ;;  %v12757_v19 = vmul.f32 1.442695, %v20782_v32  ;;  %v17227_v4 = vpop.eup %17226  ;;  %17248 = vpow2.f32 %v12755_v63 }
 0x83a   : > { %v17229_v44 = vpop.eup %17228  ;;  %17250 = vpow2.f32 %v12719_v57 }
 0x83b   : > { %v12835_v20 = vadd.f32 %v17225_v36, %v12834_v29  ;;  %v20812_v29 = vsub.f32 %v21544_v55, %v20715_v12  ;;  %v12759_v36 = vmul.f32 1.442695, %v20792_v43  ;;  %v17231_v54 = vpop.eup %17230  ;;  %17252 = vpow2.f32 %v12757_v19 }
 0x83c   : > { %v17233_v28 = vpop.eup %17232  ;;  %v12761_v55 = vmul.f32 1.442695, %v20802_v14  ;;  %17254 = vpow2.f32 %v12721_v46  ;;  %v20837_v14 = vsub.f32 %v20431_v24, %v20625_v5 }
 0x83d   : > { %v12836_v45 = vadd.f32 %v17227_v4, %v12835_v20  ;;  %21545 = vst [vmem:[#allocation31_spill] sm:$0xff] %v20812_v29  ;;  %v20822_v20 = vsub.f32 %v21546_v34, %v20715_v12  ;;  %v17235_v63 = vpop.eup %17234  ;;  %v20827_v4 = vsub.f32 %v20428_v31, %v20625_v5  ;;  %v12857_v57 = vadd.f32 %v17233_v28, %v17231_v54 }
 0x83e   : > { %v17237_v43 = vpop.eup %17236  ;;  %17256 = vpow2.f32 %v12759_v36  ;;  %v12763_v34 = vmul.f32 1.442695, %v20812_v29  ;;  %v12727_v31 = vmul.f32 1.442695, %v20817_v30 }
 0x83f   : > { %v12837_v32 = vadd.f32 %v17229_v44, %v12836_v45  ;;  %21547 = vst [vmem:[#allocation32_spill] sm:$0xff] %v20822_v20  ;;  %v21548_v44 = vld [vmem:[#allocation33_spill] sm:$0xff]  ;;  %v17239_v19 = vpop.eup %17238  ;;  %17258 = vpow2.f32 %v12723_v40  ;;  %v12858_v46 = vadd.f32 %v17237_v43, %v12857_v57  ;;  %v12765_v36 = vmul.f32 1.442695, %v20822_v20 }
 0x840   : > { %v20832_v45 = vsub.f32 %v21548_v44, %v20715_v12  ;;  %v17241_v16 = vpop.eup %17240  ;;  %17260 = vpow2.f32 %v12761_v55  ;;  %v20847_v44 = vsub.f32 %v20456_v37, %v20625_v5  ;;  %v12729_v24 = vmul.f32 1.442695, %v20827_v4 }
 0x841   : > { %v12838_v49 = vadd.f32 %v17235_v63, %v12837_v32  ;;  %v21549_v32 = vld [vmem:[#allocation34_spill] sm:$0xff]  ;;  %v17243_v63 = vpop.eup %17242  ;;  %17262 = vpow2.f32 %v12725_v27  ;;  %v12859_v40 = vadd.f32 %v17241_v16, %v12858_v46  ;;  %v12731_v37 = vmul.f32 1.442695, %v20837_v14 }
 0x842   : > { %v20842_v28 = vsub.f32 %v21549_v32, %v20715_v12  ;;  %v17245_v29 = vpop.eup %17244  ;;  %17264 = vpow2.f32 %v12763_v34  ;;  %v12767_v55 = vmul.f32 1.442695, %v20832_v45  ;;  %v20857_v32 = vsub.f32 %v20459_v38, %v20625_v5 }
 0x843   : > { %v12839_v54 = vadd.f32 %v17239_v19, %v12838_v49  ;;  %v21550_v49 = vld [vmem:[#allocation35_spill] sm:$0xff]  ;;  %v17247_v19 = vpop.eup %17246  ;;  %17266 = vpow2.f32 %v12727_v31  ;;  %v12860_v27 = vadd.f32 %v17245_v29, %v12859_v40  ;;  %v20862_v46 = vsub.f32 %v20420_v25, %v20715_v12 }
 0x844   : > { %v20852_v57 = vsub.f32 %v21550_v49, %v20715_v12  ;;  %v17249_v20 = vpop.eup %17248  ;;  %17268 = vpow2.f32 %v12765_v36  ;;  %v12769_v34 = vmul.f32 1.442695, %v20842_v28  ;;  %v12733_v38 = vmul.f32 1.442695, %v20847_v44 }
 0x845   : > { %v12840_v43 = vadd.f32 %v17243_v63, %v12839_v54  ;;  %v17251_v54 = vpop.eup %17250  ;;  %v20867_v63 = vsub.f32 %v20484_v9, %v20625_v5  ;;  %17270 = vpow2.f32 %v12729_v24  ;;  %v12861_v31 = vadd.f32 %v17249_v20, %v12860_v27 }
 0x846   : > { %v17253_v49 = vpop.eup %17252  ;;  %v20872_v40 = vsub.f32 %v20423_v8, %v20715_v12  ;;  %17272 = vpow2.f32 %v12767_v55  ;;  %v12771_v25 = vmul.f32 1.442695, %v20852_v57  ;;  %v12735_v9 = vmul.f32 1.442695, %v20857_v32 }
 0x847   : > { %v12841_v16 = vadd.f32 %v17247_v19, %v12840_v43  ;;  %v17255_v36 = vpop.eup %17254  ;;  %v20877_v43 = vsub.f32 %v20504_v2, %v20625_v5  ;;  %17274 = vpow2.f32 %v12731_v37  ;;  %v12862_v24 = vadd.f32 %v17253_v49, %v12861_v31 }
 0x848   : > { %v17257_v19 = vpop.eup %17256  ;;  %v20882_v27 = vsub.f32 %v20448_v23, %v20715_v12  ;;  %17276 = vpow2.f32 %v12769_v34  ;;  %v12773_v8 = vmul.f32 1.442695, %v20862_v46  ;;  %v12737_v2 = vmul.f32 1.442695, %v20867_v63 }
 0x849   : > { %v12842_v29 = vadd.f32 %v17251_v54, %v12841_v16  ;;  %v17259_v55 = vpop.eup %17258  ;;  %v20887_v16 = vsub.f32 %v20507_v59, %v20625_v5  ;;  %17278 = vpow2.f32 %v12733_v38  ;;  %v12863_v37 = vadd.f32 %v17257_v19, %v12862_v24 }
 0x84a   : > { %v17261_v54 = vpop.eup %17260  ;;  %v20892_v49 = vsub.f32 %v20451_v51, %v20715_v12  ;;  %17280 = vpow2.f32 %v12771_v25  ;;  %v12775_v23 = vmul.f32 1.442695, %v20872_v40  ;;  %v12739_v59 = vmul.f32 1.442695, %v20877_v43 }
 0x84b   : > { %v12843_v20 = vadd.f32 %v17255_v36, %v12842_v29  ;;  %v17263_v34 = vpop.eup %17262  ;;  %v20897_v29 = vsub.f32 %v20527_v52, %v20625_v5  ;;  %17282 = vpow2.f32 %v12735_v9  ;;  %v12864_v38 = vadd.f32 %v17261_v54, %v12863_v37 }
 0x84c   : > { %v17265_v36 = vpop.eup %17264  ;;  %v20902_v19 = vsub.f32 %v20476_v21, %v20715_v12  ;;  %17284 = vpow2.f32 %v12773_v8  ;;  %v12777_v51 = vmul.f32 1.442695, %v20882_v27  ;;  %v20908_v9 = vsub.f32 %v20479_v3, %v20715_v12 }
 0x84d   : > { %v12844_v31 = vadd.f32 %v17259_v55, %v12843_v20  ;;  %v17267_v25 = vpop.eup %17266  ;;  %17286 = vpow2.f32 %v12737_v2  ;;  %v12741_v20 = vmul.f32 1.442695, %v20887_v16  ;;  %v12865_v55 = vadd.f32 %v17265_v36, %v12864_v38 }
 0x84e   : > { %v17269_v52 = vpop.eup %17268  ;;  %17288 = vpow2.f32 %v12775_v23  ;;  %v12779_v37 = vmul.f32 1.442695, %v20892_v49  ;;  %v12743_v21 = vmul.f32 1.442695, %v20897_v29  ;;  %v20914_v2 = vsub.f32 %v20496_v0, %v20715_v12 }
 0x84f   : > { %v12845_v24 = vadd.f32 %v17263_v34, %v12844_v31  ;;  %v17271_v54 = vpop.eup %17270  ;;  %17290 = vpow2.f32 %v12739_v59  ;;  %v12866_v8 = vadd.f32 %v17269_v52, %v12865_v55  ;;  %v12781_v38 = vmul.f32 1.442695, %v20902_v19 }
 0x850   : > { %v17273_v31 = vpop.eup %17272  ;;  %17292 = vpow2.f32 %v12777_v51  ;;  %v20919_v59 = vsub.f32 %v20499_v1, %v20715_v12  ;;  %v20924_v51 = vsub.f32 %v20518_v6, %v20715_v12  ;;  %v20934_v6 = vsub.f32 %v20538_v48, %v20715_v12 }
 0x851   : > { %v12846_v5 = vadd.f32 %v17267_v25, %v12845_v24  ;;  %v17275_v36 = vpop.eup %17274  ;;  %17294 = vpow2.f32 %v12741_v20  ;;  %v12867_v3 = vadd.f32 %v17273_v31, %v12866_v8  ;;  %v12783_v25 = vmul.f32 1.442695, %v20908_v9 }
 0x852   : > { %v17277_v23 = vpop.eup %17276  ;;  %17296 = vpow2.f32 %v12779_v37  ;;  %v12785_v20 = vmul.f32 1.442695, %v20914_v2  ;;  %v20929_v37 = vsub.f32 %v20521_v7, %v20715_v12  ;;  %v20939_v7 = vsub.f32 %v20541_v61, %v20715_v12 }
 0x853   : > { %v12847_v34 = vadd.f32 %v17271_v54, %v12846_v5  ;;  %v17279_v55 = vpop.eup %17278  ;;  %17298 = vpow2.f32 %v12743_v21  ;;  %v12868_v52 = vadd.f32 %v17277_v23, %v12867_v3  ;;  %v12787_v21 = vmul.f32 1.442695, %v20919_v59 }
 0x854   : > { %v17281_v0 = vpop.eup %17280  ;;  %17300 = vpow2.f32 %v12781_v38  ;;  %v12789_v38 = vmul.f32 1.442695, %v20924_v51  ;;  %v20944_v48 = vsub.f32 %v20554_v47, %v20715_v12  ;;  %v20949_v61 = vsub.f32 %v20557_v35, %v20715_v12 }
 0x855   : > { %v12848_v24 = vadd.f32 %v17275_v36, %v12847_v34  ;;  %v17283_v54 = vpop.eup %17282  ;;  %v12869_v8 = vadd.f32 %v17281_v0, %v12868_v52  ;;  %17302 = vpow2.f32 %v12783_v25  ;;  %v12791_v25 = vmul.f32 1.442695, %v20929_v37 }
 0x856   : > { %v17285_v31 = vpop.eup %17284  ;;  %17304 = vpow2.f32 %v12785_v20  ;;  %v12793_v20 = vmul.f32 1.442695, %v20934_v6  ;;  %v20954_v47 = vsub.f32 %v20569_v41, %v20715_v12  ;;  %v12799_v35 = vmul.f32 1.442695, %v20949_v61 }
 0x857   : > { %v12849_v5 = vadd.f32 %v17279_v55, %v12848_v24  ;;  %v17287_v34 = vpop.eup %17286  ;;  %v12870_v36 = vadd.f32 %v17285_v31, %v12869_v8  ;;  %17306 = vpow2.f32 %v12787_v21  ;;  %v12795_v21 = vmul.f32 1.442695, %v20939_v7 }
 0x858   : > { %v17289_v3 = vpop.eup %17288  ;;  %17308 = vpow2.f32 %v12789_v38  ;;  %v12797_v38 = vmul.f32 1.442695, %v20944_v48  ;;  %v12801_v41 = vmul.f32 1.442695, %v20954_v47 }
 0x859   : > { %v12850_v1 = vadd.f32 %v17283_v54, %v12849_v5  ;;  %v17291_v24 = vpop.eup %17290  ;;  %v12871_v55 = vadd.f32 %v17289_v3, %v12870_v36  ;;  %17310 = vpow2.f32 %v12791_v25 }
 0x85a   : > { %v17293_v52 = vpop.eup %17292  ;;  %17312 = vpow2.f32 %v12793_v20  ;;  %v20969_v20 = vsub.f32 %v20589_v58, %v20715_v12 }
 0x85b   : > { %v12851_v23 = vadd.f32 %v17287_v34, %v12850_v1  ;;  %v17295_v5 = vpop.eup %17294  ;;  %v12872_v54 = vadd.f32 %v17293_v52, %v12871_v55  ;;  %17314 = vpow2.f32 %v12795_v21 }
 0x85c   : > { %v17297_v8 = vpop.eup %17296  ;;  %17316 = vpow2.f32 %v12797_v38  ;;  %v12807_v58 = vmul.f32 1.442695, %v20969_v20 }
 0x85d   : > { %v12852_v0 = vadd.f32 %v17291_v24, %v12851_v23  ;;  %v17299_v1 = vpop.eup %17298  ;;  %v12873_v34 = vadd.f32 %v17297_v8, %v12872_v54  ;;  %v20964_v54 = vsub.f32 %v20586_v10, %v20715_v12  ;;  %17318 = vpow2.f32 %v12799_v35 }
 0x85e   : > { %v17301_v36 = vpop.eup %17300  ;;  %17320 = vpow2.f32 %v12801_v41 }
 0x85f   : > { %v12853_v31 = vadd.f32 %v17295_v5, %v12852_v0  ;;  %v12874_v23 = vadd.f32 %v17301_v36, %v12873_v34  ;;  %v17303_v24 = vpop.eup %17302  ;;  %v20959_v0 = vsub.f32 %v20572_v42, %v20715_v12  ;;  %v20974_v36 = vsub.f32 %v20600_v22, %v20715_v12 }
 0x860   : > { %v17305_v52 = vpop.eup %17304  ;;  %v12805_v10 = vmul.f32 1.442695, %v20964_v54 }
 0x861   : > { %v12854_v3 = vadd.f32 %v17299_v1, %v12853_v31  ;;  %v12875_v55 = vadd.f32 %v17303_v24, %v12874_v23  ;;  %v17307_v5 = vpop.eup %17306  ;;  %v12803_v42 = vmul.f32 1.442695, %v20959_v0  ;;  %v20979_v23 = vsub.f32 %v20603_v11, %v20715_v12 }
 0x862   : > { %v17309_v31 = vpop.eup %17308  ;;  %v12809_v22 = vmul.f32 1.442695, %v20974_v36 }
 0x863   : > { %12855 = vadd.xlane.f32.xlu1 %v12854_v3  ;;  %v12876_v25 = vadd.f32 %v17305_v52, %v12875_v55  ;;  %v17311_v34 = vpop.eup %17310  ;;  %17322 = vpow2.f32 %v12803_v42  ;;  %v20984_v55 = vsub.f32 %v20609_v62, %v20715_v12  ;;  %v12811_v11 = vmul.f32 1.442695, %v20979_v23 }
 0x864   : > { %v17313_v21 = vpop.eup %17312  ;;  %17324 = vpow2.f32 %v12805_v10 }
 0x865   : > { %v12877_v8 = vadd.f32 %v17307_v5, %v12876_v25  ;;  %v17315_v38 = vpop.eup %17314  ;;  %v20989_v25 = vsub.f32 %v20612_v26, %v20715_v12  ;;  %17326 = vpow2.f32 %v12807_v58  ;;  %v12813_v62 = vmul.f32 1.442695, %v20984_v55 }
 0x866   : > { %v17317_v35 = vpop.eup %17316  ;;  %17328 = vpow2.f32 %v12809_v22 }
 0x867   : > { %v12878_v1 = vadd.f32 %v17309_v31, %v12877_v8  ;;  %v17319_v41 = vpop.eup %17318  ;;  %v20994_v8 = vsub.f32 %v20620_v33, %v20715_v12  ;;  %17330 = vpow2.f32 %v12811_v11 }
 0x868   : > { %v17321_v42 = vpop.eup %17320  ;;  %17332 = vpow2.f32 %v12813_v62 }
 0x869   : > { %v12879_v3 = vadd.f32 %v17311_v34, %v12878_v1  ;;  %v12815_v1 = vmul.f32 1.442695, %v20989_v25  ;;  %v12817_v10 = vmul.f32 1.442695, %v20994_v8 }
 0x86b   : > { %v12880_v24 = vadd.f32 %v17313_v21, %v12879_v3  ;;  %17334 = vpow2.f32 %v12815_v1  ;;  %v21551_v1 = vld [vmem:[#allocation36_spill] sm:$0xff] }
 0x86c   : > { %17336 = vpow2.f32 %v12817_v10 }
 0x86d   : > { %v12881_v52 = vadd.f32 %v17315_v38, %v12880_v24  ;;  %v17323_v26 = vpop.eup %17322 }
 0x86e   : > { %v17325_v21 = vpop.eup %17324 }
 0x86f   : > { %v12882_v5 = vadd.f32 %v17317_v35, %v12881_v52  ;;  %v17327_v24 = vpop.eup %17326 }
 0x870   : > { %v17329_v12 = vpop.eup %17328 }
 0x871   : > { %v12883_v31 = vadd.f32 %v17319_v41, %v12882_v5  ;;  %v17331_v22 = vpop.eup %17330 }
 0x872   : > { %v17333_v35 = vpop.eup %17332 }
 0x873   : > { %v12884_v34 = vadd.f32 %v17321_v42, %v12883_v31 }
 0x875   : > { %v12885_v3 = vadd.f32 %v17323_v26, %v12884_v34  ;;  %v17335_v5 = vpop.eup %17334 }
 0x876   : > { %v17337_v31 = vpop.eup %17336 }
 0x877   : > { %v12886_v58 = vadd.f32 %v17325_v21, %v12885_v3  ;;  %v21552_v3 = vld [vmem:[#allocation9_spill] sm:$0xff] }
 0x879   : > { %v12887_v33 = vadd.f32 %v17327_v24, %v12886_v58  ;;  %v21553_v58 = vld [vmem:[#allocation10_spill] sm:$0xff] }
 0x87b   : > { %v12888_v38 = vadd.f32 %v17329_v12, %v12887_v33  ;;  %v21554_v33 = vld [vmem:[#allocation11_spill] sm:$0xff] }
 0x87d   : > { %v12889_v52 = vadd.f32 %v17331_v22, %v12888_v38  ;;  %v21555_v38 = vld [vmem:[#allocation12_spill] sm:$0xff] }
 0x87f   : > { %v12890_v11 = vadd.f32 %v17333_v35, %v12889_v52  ;;  %v21556_v52 = vld [vmem:[#allocation13_spill] sm:$0xff] }
 0x881   : > { %v12891_v41 = vadd.f32 %v17335_v5, %v12890_v11  ;;  %v21557_v11 = vld [vmem:[#allocation14_spill] sm:$0xff] }
 0x883   : > { %v12892_v42 = vadd.f32 %v17337_v31, %v12891_v41  ;;  %v21558_v41 = vld [vmem:[#allocation15_spill] sm:$0xff] }
 0x885   : > { %12893 = vadd.xlane.f32.xlu1 %v12892_v42  ;;  %v21559_v42 = vld [vmem:[#allocation16_spill] sm:$0xff] }
 0x8f0   : > { %v12856_v62 = vpop.xlane.xlu1 %12855 }
 0x8f1   : > { %17338 = vlog2.f32 %v12856_v62 }
 0x8fb   : > { %v17339_v34 = vpop.eup %17338 }
 0x8fc   : > { %v20999_v26 = vmul.f32 0.6931472, %v17339_v34 }
 0x8fe   : > { %v12899_v10 = vsub.f32 %v21551_v1, %v20999_v26  ;;  %v12900_v21 = vsub.f32 %v21552_v3, %v20999_v26  ;;  %v12901_v24 = vsub.f32 %v21553_v58, %v20999_v26  ;;  %v12902_v12 = vsub.f32 %v21554_v33, %v20999_v26  ;;  %v21560_v3 = vld [vmem:[#allocation17_spill] sm:$0xff] }
 0x8ff   : > { %v12903_v22 = vsub.f32 %v21555_v38, %v20999_v26  ;;  %v12904_v35 = vsub.f32 %v21556_v52, %v20999_v26  ;;  %v12905_v5 = vsub.f32 %v21557_v11, %v20999_v26  ;;  %v12906_v31 = vsub.f32 %v21558_v41, %v20999_v26  ;;  %v21562_v38 = vld [vmem:[#allocation19_spill] sm:$0xff]  ;;  %v21565_v52 = vld [vmem:[#allocation37_spill] sm:$0xff] }
 0x900   : > { %v12907_v62 = vsub.f32 %v21559_v42, %v20999_v26  ;;  %v12908_v34 = vsub.f32 %v20672_v60, %v20999_v26  ;;  %v12909_v1 = vsub.f32 %v20677_v13, %v20999_v26  ;;  %v12910_v58 = vsub.f32 %v21560_v3, %v20999_v26  ;;  %12973 = vst [vmem:[%s21394_s3] sm:$0xff] %v12899_v10  ;;  %v21561_v10 = vld [vmem:[#allocation18_spill] sm:$0xff]  ;;  %v21568_v42 = vld [vmem:[#allocation40_spill] sm:$0xff] }
 0x901   : > { %12974 = vst [vmem:[%s21394_s3 + $0x8] sm:$0xff] %v12900_v21  ;;  %12975 = vst [vmem:[%s21394_s3 + $0x10] sm:$0xff] %v12901_v24  ;;  %v12911_v13 = vsub.f32 %v20687_v39, %v20999_v26  ;;  %v12912_v60 = vsub.f32 %v20692_v50, %v20999_v26  ;;  %v12913_v33 = vsub.f32 %v21561_v10, %v20999_v26  ;;  %v21563_v39 = vld [vmem:[#allocation20_spill] sm:$0xff]  ;;  %v21564_v24 = vld [vmem:[#allocation25_spill] sm:$0xff] }
 0x902   : > { %12976 = vst [vmem:[%s21394_s3 + $0x18] sm:$0xff] %v12902_v12  ;;  %v12914_v21 = vsub.f32 %v21562_v38, %v20999_v26  ;;  %12977 = vst [vmem:[%s21394_s3 + $0x20] sm:$0xff] %v12903_v22  ;;  %v12915_v50 = vsub.f32 %v21563_v39, %v20999_v26  ;;  %v12916_v12 = vsub.f32 %v21564_v24, %v20999_v26 }
 0x903   : > { %12978 = vst [vmem:[%s21394_s3 + $0x28] sm:$0xff] %v12904_v35  ;;  %12979 = vst [vmem:[%s21394_s3 + $0x30] sm:$0xff] %v12905_v5  ;;  %v12917_v22 = vsub.f32 %v20719_v53, %v20999_v26  ;;  %v12918_v35 = vsub.f32 %v21565_v52, %v20999_v26  ;;  %v21566_v53 = vld [vmem:[#allocation38_spill] sm:$0xff]  ;;  %v12920_v5 = vsub.f32 %v20747_v15, %v20999_v26  ;;  %v21576_v52 = vld [vmem:[#allocation28_spill] sm:$0xff] }
 0x904   : > { %12980 = vst [vmem:[%s21394_s3 + $0x38] sm:$0xff] %v12906_v31  ;;  %12981 = vst [vmem:[%s21394_s3 + $0x40] sm:$0xff] %v12907_v62  ;;  %v12919_v11 = vsub.f32 %v21566_v53, %v20999_v26  ;;  %v12921_v41 = vsub.f32 %v20757_v56, %v20999_v26  ;;  %v12922_v31 = vsub.f32 %v20767_v18, %v20999_v26  ;;  %v21567_v56 = vld [vmem:[#allocation39_spill] sm:$0xff]  ;;  %v21577_v53 = vld [vmem:[#allocation29_spill] sm:$0xff] }
 0x905   : > { %12982 = vst [vmem:[%s21394_s3 + $0x48] sm:$0xff] %v12908_v34  ;;  %12983 = vst [vmem:[%s21394_s3 + $0x50] sm:$0xff] %v12909_v1  ;;  %v12923_v15 = vsub.f32 %v20777_v17, %v20999_v26  ;;  %v12924_v18 = vsub.f32 %v21567_v56, %v20999_v26  ;;  %v12925_v62 = vsub.f32 %v21568_v42, %v20999_v26  ;;  %v21569_v34 = vld [vmem:[#allocation41_spill] sm:$0xff]  ;;  %v21580_v56 = vld [vmem:[#allocation32_spill] sm:$0xff] }
 0x906   : > { %12984 = vst [vmem:[%s21394_s3 + $0x58] sm:$0xff] %v12910_v58  ;;  %12985 = vst [vmem:[%s21394_s3 + $0x60] sm:$0xff] %v12911_v13  ;;  %v12926_v1 = vsub.f32 %v21569_v34, %v20999_v26  ;;  %v12927_v17 = vsub.f32 %v20817_v30, %v20999_v26  ;;  %v12928_v3 = vsub.f32 %v20827_v4, %v20999_v26 }
 0x907   : > { %12986 = vst [vmem:[%s21394_s3 + $0x68] sm:$0xff] %v12912_v60  ;;  %12987 = vst [vmem:[%s21394_s3 + $0x70] sm:$0xff] %v12913_v33  ;;  %v12929_v58 = vsub.f32 %v20837_v14, %v20999_v26  ;;  %v12930_v13 = vsub.f32 %v20847_v44, %v20999_v26  ;;  %v12931_v14 = vsub.f32 %v20857_v32, %v20999_v26  ;;  %v21571_v60 = vld [vmem:[#allocation22_spill] sm:$0xff]  ;;  %v21572_v33 = vld [vmem:[#allocation23_spill] sm:$0xff] }
 0x908   : > { %12988 = vst [vmem:[%s21394_s3 + $0x78] sm:$0xff] %v12914_v21  ;;  %12989 = vst [vmem:[%s21394_s3 + $0x80] sm:$0xff] %v12915_v50  ;;  %v12932_v30 = vsub.f32 %v20867_v63, %v20999_v26  ;;  %v12933_v4 = vsub.f32 %v20877_v43, %v20999_v26  ;;  %v12934_v44 = vsub.f32 %v20887_v16, %v20999_v26  ;;  %v21573_v21 = vld [vmem:[#allocation24_spill] sm:$0xff]  ;;  %v21574_v50 = vld [vmem:[#allocation26_spill] sm:$0xff] }
 0x909   : > { %12990 = vst [vmem:[%s21394_s3 + $0x88] sm:$0xff] %v12916_v12  ;;  %12991 = vst [vmem:[%s21394_s3 + $0x90] sm:$0xff] %v12917_v22  ;;  %v12935_v32 = vsub.f32 %v20897_v29, %v20999_v26  ;;  %v21570_v29 = vld [vmem:[#allocation21_spill] sm:$0xff]  ;;  %v21575_v12 = vld [vmem:[#allocation27_spill] sm:$0xff] }
 0x90a   : > { %12992 = vst [vmem:[%s21394_s3 + $0x98] sm:$0xff] %v12918_v35  ;;  %12993 = vst [vmem:[%s21394_s3 + $0xa0] sm:$0xff] %v12919_v11 }
 0x90b   : > { %12994 = vst [vmem:[%s21394_s3 + $0xa8] sm:$0xff] %v12920_v5  ;;  %12995 = vst [vmem:[%s21394_s3 + $0xb0] sm:$0xff] %v12921_v41  ;;  %v21578_v5 = vld [vmem:[#allocation30_spill] sm:$0xff] }
 0x90c   : > { %12996 = vst [vmem:[%s21394_s3 + $0xb8] sm:$0xff] %v12922_v31  ;;  %12997 = vst [vmem:[%s21394_s3 + $0xc0] sm:$0xff] %v12923_v15  ;;  %v21579_v31 = vld [vmem:[#allocation31_spill] sm:$0xff] }
 0x90d   : > { %12998 = vst [vmem:[%s21394_s3 + $0xc8] sm:$0xff] %v12924_v18  ;;  %12999 = vst [vmem:[%s21394_s3 + $0xd0] sm:$0xff] %v12925_v62 }
 0x90e   : > { %13000 = vst [vmem:[%s21394_s3 + $0xd8] sm:$0xff] %v12926_v1  ;;  %13001 = vst [vmem:[%s21394_s3 + $0xe0] sm:$0xff] %v12927_v17 }
 0x90f   : > { %13002 = vst [vmem:[%s21394_s3 + $0xe8] sm:$0xff] %v12928_v3  ;;  %13003 = vst [vmem:[%s21394_s3 + $0xf0] sm:$0xff] %v12929_v58 }
 0x910   : > { %13004 = vst [vmem:[%s21394_s3 + $0xf8] sm:$0xff] %v12930_v13  ;;  %13005 = vst [vmem:[%s21394_s3 + $0x100] sm:$0xff] %v12931_v14 }
 0x911   : > { %13006 = vst [vmem:[%s21394_s3 + $0x108] sm:$0xff] %v12932_v30  ;;  %13007 = vst [vmem:[%s21394_s3 + $0x110] sm:$0xff] %v12933_v4 }
 0x912   : > { %13008 = vst [vmem:[%s21394_s3 + $0x118] sm:$0xff] %v12934_v44  ;;  %13009 = vst [vmem:[%s21394_s3 + $0x120] sm:$0xff] %v12935_v32  ;;  %v12894_v63 = vpop.xlane.xlu1 %12893 }
 0x913   : > { %17340 = vlog2.f32 %v12894_v63 }
 0x91d   : > { %v17341_v43 = vpop.eup %17340 }
 0x91e   : > { %v21186_v16 = vmul.f32 0.6931472, %v17341_v43 }
 0x920   : > { %v12936_v26 = vsub.f32 %v21570_v29, %v21186_v16  ;;  %v12937_v10 = vsub.f32 %v21571_v60, %v21186_v16  ;;  %v12938_v38 = vsub.f32 %v21572_v33, %v21186_v16  ;;  %v12939_v39 = vsub.f32 %v21573_v21, %v21186_v16 }
 0x921   : > { %v12940_v24 = vsub.f32 %v21574_v50, %v21186_v16  ;;  %v12941_v22 = vsub.f32 %v21575_v12, %v21186_v16  ;;  %v12942_v35 = vsub.f32 %v21576_v52, %v21186_v16  ;;  %v12943_v11 = vsub.f32 %v21577_v53, %v21186_v16 }
 0x922   : > { %v12944_v41 = vsub.f32 %v21578_v5, %v21186_v16  ;;  %v12945_v15 = vsub.f32 %v21579_v31, %v21186_v16  ;;  %v12946_v18 = vsub.f32 %v21580_v56, %v21186_v16  ;;  %v12947_v42 = vsub.f32 %v20832_v45, %v21186_v16  ;;  %13010 = vst [vmem:[%s21394_s3 + $0x128] sm:$0xff] %v12936_v26 }
 0x923   : > { %13011 = vst [vmem:[%s21394_s3 + $0x130] sm:$0xff] %v12937_v10  ;;  %13012 = vst [vmem:[%s21394_s3 + $0x138] sm:$0xff] %v12938_v38  ;;  %v12948_v62 = vsub.f32 %v20842_v28, %v21186_v16  ;;  %v12949_v45 = vsub.f32 %v20852_v57, %v21186_v16  ;;  %v12950_v34 = vsub.f32 %v20862_v46, %v21186_v16 }
 0x924   : > { %13013 = vst [vmem:[%s21394_s3 + $0x140] sm:$0xff] %v12939_v39  ;;  %v12951_v1 = vsub.f32 %v20872_v40, %v21186_v16  ;;  %13014 = vst [vmem:[%s21394_s3 + $0x148] sm:$0xff] %v12940_v24  ;;  %v12952_v28 = vsub.f32 %v20882_v27, %v21186_v16  ;;  %v12953_v57 = vsub.f32 %v20892_v49, %v21186_v16 }
 0x925   : > { %13015 = vst [vmem:[%s21394_s3 + $0x150] sm:$0xff] %v12941_v22  ;;  %13016 = vst [vmem:[%s21394_s3 + $0x158] sm:$0xff] %v12942_v35  ;;  %v12954_v46 = vsub.f32 %v20902_v19, %v21186_v16  ;;  %v12955_v40 = vsub.f32 %v20908_v9, %v21186_v16  ;;  %v12956_v27 = vsub.f32 %v20914_v2, %v21186_v16 }
 0x926   : > { %13017 = vst [vmem:[%s21394_s3 + $0x160] sm:$0xff] %v12943_v11  ;;  %13018 = vst [vmem:[%s21394_s3 + $0x168] sm:$0xff] %v12944_v41  ;;  %v12957_v49 = vsub.f32 %v20919_v59, %v21186_v16  ;;  %v12958_v19 = vsub.f32 %v20924_v51, %v21186_v16  ;;  %v12959_v9 = vsub.f32 %v20929_v37, %v21186_v16 }
 0x927   : > { %13019 = vst [vmem:[%s21394_s3 + $0x170] sm:$0xff] %v12945_v15  ;;  %13020 = vst [vmem:[%s21394_s3 + $0x178] sm:$0xff] %v12946_v18  ;;  %v12960_v2 = vsub.f32 %v20934_v6, %v21186_v16  ;;  %v12961_v59 = vsub.f32 %v20939_v7, %v21186_v16  ;;  %v12962_v51 = vsub.f32 %v20944_v48, %v21186_v16 }
 0x928   : > { %13021 = vst [vmem:[%s21394_s3 + $0x180] sm:$0xff] %v12947_v42  ;;  %13022 = vst [vmem:[%s21394_s3 + $0x188] sm:$0xff] %v12948_v62  ;;  %v12963_v37 = vsub.f32 %v20949_v61, %v21186_v16  ;;  %v12964_v6 = vsub.f32 %v20954_v47, %v21186_v16  ;;  %v12965_v7 = vsub.f32 %v20959_v0, %v21186_v16 }
 0x929   : > { %13023 = vst [vmem:[%s21394_s3 + $0x190] sm:$0xff] %v12949_v45  ;;  %13024 = vst [vmem:[%s21394_s3 + $0x198] sm:$0xff] %v12950_v34  ;;  %v12966_v48 = vsub.f32 %v20964_v54, %v21186_v16  ;;  %v12967_v61 = vsub.f32 %v20969_v20, %v21186_v16  ;;  %v12968_v47 = vsub.f32 %v20974_v36, %v21186_v16 }
 0x92a   : > { %13025 = vst [vmem:[%s21394_s3 + $0x1a0] sm:$0xff] %v12951_v1  ;;  %13026 = vst [vmem:[%s21394_s3 + $0x1a8] sm:$0xff] %v12952_v28  ;;  %v12969_v0 = vsub.f32 %v20979_v23, %v21186_v16  ;;  %v12970_v54 = vsub.f32 %v20984_v55, %v21186_v16  ;;  %v12971_v20 = vsub.f32 %v20989_v25, %v21186_v16 }
 0x92b   : > { %13027 = vst [vmem:[%s21394_s3 + $0x1b0] sm:$0xff] %v12953_v57  ;;  %13028 = vst [vmem:[%s21394_s3 + $0x1b8] sm:$0xff] %v12954_v46  ;;  %v12972_v36 = vsub.f32 %v20994_v8, %v21186_v16 }
 0x92c   : > { %13029 = vst [vmem:[%s21394_s3 + $0x1c0] sm:$0xff] %v12955_v40  ;;  %13030 = vst [vmem:[%s21394_s3 + $0x1c8] sm:$0xff] %v12956_v27 }
 0x92d   : > { %13031 = vst [vmem:[%s21394_s3 + $0x1d0] sm:$0xff] %v12957_v49  ;;  %13032 = vst [vmem:[%s21394_s3 + $0x1d8] sm:$0xff] %v12958_v19 }
 0x92e   : > { %13033 = vst [vmem:[%s21394_s3 + $0x1e0] sm:$0xff] %v12959_v9  ;;  %13034 = vst [vmem:[%s21394_s3 + $0x1e8] sm:$0xff] %v12960_v2 }
 0x92f   : > { %13035 = vst [vmem:[%s21394_s3 + $0x1f0] sm:$0xff] %v12961_v59  ;;  %13036 = vst [vmem:[%s21394_s3 + $0x1f8] sm:$0xff] %v12962_v51 }
 0x930   : > { %13037 = vst [vmem:[%s21394_s3 + $0x200] sm:$0xff] %v12963_v37  ;;  %13038 = vst [vmem:[%s21394_s3 + $0x208] sm:$0xff] %v12964_v6 }
 0x931   : > { %13039 = vst [vmem:[%s21394_s3 + $0x210] sm:$0xff] %v12965_v7  ;;  %13040 = vst [vmem:[%s21394_s3 + $0x218] sm:$0xff] %v12966_v48 }
 0x932   : > { %13041 = vst [vmem:[%s21394_s3 + $0x220] sm:$0xff] %v12967_v61  ;;  %13042 = vst [vmem:[%s21394_s3 + $0x228] sm:$0xff] %v12968_v47 }
 0x933   : > { %13043 = vst [vmem:[%s21394_s3 + $0x230] sm:$0xff] %v12969_v0  ;;  %13044 = vst [vmem:[%s21394_s3 + $0x238] sm:$0xff] %v12970_v54 }
 0x934   : > { %13045 = vst [vmem:[%s21394_s3 + $0x240] sm:$0xff] %v12971_v20  ;;  %13046 = vst [vmem:[%s21394_s3 + $0x248] sm:$0xff] %v12972_v36 }
 0x935 PF: > { %s17_s17 = sadd.s32 1, %s17452_s17   ;;  %s21581_s12 = smov %s17436_s13 }
 0x936   : > { %p14_p6 = scmp.ge.s32.totalorder %s17_s17, 10   ;;  %s21582_s13 = smov %s17440_s14 }
 0x937   : > { %s21583_s14 = smov %s17538_s25  ;;  %s21584_s15 = smov %s17448_s16 }
 0x938   : > { %s21585_s16 = smov %s21587_s19  ;;  %16 = sbr.rel (!%p14_p6) target bundleno = 5 (0x5), region = 124 }
 0x93f   :  { %13071 = vsyncpa [#allocation4], 1 }
 0x940   :  { %13073 = vsyncpa [#allocation4 + $0x1], 1 }
 0x941   :  { %13074 = vsyncpa [#allocation6], 1 }

</bundles_post_ra>
